<compile_context>
chip_gen: v5e
topology: v5e:2x2
jax: 0.10.0
libtpu: 0.0.40
codegen_flags: <defaults>
</compile_context>

<pallas_src>
import functools
import numpy as np
import jax
import jax.numpy as jnp
from jax.experimental import pallas as pl
from jax.experimental.pallas import tpu as pltpu

TM = 512   # max M tile
TN = 256   # max N tile
TK = 256   # preferred K (reduction) tile -- feeds the 256x256 MXU on v6e/v7x


def _round_up(x, m):
    return (x + m - 1) // m * m


def _pad2(x, rows, cols):
    pr, pc = rows - x.shape[0], cols - x.shape[1]
    if pr == 0 and pc == 0:
        return x
    return jnp.pad(x, ((0, pr), (0, pc)))


# ----------------------------- Pallas kernel --------------------------------

def _matmul_bn_kernel(*refs, relu, has_residual):
    # refs: a, b, scale_bias, [residual], out, acc_scratch
    if has_residual:
        a_ref, b_ref, sb_ref, r_ref, o_ref, acc_ref = refs
    else:
        a_ref, b_ref, sb_ref, o_ref, acc_ref = refs
        r_ref = None
    k = pl.program_id(2)

    @pl.when(k == 0)
    def _():
        acc_ref[...] = jnp.zeros_like(acc_ref)

    acc_ref[...] += jnp.dot(a_ref[...], b_ref[...],
                            preferred_element_type=jnp.float32)

    @pl.when(k == pl.num_programs(2) - 1)
    def _():
        # Epilogue entirely in f32 (v5e VPU has no bf16 path); single cast at
        # the final store.
        y = acc_ref[...]
        y = y * sb_ref[0:1, :] + sb_ref[1:2, :]
        if has_residual:
            y = y + r_ref[...].astype(jnp.float32)
        if relu:
            y = jnp.maximum(y, 0.0)
        o_ref[...] = y.astype(o_ref.dtype)


# ------------------------------ wrappers -------------------------------------

def matmul_bn_act(a, b_p, sb_p, *, n_out, residual=None, relu=False):
    """act((a @ b) * scale + bias (+ residual)), bf16 in / bf16 out, f32 acc.

    a: [M, K] (usually bf16, already K-padded by the im2col glue).
    b_p: [Kp, Np] bf16, pre-padded/cast at build time.
    sb_p: [2, Np] f32 (row 0 = scale, row 1 = bias), pre-padded.
    Returns [M, n_out] bf16 (only slices when padding actually exists).
    """
    M, K = a.shape
    Kp, Np = b_p.shape
    has_res = residual is not None

    tm = min(TM, _round_up(M, 16))   # multiple of 16: bf16 sublane packing
    tn = TN if Np % TN == 0 else 128
    Mp = _round_up(M, tm)

    # v7x: guarantee >= 2 parallel (i, j) blocks so both TensorCores get work.
    if (Mp // tm) * (Np // tn) < 2:
        if Np >= 2 * 128:
            tn = 128
        elif Mp % 32 == 0 and Mp >= 32:
            tm = Mp // 2

    tk = TK if Kp % TK == 0 else 128
    tk = min(tk, Kp)

    if a.dtype != jnp.bfloat16:
        a = a.astype(jnp.bfloat16)
    if (M, K) != (Mp, Kp):
        a = _pad2(a, Mp, Kp)

    in_arrays = [a, b_p, sb_p]
    in_specs = [
        pl.BlockSpec((tm, tk), lambda i, j, k: (i, k)),
        pl.BlockSpec((tk, tn), lambda i, j, k: (k, j)),
        pl.BlockSpec((2, tn), lambda i, j, k: (0, j)),
    ]
    if has_res:
        r = residual
        if r.dtype != jnp.bfloat16:
            r = r.astype(jnp.bfloat16)
        r = _pad2(r, Mp, Np)
        in_arrays.append(r)
        # Residual block index is constant across K: only DMA'd on (i, j) change.
        in_specs.append(pl.BlockSpec((tm, tn), lambda i, j, k: (i, j)))

    bytes_accessed = (Mp * Kp * 2 + Kp * Np * 2 + Mp * Np * 2
                      + (Mp * Np * 2 if has_res else 0) + 2 * Np * 4)
    cost = pl.CostEstimate(flops=2 * Mp * Kp * Np, transcendentals=0,
                           bytes_accessed=bytes_accessed)

    out = pl.pallas_call(
        functools.partial(_matmul_bn_kernel, relu=relu, has_residual=has_res),
        out_shape=jax.ShapeDtypeStruct((Mp, Np), jnp.bfloat16),
        grid_spec=pltpu.PrefetchScalarGridSpec(
            num_scalar_prefetch=0,
            grid=(Mp // tm, Np // tn, Kp // tk),   # K (reduction) innermost
            in_specs=in_specs,
            out_specs=pl.BlockSpec((tm, tn), lambda i, j, k: (i, j)),
            scratch_shapes=[pltpu.VMEM((tm, tn), jnp.float32)],
        ),
        compiler_params=pltpu.CompilerParams(
            dimension_semantics=("parallel", "parallel", "arbitrary")),
        cost_estimate=cost,
    )(*in_arrays)

    if (Mp, Np) != (M, n_out):
        out = out[:M, :n_out]
    return out


def _im2col_bf16(x_nhwc, kh, kw, stride, pad, kp):
    """Patch matrix in bf16, already padded to kp columns (one materialization)."""
    N, H, W, C = x_nhwc.shape
    Ho = (H + 2 * pad - kh) // stride + 1
    Wo = (W + 2 * pad - kw) // stride + 1
    xp = jnp.pad(x_nhwc.astype(jnp.bfloat16),
                 ((0, 0), (pad, pad), (pad, pad), (0, 0)))
    cols = []
    for i in range(kh):
        for j in range(kw):
            cols.append(xp[:, i:i + stride * Ho:stride, j:j + stride * Wo:stride, :])
    K = kh * kw * C
    if kp > K:
        cols.append(jnp.zeros((N, Ho, Wo, kp - K), jnp.bfloat16))
    patches = jnp.concatenate(cols, axis=3)      # [N, Ho, Wo, Kp], (kh,kw,C) order
    return patches.reshape(N * Ho * Wo, kp), Ho, Wo


def conv_bn_act(x_nhwc, pack, *, kh, kw, stride, pad, cout, relu, residual=None):
    N, H, W, Cin = x_nhwc.shape
    Kp = pack["b"].shape[0]
    if kh == 1 and kw == 1:
        # 1x1 conv (downsample path): strided view + reshape, no im2col.
        xs = x_nhwc[:, ::stride, ::stride, :]
        Ho, Wo = xs.shape[1], xs.shape[2]
        patches = xs.reshape(N * Ho * Wo, Cin).astype(jnp.bfloat16)
    else:
        patches, Ho, Wo = _im2col_bf16(x_nhwc, kh, kw, stride, pad, Kp)
    res = None
    if residual is not None:
        res = residual.reshape(N * Ho * Wo, residual.shape[-1])
    out = matmul_bn_act(patches, pack["b"], pack["sb"], n_out=cout,
                        residual=res, relu=relu)
    return out.reshape(N, Ho, Wo, cout)


def maxpool_3x3_s2_p1(x_nhwc):
    # Single-pass windowed max with -inf padding (exact PyTorch MaxPool2d
    # semantics); avoids materializing 9 copies of the activation in HBM.
    return jax.lax.reduce_window(
        x_nhwc, jnp.array(-jnp.inf, x_nhwc.dtype), jax.lax.max,
        window_dimensions=(1, 3, 3, 1),
        window_strides=(1, 2, 2, 1),
        padding=((0, 0), (1, 1), (1, 1), (0, 0)))


# --------------------------- parameters (synthetic) --------------------------

STAGES = [(64, 64, 1), (64, 128, 2), (128, 256, 2), (256, 512, 2)]


def _pack_matmul(wmat, scale, bias):
    # Pre-pad (128-granular K and N) + pre-cast once at build time; pack
    # scale/bias into a single (2, Np) input.
    K, N = wmat.shape
    Kp, Np = _round_up(K, 128), _round_up(N, 128)
    b_p = _pad2(wmat, Kp, Np).astype(jnp.bfloat16)
    sb_p = _pad2(jnp.stack([scale, bias], axis=0), 2, Np).astype(jnp.float32)
    return {"b": b_p, "sb": sb_p}


def _conv_bn_pack(key, cin, cout, k):
    k1, k2, k3, k4, k5 = jax.random.split(key, 5)
    w = jax.random.normal(k1, (cout, cin, k, k), jnp.float32) / np.sqrt(cin * k * k)
    gamma = 1.0 + 0.1 * jax.random.normal(k2, (cout,), jnp.float32)
    beta = 0.1 * jax.random.normal(k3, (cout,), jnp.float32)
    rmean = 0.1 * jax.random.normal(k4, (cout,), jnp.float32)
    rvar = 0.5 + jnp.abs(jax.random.normal(k5, (cout,), jnp.float32))
    scale = gamma / jnp.sqrt(rvar + 1e-5)      # BN folded into matmul epilogue
    bias = beta - rmean * scale
    # K ordering = (kh, kw, Cin), matching _im2col_bf16.
    wmat = jnp.transpose(w, (2, 3, 1, 0)).reshape(k * k * cin, cout)
    return _pack_matmul(wmat, scale, bias)


def make_resnet18_params(key):
    keys = iter(jax.random.split(key, 64))
    p = {"conv1": _conv_bn_pack(next(keys), 3, 64, 7)}
    layers = []
    for (cin, cout, stride) in STAGES:
        blocks = []
        for b in range(2):
            s = stride if b == 0 else 1
            ci = cin if b == 0 else cout
            blk = {
                "conv1": _conv_bn_pack(next(keys), ci, cout, 3),
                "conv2": _conv_bn_pack(next(keys), cout, cout, 3),
            }
            if s != 1 or ci != cout:
                blk["down"] = _conv_bn_pack(next(keys), ci, cout, 1)
            blocks.append(blk)
        layers.append(blocks)
    p["layers"] = layers
    kf1, kf2 = jax.random.split(next(keys))
    # FC runs as a plain XLA dot (M = batch is tiny); keep f32 weights.
    p["fc"] = {
        "w": jax.random.normal(kf1, (512, 1000), jnp.float32) / np.sqrt(512.0),
        "b": 0.01 * jax.random.normal(kf2, (1000,), jnp.float32),
    }
    return p


# ------------------------------- forward ------------------------------------

def basic_block(x, blk, *, stride, cout):
    identity = x
    out = conv_bn_act(x, blk["conv1"], kh=3, kw=3, stride=stride, pad=1,
                      cout=cout, relu=True)
    if "down" in blk:
        identity = conv_bn_act(x, blk["down"], kh=1, kw=1, stride=stride, pad=0,
                               cout=cout, relu=False)
    # second conv: BN + residual add + ReLU fused in the Pallas epilogue
    out = conv_bn_act(out, blk["conv2"], kh=3, kw=3, stride=1, pad=1,
                      cout=cout, relu=True, residual=identity)
    return out


def my_script_module_forward(x_nchw, params, means):
    # (input - means) as a single fused XLA elementwise op in the layout glue.
    # (Folding it into conv1's bias is not exactly equivalent at zero-padded
    #  borders, so the explicit subtraction is kept for correctness.)
    x = jnp.transpose(x_nchw - means, (0, 2, 3, 1))          # NCHW -> NHWC
    x = conv_bn_act(x, params["conv1"], kh=7, kw=7, stride=2, pad=3,
                    cout=64, relu=True)
    x = maxpool_3x3_s2_p1(x)
    for (cin, cout, stride), blocks in zip(STAGES, params["layers"]):
        x = basic_block(x, blocks[0], stride=stride, cout=cout)
        x = basic_block(x, blocks[1], stride=1, cout=cout)
    feat = jnp.mean(x.astype(jnp.float32), axis=(1, 2))      # global avg pool
    logits = feat @ params["fc"]["w"] + params["fc"]["b"]    # tiny-M FC in XLA
    return logits


if __name__ == "__main__":
    key = jax.random.PRNGKey(0)
    kx, kp = jax.random.split(key)
    # small input consistent with the module: 3 channels (means has 3), 32x32 spatial
    x = jax.random.uniform(kx, (2, 3, 32, 32), jnp.float32) * 255.0
    params = make_resnet18_params(kp)
    means = jnp.array([103.939, 116.779, 123.68], jnp.float32).reshape(1, 3, 1, 1)

    fwd = jax.jit(my_script_module_forward)
    out = fwd(x, params, means)
    out = jax.block_until_ready(out)
    assert out.shape == (2, 1000), out.shape
    print("KERNEL_OK")
</pallas_src>

<mosaic_0001>
module attributes {stable_mosaic.version = 11 : i64} {
  func.func @_matmul_bn_kernel(%arg0: i32, %arg1: i32, %arg2: i32, %arg3: memref<256x256xbf16, #tpu.memory_space<vmem>>, %arg4: memref<256x128xbf16, #tpu.memory_space<vmem>>, %arg5: memref<2x128xf32, #tpu.memory_space<vmem>>, %arg6: memref<256x128xbf16, #tpu.memory_space<vmem>>, %arg7: memref<256x128xf32, #tpu.memory_space<vmem>>) attributes {dimension_semantics = [#tpu.dimension_semantics<parallel>, #tpu.dimension_semantics<parallel>, #tpu.dimension_semantics<arbitrary>], iteration_bounds = array<i64: 2, 1, 1>, scalar_prefetch = 0 : i64, scratch_operands = 1 : i64, tpu.core_type = #tpu.core_type<tc>, window_params = [{transform_indices = @transform_0, window_bounds = array<i64: 256, 256>}, {transform_indices = @transform_1, window_bounds = array<i64: 256, 128>}, {transform_indices = @transform_2, window_bounds = array<i64: 2, 128>}, {transform_indices = @transform_3, window_bounds = array<i64: 256, 128>}]} {
    %c0_i32 = arith.constant 0 : i32
    %0 = arith.cmpi eq, %arg2, %c0_i32 : i32
    %1 = arith.extui %0 : i1 to i32
    %c0_i32_0 = arith.constant 0 : i32
    %2 = arith.cmpi ne, %1, %c0_i32_0 : i32
    scf.if %2 {
      %cst_10 = arith.constant 0.000000e+00 : f32
      %12 = vector.broadcast %cst_10 : f32 to vector<256x128xf32>
      %c0_11 = arith.constant 0 : index
      %c0_12 = arith.constant 0 : index
      %13 = vector.load %arg7[%c0_11, %c0_12] : memref<256x128xf32, #tpu.memory_space<vmem>>, vector<256x128xf32>
      tpu.vector_store %arg7[%c0_11, %c0_12], %12 {strides = array<i32>} : memref<256x128xf32, #tpu.memory_space<vmem>>, vector<256x128xf32>,
    } else {
    }
    %c0 = arith.constant 0 : index
    %c0_1 = arith.constant 0 : index
    %3 = vector.load %arg7[%c0, %c0_1] : memref<256x128xf32, #tpu.memory_space<vmem>>, vector<256x128xf32>
    %c0_2 = arith.constant 0 : index
    %c0_3 = arith.constant 0 : index
    %4 = vector.load %arg3[%c0_2, %c0_3] : memref<256x256xbf16, #tpu.memory_space<vmem>>, vector<256x256xbf16>
    %c0_4 = arith.constant 0 : index
    %c0_5 = arith.constant 0 : index
    %5 = vector.load %arg4[%c0_4, %c0_5] : memref<256x128xbf16, #tpu.memory_space<vmem>>, vector<256x128xbf16>
    %cst = arith.constant dense<0.000000e+00> : vector<256x128xf32>
    %6 = tpu.matmul %4, %5, %cst {dimension_numbers = #tpu.dot_dimension_numbers<[1], [0], [0], [1], [0, 0, 1, 1], [], []>} : vector<256x256xbf16>, vector<256x128xbf16>, vector<256x128xf32> -> vector<256x128xf32>
    %7 = arith.addf %3, %6 : vector<256x128xf32>
    %c0_6 = arith.constant 0 : index
    %c0_7 = arith.constant 0 : index
    %8 = vector.load %arg7[%c0_6, %c0_7] : memref<256x128xf32, #tpu.memory_space<vmem>>, vector<256x128xf32>
    tpu.vector_store %arg7[%c0_6, %c0_7], %7 {strides = array<i32>} : memref<256x128xf32, #tpu.memory_space<vmem>>, vector<256x128xf32>,
    %c0_i32_8 = arith.constant 0 : i32
    %9 = arith.cmpi eq, %arg2, %c0_i32_8 : i32
    %10 = arith.extui %9 : i1 to i32
    %c0_i32_9 = arith.constant 0 : i32
    %11 = arith.cmpi ne, %10, %c0_i32_9 : i32
    scf.if %11 {
      %c0_10 = arith.constant 0 : index
      %c0_11 = arith.constant 0 : index
      %12 = vector.load %arg7[%c0_10, %c0_11] : memref<256x128xf32, #tpu.memory_space<vmem>>, vector<256x128xf32>
      %c0_12 = arith.constant 0 : index
      %c0_13 = arith.constant 0 : index
      %13 = vector.load %arg5[%c0_12, %c0_13] : memref<2x128xf32, #tpu.memory_space<vmem>>, vector<1x128xf32>
      %14 = vector.broadcast %13 : vector<1x128xf32> to vector<256x128xf32>
      %15 = arith.mulf %12, %14 : vector<256x128xf32>
      %c1 = arith.constant 1 : index
      %c0_14 = arith.constant 0 : index
      %16 = vector.load %arg5[%c1, %c0_14] : memref<2x128xf32, #tpu.memory_space<vmem>>, vector<1x128xf32>
      %17 = vector.broadcast %16 : vector<1x128xf32> to vector<256x128xf32>
      %18 = arith.addf %15, %17 : vector<256x128xf32>
      %cst_15 = arith.constant 0.000000e+00 : f32
      %19 = vector.broadcast %cst_15 : f32 to vector<256x128xf32>
      %20 = arith.maximumf %18, %19 : vector<256x128xf32>
      %21 = arith.truncf %20 : vector<256x128xf32> to vector<256x128xbf16>
      %c0_16 = arith.constant 0 : index
      %c0_17 = arith.constant 0 : index
      %22 = vector.load %arg6[%c0_16, %c0_17] : memref<256x128xbf16, #tpu.memory_space<vmem>>, vector<256x128xbf16>
      tpu.vector_store %arg6[%c0_16, %c0_17], %21 {strides = array<i32>} : memref<256x128xbf16, #tpu.memory_space<vmem>>, vector<256x128xbf16>,
    } else {
    }
    return
  }
  func.func @transform_0(%arg0: i32, %arg1: i32, %arg2: i32) -> (i32, i32) {
    %c0_i32 = arith.constant 0 : i32
    return %arg0, %arg2 : i32, i32
  }
  func.func @transform_1(%arg0: i32, %arg1: i32, %arg2: i32) -> (i32, i32) {
    %c0_i32 = arith.constant 0 : i32
    return %arg2, %arg1 : i32, i32
  }
  func.func @transform_2(%arg0: i32, %arg1: i32, %arg2: i32) -> (i32, i32) {
    %c0_i32 = arith.constant 0 : i32
    %c0_i32_0 = arith.constant 0 : i32
    return %c0_i32, %arg1 : i32, i32
  }
  func.func @transform_3(%arg0: i32, %arg1: i32, %arg2: i32) -> (i32, i32) {
    %c0_i32 = arith.constant 0 : i32
    return %arg0, %arg1 : i32, i32
  }
}

module attributes {stable_mosaic.version = 11 : i64} {
  func.func @_matmul_bn_kernel(%arg0: i32, %arg1: i32, %arg2: i32, %arg3: memref<64x128xbf16, #tpu.memory_space<vmem>>, %arg4: memref<128x128xbf16, #tpu.memory_space<vmem>>, %arg5: memref<2x128xf32, #tpu.memory_space<vmem>>, %arg6: memref<64x128xbf16, #tpu.memory_space<vmem>>, %arg7: memref<64x128xf32, #tpu.memory_space<vmem>>) attributes {dimension_semantics = [#tpu.dimension_semantics<parallel>, #tpu.dimension_semantics<parallel>, #tpu.dimension_semantics<arbitrary>], iteration_bounds = array<i64: 2, 1, 5>, scalar_prefetch = 0 : i64, scratch_operands = 1 : i64, tpu.core_type = #tpu.core_type<tc>, window_params = [{transform_indices = @transform_0, window_bounds = array<i64: 64, 128>}, {transform_indices = @transform_1, window_bounds = array<i64: 128, 128>}, {transform_indices = @transform_2, window_bounds = array<i64: 2, 128>}, {transform_indices = @transform_3, window_bounds = array<i64: 64, 128>}]} {
    %c0_i32 = arith.constant 0 : i32
    %0 = arith.cmpi eq, %arg2, %c0_i32 : i32
    %1 = arith.extui %0 : i1 to i32
    %c0_i32_0 = arith.constant 0 : i32
    %2 = arith.cmpi ne, %1, %c0_i32_0 : i32
    scf.if %2 {
      %cst_9 = arith.constant 0.000000e+00 : f32
      %12 = vector.broadcast %cst_9 : f32 to vector<64x128xf32>
      %c0_10 = arith.constant 0 : index
      %c0_11 = arith.constant 0 : index
      %13 = vector.load %arg7[%c0_10, %c0_11] : memref<64x128xf32, #tpu.memory_space<vmem>>, vector<64x128xf32>
      tpu.vector_store %arg7[%c0_10, %c0_11], %12 {strides = array<i32>} : memref<64x128xf32, #tpu.memory_space<vmem>>, vector<64x128xf32>,
    } else {
    }
    %c0 = arith.constant 0 : index
    %c0_1 = arith.constant 0 : index
    %3 = vector.load %arg7[%c0, %c0_1] : memref<64x128xf32, #tpu.memory_space<vmem>>, vector<64x128xf32>
    %c0_2 = arith.constant 0 : index
    %c0_3 = arith.constant 0 : index
    %4 = vector.load %arg3[%c0_2, %c0_3] : memref<64x128xbf16, #tpu.memory_space<vmem>>, vector<64x128xbf16>
    %c0_4 = arith.constant 0 : index
    %c0_5 = arith.constant 0 : index
    %5 = vector.load %arg4[%c0_4, %c0_5] : memref<128x128xbf16, #tpu.memory_space<vmem>>, vector<128x128xbf16>
    %cst = arith.constant dense<0.000000e+00> : vector<64x128xf32>
    %6 = tpu.matmul %4, %5, %cst {dimension_numbers = #tpu.dot_dimension_numbers<[1], [0], [0], [1], [0, 0, 1, 1], [], []>} : vector<64x128xbf16>, vector<128x128xbf16>, vector<64x128xf32> -> vector<64x128xf32>
    %7 = arith.addf %3, %6 : vector<64x128xf32>
    %c0_6 = arith.constant 0 : index
    %c0_7 = arith.constant 0 : index
    %8 = vector.load %arg7[%c0_6, %c0_7] : memref<64x128xf32, #tpu.memory_space<vmem>>, vector<64x128xf32>
    tpu.vector_store %arg7[%c0_6, %c0_7], %7 {strides = array<i32>} : memref<64x128xf32, #tpu.memory_space<vmem>>, vector<64x128xf32>,
    %c4_i32 = arith.constant 4 : i32
    %9 = arith.cmpi eq, %arg2, %c4_i32 : i32
    %10 = arith.extui %9 : i1 to i32
    %c0_i32_8 = arith.constant 0 : i32
    %11 = arith.cmpi ne, %10, %c0_i32_8 : i32
    scf.if %11 {
      %c0_9 = arith.constant 0 : index
      %c0_10 = arith.constant 0 : index
      %12 = vector.load %arg7[%c0_9, %c0_10] : memref<64x128xf32, #tpu.memory_space<vmem>>, vector<64x128xf32>
      %c0_11 = arith.constant 0 : index
      %c0_12 = arith.constant 0 : index
      %13 = vector.load %arg5[%c0_11, %c0_12] : memref<2x128xf32, #tpu.memory_space<vmem>>, vector<1x128xf32>
      %14 = vector.broadcast %13 : vector<1x128xf32> to vector<64x128xf32>
      %15 = arith.mulf %12, %14 : vector<64x128xf32>
      %c1 = arith.constant 1 : index
      %c0_13 = arith.constant 0 : index
      %16 = vector.load %arg5[%c1, %c0_13] : memref<2x128xf32, #tpu.memory_space<vmem>>, vector<1x128xf32>
      %17 = vector.broadcast %16 : vector<1x128xf32> to vector<64x128xf32>
      %18 = arith.addf %15, %17 : vector<64x128xf32>
      %cst_14 = arith.constant 0.000000e+00 : f32
      %19 = vector.broadcast %cst_14 : f32 to vector<64x128xf32>
      %20 = arith.maximumf %18, %19 : vector<64x128xf32>
      %21 = arith.truncf %20 : vector<64x128xf32> to vector<64x128xbf16>
      %c0_15 = arith.constant 0 : index
      %c0_16 = arith.constant 0 : index
      %22 = vector.load %arg6[%c0_15, %c0_16] : memref<64x128xbf16, #tpu.memory_space<vmem>>, vector<64x128xbf16>
      tpu.vector_store %arg6[%c0_15, %c0_16], %21 {strides = array<i32>} : memref<64x128xbf16, #tpu.memory_space<vmem>>, vector<64x128xbf16>,
    } else {
    }
    return
  }
  func.func @transform_0(%arg0: i32, %arg1: i32, %arg2: i32) -> (i32, i32) {
    %c0_i32 = arith.constant 0 : i32
    return %arg0, %arg2 : i32, i32
  }
  func.func @transform_1(%arg0: i32, %arg1: i32, %arg2: i32) -> (i32, i32) {
    %c0_i32 = arith.constant 0 : i32
    return %arg2, %arg1 : i32, i32
  }
  func.func @transform_2(%arg0: i32, %arg1: i32, %arg2: i32) -> (i32, i32) {
    %c0_i32 = arith.constant 0 : i32
    %c0_i32_0 = arith.constant 0 : i32
    return %c0_i32, %arg1 : i32, i32
  }
  func.func @transform_3(%arg0: i32, %arg1: i32, %arg2: i32) -> (i32, i32) {
    %c0_i32 = arith.constant 0 : i32
    return %arg0, %arg1 : i32, i32
  }
}

module attributes {stable_mosaic.version = 11 : i64} {
  func.func @_matmul_bn_kernel(%arg0: i32, %arg1: i32, %arg2: i32, %arg3: memref<64x128xbf16, #tpu.memory_space<vmem>>, %arg4: memref<128x128xbf16, #tpu.memory_space<vmem>>, %arg5: memref<2x128xf32, #tpu.memory_space<vmem>>, %arg6: memref<64x128xbf16, #tpu.memory_space<vmem>>, %arg7: memref<64x128xbf16, #tpu.memory_space<vmem>>, %arg8: memref<64x128xf32, #tpu.memory_space<vmem>>) attributes {dimension_semantics = [#tpu.dimension_semantics<parallel>, #tpu.dimension_semantics<parallel>, #tpu.dimension_semantics<arbitrary>], iteration_bounds = array<i64: 2, 1, 5>, scalar_prefetch = 0 : i64, scratch_operands = 1 : i64, tpu.core_type = #tpu.core_type<tc>, window_params = [{transform_indices = @transform_0, window_bounds = array<i64: 64, 128>}, {transform_indices = @transform_1, window_bounds = array<i64: 128, 128>}, {transform_indices = @transform_2, window_bounds = array<i64: 2, 128>}, {transform_indices = @transform_3, window_bounds = array<i64: 64, 128>}, {transform_indices = @transform_4, window_bounds = array<i64: 64, 128>}]} {
    %c0_i32 = arith.constant 0 : i32
    %0 = arith.cmpi eq, %arg2, %c0_i32 : i32
    %1 = arith.extui %0 : i1 to i32
    %c0_i32_0 = arith.constant 0 : i32
    %2 = arith.cmpi ne, %1, %c0_i32_0 : i32
    scf.if %2 {
      %cst_9 = arith.constant 0.000000e+00 : f32
      %12 = vector.broadcast %cst_9 : f32 to vector<64x128xf32>
      %c0_10 = arith.constant 0 : index
      %c0_11 = arith.constant 0 : index
      %13 = vector.load %arg8[%c0_10, %c0_11] : memref<64x128xf32, #tpu.memory_space<vmem>>, vector<64x128xf32>
      tpu.vector_store %arg8[%c0_10, %c0_11], %12 {strides = array<i32>} : memref<64x128xf32, #tpu.memory_space<vmem>>, vector<64x128xf32>,
    } else {
    }
    %c0 = arith.constant 0 : index
    %c0_1 = arith.constant 0 : index
    %3 = vector.load %arg8[%c0, %c0_1] : memref<64x128xf32, #tpu.memory_space<vmem>>, vector<64x128xf32>
    %c0_2 = arith.constant 0 : index
    %c0_3 = arith.constant 0 : index
    %4 = vector.load %arg3[%c0_2, %c0_3] : memref<64x128xbf16, #tpu.memory_space<vmem>>, vector<64x128xbf16>
    %c0_4 = arith.constant 0 : index
    %c0_5 = arith.constant 0 : index
    %5 = vector.load %arg4[%c0_4, %c0_5] : memref<128x128xbf16, #tpu.memory_space<vmem>>, vector<128x128xbf16>
    %cst = arith.constant dense<0.000000e+00> : vector<64x128xf32>
    %6 = tpu.matmul %4, %5, %cst {dimension_numbers = #tpu.dot_dimension_numbers<[1], [0], [0], [1], [0, 0, 1, 1], [], []>} : vector<64x128xbf16>, vector<128x128xbf16>, vector<64x128xf32> -> vector<64x128xf32>
    %7 = arith.addf %3, %6 : vector<64x128xf32>
    %c0_6 = arith.constant 0 : index
    %c0_7 = arith.constant 0 : index
    %8 = vector.load %arg8[%c0_6, %c0_7] : memref<64x128xf32, #tpu.memory_space<vmem>>, vector<64x128xf32>
    tpu.vector_store %arg8[%c0_6, %c0_7], %7 {strides = array<i32>} : memref<64x128xf32, #tpu.memory_space<vmem>>, vector<64x128xf32>,
    %c4_i32 = arith.constant 4 : i32
    %9 = arith.cmpi eq, %arg2, %c4_i32 : i32
    %10 = arith.extui %9 : i1 to i32
    %c0_i32_8 = arith.constant 0 : i32
    %11 = arith.cmpi ne, %10, %c0_i32_8 : i32
    scf.if %11 {
      %c0_9 = arith.constant 0 : index
      %c0_10 = arith.constant 0 : index
      %12 = vector.load %arg8[%c0_9, %c0_10] : memref<64x128xf32, #tpu.memory_space<vmem>>, vector<64x128xf32>
      %c0_11 = arith.constant 0 : index
      %c0_12 = arith.constant 0 : index
      %13 = vector.load %arg5[%c0_11, %c0_12] : memref<2x128xf32, #tpu.memory_space<vmem>>, vector<1x128xf32>
      %14 = vector.broadcast %13 : vector<1x128xf32> to vector<64x128xf32>
      %15 = arith.mulf %12, %14 : vector<64x128xf32>
      %c1 = arith.constant 1 : index
      %c0_13 = arith.constant 0 : index
      %16 = vector.load %arg5[%c1, %c0_13] : memref<2x128xf32, #tpu.memory_space<vmem>>, vector<1x128xf32>
      %17 = vector.broadcast %16 : vector<1x128xf32> to vector<64x128xf32>
      %18 = arith.addf %15, %17 : vector<64x128xf32>
      %c0_14 = arith.constant 0 : index
      %c0_15 = arith.constant 0 : index
      %19 = vector.load %arg6[%c0_14, %c0_15] : memref<64x128xbf16, #tpu.memory_space<vmem>>, vector<64x128xbf16>
      %20 = arith.extf %19 : vector<64x128xbf16> to vector<64x128xf32>
      %21 = arith.addf %18, %20 : vector<64x128xf32>
      %cst_16 = arith.constant 0.000000e+00 : f32
      %22 = vector.broadcast %cst_16 : f32 to vector<64x128xf32>
      %23 = arith.maximumf %21, %22 : vector<64x128xf32>
      %24 = arith.truncf %23 : vector<64x128xf32> to vector<64x128xbf16>
      %c0_17 = arith.constant 0 : index
      %c0_18 = arith.constant 0 : index
      %25 = vector.load %arg7[%c0_17, %c0_18] : memref<64x128xbf16, #tpu.memory_space<vmem>>, vector<64x128xbf16>
      tpu.vector_store %arg7[%c0_17, %c0_18], %24 {strides = array<i32>} : memref<64x128xbf16, #tpu.memory_space<vmem>>, vector<64x128xbf16>,
    } else {
    }
    return
  }
  func.func @transform_0(%arg0: i32, %arg1: i32, %arg2: i32) -> (i32, i32) {
    %c0_i32 = arith.constant 0 : i32
    return %arg0, %arg2 : i32, i32
  }
  func.func @transform_1(%arg0: i32, %arg1: i32, %arg2: i32) -> (i32, i32) {
    %c0_i32 = arith.constant 0 : i32
    return %arg2, %arg1 : i32, i32
  }
  func.func @transform_2(%arg0: i32, %arg1: i32, %arg2: i32) -> (i32, i32) {
    %c0_i32 = arith.constant 0 : i32
    %c0_i32_0 = arith.constant 0 : i32
    return %c0_i32, %arg1 : i32, i32
  }
  func.func @transform_3(%arg0: i32, %arg1: i32, %arg2: i32) -> (i32, i32) {
    %c0_i32 = arith.constant 0 : i32
    return %arg0, %arg1 : i32, i32
  }
  func.func @transform_4(%arg0: i32, %arg1: i32, %arg2: i32) -> (i32, i32) {
    %c0_i32 = arith.constant 0 : i32
    return %arg0, %arg1 : i32, i32
  }
}

module attributes {stable_mosaic.version = 11 : i64} {
  func.func @_matmul_bn_kernel(%arg0: i32, %arg1: i32, %arg2: i32, %arg3: memref<16x128xbf16, #tpu.memory_space<vmem>>, %arg4: memref<128x128xbf16, #tpu.memory_space<vmem>>, %arg5: memref<2x128xf32, #tpu.memory_space<vmem>>, %arg6: memref<16x128xbf16, #tpu.memory_space<vmem>>, %arg7: memref<16x128xf32, #tpu.memory_space<vmem>>) attributes {dimension_semantics = [#tpu.dimension_semantics<parallel>, #tpu.dimension_semantics<parallel>, #tpu.dimension_semantics<arbitrary>], iteration_bounds = array<i64: 2, 1, 5>, scalar_prefetch = 0 : i64, scratch_operands = 1 : i64, tpu.core_type = #tpu.core_type<tc>, window_params = [{transform_indices = @transform_0, window_bounds = array<i64: 16, 128>}, {transform_indices = @transform_1, window_bounds = array<i64: 128, 128>}, {transform_indices = @transform_2, window_bounds = array<i64: 2, 128>}, {transform_indices = @transform_3, window_bounds = array<i64: 16, 128>}]} {
    %c0_i32 = arith.constant 0 : i32
    %0 = arith.cmpi eq, %arg2, %c0_i32 : i32
    %1 = arith.extui %0 : i1 to i32
    %c0_i32_0 = arith.constant 0 : i32
    %2 = arith.cmpi ne, %1, %c0_i32_0 : i32
    scf.if %2 {
      %cst_9 = arith.constant 0.000000e+00 : f32
      %12 = vector.broadcast %cst_9 : f32 to vector<16x128xf32>
      %c0_10 = arith.constant 0 : index
      %c0_11 = arith.constant 0 : index
      %13 = vector.load %arg7[%c0_10, %c0_11] : memref<16x128xf32, #tpu.memory_space<vmem>>, vector<16x128xf32>
      tpu.vector_store %arg7[%c0_10, %c0_11], %12 {strides = array<i32>} : memref<16x128xf32, #tpu.memory_space<vmem>>, vector<16x128xf32>,
    } else {
    }
    %c0 = arith.constant 0 : index
    %c0_1 = arith.constant 0 : index
    %3 = vector.load %arg7[%c0, %c0_1] : memref<16x128xf32, #tpu.memory_space<vmem>>, vector<16x128xf32>
    %c0_2 = arith.constant 0 : index
    %c0_3 = arith.constant 0 : index
    %4 = vector.load %arg3[%c0_2, %c0_3] : memref<16x128xbf16, #tpu.memory_space<vmem>>, vector<16x128xbf16>
    %c0_4 = arith.constant 0 : index
    %c0_5 = arith.constant 0 : index
    %5 = vector.load %arg4[%c0_4, %c0_5] : memref<128x128xbf16, #tpu.memory_space<vmem>>, vector<128x128xbf16>
    %cst = arith.constant dense<0.000000e+00> : vector<16x128xf32>
    %6 = tpu.matmul %4, %5, %cst {dimension_numbers = #tpu.dot_dimension_numbers<[1], [0], [0], [1], [0, 0, 1, 1], [], []>} : vector<16x128xbf16>, vector<128x128xbf16>, vector<16x128xf32> -> vector<16x128xf32>
    %7 = arith.addf %3, %6 : vector<16x128xf32>
    %c0_6 = arith.constant 0 : index
    %c0_7 = arith.constant 0 : index
    %8 = vector.load %arg7[%c0_6, %c0_7] : memref<16x128xf32, #tpu.memory_space<vmem>>, vector<16x128xf32>
    tpu.vector_store %arg7[%c0_6, %c0_7], %7 {strides = array<i32>} : memref<16x128xf32, #tpu.memory_space<vmem>>, vector<16x128xf32>,
    %c4_i32 = arith.constant 4 : i32
    %9 = arith.cmpi eq, %arg2, %c4_i32 : i32
    %10 = arith.extui %9 : i1 to i32
    %c0_i32_8 = arith.constant 0 : i32
    %11 = arith.cmpi ne, %10, %c0_i32_8 : i32
    scf.if %11 {
      %c0_9 = arith.constant 0 : index
      %c0_10 = arith.constant 0 : index
      %12 = vector.load %arg7[%c0_9, %c0_10] : memref<16x128xf32, #tpu.memory_space<vmem>>, vector<16x128xf32>
      %c0_11 = arith.constant 0 : index
      %c0_12 = arith.constant 0 : index
      %13 = vector.load %arg5[%c0_11, %c0_12] : memref<2x128xf32, #tpu.memory_space<vmem>>, vector<1x128xf32>
      %14 = vector.broadcast %13 : vector<1x128xf32> to vector<16x128xf32>
      %15 = arith.mulf %12, %14 : vector<16x128xf32>
      %c1 = arith.constant 1 : index
      %c0_13 = arith.constant 0 : index
      %16 = vector.load %arg5[%c1, %c0_13] : memref<2x128xf32, #tpu.memory_space<vmem>>, vector<1x128xf32>
      %17 = vector.broadcast %16 : vector<1x128xf32> to vector<16x128xf32>
      %18 = arith.addf %15, %17 : vector<16x128xf32>
      %cst_14 = arith.constant 0.000000e+00 : f32
      %19 = vector.broadcast %cst_14 : f32 to vector<16x128xf32>
      %20 = arith.maximumf %18, %19 : vector<16x128xf32>
      %21 = arith.truncf %20 : vector<16x128xf32> to vector<16x128xbf16>
      %c0_15 = arith.constant 0 : index
      %c0_16 = arith.constant 0 : index
      %22 = vector.load %arg6[%c0_15, %c0_16] : memref<16x128xbf16, #tpu.memory_space<vmem>>, vector<16x128xbf16>
      tpu.vector_store %arg6[%c0_15, %c0_16], %21 {strides = array<i32>} : memref<16x128xbf16, #tpu.memory_space<vmem>>, vector<16x128xbf16>,
    } else {
    }
    return
  }
  func.func @transform_0(%arg0: i32, %arg1: i32, %arg2: i32) -> (i32, i32) {
    %c0_i32 = arith.constant 0 : i32
    return %arg0, %arg2 : i32, i32
  }
  func.func @transform_1(%arg0: i32, %arg1: i32, %arg2: i32) -> (i32, i32) {
    %c0_i32 = arith.constant 0 : i32
    return %arg2, %arg1 : i32, i32
  }
  func.func @transform_2(%arg0: i32, %arg1: i32, %arg2: i32) -> (i32, i32) {
    %c0_i32 = arith.constant 0 : i32
    %c0_i32_0 = arith.constant 0 : i32
    return %c0_i32, %arg1 : i32, i32
  }
  func.func @transform_3(%arg0: i32, %arg1: i32, %arg2: i32) -> (i32, i32) {
    %c0_i32 = arith.constant 0 : i32
    return %arg0, %arg1 : i32, i32
  }
}

module attributes {stable_mosaic.version = 11 : i64} {
  func.func @_matmul_bn_kernel(%arg0: i32, %arg1: i32, %arg2: i32, %arg3: memref<16x128xbf16, #tpu.memory_space<vmem>>, %arg4: memref<128x128xbf16, #tpu.memory_space<vmem>>, %arg5: memref<2x128xf32, #tpu.memory_space<vmem>>, %arg6: memref<16x128xbf16, #tpu.memory_space<vmem>>, %arg7: memref<16x128xbf16, #tpu.memory_space<vmem>>, %arg8: memref<16x128xf32, #tpu.memory_space<vmem>>) attributes {dimension_semantics = [#tpu.dimension_semantics<parallel>, #tpu.dimension_semantics<parallel>, #tpu.dimension_semantics<arbitrary>], iteration_bounds = array<i64: 2, 1, 9>, scalar_prefetch = 0 : i64, scratch_operands = 1 : i64, tpu.core_type = #tpu.core_type<tc>, window_params = [{transform_indices = @transform_0, window_bounds = array<i64: 16, 128>}, {transform_indices = @transform_1, window_bounds = array<i64: 128, 128>}, {transform_indices = @transform_2, window_bounds = array<i64: 2, 128>}, {transform_indices = @transform_3, window_bounds = array<i64: 16, 128>}, {transform_indices = @transform_4, window_bounds = array<i64: 16, 128>}]} {
    %c0_i32 = arith.constant 0 : i32
    %0 = arith.cmpi eq, %arg2, %c0_i32 : i32
    %1 = arith.extui %0 : i1 to i32
    %c0_i32_0 = arith.constant 0 : i32
    %2 = arith.cmpi ne, %1, %c0_i32_0 : i32
    scf.if %2 {
      %cst_9 = arith.constant 0.000000e+00 : f32
      %12 = vector.broadcast %cst_9 : f32 to vector<16x128xf32>
      %c0_10 = arith.constant 0 : index
      %c0_11 = arith.constant 0 : index
      %13 = vector.load %arg8[%c0_10, %c0_11] : memref<16x128xf32, #tpu.memory_space<vmem>>, vector<16x128xf32>
      tpu.vector_store %arg8[%c0_10, %c0_11], %12 {strides = array<i32>} : memref<16x128xf32, #tpu.memory_space<vmem>>, vector<16x128xf32>,
    } else {
    }
    %c0 = arith.constant 0 : index
    %c0_1 = arith.constant 0 : index
    %3 = vector.load %arg8[%c0, %c0_1] : memref<16x128xf32, #tpu.memory_space<vmem>>, vector<16x128xf32>
    %c0_2 = arith.constant 0 : index
    %c0_3 = arith.constant 0 : index
    %4 = vector.load %arg3[%c0_2, %c0_3] : memref<16x128xbf16, #tpu.memory_space<vmem>>, vector<16x128xbf16>
    %c0_4 = arith.constant 0 : index
    %c0_5 = arith.constant 0 : index
    %5 = vector.load %arg4[%c0_4, %c0_5] : memref<128x128xbf16, #tpu.memory_space<vmem>>, vector<128x128xbf16>
    %cst = arith.constant dense<0.000000e+00> : vector<16x128xf32>
    %6 = tpu.matmul %4, %5, %cst {dimension_numbers = #tpu.dot_dimension_numbers<[1], [0], [0], [1], [0, 0, 1, 1], [], []>} : vector<16x128xbf16>, vector<128x128xbf16>, vector<16x128xf32> -> vector<16x128xf32>
    %7 = arith.addf %3, %6 : vector<16x128xf32>
    %c0_6 = arith.constant 0 : index
    %c0_7 = arith.constant 0 : index
    %8 = vector.load %arg8[%c0_6, %c0_7] : memref<16x128xf32, #tpu.memory_space<vmem>>, vector<16x128xf32>
    tpu.vector_store %arg8[%c0_6, %c0_7], %7 {strides = array<i32>} : memref<16x128xf32, #tpu.memory_space<vmem>>, vector<16x128xf32>,
    %c8_i32 = arith.constant 8 : i32
    %9 = arith.cmpi eq, %arg2, %c8_i32 : i32
    %10 = arith.extui %9 : i1 to i32
    %c0_i32_8 = arith.constant 0 : i32
    %11 = arith.cmpi ne, %10, %c0_i32_8 : i32
    scf.if %11 {
      %c0_9 = arith.constant 0 : index
      %c0_10 = arith.constant 0 : index
      %12 = vector.load %arg8[%c0_9, %c0_10] : memref<16x128xf32, #tpu.memory_space<vmem>>, vector<16x128xf32>
      %c0_11 = arith.constant 0 : index
      %c0_12 = arith.constant 0 : index
      %13 = vector.load %arg5[%c0_11, %c0_12] : memref<2x128xf32, #tpu.memory_space<vmem>>, vector<1x128xf32>
      %14 = vector.broadcast %13 : vector<1x128xf32> to vector<16x128xf32>
      %15 = arith.mulf %12, %14 : vector<16x128xf32>
      %c1 = arith.constant 1 : index
      %c0_13 = arith.constant 0 : index
      %16 = vector.load %arg5[%c1, %c0_13] : memref<2x128xf32, #tpu.memory_space<vmem>>, vector<1x128xf32>
      %17 = vector.broadcast %16 : vector<1x128xf32> to vector<16x128xf32>
      %18 = arith.addf %15, %17 : vector<16x128xf32>
      %c0_14 = arith.constant 0 : index
      %c0_15 = arith.constant 0 : index
      %19 = vector.load %arg6[%c0_14, %c0_15] : memref<16x128xbf16, #tpu.memory_space<vmem>>, vector<16x128xbf16>
      %20 = arith.extf %19 : vector<16x128xbf16> to vector<16x128xf32>
      %21 = arith.addf %18, %20 : vector<16x128xf32>
      %cst_16 = arith.constant 0.000000e+00 : f32
      %22 = vector.broadcast %cst_16 : f32 to vector<16x128xf32>
      %23 = arith.maximumf %21, %22 : vector<16x128xf32>
      %24 = arith.truncf %23 : vector<16x128xf32> to vector<16x128xbf16>
      %c0_17 = arith.constant 0 : index
      %c0_18 = arith.constant 0 : index
      %25 = vector.load %arg7[%c0_17, %c0_18] : memref<16x128xbf16, #tpu.memory_space<vmem>>, vector<16x128xbf16>
      tpu.vector_store %arg7[%c0_17, %c0_18], %24 {strides = array<i32>} : memref<16x128xbf16, #tpu.memory_space<vmem>>, vector<16x128xbf16>,
    } else {
    }
    return
  }
  func.func @transform_0(%arg0: i32, %arg1: i32, %arg2: i32) -> (i32, i32) {
    %c0_i32 = arith.constant 0 : i32
    return %arg0, %arg2 : i32, i32
  }
  func.func @transform_1(%arg0: i32, %arg1: i32, %arg2: i32) -> (i32, i32) {
    %c0_i32 = arith.constant 0 : i32
    return %arg2, %arg1 : i32, i32
  }
  func.func @transform_2(%arg0: i32, %arg1: i32, %arg2: i32) -> (i32, i32) {
    %c0_i32 = arith.constant 0 : i32
    %c0_i32_0 = arith.constant 0 : i32
    return %c0_i32, %arg1 : i32, i32
  }
  func.func @transform_3(%arg0: i32, %arg1: i32, %arg2: i32) -> (i32, i32) {
    %c0_i32 = arith.constant 0 : i32
    return %arg0, %arg1 : i32, i32
  }
  func.func @transform_4(%arg0: i32, %arg1: i32, %arg2: i32) -> (i32, i32) {
    %c0_i32 = arith.constant 0 : i32
    return %arg0, %arg1 : i32, i32
  }
}

module attributes {stable_mosaic.version = 11 : i64} {
  func.func @_matmul_bn_kernel(%arg0: i32, %arg1: i32, %arg2: i32, %arg3: memref<16x128xbf16, #tpu.memory_space<vmem>>, %arg4: memref<128x128xbf16, #tpu.memory_space<vmem>>, %arg5: memref<2x128xf32, #tpu.memory_space<vmem>>, %arg6: memref<16x128xbf16, #tpu.memory_space<vmem>>, %arg7: memref<16x128xf32, #tpu.memory_space<vmem>>) attributes {dimension_semantics = [#tpu.dimension_semantics<parallel>, #tpu.dimension_semantics<parallel>, #tpu.dimension_semantics<arbitrary>], iteration_bounds = array<i64: 2, 1, 1>, scalar_prefetch = 0 : i64, scratch_operands = 1 : i64, tpu.core_type = #tpu.core_type<tc>, window_params = [{transform_indices = @transform_0, window_bounds = array<i64: 16, 128>}, {transform_indices = @transform_1, window_bounds = array<i64: 128, 128>}, {transform_indices = @transform_2, window_bounds = array<i64: 2, 128>}, {transform_indices = @transform_3, window_bounds = array<i64: 16, 128>}]} {
    %c0_i32 = arith.constant 0 : i32
    %0 = arith.cmpi eq, %arg2, %c0_i32 : i32
    %1 = arith.extui %0 : i1 to i32
    %c0_i32_0 = arith.constant 0 : i32
    %2 = arith.cmpi ne, %1, %c0_i32_0 : i32
    scf.if %2 {
      %cst_10 = arith.constant 0.000000e+00 : f32
      %12 = vector.broadcast %cst_10 : f32 to vector<16x128xf32>
      %c0_11 = arith.constant 0 : index
      %c0_12 = arith.constant 0 : index
      %13 = vector.load %arg7[%c0_11, %c0_12] : memref<16x128xf32, #tpu.memory_space<vmem>>, vector<16x128xf32>
      tpu.vector_store %arg7[%c0_11, %c0_12], %12 {strides = array<i32>} : memref<16x128xf32, #tpu.memory_space<vmem>>, vector<16x128xf32>,
    } else {
    }
    %c0 = arith.constant 0 : index
    %c0_1 = arith.constant 0 : index
    %3 = vector.load %arg7[%c0, %c0_1] : memref<16x128xf32, #tpu.memory_space<vmem>>, vector<16x128xf32>
    %c0_2 = arith.constant 0 : index
    %c0_3 = arith.constant 0 : index
    %4 = vector.load %arg3[%c0_2, %c0_3] : memref<16x128xbf16, #tpu.memory_space<vmem>>, vector<16x128xbf16>
    %c0_4 = arith.constant 0 : index
    %c0_5 = arith.constant 0 : index
    %5 = vector.load %arg4[%c0_4, %c0_5] : memref<128x128xbf16, #tpu.memory_space<vmem>>, vector<128x128xbf16>
    %cst = arith.constant dense<0.000000e+00> : vector<16x128xf32>
    %6 = tpu.matmul %4, %5, %cst {dimension_numbers = #tpu.dot_dimension_numbers<[1], [0], [0], [1], [0, 0, 1, 1], [], []>} : vector<16x128xbf16>, vector<128x128xbf16>, vector<16x128xf32> -> vector<16x128xf32>
    %7 = arith.addf %3, %6 : vector<16x128xf32>
    %c0_6 = arith.constant 0 : index
    %c0_7 = arith.constant 0 : index
    %8 = vector.load %arg7[%c0_6, %c0_7] : memref<16x128xf32, #tpu.memory_space<vmem>>, vector<16x128xf32>
    tpu.vector_store %arg7[%c0_6, %c0_7], %7 {strides = array<i32>} : memref<16x128xf32, #tpu.memory_space<vmem>>, vector<16x128xf32>,
    %c0_i32_8 = arith.constant 0 : i32
    %9 = arith.cmpi eq, %arg2, %c0_i32_8 : i32
    %10 = arith.extui %9 : i1 to i32
    %c0_i32_9 = arith.constant 0 : i32
    %11 = arith.cmpi ne, %10, %c0_i32_9 : i32
    scf.if %11 {
      %c0_10 = arith.constant 0 : index
      %c0_11 = arith.constant 0 : index
      %12 = vector.load %arg7[%c0_10, %c0_11] : memref<16x128xf32, #tpu.memory_space<vmem>>, vector<16x128xf32>
      %c0_12 = arith.constant 0 : index
      %c0_13 = arith.constant 0 : index
      %13 = vector.load %arg5[%c0_12, %c0_13] : memref<2x128xf32, #tpu.memory_space<vmem>>, vector<1x128xf32>
      %14 = vector.broadcast %13 : vector<1x128xf32> to vector<16x128xf32>
      %15 = arith.mulf %12, %14 : vector<16x128xf32>
      %c1 = arith.constant 1 : index
      %c0_14 = arith.constant 0 : index
      %16 = vector.load %arg5[%c1, %c0_14] : memref<2x128xf32, #tpu.memory_space<vmem>>, vector<1x128xf32>
      %17 = vector.broadcast %16 : vector<1x128xf32> to vector<16x128xf32>
      %18 = arith.addf %15, %17 : vector<16x128xf32>
      %19 = arith.truncf %18 : vector<16x128xf32> to vector<16x128xbf16>
      %c0_15 = arith.constant 0 : index
      %c0_16 = arith.constant 0 : index
      %20 = vector.load %arg6[%c0_15, %c0_16] : memref<16x128xbf16, #tpu.memory_space<vmem>>, vector<16x128xbf16>
      tpu.vector_store %arg6[%c0_15, %c0_16], %19 {strides = array<i32>} : memref<16x128xbf16, #tpu.memory_space<vmem>>, vector<16x128xbf16>,
    } else {
    }
    return
  }
  func.func @transform_0(%arg0: i32, %arg1: i32, %arg2: i32) -> (i32, i32) {
    %c0_i32 = arith.constant 0 : i32
    return %arg0, %arg2 : i32, i32
  }
  func.func @transform_1(%arg0: i32, %arg1: i32, %arg2: i32) -> (i32, i32) {
    %c0_i32 = arith.constant 0 : i32
    return %arg2, %arg1 : i32, i32
  }
  func.func @transform_2(%arg0: i32, %arg1: i32, %arg2: i32) -> (i32, i32) {
    %c0_i32 = arith.constant 0 : i32
    %c0_i32_0 = arith.constant 0 : i32
    return %c0_i32, %arg1 : i32, i32
  }
  func.func @transform_3(%arg0: i32, %arg1: i32, %arg2: i32) -> (i32, i32) {
    %c0_i32 = arith.constant 0 : i32
    return %arg0, %arg1 : i32, i32
  }
}

module attributes {stable_mosaic.version = 11 : i64} {
  func.func @_matmul_bn_kernel(%arg0: i32, %arg1: i32, %arg2: i32, %arg3: memref<16x128xbf16, #tpu.memory_space<vmem>>, %arg4: memref<128x128xbf16, #tpu.memory_space<vmem>>, %arg5: memref<2x128xf32, #tpu.memory_space<vmem>>, %arg6: memref<16x128xbf16, #tpu.memory_space<vmem>>, %arg7: memref<16x128xf32, #tpu.memory_space<vmem>>) attributes {dimension_semantics = [#tpu.dimension_semantics<parallel>, #tpu.dimension_semantics<parallel>, #tpu.dimension_semantics<arbitrary>], iteration_bounds = array<i64: 2, 1, 9>, scalar_prefetch = 0 : i64, scratch_operands = 1 : i64, tpu.core_type = #tpu.core_type<tc>, window_params = [{transform_indices = @transform_0, window_bounds = array<i64: 16, 128>}, {transform_indices = @transform_1, window_bounds = array<i64: 128, 128>}, {transform_indices = @transform_2, window_bounds = array<i64: 2, 128>}, {transform_indices = @transform_3, window_bounds = array<i64: 16, 128>}]} {
    %c0_i32 = arith.constant 0 : i32
    %0 = arith.cmpi eq, %arg2, %c0_i32 : i32
    %1 = arith.extui %0 : i1 to i32
    %c0_i32_0 = arith.constant 0 : i32
    %2 = arith.cmpi ne, %1, %c0_i32_0 : i32
    scf.if %2 {
      %cst_9 = arith.constant 0.000000e+00 : f32
      %12 = vector.broadcast %cst_9 : f32 to vector<16x128xf32>
      %c0_10 = arith.constant 0 : index
      %c0_11 = arith.constant 0 : index
      %13 = vector.load %arg7[%c0_10, %c0_11] : memref<16x128xf32, #tpu.memory_space<vmem>>, vector<16x128xf32>
      tpu.vector_store %arg7[%c0_10, %c0_11], %12 {strides = array<i32>} : memref<16x128xf32, #tpu.memory_space<vmem>>, vector<16x128xf32>,
    } else {
    }
    %c0 = arith.constant 0 : index
    %c0_1 = arith.constant 0 : index
    %3 = vector.load %arg7[%c0, %c0_1] : memref<16x128xf32, #tpu.memory_space<vmem>>, vector<16x128xf32>
    %c0_2 = arith.constant 0 : index
    %c0_3 = arith.constant 0 : index
    %4 = vector.load %arg3[%c0_2, %c0_3] : memref<16x128xbf16, #tpu.memory_space<vmem>>, vector<16x128xbf16>
    %c0_4 = arith.constant 0 : index
    %c0_5 = arith.constant 0 : index
    %5 = vector.load %arg4[%c0_4, %c0_5] : memref<128x128xbf16, #tpu.memory_space<vmem>>, vector<128x128xbf16>
    %cst = arith.constant dense<0.000000e+00> : vector<16x128xf32>
    %6 = tpu.matmul %4, %5, %cst {dimension_numbers = #tpu.dot_dimension_numbers<[1], [0], [0], [1], [0, 0, 1, 1], [], []>} : vector<16x128xbf16>, vector<128x128xbf16>, vector<16x128xf32> -> vector<16x128xf32>
    %7 = arith.addf %3, %6 : vector<16x128xf32>
    %c0_6 = arith.constant 0 : index
    %c0_7 = arith.constant 0 : index
    %8 = vector.load %arg7[%c0_6, %c0_7] : memref<16x128xf32, #tpu.memory_space<vmem>>, vector<16x128xf32>
    tpu.vector_store %arg7[%c0_6, %c0_7], %7 {strides = array<i32>} : memref<16x128xf32, #tpu.memory_space<vmem>>, vector<16x128xf32>,
    %c8_i32 = arith.constant 8 : i32
    %9 = arith.cmpi eq, %arg2, %c8_i32 : i32
    %10 = arith.extui %9 : i1 to i32
    %c0_i32_8 = arith.constant 0 : i32
    %11 = arith.cmpi ne, %10, %c0_i32_8 : i32
    scf.if %11 {
      %c0_9 = arith.constant 0 : index
      %c0_10 = arith.constant 0 : index
      %12 = vector.load %arg7[%c0_9, %c0_10] : memref<16x128xf32, #tpu.memory_space<vmem>>, vector<16x128xf32>
      %c0_11 = arith.constant 0 : index
      %c0_12 = arith.constant 0 : index
      %13 = vector.load %arg5[%c0_11, %c0_12] : memref<2x128xf32, #tpu.memory_space<vmem>>, vector<1x128xf32>
      %14 = vector.broadcast %13 : vector<1x128xf32> to vector<16x128xf32>
      %15 = arith.mulf %12, %14 : vector<16x128xf32>
      %c1 = arith.constant 1 : index
      %c0_13 = arith.constant 0 : index
      %16 = vector.load %arg5[%c1, %c0_13] : memref<2x128xf32, #tpu.memory_space<vmem>>, vector<1x128xf32>
      %17 = vector.broadcast %16 : vector<1x128xf32> to vector<16x128xf32>
      %18 = arith.addf %15, %17 : vector<16x128xf32>
      %cst_14 = arith.constant 0.000000e+00 : f32
      %19 = vector.broadcast %cst_14 : f32 to vector<16x128xf32>
      %20 = arith.maximumf %18, %19 : vector<16x128xf32>
      %21 = arith.truncf %20 : vector<16x128xf32> to vector<16x128xbf16>
      %c0_15 = arith.constant 0 : index
      %c0_16 = arith.constant 0 : index
      %22 = vector.load %arg6[%c0_15, %c0_16] : memref<16x128xbf16, #tpu.memory_space<vmem>>, vector<16x128xbf16>
      tpu.vector_store %arg6[%c0_15, %c0_16], %21 {strides = array<i32>} : memref<16x128xbf16, #tpu.memory_space<vmem>>, vector<16x128xbf16>,
    } else {
    }
    return
  }
  func.func @transform_0(%arg0: i32, %arg1: i32, %arg2: i32) -> (i32, i32) {
    %c0_i32 = arith.constant 0 : i32
    return %arg0, %arg2 : i32, i32
  }
  func.func @transform_1(%arg0: i32, %arg1: i32, %arg2: i32) -> (i32, i32) {
    %c0_i32 = arith.constant 0 : i32
    return %arg2, %arg1 : i32, i32
  }
  func.func @transform_2(%arg0: i32, %arg1: i32, %arg2: i32) -> (i32, i32) {
    %c0_i32 = arith.constant 0 : i32
    %c0_i32_0 = arith.constant 0 : i32
    return %c0_i32, %arg1 : i32, i32
  }
  func.func @transform_3(%arg0: i32, %arg1: i32, %arg2: i32) -> (i32, i32) {
    %c0_i32 = arith.constant 0 : i32
    return %arg0, %arg1 : i32, i32
  }
}

module attributes {stable_mosaic.version = 11 : i64} {
  func.func @_matmul_bn_kernel(%arg0: i32, %arg1: i32, %arg2: i32, %arg3: memref<16x128xbf16, #tpu.memory_space<vmem>>, %arg4: memref<128x128xbf16, #tpu.memory_space<vmem>>, %arg5: memref<2x128xf32, #tpu.memory_space<vmem>>, %arg6: memref<16x128xbf16, #tpu.memory_space<vmem>>, %arg7: memref<16x128xf32, #tpu.memory_space<vmem>>) attributes {dimension_semantics = [#tpu.dimension_semantics<parallel>, #tpu.dimension_semantics<parallel>, #tpu.dimension_semantics<arbitrary>], iteration_bounds = array<i64: 1, 2, 9>, scalar_prefetch = 0 : i64, scratch_operands = 1 : i64, tpu.core_type = #tpu.core_type<tc>, window_params = [{transform_indices = @transform_0, window_bounds = array<i64: 16, 128>}, {transform_indices = @transform_1, window_bounds = array<i64: 128, 128>}, {transform_indices = @transform_2, window_bounds = array<i64: 2, 128>}, {transform_indices = @transform_3, window_bounds = array<i64: 16, 128>}]} {
    %c0_i32 = arith.constant 0 : i32
    %0 = arith.cmpi eq, %arg2, %c0_i32 : i32
    %1 = arith.extui %0 : i1 to i32
    %c0_i32_0 = arith.constant 0 : i32
    %2 = arith.cmpi ne, %1, %c0_i32_0 : i32
    scf.if %2 {
      %cst_9 = arith.constant 0.000000e+00 : f32
      %12 = vector.broadcast %cst_9 : f32 to vector<16x128xf32>
      %c0_10 = arith.constant 0 : index
      %c0_11 = arith.constant 0 : index
      %13 = vector.load %arg7[%c0_10, %c0_11] : memref<16x128xf32, #tpu.memory_space<vmem>>, vector<16x128xf32>
      tpu.vector_store %arg7[%c0_10, %c0_11], %12 {strides = array<i32>} : memref<16x128xf32, #tpu.memory_space<vmem>>, vector<16x128xf32>,
    } else {
    }
    %c0 = arith.constant 0 : index
    %c0_1 = arith.constant 0 : index
    %3 = vector.load %arg7[%c0, %c0_1] : memref<16x128xf32, #tpu.memory_space<vmem>>, vector<16x128xf32>
    %c0_2 = arith.constant 0 : index
    %c0_3 = arith.constant 0 : index
    %4 = vector.load %arg3[%c0_2, %c0_3] : memref<16x128xbf16, #tpu.memory_space<vmem>>, vector<16x128xbf16>
    %c0_4 = arith.constant 0 : index
    %c0_5 = arith.constant 0 : index
    %5 = vector.load %arg4[%c0_4, %c0_5] : memref<128x128xbf16, #tpu.memory_space<vmem>>, vector<128x128xbf16>
    %cst = arith.constant dense<0.000000e+00> : vector<16x128xf32>
    %6 = tpu.matmul %4, %5, %cst {dimension_numbers = #tpu.dot_dimension_numbers<[1], [0], [0], [1], [0, 0, 1, 1], [], []>} : vector<16x128xbf16>, vector<128x128xbf16>, vector<16x128xf32> -> vector<16x128xf32>
    %7 = arith.addf %3, %6 : vector<16x128xf32>
    %c0_6 = arith.constant 0 : index
    %c0_7 = arith.constant 0 : index
    %8 = vector.load %arg7[%c0_6, %c0_7] : memref<16x128xf32, #tpu.memory_space<vmem>>, vector<16x128xf32>
    tpu.vector_store %arg7[%c0_6, %c0_7], %7 {strides = array<i32>} : memref<16x128xf32, #tpu.memory_space<vmem>>, vector<16x128xf32>,
    %c8_i32 = arith.constant 8 : i32
    %9 = arith.cmpi eq, %arg2, %c8_i32 : i32
    %10 = arith.extui %9 : i1 to i32
    %c0_i32_8 = arith.constant 0 : i32
    %11 = arith.cmpi ne, %10, %c0_i32_8 : i32
    scf.if %11 {
      %c0_9 = arith.constant 0 : index
      %c0_10 = arith.constant 0 : index
      %12 = vector.load %arg7[%c0_9, %c0_10] : memref<16x128xf32, #tpu.memory_space<vmem>>, vector<16x128xf32>
      %c0_11 = arith.constant 0 : index
      %c0_12 = arith.constant 0 : index
      %13 = vector.load %arg5[%c0_11, %c0_12] : memref<2x128xf32, #tpu.memory_space<vmem>>, vector<1x128xf32>
      %14 = vector.broadcast %13 : vector<1x128xf32> to vector<16x128xf32>
      %15 = arith.mulf %12, %14 : vector<16x128xf32>
      %c1 = arith.constant 1 : index
      %c0_13 = arith.constant 0 : index
      %16 = vector.load %arg5[%c1, %c0_13] : memref<2x128xf32, #tpu.memory_space<vmem>>, vector<1x128xf32>
      %17 = vector.broadcast %16 : vector<1x128xf32> to vector<16x128xf32>
      %18 = arith.addf %15, %17 : vector<16x128xf32>
      %cst_14 = arith.constant 0.000000e+00 : f32
      %19 = vector.broadcast %cst_14 : f32 to vector<16x128xf32>
      %20 = arith.maximumf %18, %19 : vector<16x128xf32>
      %21 = arith.truncf %20 : vector<16x128xf32> to vector<16x128xbf16>
      %c0_15 = arith.constant 0 : index
      %c0_16 = arith.constant 0 : index
      %22 = vector.load %arg6[%c0_15, %c0_16] : memref<16x128xbf16, #tpu.memory_space<vmem>>, vector<16x128xbf16>
      tpu.vector_store %arg6[%c0_15, %c0_16], %21 {strides = array<i32>} : memref<16x128xbf16, #tpu.memory_space<vmem>>, vector<16x128xbf16>,
    } else {
    }
    return
  }
  func.func @transform_0(%arg0: i32, %arg1: i32, %arg2: i32) -> (i32, i32) {
    %c0_i32 = arith.constant 0 : i32
    return %arg0, %arg2 : i32, i32
  }
  func.func @transform_1(%arg0: i32, %arg1: i32, %arg2: i32) -> (i32, i32) {
    %c0_i32 = arith.constant 0 : i32
    return %arg2, %arg1 : i32, i32
  }
  func.func @transform_2(%arg0: i32, %arg1: i32, %arg2: i32) -> (i32, i32) {
    %c0_i32 = arith.constant 0 : i32
    %c0_i32_0 = arith.constant 0 : i32
    return %c0_i32, %arg1 : i32, i32
  }
  func.func @transform_3(%arg0: i32, %arg1: i32, %arg2: i32) -> (i32, i32) {
    %c0_i32 = arith.constant 0 : i32
    return %arg0, %arg1 : i32, i32
  }
}

module attributes {stable_mosaic.version = 11 : i64} {
  func.func @_matmul_bn_kernel(%arg0: i32, %arg1: i32, %arg2: i32, %arg3: memref<16x128xbf16, #tpu.memory_space<vmem>>, %arg4: memref<128x128xbf16, #tpu.memory_space<vmem>>, %arg5: memref<2x128xf32, #tpu.memory_space<vmem>>, %arg6: memref<16x128xbf16, #tpu.memory_space<vmem>>, %arg7: memref<16x128xf32, #tpu.memory_space<vmem>>) attributes {dimension_semantics = [#tpu.dimension_semantics<parallel>, #tpu.dimension_semantics<parallel>, #tpu.dimension_semantics<arbitrary>], iteration_bounds = array<i64: 1, 2, 1>, scalar_prefetch = 0 : i64, scratch_operands = 1 : i64, tpu.core_type = #tpu.core_type<tc>, window_params = [{transform_indices = @transform_0, window_bounds = array<i64: 16, 128>}, {transform_indices = @transform_1, window_bounds = array<i64: 128, 128>}, {transform_indices = @transform_2, window_bounds = array<i64: 2, 128>}, {transform_indices = @transform_3, window_bounds = array<i64: 16, 128>}]} {
    %c0_i32 = arith.constant 0 : i32
    %0 = arith.cmpi eq, %arg2, %c0_i32 : i32
    %1 = arith.extui %0 : i1 to i32
    %c0_i32_0 = arith.constant 0 : i32
    %2 = arith.cmpi ne, %1, %c0_i32_0 : i32
    scf.if %2 {
      %cst_10 = arith.constant 0.000000e+00 : f32
      %12 = vector.broadcast %cst_10 : f32 to vector<16x128xf32>
      %c0_11 = arith.constant 0 : index
      %c0_12 = arith.constant 0 : index
      %13 = vector.load %arg7[%c0_11, %c0_12] : memref<16x128xf32, #tpu.memory_space<vmem>>, vector<16x128xf32>
      tpu.vector_store %arg7[%c0_11, %c0_12], %12 {strides = array<i32>} : memref<16x128xf32, #tpu.memory_space<vmem>>, vector<16x128xf32>,
    } else {
    }
    %c0 = arith.constant 0 : index
    %c0_1 = arith.constant 0 : index
    %3 = vector.load %arg7[%c0, %c0_1] : memref<16x128xf32, #tpu.memory_space<vmem>>, vector<16x128xf32>
    %c0_2 = arith.constant 0 : index
    %c0_3 = arith.constant 0 : index
    %4 = vector.load %arg3[%c0_2, %c0_3] : memref<16x128xbf16, #tpu.memory_space<vmem>>, vector<16x128xbf16>
    %c0_4 = arith.constant 0 : index
    %c0_5 = arith.constant 0 : index
    %5 = vector.load %arg4[%c0_4, %c0_5] : memref<128x128xbf16, #tpu.memory_space<vmem>>, vector<128x128xbf16>
    %cst = arith.constant dense<0.000000e+00> : vector<16x128xf32>
    %6 = tpu.matmul %4, %5, %cst {dimension_numbers = #tpu.dot_dimension_numbers<[1], [0], [0], [1], [0, 0, 1, 1], [], []>} : vector<16x128xbf16>, vector<128x128xbf16>, vector<16x128xf32> -> vector<16x128xf32>
    %7 = arith.addf %3, %6 : vector<16x128xf32>
    %c0_6 = arith.constant 0 : index
    %c0_7 = arith.constant 0 : index
    %8 = vector.load %arg7[%c0_6, %c0_7] : memref<16x128xf32, #tpu.memory_space<vmem>>, vector<16x128xf32>
    tpu.vector_store %arg7[%c0_6, %c0_7], %7 {strides = array<i32>} : memref<16x128xf32, #tpu.memory_space<vmem>>, vector<16x128xf32>,
    %c0_i32_8 = arith.constant 0 : i32
    %9 = arith.cmpi eq, %arg2, %c0_i32_8 : i32
    %10 = arith.extui %9 : i1 to i32
    %c0_i32_9 = arith.constant 0 : i32
    %11 = arith.cmpi ne, %10, %c0_i32_9 : i32
    scf.if %11 {
      %c0_10 = arith.constant 0 : index
      %c0_11 = arith.constant 0 : index
      %12 = vector.load %arg7[%c0_10, %c0_11] : memref<16x128xf32, #tpu.memory_space<vmem>>, vector<16x128xf32>
      %c0_12 = arith.constant 0 : index
      %c0_13 = arith.constant 0 : index
      %13 = vector.load %arg5[%c0_12, %c0_13] : memref<2x128xf32, #tpu.memory_space<vmem>>, vector<1x128xf32>
      %14 = vector.broadcast %13 : vector<1x128xf32> to vector<16x128xf32>
      %15 = arith.mulf %12, %14 : vector<16x128xf32>
      %c1 = arith.constant 1 : index
      %c0_14 = arith.constant 0 : index
      %16 = vector.load %arg5[%c1, %c0_14] : memref<2x128xf32, #tpu.memory_space<vmem>>, vector<1x128xf32>
      %17 = vector.broadcast %16 : vector<1x128xf32> to vector<16x128xf32>
      %18 = arith.addf %15, %17 : vector<16x128xf32>
      %19 = arith.truncf %18 : vector<16x128xf32> to vector<16x128xbf16>
      %c0_15 = arith.constant 0 : index
      %c0_16 = arith.constant 0 : index
      %20 = vector.load %arg6[%c0_15, %c0_16] : memref<16x128xbf16, #tpu.memory_space<vmem>>, vector<16x128xbf16>
      tpu.vector_store %arg6[%c0_15, %c0_16], %19 {strides = array<i32>} : memref<16x128xbf16, #tpu.memory_space<vmem>>, vector<16x128xbf16>,
    } else {
    }
    return
  }
  func.func @transform_0(%arg0: i32, %arg1: i32, %arg2: i32) -> (i32, i32) {
    %c0_i32 = arith.constant 0 : i32
    return %arg0, %arg2 : i32, i32
  }
  func.func @transform_1(%arg0: i32, %arg1: i32, %arg2: i32) -> (i32, i32) {
    %c0_i32 = arith.constant 0 : i32
    return %arg2, %arg1 : i32, i32
  }
  func.func @transform_2(%arg0: i32, %arg1: i32, %arg2: i32) -> (i32, i32) {
    %c0_i32 = arith.constant 0 : i32
    %c0_i32_0 = arith.constant 0 : i32
    return %c0_i32, %arg1 : i32, i32
  }
  func.func @transform_3(%arg0: i32, %arg1: i32, %arg2: i32) -> (i32, i32) {
    %c0_i32 = arith.constant 0 : i32
    return %arg0, %arg1 : i32, i32
  }
}

module attributes {stable_mosaic.version = 11 : i64} {
  func.func @_matmul_bn_kernel(%arg0: i32, %arg1: i32, %arg2: i32, %arg3: memref<16x256xbf16, #tpu.memory_space<vmem>>, %arg4: memref<256x128xbf16, #tpu.memory_space<vmem>>, %arg5: memref<2x128xf32, #tpu.memory_space<vmem>>, %arg6: memref<16x128xbf16, #tpu.memory_space<vmem>>, %arg7: memref<16x128xbf16, #tpu.memory_space<vmem>>, %arg8: memref<16x128xf32, #tpu.memory_space<vmem>>) attributes {dimension_semantics = [#tpu.dimension_semantics<parallel>, #tpu.dimension_semantics<parallel>, #tpu.dimension_semantics<arbitrary>], iteration_bounds = array<i64: 1, 2, 9>, scalar_prefetch = 0 : i64, scratch_operands = 1 : i64, tpu.core_type = #tpu.core_type<tc>, window_params = [{transform_indices = @transform_0, window_bounds = array<i64: 16, 256>}, {transform_indices = @transform_1, window_bounds = array<i64: 256, 128>}, {transform_indices = @transform_2, window_bounds = array<i64: 2, 128>}, {transform_indices = @transform_3, window_bounds = array<i64: 16, 128>}, {transform_indices = @transform_4, window_bounds = array<i64: 16, 128>}]} {
    %c0_i32 = arith.constant 0 : i32
    %0 = arith.cmpi eq, %arg2, %c0_i32 : i32
    %1 = arith.extui %0 : i1 to i32
    %c0_i32_0 = arith.constant 0 : i32
    %2 = arith.cmpi ne, %1, %c0_i32_0 : i32
    scf.if %2 {
      %cst_9 = arith.constant 0.000000e+00 : f32
      %12 = vector.broadcast %cst_9 : f32 to vector<16x128xf32>
      %c0_10 = arith.constant 0 : index
      %c0_11 = arith.constant 0 : index
      %13 = vector.load %arg8[%c0_10, %c0_11] : memref<16x128xf32, #tpu.memory_space<vmem>>, vector<16x128xf32>
      tpu.vector_store %arg8[%c0_10, %c0_11], %12 {strides = array<i32>} : memref<16x128xf32, #tpu.memory_space<vmem>>, vector<16x128xf32>,
    } else {
    }
    %c0 = arith.constant 0 : index
    %c0_1 = arith.constant 0 : index
    %3 = vector.load %arg8[%c0, %c0_1] : memref<16x128xf32, #tpu.memory_space<vmem>>, vector<16x128xf32>
    %c0_2 = arith.constant 0 : index
    %c0_3 = arith.constant 0 : index
    %4 = vector.load %arg3[%c0_2, %c0_3] : memref<16x256xbf16, #tpu.memory_space<vmem>>, vector<16x256xbf16>
    %c0_4 = arith.constant 0 : index
    %c0_5 = arith.constant 0 : index
    %5 = vector.load %arg4[%c0_4, %c0_5] : memref<256x128xbf16, #tpu.memory_space<vmem>>, vector<256x128xbf16>
    %cst = arith.constant dense<0.000000e+00> : vector<16x128xf32>
    %6 = tpu.matmul %4, %5, %cst {dimension_numbers = #tpu.dot_dimension_numbers<[1], [0], [0], [1], [0, 0, 1, 1], [], []>} : vector<16x256xbf16>, vector<256x128xbf16>, vector<16x128xf32> -> vector<16x128xf32>
    %7 = arith.addf %3, %6 : vector<16x128xf32>
    %c0_6 = arith.constant 0 : index
    %c0_7 = arith.constant 0 : index
    %8 = vector.load %arg8[%c0_6, %c0_7] : memref<16x128xf32, #tpu.memory_space<vmem>>, vector<16x128xf32>
    tpu.vector_store %arg8[%c0_6, %c0_7], %7 {strides = array<i32>} : memref<16x128xf32, #tpu.memory_space<vmem>>, vector<16x128xf32>,
    %c8_i32 = arith.constant 8 : i32
    %9 = arith.cmpi eq, %arg2, %c8_i32 : i32
    %10 = arith.extui %9 : i1 to i32
    %c0_i32_8 = arith.constant 0 : i32
    %11 = arith.cmpi ne, %10, %c0_i32_8 : i32
    scf.if %11 {
      %c0_9 = arith.constant 0 : index
      %c0_10 = arith.constant 0 : index
      %12 = vector.load %arg8[%c0_9, %c0_10] : memref<16x128xf32, #tpu.memory_space<vmem>>, vector<16x128xf32>
      %c0_11 = arith.constant 0 : index
      %c0_12 = arith.constant 0 : index
      %13 = vector.load %arg5[%c0_11, %c0_12] : memref<2x128xf32, #tpu.memory_space<vmem>>, vector<1x128xf32>
      %14 = vector.broadcast %13 : vector<1x128xf32> to vector<16x128xf32>
      %15 = arith.mulf %12, %14 : vector<16x128xf32>
      %c1 = arith.constant 1 : index
      %c0_13 = arith.constant 0 : index
      %16 = vector.load %arg5[%c1, %c0_13] : memref<2x128xf32, #tpu.memory_space<vmem>>, vector<1x128xf32>
      %17 = vector.broadcast %16 : vector<1x128xf32> to vector<16x128xf32>
      %18 = arith.addf %15, %17 : vector<16x128xf32>
      %c0_14 = arith.constant 0 : index
      %c0_15 = arith.constant 0 : index
      %19 = vector.load %arg6[%c0_14, %c0_15] : memref<16x128xbf16, #tpu.memory_space<vmem>>, vector<16x128xbf16>
      %20 = arith.extf %19 : vector<16x128xbf16> to vector<16x128xf32>
      %21 = arith.addf %18, %20 : vector<16x128xf32>
      %cst_16 = arith.constant 0.000000e+00 : f32
      %22 = vector.broadcast %cst_16 : f32 to vector<16x128xf32>
      %23 = arith.maximumf %21, %22 : vector<16x128xf32>
      %24 = arith.truncf %23 : vector<16x128xf32> to vector<16x128xbf16>
      %c0_17 = arith.constant 0 : index
      %c0_18 = arith.constant 0 : index
      %25 = vector.load %arg7[%c0_17, %c0_18] : memref<16x128xbf16, #tpu.memory_space<vmem>>, vector<16x128xbf16>
      tpu.vector_store %arg7[%c0_17, %c0_18], %24 {strides = array<i32>} : memref<16x128xbf16, #tpu.memory_space<vmem>>, vector<16x128xbf16>,
    } else {
    }
    return
  }
  func.func @transform_0(%arg0: i32, %arg1: i32, %arg2: i32) -> (i32, i32) {
    %c0_i32 = arith.constant 0 : i32
    return %arg0, %arg2 : i32, i32
  }
  func.func @transform_1(%arg0: i32, %arg1: i32, %arg2: i32) -> (i32, i32) {
    %c0_i32 = arith.constant 0 : i32
    return %arg2, %arg1 : i32, i32
  }
  func.func @transform_2(%arg0: i32, %arg1: i32, %arg2: i32) -> (i32, i32) {
    %c0_i32 = arith.constant 0 : i32
    %c0_i32_0 = arith.constant 0 : i32
    return %c0_i32, %arg1 : i32, i32
  }
  func.func @transform_3(%arg0: i32, %arg1: i32, %arg2: i32) -> (i32, i32) {
    %c0_i32 = arith.constant 0 : i32
    return %arg0, %arg1 : i32, i32
  }
  func.func @transform_4(%arg0: i32, %arg1: i32, %arg2: i32) -> (i32, i32) {
    %c0_i32 = arith.constant 0 : i32
    return %arg0, %arg1 : i32, i32
  }
}

module attributes {stable_mosaic.version = 11 : i64} {
  func.func @_matmul_bn_kernel(%arg0: i32, %arg1: i32, %arg2: i32, %arg3: memref<16x256xbf16, #tpu.memory_space<vmem>>, %arg4: memref<256x128xbf16, #tpu.memory_space<vmem>>, %arg5: memref<2x128xf32, #tpu.memory_space<vmem>>, %arg6: memref<16x128xbf16, #tpu.memory_space<vmem>>, %arg7: memref<16x128xf32, #tpu.memory_space<vmem>>) attributes {dimension_semantics = [#tpu.dimension_semantics<parallel>, #tpu.dimension_semantics<parallel>, #tpu.dimension_semantics<arbitrary>], iteration_bounds = array<i64: 1, 2, 9>, scalar_prefetch = 0 : i64, scratch_operands = 1 : i64, tpu.core_type = #tpu.core_type<tc>, window_params = [{transform_indices = @transform_0, window_bounds = array<i64: 16, 256>}, {transform_indices = @transform_1, window_bounds = array<i64: 256, 128>}, {transform_indices = @transform_2, window_bounds = array<i64: 2, 128>}, {transform_indices = @transform_3, window_bounds = array<i64: 16, 128>}]} {
    %c0_i32 = arith.constant 0 : i32
    %0 = arith.cmpi eq, %arg2, %c0_i32 : i32
    %1 = arith.extui %0 : i1 to i32
    %c0_i32_0 = arith.constant 0 : i32
    %2 = arith.cmpi ne, %1, %c0_i32_0 : i32
    scf.if %2 {
      %cst_9 = arith.constant 0.000000e+00 : f32
      %12 = vector.broadcast %cst_9 : f32 to vector<16x128xf32>
      %c0_10 = arith.constant 0 : index
      %c0_11 = arith.constant 0 : index
      %13 = vector.load %arg7[%c0_10, %c0_11] : memref<16x128xf32, #tpu.memory_space<vmem>>, vector<16x128xf32>
      tpu.vector_store %arg7[%c0_10, %c0_11], %12 {strides = array<i32>} : memref<16x128xf32, #tpu.memory_space<vmem>>, vector<16x128xf32>,
    } else {
    }
    %c0 = arith.constant 0 : index
    %c0_1 = arith.constant 0 : index
    %3 = vector.load %arg7[%c0, %c0_1] : memref<16x128xf32, #tpu.memory_space<vmem>>, vector<16x128xf32>
    %c0_2 = arith.constant 0 : index
    %c0_3 = arith.constant 0 : index
    %4 = vector.load %arg3[%c0_2, %c0_3] : memref<16x256xbf16, #tpu.memory_space<vmem>>, vector<16x256xbf16>
    %c0_4 = arith.constant 0 : index
    %c0_5 = arith.constant 0 : index
    %5 = vector.load %arg4[%c0_4, %c0_5] : memref<256x128xbf16, #tpu.memory_space<vmem>>, vector<256x128xbf16>
    %cst = arith.constant dense<0.000000e+00> : vector<16x128xf32>
    %6 = tpu.matmul %4, %5, %cst {dimension_numbers = #tpu.dot_dimension_numbers<[1], [0], [0], [1], [0, 0, 1, 1], [], []>} : vector<16x256xbf16>, vector<256x128xbf16>, vector<16x128xf32> -> vector<16x128xf32>
    %7 = arith.addf %3, %6 : vector<16x128xf32>
    %c0_6 = arith.constant 0 : index
    %c0_7 = arith.constant 0 : index
    %8 = vector.load %arg7[%c0_6, %c0_7] : memref<16x128xf32, #tpu.memory_space<vmem>>, vector<16x128xf32>
    tpu.vector_store %arg7[%c0_6, %c0_7], %7 {strides = array<i32>} : memref<16x128xf32, #tpu.memory_space<vmem>>, vector<16x128xf32>,
    %c8_i32 = arith.constant 8 : i32
    %9 = arith.cmpi eq, %arg2, %c8_i32 : i32
    %10 = arith.extui %9 : i1 to i32
    %c0_i32_8 = arith.constant 0 : i32
    %11 = arith.cmpi ne, %10, %c0_i32_8 : i32
    scf.if %11 {
      %c0_9 = arith.constant 0 : index
      %c0_10 = arith.constant 0 : index
      %12 = vector.load %arg7[%c0_9, %c0_10] : memref<16x128xf32, #tpu.memory_space<vmem>>, vector<16x128xf32>
      %c0_11 = arith.constant 0 : index
      %c0_12 = arith.constant 0 : index
      %13 = vector.load %arg5[%c0_11, %c0_12] : memref<2x128xf32, #tpu.memory_space<vmem>>, vector<1x128xf32>
      %14 = vector.broadcast %13 : vector<1x128xf32> to vector<16x128xf32>
      %15 = arith.mulf %12, %14 : vector<16x128xf32>
      %c1 = arith.constant 1 : index
      %c0_13 = arith.constant 0 : index
      %16 = vector.load %arg5[%c1, %c0_13] : memref<2x128xf32, #tpu.memory_space<vmem>>, vector<1x128xf32>
      %17 = vector.broadcast %16 : vector<1x128xf32> to vector<16x128xf32>
      %18 = arith.addf %15, %17 : vector<16x128xf32>
      %cst_14 = arith.constant 0.000000e+00 : f32
      %19 = vector.broadcast %cst_14 : f32 to vector<16x128xf32>
      %20 = arith.maximumf %18, %19 : vector<16x128xf32>
      %21 = arith.truncf %20 : vector<16x128xf32> to vector<16x128xbf16>
      %c0_15 = arith.constant 0 : index
      %c0_16 = arith.constant 0 : index
      %22 = vector.load %arg6[%c0_15, %c0_16] : memref<16x128xbf16, #tpu.memory_space<vmem>>, vector<16x128xbf16>
      tpu.vector_store %arg6[%c0_15, %c0_16], %21 {strides = array<i32>} : memref<16x128xbf16, #tpu.memory_space<vmem>>, vector<16x128xbf16>,
    } else {
    }
    return
  }
  func.func @transform_0(%arg0: i32, %arg1: i32, %arg2: i32) -> (i32, i32) {
    %c0_i32 = arith.constant 0 : i32
    return %arg0, %arg2 : i32, i32
  }
  func.func @transform_1(%arg0: i32, %arg1: i32, %arg2: i32) -> (i32, i32) {
    %c0_i32 = arith.constant 0 : i32
    return %arg2, %arg1 : i32, i32
  }
  func.func @transform_2(%arg0: i32, %arg1: i32, %arg2: i32) -> (i32, i32) {
    %c0_i32 = arith.constant 0 : i32
    %c0_i32_0 = arith.constant 0 : i32
    return %c0_i32, %arg1 : i32, i32
  }
  func.func @transform_3(%arg0: i32, %arg1: i32, %arg2: i32) -> (i32, i32) {
    %c0_i32 = arith.constant 0 : i32
    return %arg0, %arg1 : i32, i32
  }
}

module attributes {stable_mosaic.version = 11 : i64} {
  func.func @_matmul_bn_kernel(%arg0: i32, %arg1: i32, %arg2: i32, %arg3: memref<16x256xbf16, #tpu.memory_space<vmem>>, %arg4: memref<256x256xbf16, #tpu.memory_space<vmem>>, %arg5: memref<2x256xf32, #tpu.memory_space<vmem>>, %arg6: memref<16x256xbf16, #tpu.memory_space<vmem>>, %arg7: memref<16x256xf32, #tpu.memory_space<vmem>>) attributes {dimension_semantics = [#tpu.dimension_semantics<parallel>, #tpu.dimension_semantics<parallel>, #tpu.dimension_semantics<arbitrary>], iteration_bounds = array<i64: 1, 2, 9>, scalar_prefetch = 0 : i64, scratch_operands = 1 : i64, tpu.core_type = #tpu.core_type<tc>, window_params = [{transform_indices = @transform_0, window_bounds = array<i64: 16, 256>}, {transform_indices = @transform_1, window_bounds = array<i64: 256, 256>}, {transform_indices = @transform_2, window_bounds = array<i64: 2, 256>}, {transform_indices = @transform_3, window_bounds = array<i64: 16, 256>}]} {
    %c0_i32 = arith.constant 0 : i32
    %0 = arith.cmpi eq, %arg2, %c0_i32 : i32
    %1 = arith.extui %0 : i1 to i32
    %c0_i32_0 = arith.constant 0 : i32
    %2 = arith.cmpi ne, %1, %c0_i32_0 : i32
    scf.if %2 {
      %cst_9 = arith.constant 0.000000e+00 : f32
      %12 = vector.broadcast %cst_9 : f32 to vector<16x256xf32>
      %c0_10 = arith.constant 0 : index
      %c0_11 = arith.constant 0 : index
      %13 = vector.load %arg7[%c0_10, %c0_11] : memref<16x256xf32, #tpu.memory_space<vmem>>, vector<16x256xf32>
      tpu.vector_store %arg7[%c0_10, %c0_11], %12 {strides = array<i32>} : memref<16x256xf32, #tpu.memory_space<vmem>>, vector<16x256xf32>,
    } else {
    }
    %c0 = arith.constant 0 : index
    %c0_1 = arith.constant 0 : index
    %3 = vector.load %arg7[%c0, %c0_1] : memref<16x256xf32, #tpu.memory_space<vmem>>, vector<16x256xf32>
    %c0_2 = arith.constant 0 : index
    %c0_3 = arith.constant 0 : index
    %4 = vector.load %arg3[%c0_2, %c0_3] : memref<16x256xbf16, #tpu.memory_space<vmem>>, vector<16x256xbf16>
    %c0_4 = arith.constant 0 : index
    %c0_5 = arith.constant 0 : index
    %5 = vector.load %arg4[%c0_4, %c0_5] : memref<256x256xbf16, #tpu.memory_space<vmem>>, vector<256x256xbf16>
    %cst = arith.constant dense<0.000000e+00> : vector<16x256xf32>
    %6 = tpu.matmul %4, %5, %cst {dimension_numbers = #tpu.dot_dimension_numbers<[1], [0], [0], [1], [0, 0, 1, 1], [], []>} : vector<16x256xbf16>, vector<256x256xbf16>, vector<16x256xf32> -> vector<16x256xf32>
    %7 = arith.addf %3, %6 : vector<16x256xf32>
    %c0_6 = arith.constant 0 : index
    %c0_7 = arith.constant 0 : index
    %8 = vector.load %arg7[%c0_6, %c0_7] : memref<16x256xf32, #tpu.memory_space<vmem>>, vector<16x256xf32>
    tpu.vector_store %arg7[%c0_6, %c0_7], %7 {strides = array<i32>} : memref<16x256xf32, #tpu.memory_space<vmem>>, vector<16x256xf32>,
    %c8_i32 = arith.constant 8 : i32
    %9 = arith.cmpi eq, %arg2, %c8_i32 : i32
    %10 = arith.extui %9 : i1 to i32
    %c0_i32_8 = arith.constant 0 : i32
    %11 = arith.cmpi ne, %10, %c0_i32_8 : i32
    scf.if %11 {
      %c0_9 = arith.constant 0 : index
      %c0_10 = arith.constant 0 : index
      %12 = vector.load %arg7[%c0_9, %c0_10] : memref<16x256xf32, #tpu.memory_space<vmem>>, vector<16x256xf32>
      %c0_11 = arith.constant 0 : index
      %c0_12 = arith.constant 0 : index
      %13 = vector.load %arg5[%c0_11, %c0_12] : memref<2x256xf32, #tpu.memory_space<vmem>>, vector<1x256xf32>
      %14 = vector.broadcast %13 : vector<1x256xf32> to vector<16x256xf32>
      %15 = arith.mulf %12, %14 : vector<16x256xf32>
      %c1 = arith.constant 1 : index
      %c0_13 = arith.constant 0 : index
      %16 = vector.load %arg5[%c1, %c0_13] : memref<2x256xf32, #tpu.memory_space<vmem>>, vector<1x256xf32>
      %17 = vector.broadcast %16 : vector<1x256xf32> to vector<16x256xf32>
      %18 = arith.addf %15, %17 : vector<16x256xf32>
      %cst_14 = arith.constant 0.000000e+00 : f32
      %19 = vector.broadcast %cst_14 : f32 to vector<16x256xf32>
      %20 = arith.maximumf %18, %19 : vector<16x256xf32>
      %21 = arith.truncf %20 : vector<16x256xf32> to vector<16x256xbf16>
      %c0_15 = arith.constant 0 : index
      %c0_16 = arith.constant 0 : index
      %22 = vector.load %arg6[%c0_15, %c0_16] : memref<16x256xbf16, #tpu.memory_space<vmem>>, vector<16x256xbf16>
      tpu.vector_store %arg6[%c0_15, %c0_16], %21 {strides = array<i32>} : memref<16x256xbf16, #tpu.memory_space<vmem>>, vector<16x256xbf16>,
    } else {
    }
    return
  }
  func.func @transform_0(%arg0: i32, %arg1: i32, %arg2: i32) -> (i32, i32) {
    %c0_i32 = arith.constant 0 : i32
    return %arg0, %arg2 : i32, i32
  }
  func.func @transform_1(%arg0: i32, %arg1: i32, %arg2: i32) -> (i32, i32) {
    %c0_i32 = arith.constant 0 : i32
    return %arg2, %arg1 : i32, i32
  }
  func.func @transform_2(%arg0: i32, %arg1: i32, %arg2: i32) -> (i32, i32) {
    %c0_i32 = arith.constant 0 : i32
    %c0_i32_0 = arith.constant 0 : i32
    return %c0_i32, %arg1 : i32, i32
  }
  func.func @transform_3(%arg0: i32, %arg1: i32, %arg2: i32) -> (i32, i32) {
    %c0_i32 = arith.constant 0 : i32
    return %arg0, %arg1 : i32, i32
  }
}

module attributes {stable_mosaic.version = 11 : i64} {
  func.func @_matmul_bn_kernel(%arg0: i32, %arg1: i32, %arg2: i32, %arg3: memref<16x256xbf16, #tpu.memory_space<vmem>>, %arg4: memref<256x256xbf16, #tpu.memory_space<vmem>>, %arg5: memref<2x256xf32, #tpu.memory_space<vmem>>, %arg6: memref<16x256xbf16, #tpu.memory_space<vmem>>, %arg7: memref<16x256xf32, #tpu.memory_space<vmem>>) attributes {dimension_semantics = [#tpu.dimension_semantics<parallel>, #tpu.dimension_semantics<parallel>, #tpu.dimension_semantics<arbitrary>], iteration_bounds = array<i64: 1, 2, 1>, scalar_prefetch = 0 : i64, scratch_operands = 1 : i64, tpu.core_type = #tpu.core_type<tc>, window_params = [{transform_indices = @transform_0, window_bounds = array<i64: 16, 256>}, {transform_indices = @transform_1, window_bounds = array<i64: 256, 256>}, {transform_indices = @transform_2, window_bounds = array<i64: 2, 256>}, {transform_indices = @transform_3, window_bounds = array<i64: 16, 256>}]} {
    %c0_i32 = arith.constant 0 : i32
    %0 = arith.cmpi eq, %arg2, %c0_i32 : i32
    %1 = arith.extui %0 : i1 to i32
    %c0_i32_0 = arith.constant 0 : i32
    %2 = arith.cmpi ne, %1, %c0_i32_0 : i32
    scf.if %2 {
      %cst_10 = arith.constant 0.000000e+00 : f32
      %12 = vector.broadcast %cst_10 : f32 to vector<16x256xf32>
      %c0_11 = arith.constant 0 : index
      %c0_12 = arith.constant 0 : index
      %13 = vector.load %arg7[%c0_11, %c0_12] : memref<16x256xf32, #tpu.memory_space<vmem>>, vector<16x256xf32>
      tpu.vector_store %arg7[%c0_11, %c0_12], %12 {strides = array<i32>} : memref<16x256xf32, #tpu.memory_space<vmem>>, vector<16x256xf32>,
    } else {
    }
    %c0 = arith.constant 0 : index
    %c0_1 = arith.constant 0 : index
    %3 = vector.load %arg7[%c0, %c0_1] : memref<16x256xf32, #tpu.memory_space<vmem>>, vector<16x256xf32>
    %c0_2 = arith.constant 0 : index
    %c0_3 = arith.constant 0 : index
    %4 = vector.load %arg3[%c0_2, %c0_3] : memref<16x256xbf16, #tpu.memory_space<vmem>>, vector<16x256xbf16>
    %c0_4 = arith.constant 0 : index
    %c0_5 = arith.constant 0 : index
    %5 = vector.load %arg4[%c0_4, %c0_5] : memref<256x256xbf16, #tpu.memory_space<vmem>>, vector<256x256xbf16>
    %cst = arith.constant dense<0.000000e+00> : vector<16x256xf32>
    %6 = tpu.matmul %4, %5, %cst {dimension_numbers = #tpu.dot_dimension_numbers<[1], [0], [0], [1], [0, 0, 1, 1], [], []>} : vector<16x256xbf16>, vector<256x256xbf16>, vector<16x256xf32> -> vector<16x256xf32>
    %7 = arith.addf %3, %6 : vector<16x256xf32>
    %c0_6 = arith.constant 0 : index
    %c0_7 = arith.constant 0 : index
    %8 = vector.load %arg7[%c0_6, %c0_7] : memref<16x256xf32, #tpu.memory_space<vmem>>, vector<16x256xf32>
    tpu.vector_store %arg7[%c0_6, %c0_7], %7 {strides = array<i32>} : memref<16x256xf32, #tpu.memory_space<vmem>>, vector<16x256xf32>,
    %c0_i32_8 = arith.constant 0 : i32
    %9 = arith.cmpi eq, %arg2, %c0_i32_8 : i32
    %10 = arith.extui %9 : i1 to i32
    %c0_i32_9 = arith.constant 0 : i32
    %11 = arith.cmpi ne, %10, %c0_i32_9 : i32
    scf.if %11 {
      %c0_10 = arith.constant 0 : index
      %c0_11 = arith.constant 0 : index
      %12 = vector.load %arg7[%c0_10, %c0_11] : memref<16x256xf32, #tpu.memory_space<vmem>>, vector<16x256xf32>
      %c0_12 = arith.constant 0 : index
      %c0_13 = arith.constant 0 : index
      %13 = vector.load %arg5[%c0_12, %c0_13] : memref<2x256xf32, #tpu.memory_space<vmem>>, vector<1x256xf32>
      %14 = vector.broadcast %13 : vector<1x256xf32> to vector<16x256xf32>
      %15 = arith.mulf %12, %14 : vector<16x256xf32>
      %c1 = arith.constant 1 : index
      %c0_14 = arith.constant 0 : index
      %16 = vector.load %arg5[%c1, %c0_14] : memref<2x256xf32, #tpu.memory_space<vmem>>, vector<1x256xf32>
      %17 = vector.broadcast %16 : vector<1x256xf32> to vector<16x256xf32>
      %18 = arith.addf %15, %17 : vector<16x256xf32>
      %19 = arith.truncf %18 : vector<16x256xf32> to vector<16x256xbf16>
      %c0_15 = arith.constant 0 : index
      %c0_16 = arith.constant 0 : index
      %20 = vector.load %arg6[%c0_15, %c0_16] : memref<16x256xbf16, #tpu.memory_space<vmem>>, vector<16x256xbf16>
      tpu.vector_store %arg6[%c0_15, %c0_16], %19 {strides = array<i32>} : memref<16x256xbf16, #tpu.memory_space<vmem>>, vector<16x256xbf16>,
    } else {
    }
    return
  }
  func.func @transform_0(%arg0: i32, %arg1: i32, %arg2: i32) -> (i32, i32) {
    %c0_i32 = arith.constant 0 : i32
    return %arg0, %arg2 : i32, i32
  }
  func.func @transform_1(%arg0: i32, %arg1: i32, %arg2: i32) -> (i32, i32) {
    %c0_i32 = arith.constant 0 : i32
    return %arg2, %arg1 : i32, i32
  }
  func.func @transform_2(%arg0: i32, %arg1: i32, %arg2: i32) -> (i32, i32) {
    %c0_i32 = arith.constant 0 : i32
    %c0_i32_0 = arith.constant 0 : i32
    return %c0_i32, %arg1 : i32, i32
  }
  func.func @transform_3(%arg0: i32, %arg1: i32, %arg2: i32) -> (i32, i32) {
    %c0_i32 = arith.constant 0 : i32
    return %arg0, %arg1 : i32, i32
  }
}

module attributes {stable_mosaic.version = 11 : i64} {
  func.func @_matmul_bn_kernel(%arg0: i32, %arg1: i32, %arg2: i32, %arg3: memref<16x256xbf16, #tpu.memory_space<vmem>>, %arg4: memref<256x256xbf16, #tpu.memory_space<vmem>>, %arg5: memref<2x256xf32, #tpu.memory_space<vmem>>, %arg6: memref<16x256xbf16, #tpu.memory_space<vmem>>, %arg7: memref<16x256xbf16, #tpu.memory_space<vmem>>, %arg8: memref<16x256xf32, #tpu.memory_space<vmem>>) attributes {dimension_semantics = [#tpu.dimension_semantics<parallel>, #tpu.dimension_semantics<parallel>, #tpu.dimension_semantics<arbitrary>], iteration_bounds = array<i64: 1, 2, 18>, scalar_prefetch = 0 : i64, scratch_operands = 1 : i64, tpu.core_type = #tpu.core_type<tc>, window_params = [{transform_indices = @transform_0, window_bounds = array<i64: 16, 256>}, {transform_indices = @transform_1, window_bounds = array<i64: 256, 256>}, {transform_indices = @transform_2, window_bounds = array<i64: 2, 256>}, {transform_indices = @transform_3, window_bounds = array<i64: 16, 256>}, {transform_indices = @transform_4, window_bounds = array<i64: 16, 256>}]} {
    %c0_i32 = arith.constant 0 : i32
    %0 = arith.cmpi eq, %arg2, %c0_i32 : i32
    %1 = arith.extui %0 : i1 to i32
    %c0_i32_0 = arith.constant 0 : i32
    %2 = arith.cmpi ne, %1, %c0_i32_0 : i32
    scf.if %2 {
      %cst_9 = arith.constant 0.000000e+00 : f32
      %12 = vector.broadcast %cst_9 : f32 to vector<16x256xf32>
      %c0_10 = arith.constant 0 : index
      %c0_11 = arith.constant 0 : index
      %13 = vector.load %arg8[%c0_10, %c0_11] : memref<16x256xf32, #tpu.memory_space<vmem>>, vector<16x256xf32>
      tpu.vector_store %arg8[%c0_10, %c0_11], %12 {strides = array<i32>} : memref<16x256xf32, #tpu.memory_space<vmem>>, vector<16x256xf32>,
    } else {
    }
    %c0 = arith.constant 0 : index
    %c0_1 = arith.constant 0 : index
    %3 = vector.load %arg8[%c0, %c0_1] : memref<16x256xf32, #tpu.memory_space<vmem>>, vector<16x256xf32>
    %c0_2 = arith.constant 0 : index
    %c0_3 = arith.constant 0 : index
    %4 = vector.load %arg3[%c0_2, %c0_3] : memref<16x256xbf16, #tpu.memory_space<vmem>>, vector<16x256xbf16>
    %c0_4 = arith.constant 0 : index
    %c0_5 = arith.constant 0 : index
    %5 = vector.load %arg4[%c0_4, %c0_5] : memref<256x256xbf16, #tpu.memory_space<vmem>>, vector<256x256xbf16>
    %cst = arith.constant dense<0.000000e+00> : vector<16x256xf32>
    %6 = tpu.matmul %4, %5, %cst {dimension_numbers = #tpu.dot_dimension_numbers<[1], [0], [0], [1], [0, 0, 1, 1], [], []>} : vector<16x256xbf16>, vector<256x256xbf16>, vector<16x256xf32> -> vector<16x256xf32>
    %7 = arith.addf %3, %6 : vector<16x256xf32>
    %c0_6 = arith.constant 0 : index
    %c0_7 = arith.constant 0 : index
    %8 = vector.load %arg8[%c0_6, %c0_7] : memref<16x256xf32, #tpu.memory_space<vmem>>, vector<16x256xf32>
    tpu.vector_store %arg8[%c0_6, %c0_7], %7 {strides = array<i32>} : memref<16x256xf32, #tpu.memory_space<vmem>>, vector<16x256xf32>,
    %c17_i32 = arith.constant 17 : i32
    %9 = arith.cmpi eq, %arg2, %c17_i32 : i32
    %10 = arith.extui %9 : i1 to i32
    %c0_i32_8 = arith.constant 0 : i32
    %11 = arith.cmpi ne, %10, %c0_i32_8 : i32
    scf.if %11 {
      %c0_9 = arith.constant 0 : index
      %c0_10 = arith.constant 0 : index
      %12 = vector.load %arg8[%c0_9, %c0_10] : memref<16x256xf32, #tpu.memory_space<vmem>>, vector<16x256xf32>
      %c0_11 = arith.constant 0 : index
      %c0_12 = arith.constant 0 : index
      %13 = vector.load %arg5[%c0_11, %c0_12] : memref<2x256xf32, #tpu.memory_space<vmem>>, vector<1x256xf32>
      %14 = vector.broadcast %13 : vector<1x256xf32> to vector<16x256xf32>
      %15 = arith.mulf %12, %14 : vector<16x256xf32>
      %c1 = arith.constant 1 : index
      %c0_13 = arith.constant 0 : index
      %16 = vector.load %arg5[%c1, %c0_13] : memref<2x256xf32, #tpu.memory_space<vmem>>, vector<1x256xf32>
      %17 = vector.broadcast %16 : vector<1x256xf32> to vector<16x256xf32>
      %18 = arith.addf %15, %17 : vector<16x256xf32>
      %c0_14 = arith.constant 0 : index
      %c0_15 = arith.constant 0 : index
      %19 = vector.load %arg6[%c0_14, %c0_15] : memref<16x256xbf16, #tpu.memory_space<vmem>>, vector<16x256xbf16>
      %20 = arith.extf %19 : vector<16x256xbf16> to vector<16x256xf32>
      %21 = arith.addf %18, %20 : vector<16x256xf32>
      %cst_16 = arith.constant 0.000000e+00 : f32
      %22 = vector.broadcast %cst_16 : f32 to vector<16x256xf32>
      %23 = arith.maximumf %21, %22 : vector<16x256xf32>
      %24 = arith.truncf %23 : vector<16x256xf32> to vector<16x256xbf16>
      %c0_17 = arith.constant 0 : index
      %c0_18 = arith.constant 0 : index
      %25 = vector.load %arg7[%c0_17, %c0_18] : memref<16x256xbf16, #tpu.memory_space<vmem>>, vector<16x256xbf16>
      tpu.vector_store %arg7[%c0_17, %c0_18], %24 {strides = array<i32>} : memref<16x256xbf16, #tpu.memory_space<vmem>>, vector<16x256xbf16>,
    } else {
    }
    return
  }
  func.func @transform_0(%arg0: i32, %arg1: i32, %arg2: i32) -> (i32, i32) {
    %c0_i32 = arith.constant 0 : i32
    return %arg0, %arg2 : i32, i32
  }
  func.func @transform_1(%arg0: i32, %arg1: i32, %arg2: i32) -> (i32, i32) {
    %c0_i32 = arith.constant 0 : i32
    return %arg2, %arg1 : i32, i32
  }
  func.func @transform_2(%arg0: i32, %arg1: i32, %arg2: i32) -> (i32, i32) {
    %c0_i32 = arith.constant 0 : i32
    %c0_i32_0 = arith.constant 0 : i32
    return %c0_i32, %arg1 : i32, i32
  }
  func.func @transform_3(%arg0: i32, %arg1: i32, %arg2: i32) -> (i32, i32) {
    %c0_i32 = arith.constant 0 : i32
    return %arg0, %arg1 : i32, i32
  }
  func.func @transform_4(%arg0: i32, %arg1: i32, %arg2: i32) -> (i32, i32) {
    %c0_i32 = arith.constant 0 : i32
    return %arg0, %arg1 : i32, i32
  }
}

module attributes {stable_mosaic.version = 11 : i64} {
  func.func @_matmul_bn_kernel(%arg0: i32, %arg1: i32, %arg2: i32, %arg3: memref<16x256xbf16, #tpu.memory_space<vmem>>, %arg4: memref<256x256xbf16, #tpu.memory_space<vmem>>, %arg5: memref<2x256xf32, #tpu.memory_space<vmem>>, %arg6: memref<16x256xbf16, #tpu.memory_space<vmem>>, %arg7: memref<16x256xf32, #tpu.memory_space<vmem>>) attributes {dimension_semantics = [#tpu.dimension_semantics<parallel>, #tpu.dimension_semantics<parallel>, #tpu.dimension_semantics<arbitrary>], iteration_bounds = array<i64: 1, 2, 18>, scalar_prefetch = 0 : i64, scratch_operands = 1 : i64, tpu.core_type = #tpu.core_type<tc>, window_params = [{transform_indices = @transform_0, window_bounds = array<i64: 16, 256>}, {transform_indices = @transform_1, window_bounds = array<i64: 256, 256>}, {transform_indices = @transform_2, window_bounds = array<i64: 2, 256>}, {transform_indices = @transform_3, window_bounds = array<i64: 16, 256>}]} {
    %c0_i32 = arith.constant 0 : i32
    %0 = arith.cmpi eq, %arg2, %c0_i32 : i32
    %1 = arith.extui %0 : i1 to i32
    %c0_i32_0 = arith.constant 0 : i32
    %2 = arith.cmpi ne, %1, %c0_i32_0 : i32
    scf.if %2 {
      %cst_9 = arith.constant 0.000000e+00 : f32
      %12 = vector.broadcast %cst_9 : f32 to vector<16x256xf32>
      %c0_10 = arith.constant 0 : index
      %c0_11 = arith.constant 0 : index
      %13 = vector.load %arg7[%c0_10, %c0_11] : memref<16x256xf32, #tpu.memory_space<vmem>>, vector<16x256xf32>
      tpu.vector_store %arg7[%c0_10, %c0_11], %12 {strides = array<i32>} : memref<16x256xf32, #tpu.memory_space<vmem>>, vector<16x256xf32>,
    } else {
    }
    %c0 = arith.constant 0 : index
    %c0_1 = arith.constant 0 : index
    %3 = vector.load %arg7[%c0, %c0_1] : memref<16x256xf32, #tpu.memory_space<vmem>>, vector<16x256xf32>
    %c0_2 = arith.constant 0 : index
    %c0_3 = arith.constant 0 : index
    %4 = vector.load %arg3[%c0_2, %c0_3] : memref<16x256xbf16, #tpu.memory_space<vmem>>, vector<16x256xbf16>
    %c0_4 = arith.constant 0 : index
    %c0_5 = arith.constant 0 : index
    %5 = vector.load %arg4[%c0_4, %c0_5] : memref<256x256xbf16, #tpu.memory_space<vmem>>, vector<256x256xbf16>
    %cst = arith.constant dense<0.000000e+00> : vector<16x256xf32>
    %6 = tpu.matmul %4, %5, %cst {dimension_numbers = #tpu.dot_dimension_numbers<[1], [0], [0], [1], [0, 0, 1, 1], [], []>} : vector<16x256xbf16>, vector<256x256xbf16>, vector<16x256xf32> -> vector<16x256xf32>
    %7 = arith.addf %3, %6 : vector<16x256xf32>
    %c0_6 = arith.constant 0 : index
    %c0_7 = arith.constant 0 : index
    %8 = vector.load %arg7[%c0_6, %c0_7] : memref<16x256xf32, #tpu.memory_space<vmem>>, vector<16x256xf32>
    tpu.vector_store %arg7[%c0_6, %c0_7], %7 {strides = array<i32>} : memref<16x256xf32, #tpu.memory_space<vmem>>, vector<16x256xf32>,
    %c17_i32 = arith.constant 17 : i32
    %9 = arith.cmpi eq, %arg2, %c17_i32 : i32
    %10 = arith.extui %9 : i1 to i32
    %c0_i32_8 = arith.constant 0 : i32
    %11 = arith.cmpi ne, %10, %c0_i32_8 : i32
    scf.if %11 {
      %c0_9 = arith.constant 0 : index
      %c0_10 = arith.constant 0 : index
      %12 = vector.load %arg7[%c0_9, %c0_10] : memref<16x256xf32, #tpu.memory_space<vmem>>, vector<16x256xf32>
      %c0_11 = arith.constant 0 : index
      %c0_12 = arith.constant 0 : index
      %13 = vector.load %arg5[%c0_11, %c0_12] : memref<2x256xf32, #tpu.memory_space<vmem>>, vector<1x256xf32>
      %14 = vector.broadcast %13 : vector<1x256xf32> to vector<16x256xf32>
      %15 = arith.mulf %12, %14 : vector<16x256xf32>
      %c1 = arith.constant 1 : index
      %c0_13 = arith.constant 0 : index
      %16 = vector.load %arg5[%c1, %c0_13] : memref<2x256xf32, #tpu.memory_space<vmem>>, vector<1x256xf32>
      %17 = vector.broadcast %16 : vector<1x256xf32> to vector<16x256xf32>
      %18 = arith.addf %15, %17 : vector<16x256xf32>
      %cst_14 = arith.constant 0.000000e+00 : f32
      %19 = vector.broadcast %cst_14 : f32 to vector<16x256xf32>
      %20 = arith.maximumf %18, %19 : vector<16x256xf32>
      %21 = arith.truncf %20 : vector<16x256xf32> to vector<16x256xbf16>
      %c0_15 = arith.constant 0 : index
      %c0_16 = arith.constant 0 : index
      %22 = vector.load %arg6[%c0_15, %c0_16] : memref<16x256xbf16, #tpu.memory_space<vmem>>, vector<16x256xbf16>
      tpu.vector_store %arg6[%c0_15, %c0_16], %21 {strides = array<i32>} : memref<16x256xbf16, #tpu.memory_space<vmem>>, vector<16x256xbf16>,
    } else {
    }
    return
  }
  func.func @transform_0(%arg0: i32, %arg1: i32, %arg2: i32) -> (i32, i32) {
    %c0_i32 = arith.constant 0 : i32
    return %arg0, %arg2 : i32, i32
  }
  func.func @transform_1(%arg0: i32, %arg1: i32, %arg2: i32) -> (i32, i32) {
    %c0_i32 = arith.constant 0 : i32
    return %arg2, %arg1 : i32, i32
  }
  func.func @transform_2(%arg0: i32, %arg1: i32, %arg2: i32) -> (i32, i32) {
    %c0_i32 = arith.constant 0 : i32
    %c0_i32_0 = arith.constant 0 : i32
    return %c0_i32, %arg1 : i32, i32
  }
  func.func @transform_3(%arg0: i32, %arg1: i32, %arg2: i32) -> (i32, i32) {
    %c0_i32 = arith.constant 0 : i32
    return %arg0, %arg1 : i32, i32
  }
}

</mosaic_0001>

<bundles_post_ra>
// kernel: my_script_module_forward.20
= control target key start
LH: loop header
LB: loop body
LE: loop exit
PB: predicated region body
PF: predicated region fallthrough
CT: control target
= control target key end

     0   :  { %s1652_s12 = smov 0   ;;  %s1654_s13 = smov 0   ;;  %s1898_s0 = inlined_call_operand.vmem [shape: bf16[512,256], index: 0, kind: input, shape index: {}]   ;;  %s1899_s1 = inlined_call_operand.vmem [shape: bf16[256,128], index: 1, kind: input, shape index: {}]   ;;  %s1900_s2 = inlined_call_operand.vmem [shape: f32[2,128], index: 2, kind: input, shape index: {}]   ;;  %s1901_s3 = inlined_call_operand.vmem [shape: bf16[512,128], index: 3, kind: output, shape index: {}]  }
   0x1   :  { %s1656_s14 = smov 0  }
   0x2 LB: > { %s32_s15 = sadd.s32 1, %s1626_s13  ;;  %p1222_p0 = scmp.ge.s32.totalorder %s1630_s14, 1  ;;  %s1630_s14 = sphi %s1656_s14, %s13_s14   ;;  %s1626_s13 = sphi %s1654_s13, %s1903_s13   ;;  %s1622_s12 = sphi %s1652_s12, %s1902_s12  }
   0x3   : > { %p34_p1 = scmp.ge.s32.totalorder %s32_s15, 2  ;;  %p192_p2 = scmp.lt.s32.totalorder %s1630_s14, 3 }
   0x5   : > { %s1905_s15 = smov (%p34_p1, %s32_s15), 0  ;;  %p193_p3 = pnand %p1222_p0, %p192_p2 }
   0x6   : > { %s1223_s28 = sshll.u32 (!%p193_p3), %s1622_s12, 5 }
   0x7   : > { %196 = sbr.rel (%p193_p3) target bundleno = 308 (0x134), region = 32  ;;  %p238_p4 = scmp.lt.s32.totalorder (!%p193_p3), %s1223_s28, 63 }
   0xc   : > { %v1462_v0 = vld [vmem:[%s1899_s1 + $0x38] sm:$0xff]  ;;  %v1461_v2 = vld [vmem:[%s1899_s1 + $0x30] sm:$0xff]  ;;  %v1460_v4 = vld [vmem:[%s1899_s1 + $0x28] sm:$0xff]  ;;  %s1907_s28 = smov (!%p238_p4, %s1223_s28), 63 }
   0xd   : > { %v1470_v1 = vld [vmem:[%s1899_s1 + $0x78] sm:$0xff]  ;;  %658 = vmatpush.bf16.msra.mxu0 %v1462_v0  ;;  %1566 = vmatpush.bf16.msra.mxu2 %v1462_v0  ;;  %v1469_v3 = vld [vmem:[%s1899_s1 + $0x70] sm:$0xff]  ;;  %v1468_v5 = vld [vmem:[%s1899_s1 + $0x68] sm:$0xff]  ;;  %s1422_s17 = sshll.u32 %s1907_s28, 3  ;;  %s1227_s7 = sshll.u32 %s1907_s28, 2 }
   0xe   : > { %747 = vmatpush.bf16.msra.mxu1 %v1470_v1  ;;  %1574 = vmatpush.bf16.msra.mxu3 %v1470_v1  ;;  %v1459_v6 = vld [vmem:[%s1899_s1 + $0x20] sm:$0xff]  ;;  %v1458_v8 = vld [vmem:[%s1899_s1 + $0x18] sm:$0xff]  ;;  %v1457_v10 = vld [vmem:[%s1899_s1 + $0x10] sm:$0xff]  ;;  %s1718_s22 = scalar_lea.vmem %s1898_s0, %s1422_s17  ;;  %s1812_s10 = scalar_lea.vmem %s1901_s3, %s1227_s7 }
   0xf   : > { %v1467_v7 = vld [vmem:[%s1899_s1 + $0x60] sm:$0xff]  ;;  %v1466_v9 = vld [vmem:[%s1899_s1 + $0x58] sm:$0xff]  ;;  %v1465_v11 = vld [vmem:[%s1899_s1 + $0x50] sm:$0xff] }
  0x10   : > { %v1456_v12 = vld [vmem:[%s1899_s1 + $0x8] sm:$0xff]  ;;  %v1455_v14 = vld [vmem:[%s1899_s1] sm:$0xff]  ;;  %v1238_v28 = vld [vmem:[%s1718_s22 + $0x10] sm:$0xf] }
  0x11   : > { %659 = vmatpush.bf16.msra.mxu0 %v1461_v2  ;;  %1567 = vmatpush.bf16.msra.mxu2 %v1461_v2  ;;  %v1464_v13 = vld [vmem:[%s1899_s1 + $0x48] sm:$0xff]  ;;  %v1463_v15 = vld [vmem:[%s1899_s1 + $0x40] sm:$0xff]  ;;  %v1426_v29 = vld [vmem:[%s1718_s22 + $0x14] sm:$0xf0] }
  0x12   : > { %748 = vmatpush.bf16.msra.mxu1 %v1469_v3  ;;  %1575 = vmatpush.bf16.msra.mxu3 %v1469_v3  ;;  %v1230_v16 = vld [vmem:[%s1718_s22] sm:$0xf]  ;;  %v1424_v17 = vld [vmem:[%s1718_s22 + $0x4] sm:$0xf0]  ;;  %v1423_v20 = vld [vmem:[%s1718_s22 + $0x4] sm:$0xf]  ;;  %v1239_v36 = vor.u32 %v1426_v29, %v1238_v28 }
  0x13   : > { %v1294_v18 = vld [vmem:[%s1718_s22 + $0x80] sm:$0xf]  ;;  %v1440_v19 = vld [vmem:[%s1718_s22 + $0x84] sm:$0xf0]  ;;  %v1232_v21 = vld [vmem:[%s1718_s22 + $0x8] sm:$0xf0]  ;;  %v1231_v24 = vor.u32 %v1424_v17, %v1230_v16 }
  0x14   : > { %v1439_v22 = vld [vmem:[%s1718_s22 + $0x84] sm:$0xf]  ;;  %v1296_v23 = vld [vmem:[%s1718_s22 + $0x88] sm:$0xf0]  ;;  %v1295_v25 = vor.u32 %v1440_v19, %v1294_v18  ;;  %v1235_v26 = vor.u32 %v1423_v20, %v1232_v21  ;;  %v1302_v30 = vld [vmem:[%s1718_s22 + $0x90] sm:$0xf] }
  0x15   : > { %660 = vmatpush.bf16.msra.mxu0 %v1460_v4  ;;  %1568 = vmatpush.bf16.msra.mxu2 %v1460_v4  ;;  %v1299_v27 = vor.u32 %v1439_v22, %v1296_v23  ;;  %v1442_v31 = vld [vmem:[%s1718_s22 + $0x94] sm:$0xf0]  ;;  %v1425_v32 = vld [vmem:[%s1718_s22 + $0x14] sm:$0xf]  ;;  %v1240_v33 = vld [vmem:[%s1718_s22 + $0x18] sm:$0xf0] }
  0x16   : > { %749 = vmatpush.bf16.msra.mxu1 %v1468_v5  ;;  %1576 = vmatpush.bf16.msra.mxu3 %v1468_v5  ;;  %v1441_v34 = vld [vmem:[%s1718_s22 + $0x94] sm:$0xf]  ;;  %v1304_v35 = vld [vmem:[%s1718_s22 + $0x98] sm:$0xf0]  ;;  %v1303_v37 = vor.u32 %v1442_v31, %v1302_v30  ;;  %v1243_v38 = vor.u32 %v1425_v32, %v1240_v33  ;;  %v1246_v40 = vld [vmem:[%s1718_s22 + $0x20] sm:$0xf] }
  0x17   : > { %v1307_v39 = vor.u32 %v1441_v34, %v1304_v35  ;;  %v1428_v41 = vld [vmem:[%s1718_s22 + $0x24] sm:$0xf0]  ;;  %v1310_v42 = vld [vmem:[%s1718_s22 + $0xa0] sm:$0xf]  ;;  %v1427_v44 = vld [vmem:[%s1718_s22 + $0x24] sm:$0xf] }
  0x18   : > { %v1444_v43 = vld [vmem:[%s1718_s22 + $0xa4] sm:$0xf0]  ;;  %v1248_v45 = vld [vmem:[%s1718_s22 + $0x28] sm:$0xf0]  ;;  %v1443_v46 = vld [vmem:[%s1718_s22 + $0xa4] sm:$0xf]  ;;  %v1247_v48 = vor.u32 %v1428_v41, %v1246_v40 }
  0x19   : > { %661 = vmatpush.bf16.msra.mxu0 %v1459_v6  ;;  %1569 = vmatpush.bf16.msra.mxu2 %v1459_v6  ;;  %v1312_v47 = vld [vmem:[%s1718_s22 + $0xa8] sm:$0xf0]  ;;  %v1311_v49 = vor.u32 %v1444_v43, %v1310_v42  ;;  %v1251_v50 = vor.u32 %v1427_v44, %v1248_v45  ;;  %v1254_v52 = vld [vmem:[%s1718_s22 + $0x30] sm:$0xf]  ;;  %v1430_v53 = vld [vmem:[%s1718_s22 + $0x34] sm:$0xf0] }
  0x1a   : > { %750 = vmatpush.bf16.msra.mxu1 %v1467_v7  ;;  %1577 = vmatpush.bf16.msra.mxu3 %v1467_v7  ;;  %v1315_v51 = vor.u32 %v1443_v46, %v1312_v47  ;;  %v1318_v54 = vld [vmem:[%s1718_s22 + $0xb0] sm:$0xf]  ;;  %v1446_v55 = vld [vmem:[%s1718_s22 + $0xb4] sm:$0xf0]  ;;  %v1429_v56 = vld [vmem:[%s1718_s22 + $0x34] sm:$0xf]  ;;  %v1255_v60 = vor.u32 %v1430_v53, %v1254_v52 }
  0x1b   : > { %v1256_v57 = vld [vmem:[%s1718_s22 + $0x38] sm:$0xf0]  ;;  %v1445_v58 = vld [vmem:[%s1718_s22 + $0xb4] sm:$0xf]  ;;  %v1319_v61 = vor.u32 %v1446_v55, %v1318_v54  ;;  %v1262_v0 = vld [vmem:[%s1718_s22 + $0x40] sm:$0xf] }
  0x1c   : > { %v1320_v59 = vld [vmem:[%s1718_s22 + $0xb8] sm:$0xf0]  ;;  %v1259_v62 = vor.u32 %v1429_v56, %v1256_v57  ;;  %v1432_v1 = vld [vmem:[%s1718_s22 + $0x44] sm:$0xf0]  ;;  %v1326_v2 = vld [vmem:[%s1718_s22 + $0xc0] sm:$0xf] }
  0x1d   : > { %662 = vmatpush.bf16.msra.mxu0 %v1458_v8  ;;  %1570 = vmatpush.bf16.msra.mxu2 %v1458_v8  ;;  %v1323_v63 = vor.u32 %v1445_v58, %v1320_v59  ;;  %v1448_v3 = vld [vmem:[%s1718_s22 + $0xc4] sm:$0xf0]  ;;  %v1431_v4 = vld [vmem:[%s1718_s22 + $0x44] sm:$0xf]  ;;  %v1264_v5 = vld [vmem:[%s1718_s22 + $0x48] sm:$0xf0]  ;;  %v1263_v8 = vor.u32 %v1432_v1, %v1262_v0 }
  0x1e   : > { %751 = vmatpush.bf16.msra.mxu1 %v1466_v9  ;;  %1578 = vmatpush.bf16.msra.mxu3 %v1466_v9  ;;  %v1447_v6 = vld [vmem:[%s1718_s22 + $0xc4] sm:$0xf]  ;;  %v1328_v7 = vld [vmem:[%s1718_s22 + $0xc8] sm:$0xf0]  ;;  %v1327_v9 = vor.u32 %v1448_v3, %v1326_v2  ;;  %v1433_v16 = vld [vmem:[%s1718_s22 + $0x54] sm:$0xf] }
  0x1f   : > { %v1272_v17 = vld [vmem:[%s1718_s22 + $0x58] sm:$0xf0]  ;;  %v1449_v18 = vld [vmem:[%s1718_s22 + $0xd4] sm:$0xf]  ;;  %v1435_v28 = vld [vmem:[%s1718_s22 + $0x64] sm:$0xf] }
  0x20   : > { %v1336_v19 = vld [vmem:[%s1718_s22 + $0xd8] sm:$0xf0]  ;;  %v1275_v22 = vor.u32 %v1433_v16, %v1272_v17  ;;  %v1280_v29 = vld [vmem:[%s1718_s22 + $0x68] sm:$0xf0]  ;;  %v1451_v30 = vld [vmem:[%s1718_s22 + $0xe4] sm:$0xf] }
  0x21   : > { %663 = vmatpush.bf16.msra.mxu0 %v1457_v10  ;;  %1571 = vmatpush.bf16.msra.mxu2 %v1457_v10  ;;  %v1267_v10 = vor.u32 %v1431_v4, %v1264_v5  ;;  %v1339_v23 = vor.u32 %v1449_v18, %v1336_v19  ;;  %v1344_v31 = vld [vmem:[%s1718_s22 + $0xe8] sm:$0xf0]  ;;  %v1283_v34 = vor.u32 %v1435_v28, %v1280_v29  ;;  %v1437_v40 = vld [vmem:[%s1718_s22 + $0x74] sm:$0xf]  ;;  %v1288_v41 = vld [vmem:[%s1718_s22 + $0x78] sm:$0xf0] }
  0x22   : > { %752 = vmatpush.bf16.msra.mxu1 %v1465_v11  ;;  %1579 = vmatpush.bf16.msra.mxu3 %v1465_v11  ;;  %v1331_v11 = vor.u32 %v1447_v6, %v1328_v7  ;;  %v1347_v35 = vor.u32 %v1451_v30, %v1344_v31  ;;  %v1453_v42 = vld [vmem:[%s1718_s22 + $0xf4] sm:$0xf]  ;;  %v1352_v43 = vld [vmem:[%s1718_s22 + $0xf8] sm:$0xf0]  ;;  %v1291_v46 = vor.u32 %v1437_v40, %v1288_v41  ;;  %v1802_v55 = vld [vmem:[%s1900_s2 + $0x1] ss:$0 sm:$0xff] }
  0x23   : > { %v1355_v47 = vor.u32 %v1453_v42, %v1352_v43 }
  0x25   : > { %664 = vmatpush.bf16.msra.mxu0 %v1456_v12  ;;  %1572 = vmatpush.bf16.msra.mxu2 %v1456_v12  ;;  %v1270_v12 = vld [vmem:[%s1718_s22 + $0x50] sm:$0xf] }
  0x26   : > { %753 = vmatpush.bf16.msra.mxu1 %v1464_v13  ;;  %1580 = vmatpush.bf16.msra.mxu3 %v1464_v13  ;;  %v1434_v13 = vld [vmem:[%s1718_s22 + $0x54] sm:$0xf0] }
  0x27   : > { %v1271_v20 = vor.u32 %v1434_v13, %v1270_v12 }
  0x29   : > { %665 = vmatpush.bf16.msra.mxu0 %v1455_v14  ;;  %1573 = vmatpush.bf16.msra.mxu2 %v1455_v14  ;;  %v1334_v14 = vld [vmem:[%s1718_s22 + $0xd0] sm:$0xf] }
  0x2a   : > { %754 = vmatpush.bf16.msra.mxu1 %v1463_v15  ;;  %1581 = vmatpush.bf16.msra.mxu3 %v1463_v15  ;;  %v1450_v15 = vld [vmem:[%s1718_s22 + $0xd4] sm:$0xf0] }
  0x2b   : > { %v1335_v21 = vor.u32 %v1450_v15, %v1334_v14 }
  0x2c   : > { %666 = vmatmul.bf16.vlgmr.msra.gmra.mxu0 %v1231_v24  ;;  %706 = vmatmul.bf16.vlgmr.msra.gmra.mxu2 %v1295_v25  ;;  %v1278_v24 = vld [vmem:[%s1718_s22 + $0x60] sm:$0xf]  ;;  %v1436_v25 = vld [vmem:[%s1718_s22 + $0x64] sm:$0xf0] }
  0x2d   : > { %755 = vmatmul.bf16.vlgmr.msra.gmra.mxu1 %v1235_v26  ;;  %795 = vmatmul.bf16.vlgmr.msra.gmra.mxu3 %v1299_v27  ;;  %v1342_v26 = vld [vmem:[%s1718_s22 + $0xe0] sm:$0xf]  ;;  %v1452_v27 = vld [vmem:[%s1718_s22 + $0xe4] sm:$0xf0]  ;;  %v1279_v32 = vor.u32 %v1436_v25, %v1278_v24 }
  0x2e   : > { %v1343_v33 = vor.u32 %v1452_v27, %v1342_v26 }
  0x3c   : > { %671 = vmatmul.bf16.gmra.mxu0 %v1239_v36  ;;  %711 = vmatmul.bf16.gmra.mxu2 %v1303_v37  ;;  %v1286_v36 = vld [vmem:[%s1718_s22 + $0x70] sm:$0xf]  ;;  %v1438_v37 = vld [vmem:[%s1718_s22 + $0x74] sm:$0xf0] }
  0x3d   : > { %760 = vmatmul.bf16.gmra.mxu1 %v1243_v38  ;;  %800 = vmatmul.bf16.gmra.mxu3 %v1307_v39  ;;  %v1350_v38 = vld [vmem:[%s1718_s22 + $0xf0] sm:$0xf]  ;;  %v1454_v39 = vld [vmem:[%s1718_s22 + $0xf4] sm:$0xf0]  ;;  %v1287_v44 = vor.u32 %v1438_v37, %v1286_v36 }
  0x3e   : > { %v1351_v45 = vor.u32 %v1454_v39, %v1350_v38 }
  0x4c   : > { %676 = vmatmul.bf16.gmra.mxu0 %v1247_v48  ;;  %716 = vmatmul.bf16.gmra.mxu2 %v1311_v49 }
  0x4d   : > { %765 = vmatmul.bf16.gmra.mxu1 %v1251_v50  ;;  %805 = vmatmul.bf16.gmra.mxu3 %v1315_v51  ;;  %v1796_v51 = vld [vmem:[%s1900_s2] ss:$0 sm:$0xff] }
  0x5c   : > { %681 = vmatmul.bf16.gmra.mxu0 %v1255_v60  ;;  %721 = vmatmul.bf16.gmra.mxu2 %v1319_v61 }
  0x5d   : > { %770 = vmatmul.bf16.gmra.mxu1 %v1259_v62  ;;  %810 = vmatmul.bf16.gmra.mxu3 %v1323_v63 }
  0x6c   : > { %686 = vmatmul.bf16.gmra.mxu0 %v1263_v8  ;;  %726 = vmatmul.bf16.gmra.mxu2 %v1327_v9 }
  0x6d   : > { %775 = vmatmul.bf16.gmra.mxu1 %v1267_v10  ;;  %815 = vmatmul.bf16.gmra.mxu3 %v1331_v11 }
  0x7c   : > { %691 = vmatmul.bf16.gmra.mxu0 %v1271_v20  ;;  %731 = vmatmul.bf16.gmra.mxu2 %v1335_v21 }
  0x7d   : > { %780 = vmatmul.bf16.gmra.mxu1 %v1275_v22  ;;  %820 = vmatmul.bf16.gmra.mxu3 %v1339_v23 }
  0x8c   : > { %696 = vmatmul.bf16.gmra.mxu0 %v1279_v32  ;;  %736 = vmatmul.bf16.gmra.mxu2 %v1343_v33 }
  0x8d   : > { %785 = vmatmul.bf16.gmra.mxu1 %v1283_v34  ;;  %825 = vmatmul.bf16.gmra.mxu3 %v1347_v35 }
  0x9c   : > { %701 = vmatmul.bf16.gmra.mxu0 %v1287_v44  ;;  %741 = vmatmul.bf16.gmra.mxu2 %v1351_v45 }
  0x9d   : > { %790 = vmatmul.bf16.gmra.mxu1 %v1291_v46  ;;  %830 = vmatmul.bf16.gmra.mxu3 %v1355_v47 }
  0xa9   : > { %v667_v48 = vpop.f32.mrf.mxu0 }
  0xaa   : > { %v756_v49 = vpop.f32.mrf.mxu1 }
  0xab   : > { %v757_v50 = vadd.f32 %v756_v49, %v667_v48 }
  0xad   : > { %v937_v54 = vmul.f32 %v1796_v51, %v757_v50 }
  0xaf   : > { %v707_v52 = vpop.f32.mrf.mxu2  ;;  %v971_v60 = vadd.f32 %v1802_v55, %v937_v54 }
  0xb0   : > { %v796_v53 = vpop.f32.mrf.mxu3 }
  0xb1   : > { %v669_v56 = vpop.f32.mrf.mxu0  ;;  %v797_v58 = vadd.f32 %v796_v53, %v707_v52  ;;  %v1003_v2 = vmax.f32 %v971_v60, 0.0 }
  0xb2   : > { %v758_v57 = vpop.f32.mrf.mxu1 }
  0xb3   : > { %v759_v59 = vadd.f32 %v758_v57, %v669_v56  ;;  %v953_v62 = vmul.f32 %v1796_v51, %v797_v58 }
  0xb5   : > { %v938_v61 = vmul.f32 %v1796_v51, %v759_v59  ;;  %v987_v7 = vadd.f32 %v1802_v55, %v953_v62 }
  0xb7   : > { %v972_v63 = vadd.f32 %v1802_v55, %v938_v61  ;;  %v709_v0 = vpop.f32.mrf.mxu2  ;;  %v1019_v12 = vmax.f32 %v987_v7, 0.0 }
  0xb8   : > { %v798_v1 = vpop.f32.mrf.mxu3 }
  0xb9   : > { %v1004_v3 = vmax.f32 %v972_v63, 0.0  ;;  %v799_v4 = vadd.f32 %v798_v1, %v709_v0  ;;  %v672_v5 = vpop.f32.mrf.mxu0 }
  0xba   : > { %v761_v6 = vpop.f32.mrf.mxu1 }
  0xbb   : > { %v1474_v8 = vpack.c.bf16 %v1004_v3, %v1003_v2  ;;  %v954_v9 = vmul.f32 %v1796_v51, %v799_v4  ;;  %v762_v11 = vadd.f32 %v761_v6, %v672_v5 }
  0xbd   : > { %1475 = vst [vmem:[%s1812_s10] sm:$0xff] %v1474_v8   ;;  %v988_v10 = vadd.f32 %v1802_v55, %v954_v9  ;;  %v939_v17 = vmul.f32 %v1796_v51, %v762_v11 }
  0xbf   : > { %v1020_v13 = vmax.f32 %v988_v10, 0.0  ;;  %v712_v14 = vpop.f32.mrf.mxu2  ;;  %v973_v22 = vadd.f32 %v1802_v55, %v939_v17 }
  0xc0   : > { %v801_v15 = vpop.f32.mrf.mxu3 }
  0xc1   : > { %v1514_v16 = vpack.c.bf16 %v1020_v13, %v1019_v12  ;;  %v674_v18 = vpop.f32.mrf.mxu0  ;;  %v802_v20 = vadd.f32 %v801_v15, %v712_v14  ;;  %v1005_v28 = vmax.f32 %v973_v22, 0.0 }
  0xc2   : > { %v763_v19 = vpop.f32.mrf.mxu1 }
  0xc3   : > { %1558 = vst [vmem:[%s1812_s10 + $0x40] sm:$0xff] %v1514_v16   ;;  %v764_v21 = vadd.f32 %v763_v19, %v674_v18  ;;  %v955_v24 = vmul.f32 %v1796_v51, %v802_v20 }
  0xc5   : > { %v940_v23 = vmul.f32 %v1796_v51, %v764_v21  ;;  %v989_v33 = vadd.f32 %v1802_v55, %v955_v24 }
  0xc7   : > { %v974_v25 = vadd.f32 %v1802_v55, %v940_v23  ;;  %v714_v26 = vpop.f32.mrf.mxu2  ;;  %v1021_v38 = vmax.f32 %v989_v33, 0.0 }
  0xc8   : > { %v803_v27 = vpop.f32.mrf.mxu3 }
  0xc9   : > { %v1006_v29 = vmax.f32 %v974_v25, 0.0  ;;  %v804_v30 = vadd.f32 %v803_v27, %v714_v26  ;;  %v677_v31 = vpop.f32.mrf.mxu0 }
  0xca   : > { %v766_v32 = vpop.f32.mrf.mxu1 }
  0xcb   : > { %v1479_v34 = vpack.c.bf16 %v1006_v29, %v1005_v28  ;;  %v956_v35 = vmul.f32 %v1796_v51, %v804_v30  ;;  %v767_v37 = vadd.f32 %v766_v32, %v677_v31 }
  0xcd   : > { %1551 = vst [vmem:[%s1812_s10 + $0x8] sm:$0xff] %v1479_v34   ;;  %v990_v36 = vadd.f32 %v1802_v55, %v956_v35  ;;  %v941_v43 = vmul.f32 %v1796_v51, %v767_v37 }
  0xcf   : > { %v1022_v39 = vmax.f32 %v990_v36, 0.0  ;;  %v717_v40 = vpop.f32.mrf.mxu2  ;;  %v975_v48 = vadd.f32 %v1802_v55, %v941_v43 }
  0xd0   : > { %v806_v41 = vpop.f32.mrf.mxu3 }
  0xd1   : > { %v1519_v42 = vpack.c.bf16 %v1022_v39, %v1021_v38  ;;  %v679_v44 = vpop.f32.mrf.mxu0  ;;  %v807_v46 = vadd.f32 %v806_v41, %v717_v40  ;;  %v1007_v56 = vmax.f32 %v975_v48, 0.0 }
  0xd2   : > { %v768_v45 = vpop.f32.mrf.mxu1 }
  0xd3   : > { %1559 = vst [vmem:[%s1812_s10 + $0x48] sm:$0xff] %v1519_v42   ;;  %v769_v47 = vadd.f32 %v768_v45, %v679_v44  ;;  %v957_v50 = vmul.f32 %v1796_v51, %v807_v46 }
  0xd5   : > { %v942_v49 = vmul.f32 %v1796_v51, %v769_v47  ;;  %v991_v61 = vadd.f32 %v1802_v55, %v957_v50 }
  0xd7   : > { %v976_v52 = vadd.f32 %v1802_v55, %v942_v49  ;;  %v719_v53 = vpop.f32.mrf.mxu2  ;;  %v1023_v2 = vmax.f32 %v991_v61, 0.0 }
  0xd8   : > { %v808_v54 = vpop.f32.mrf.mxu3 }
  0xd9   : > { %v1008_v57 = vmax.f32 %v976_v52, 0.0  ;;  %v809_v58 = vadd.f32 %v808_v54, %v719_v53  ;;  %v682_v59 = vpop.f32.mrf.mxu0 }
  0xda   : > { %v771_v60 = vpop.f32.mrf.mxu1 }
  0xdb   : > { %v1484_v62 = vpack.c.bf16 %v1008_v57, %v1007_v56  ;;  %v958_v63 = vmul.f32 %v1796_v51, %v809_v58  ;;  %v772_v1 = vadd.f32 %v771_v60, %v682_v59 }
  0xdd   : > { %1552 = vst [vmem:[%s1812_s10 + $0x10] sm:$0xff] %v1484_v62   ;;  %v992_v0 = vadd.f32 %v1802_v55, %v958_v63  ;;  %v943_v7 = vmul.f32 %v1796_v51, %v772_v1 }
  0xdf   : > { %v1024_v3 = vmax.f32 %v992_v0, 0.0  ;;  %v722_v4 = vpop.f32.mrf.mxu2  ;;  %v977_v12 = vadd.f32 %v1802_v55, %v943_v7 }
  0xe0   : > { %v811_v5 = vpop.f32.mrf.mxu3 }
  0xe1   : > { %v1524_v6 = vpack.c.bf16 %v1024_v3, %v1023_v2  ;;  %v684_v8 = vpop.f32.mrf.mxu0  ;;  %v812_v10 = vadd.f32 %v811_v5, %v722_v4  ;;  %v1009_v18 = vmax.f32 %v977_v12, 0.0 }
  0xe2   : > { %v773_v9 = vpop.f32.mrf.mxu1 }
  0xe3   : > { %1560 = vst [vmem:[%s1812_s10 + $0x50] sm:$0xff] %v1524_v6   ;;  %v774_v11 = vadd.f32 %v773_v9, %v684_v8  ;;  %v959_v14 = vmul.f32 %v1796_v51, %v812_v10 }
  0xe5   : > { %v944_v13 = vmul.f32 %v1796_v51, %v774_v11  ;;  %v993_v23 = vadd.f32 %v1802_v55, %v959_v14 }
  0xe7   : > { %v978_v15 = vadd.f32 %v1802_v55, %v944_v13  ;;  %v724_v16 = vpop.f32.mrf.mxu2  ;;  %v1025_v28 = vmax.f32 %v993_v23, 0.0 }
  0xe8   : > { %v813_v17 = vpop.f32.mrf.mxu3 }
  0xe9   : > { %v1010_v19 = vmax.f32 %v978_v15, 0.0  ;;  %v814_v20 = vadd.f32 %v813_v17, %v724_v16  ;;  %v687_v21 = vpop.f32.mrf.mxu0 }
  0xea   : > { %v776_v22 = vpop.f32.mrf.mxu1 }
  0xeb   : > { %v1489_v24 = vpack.c.bf16 %v1010_v19, %v1009_v18  ;;  %v960_v25 = vmul.f32 %v1796_v51, %v814_v20  ;;  %v777_v27 = vadd.f32 %v776_v22, %v687_v21 }
  0xed   : > { %1553 = vst [vmem:[%s1812_s10 + $0x18] sm:$0xff] %v1489_v24   ;;  %v994_v26 = vadd.f32 %v1802_v55, %v960_v25  ;;  %v945_v33 = vmul.f32 %v1796_v51, %v777_v27 }
  0xef   : > { %v1026_v29 = vmax.f32 %v994_v26, 0.0  ;;  %v727_v30 = vpop.f32.mrf.mxu2  ;;  %v979_v38 = vadd.f32 %v1802_v55, %v945_v33 }
  0xf0   : > { %v816_v31 = vpop.f32.mrf.mxu3 }
  0xf1   : > { %v1529_v32 = vpack.c.bf16 %v1026_v29, %v1025_v28  ;;  %v689_v34 = vpop.f32.mrf.mxu0  ;;  %v817_v36 = vadd.f32 %v816_v31, %v727_v30  ;;  %v1011_v44 = vmax.f32 %v979_v38, 0.0 }
  0xf2   : > { %v778_v35 = vpop.f32.mrf.mxu1 }
  0xf3   : > { %1561 = vst [vmem:[%s1812_s10 + $0x58] sm:$0xff] %v1529_v32   ;;  %v779_v37 = vadd.f32 %v778_v35, %v689_v34  ;;  %v961_v40 = vmul.f32 %v1796_v51, %v817_v36 }
  0xf5   : > { %v946_v39 = vmul.f32 %v1796_v51, %v779_v37  ;;  %v995_v49 = vadd.f32 %v1802_v55, %v961_v40 }
  0xf7   : > { %v980_v41 = vadd.f32 %v1802_v55, %v946_v39  ;;  %v729_v42 = vpop.f32.mrf.mxu2  ;;  %v1027_v56 = vmax.f32 %v995_v49, 0.0 }
  0xf8   : > { %v818_v43 = vpop.f32.mrf.mxu3 }
  0xf9   : > { %v1012_v45 = vmax.f32 %v980_v41, 0.0  ;;  %v819_v46 = vadd.f32 %v818_v43, %v729_v42  ;;  %v692_v47 = vpop.f32.mrf.mxu0 }
  0xfa   : > { %v781_v48 = vpop.f32.mrf.mxu1 }
  0xfb   : > { %v1494_v50 = vpack.c.bf16 %v1012_v45, %v1011_v44  ;;  %v962_v52 = vmul.f32 %v1796_v51, %v819_v46  ;;  %v782_v54 = vadd.f32 %v781_v48, %v692_v47 }
  0xfd   : > { %1554 = vst [vmem:[%s1812_s10 + $0x20] sm:$0xff] %v1494_v50   ;;  %v996_v53 = vadd.f32 %v1802_v55, %v962_v52  ;;  %v947_v61 = vmul.f32 %v1796_v51, %v782_v54 }
  0xff   : > { %v1028_v57 = vmax.f32 %v996_v53, 0.0  ;;  %v732_v58 = vpop.f32.mrf.mxu2  ;;  %v981_v2 = vadd.f32 %v1802_v55, %v947_v61 }
 0x100   : > { %v821_v59 = vpop.f32.mrf.mxu3 }
 0x101   : > { %v1534_v60 = vpack.c.bf16 %v1028_v57, %v1027_v56  ;;  %v694_v62 = vpop.f32.mrf.mxu0  ;;  %v822_v0 = vadd.f32 %v821_v59, %v732_v58  ;;  %v1013_v8 = vmax.f32 %v981_v2, 0.0 }
 0x102   : > { %v783_v63 = vpop.f32.mrf.mxu1 }
 0x103   : > { %1562 = vst [vmem:[%s1812_s10 + $0x60] sm:$0xff] %v1534_v60   ;;  %v784_v1 = vadd.f32 %v783_v63, %v694_v62  ;;  %v963_v4 = vmul.f32 %v1796_v51, %v822_v0 }
 0x105   : > { %v948_v3 = vmul.f32 %v1796_v51, %v784_v1  ;;  %v997_v13 = vadd.f32 %v1802_v55, %v963_v4 }
 0x107   : > { %v982_v5 = vadd.f32 %v1802_v55, %v948_v3  ;;  %v734_v6 = vpop.f32.mrf.mxu2  ;;  %v1029_v18 = vmax.f32 %v997_v13, 0.0 }
 0x108   : > { %v823_v7 = vpop.f32.mrf.mxu3 }
 0x109   : > { %v1014_v9 = vmax.f32 %v982_v5, 0.0  ;;  %v824_v10 = vadd.f32 %v823_v7, %v734_v6  ;;  %v697_v11 = vpop.f32.mrf.mxu0 }
 0x10a   : > { %v786_v12 = vpop.f32.mrf.mxu1 }
 0x10b   : > { %v1499_v14 = vpack.c.bf16 %v1014_v9, %v1013_v8  ;;  %v964_v15 = vmul.f32 %v1796_v51, %v824_v10  ;;  %v787_v17 = vadd.f32 %v786_v12, %v697_v11 }
 0x10d   : > { %1555 = vst [vmem:[%s1812_s10 + $0x28] sm:$0xff] %v1499_v14   ;;  %v998_v16 = vadd.f32 %v1802_v55, %v964_v15  ;;  %v949_v23 = vmul.f32 %v1796_v51, %v787_v17 }
 0x10f   : > { %v1030_v19 = vmax.f32 %v998_v16, 0.0  ;;  %v737_v20 = vpop.f32.mrf.mxu2  ;;  %v983_v28 = vadd.f32 %v1802_v55, %v949_v23 }
 0x110   : > { %v826_v21 = vpop.f32.mrf.mxu3 }
 0x111   : > { %v1539_v22 = vpack.c.bf16 %v1030_v19, %v1029_v18  ;;  %v699_v24 = vpop.f32.mrf.mxu0  ;;  %v827_v26 = vadd.f32 %v826_v21, %v737_v20  ;;  %v1015_v34 = vmax.f32 %v983_v28, 0.0 }
 0x112   : > { %v788_v25 = vpop.f32.mrf.mxu1 }
 0x113   : > { %1563 = vst [vmem:[%s1812_s10 + $0x68] sm:$0xff] %v1539_v22   ;;  %v789_v27 = vadd.f32 %v788_v25, %v699_v24  ;;  %v965_v30 = vmul.f32 %v1796_v51, %v827_v26 }
 0x115   : > { %v950_v29 = vmul.f32 %v1796_v51, %v789_v27  ;;  %v999_v39 = vadd.f32 %v1802_v55, %v965_v30 }
 0x117   : > { %v984_v31 = vadd.f32 %v1802_v55, %v950_v29  ;;  %v739_v32 = vpop.f32.mrf.mxu2  ;;  %v1031_v44 = vmax.f32 %v999_v39, 0.0 }
 0x118   : > { %v828_v33 = vpop.f32.mrf.mxu3 }
 0x119   : > { %v1016_v35 = vmax.f32 %v984_v31, 0.0  ;;  %v829_v36 = vadd.f32 %v828_v33, %v739_v32  ;;  %v702_v37 = vpop.f32.mrf.mxu0 }
 0x11a   : > { %v791_v38 = vpop.f32.mrf.mxu1 }
 0x11b   : > { %v1504_v40 = vpack.c.bf16 %v1016_v35, %v1015_v34  ;;  %v966_v41 = vmul.f32 %v1796_v51, %v829_v36  ;;  %v792_v43 = vadd.f32 %v791_v38, %v702_v37 }
 0x11d   : > { %1556 = vst [vmem:[%s1812_s10 + $0x30] sm:$0xff] %v1504_v40   ;;  %v1000_v42 = vadd.f32 %v1802_v55, %v966_v41  ;;  %v951_v49 = vmul.f32 %v1796_v51, %v792_v43 }
 0x11f   : > { %v1032_v45 = vmax.f32 %v1000_v42, 0.0  ;;  %v742_v46 = vpop.f32.mrf.mxu2  ;;  %v985_v56 = vadd.f32 %v1802_v55, %v951_v49 }
 0x120   : > { %v831_v47 = vpop.f32.mrf.mxu3 }
 0x121   : > { %v1544_v48 = vpack.c.bf16 %v1032_v45, %v1031_v44  ;;  %v704_v50 = vpop.f32.mrf.mxu0  ;;  %v832_v53 = vadd.f32 %v831_v47, %v742_v46  ;;  %v1017_v62 = vmax.f32 %v985_v56, 0.0 }
 0x122   : > { %v793_v52 = vpop.f32.mrf.mxu1 }
 0x123   : > { %1564 = vst [vmem:[%s1812_s10 + $0x70] sm:$0xff] %v1544_v48   ;;  %v794_v54 = vadd.f32 %v793_v52, %v704_v50  ;;  %v967_v58 = vmul.f32 %v1796_v51, %v832_v53 }
 0x125   : > { %v952_v57 = vmul.f32 %v1796_v51, %v794_v54  ;;  %v1001_v1 = vadd.f32 %v1802_v55, %v967_v58 }
 0x127   : > { %v986_v59 = vadd.f32 %v1802_v55, %v952_v57  ;;  %v744_v60 = vpop.f32.mrf.mxu2  ;;  %v1033_v5 = vmax.f32 %v1001_v1, 0.0 }
 0x128   : > { %v833_v61 = vpop.f32.mrf.mxu3 }
 0x129   : > { %v1018_v63 = vmax.f32 %v986_v59, 0.0  ;;  %v834_v0 = vadd.f32 %v833_v61, %v744_v60 }
 0x12b   : > { %v1509_v2 = vpack.c.bf16 %v1018_v63, %v1017_v62  ;;  %v968_v3 = vmul.f32 %v1796_v51, %v834_v0 }
 0x12d   : > { %1557 = vst [vmem:[%s1812_s10 + $0x38] sm:$0xff] %v1509_v2   ;;  %v1002_v4 = vadd.f32 %v1802_v55, %v968_v3 }
 0x12f   : > { %v1034_v6 = vmax.f32 %v1002_v4, 0.0 }
 0x131   : > { %v1549_v7 = vpack.c.bf16 %v1034_v6, %v1033_v5 }
 0x133   : > { %1565 = vst [vmem:[%s1812_s10 + $0x78] sm:$0xff] %v1549_v7  }
 0x134 PF: > { %s13_s14 = sadd.s32 1, %s1630_s14   ;;  %s1902_s12 = smov %s1626_s13 }
 0x135   : > { %p10_p5 = scmp.ge.s32.totalorder %s13_s14, 4   ;;  %s1903_s13 = smov %s1905_s15 }
 0x137   :  { %12 = sbr.rel (!%p10_p5) target bundleno = 2 (0x2), region = 76 }

// kernel: my_script_module_forward.21
= control target key start
LH: loop header
LB: loop body
LE: loop exit
PB: predicated region body
PF: predicated region fallthrough
CT: control target
= control target key end

     0   :  { %s925_s12 = smov 0   ;;  %s927_s13 = smov 0   ;;  %s1047_s0 = inlined_call_operand.vmem [shape: bf16[128,640], index: 0, kind: input, shape index: {}]   ;;  %s1048_s1 = inlined_call_operand.vmem [shape: bf16[640,128], index: 1, kind: input, shape index: {}]   ;;  %s1049_s2 = inlined_call_operand.vmem [shape: f32[2,128], index: 2, kind: input, shape index: {}]   ;;  %s1050_s3 = inlined_call_operand.vmem [shape: bf16[128,128], index: 3, kind: output, shape index: {}]  }
   0x1   :  { %s929_s14 = smov 0   ;;  %s931_s15 = smov 0  }
   0x2   :  { %s933_s16 = smov 0   ;;  %s935_s17 = smov 0  }
   0x3   :  { %s937_s18 = smov 0  }
   0x4 LB: > { %s25_s19 = sadd.s32 1, %s894_s16  ;;  %s32_s20 = sadd.s32 1, %s898_s17  ;;  %s902_s18 = sphi %s937_s18, %s13_s18   ;;  %s898_s17 = sphi %s935_s17, %s1056_s17   ;;  %s894_s16 = sphi %s933_s16, %s1055_s16   ;;  %s890_s15 = sphi %s931_s15, %s1054_s15   ;;  %s886_s14 = sphi %s929_s14, %s1053_s14   ;;  %s882_s13 = sphi %s927_s13, %s1052_s13   ;;  %s878_s12 = sphi %s925_s12, %s1051_s12  }
   0x5   : > { %p26_p0 = scmp.ge.s32.totalorder %s25_s19, 5  ;;  %p48_p1 = scmp.ne.s32.totalorder %s882_s13, %s878_s12 }
   0x6   : > { %p49_p2 = scmp.eq.s32.totalorder %s902_s18, 0  ;;  %s41_s24 = sadd.s32 1, %s882_s13 }
   0x7   : > { %s1058_s19 = smov (%p26_p0, %s25_s19), 0  ;;  %s1060_s20 = smov (!%p26_p0, %s32_s20), %s898_s17 }
   0x8   : > { %p50_p3 = por %p49_p2, %p48_p1  ;;  %p34_p4 = scmp.ge.s32.totalorder %s1060_s20, 2 }
   0x9   : > { %s37_s21 = ssub.s32 %s894_s16, %s1058_s19  ;;  %p666_p6 = scmp.ge.s32.totalorder %s902_s18, 10 }
   0xa   : > { %s1062_s20 = smov (%p34_p4, %s1060_s20), 0 }
   0xb   : > { %s36_s22 = ssub.s32 %s898_s17, %s1062_s20  ;;  %163 = sbr.rel (%p666_p6) target bundleno = 31 (0x1f), region = 20 }
   0xc   : > { %s38_s23 = sor.u32 %s37_s21, %s36_s22 }
   0xd   : > { %p39_p5 = scmp.eq.s32.totalorder %s38_s23, 0 }
   0xf   : > { %s976_s25 = scalar_select %p39_p5, %s882_s13, %s41_s24  }
  0x10   : > { %166 = sbr.rel (!%p50_p3) target bundleno = 31 (0x1f), region = 24  ;;  %s168_s26 = sand.u32 (%p50_p3), 1, %s882_s13  }
  0x11   : > { %s788_s27 = smul.u32 (%p50_p3), 40, %s898_s17  ;;  %s667_s28 = sshll.u32 (%p50_p3), %s168_s26, 5 }
  0x12   : > { %s170_s7 = scalar_lea.vmem (%p50_p3), [#allocation3], %s667_s28 }
  0x13   : > { %s173_s29 = sadd.s32 (%p50_p3), %s894_s16, %s788_s27 }
  0x14   : > { %s670_s30 = sshll.u32 (%p50_p3), %s173_s29, 2 }
  0x15   : > { %s175_s6 = scalar_lea.vmem %s1047_s0, %s670_s30 }
  0x16   : > { %v192_v0 = vld [vmem:[%s175_s6] sm:$0xf]  ;;  %v194_v1 = vld [vmem:[%s175_s6 + $0x14] sm:$0xf]  ;;  %v196_v2 = vld [vmem:[%s175_s6 + $0x28] sm:$0xf] }
  0x17   : > { %193 = vst [vmem:[%s170_s7] sm:$0xf] %v192_v0  ;;  %v198_v3 = vld [vmem:[%s175_s6 + $0x3c] sm:$0xf]  ;;  %v200_v4 = vld [vmem:[%s175_s6 + $0x50] sm:$0xf] }
  0x18   : > { %195 = vst [vmem:[%s170_s7 + $0x4] sm:$0xf] %v194_v1  ;;  %v202_v5 = vld [vmem:[%s175_s6 + $0x64] sm:$0xf]  ;;  %v204_v6 = vld [vmem:[%s175_s6 + $0x78] sm:$0xf] }
  0x19   : > { %197 = vst [vmem:[%s170_s7 + $0x8] sm:$0xf] %v196_v2  ;;  %v206_v7 = vld [vmem:[%s175_s6 + $0x8c] sm:$0xf] }
  0x1a   : > { %199 = vst [vmem:[%s170_s7 + $0xc] sm:$0xf] %v198_v3 }
  0x1b   : > { %201 = vst [vmem:[%s170_s7 + $0x10] sm:$0xf] %v200_v4 }
  0x1c   : > { %203 = vst [vmem:[%s170_s7 + $0x14] sm:$0xf] %v202_v5 }
  0x1d   : > { %205 = vst [vmem:[%s170_s7 + $0x18] sm:$0xf] %v204_v6 }
  0x1e   : > { %207 = vst [vmem:[%s170_s7 + $0x1c] sm:$0xf] %v206_v7 }
  0x1f PF: > { %p671_p7 = scmp.ge.s32.totalorder %s902_s18, 1  ;;  %p258_p8 = scmp.lt.s32.totalorder %s902_s18, 11 }
  0x21   : > { %p259_p9 = pnand %p671_p7, %p258_p8 }
  0x22   : > { %s265_s8 = sand.u32 (!%p259_p9), 1, %s878_s12   ;;  %s673_s9 = sshll.u32 (!%p259_p9), %s886_s14, 4 }
  0x23   : > { %262 = sbr.rel (%p259_p9) target bundleno = 250 (0xfa), region = 69  ;;  %s672_s10 = sshll.u32 (!%p259_p9), %s265_s8, 5 }
  0x24   : > { %p305_p10 = scmp.lt.s32.totalorder (!%p259_p9), %s673_s9, 79  ;;  %s675_s11 = sshll.u32 (!%p259_p9), %s890_s15, 3 }
  0x25   : > { %p318_p11 = scmp.lt.s32.totalorder (!%p259_p9), %s675_s11, 15  ;;  %s1000_s12 = scalar_lea.vmem (!%p259_p9), [#allocation3], %s672_s10 }
  0x26   : > { %p677_p12 = scmp.ne.s32.totalorder (!%p259_p9), %s886_s14, 0 }
  0x28   : > { %s1064_s9 = smov (!%p305_p10, %s673_s9), 79  ;;  %s1066_s11 = smov (!%p318_p11, %s675_s11), 15 }
  0x29   : > { %s674_s21 = sshll.u32 %s1064_s9, 2  ;;  %s676_s26 = sshll.u32 %s1066_s11, 2 }
  0x2a   : > { %s993_s24 = scalar_lea.vmem %s1048_s1, %s674_s21  ;;  %s998_s29 = scalar_lea.vmem %s1050_s3, %s676_s26 }
  0x2b   : > { %329 = sbr.rel (%p677_p12) target bundleno = 57 (0x39), region = 77 }
  0x30   : > { %v904_v8 = vmov 0.0  }
  0x31   : > { %330 = vst [vmem:[#allocation2 + $0x30] sm:$0xff] %v904_v8 }
  0x32   : > { %331 = vst [vmem:[#allocation2] sm:$0xff] %v904_v8 }
  0x33   : > { %332 = vst [vmem:[#allocation2 + $0x18] sm:$0xff] %v904_v8 }
  0x34   : > { %333 = vst [vmem:[#allocation2 + $0x10] sm:$0xff] %v904_v8 }
  0x35   : > { %334 = vst [vmem:[#allocation2 + $0x8] sm:$0xff] %v904_v8 }
  0x36   : > { %335 = vst [vmem:[#allocation2 + $0x20] sm:$0xff] %v904_v8 }
  0x37   : > { %336 = vst [vmem:[#allocation2 + $0x28] sm:$0xff] %v904_v8 }
  0x38   : > { %337 = vst [vmem:[#allocation2 + $0x38] sm:$0xff] %v904_v8 }
  0x39 PF: > { %v740_v9 = vld [vmem:[%s993_s24 + $0x38] sm:$0xff]  ;;  %v739_v10 = vld [vmem:[%s993_s24 + $0x30] sm:$0xff]  ;;  %v738_v11 = vld [vmem:[%s993_s24 + $0x28] sm:$0xff]  ;;  %p726_p13 = scmp.ne.s32.totalorder %s886_s14, 4 }
  0x3a   : > { %442 = vmatpush.bf16.msra.mxu0 %v740_v9  ;;  %764 = vmatpush.bf16.msra.mxu1 %v740_v9  ;;  %v737_v12 = vld [vmem:[%s993_s24 + $0x20] sm:$0xff]  ;;  %v736_v13 = vld [vmem:[%s993_s24 + $0x18] sm:$0xff]  ;;  %v735_v14 = vld [vmem:[%s993_s24 + $0x10] sm:$0xff] }
  0x3b   : > { %765 = vmatpush.bf16.msra.mxu2 %v740_v9  ;;  %766 = vmatpush.bf16.msra.mxu3 %v740_v9  ;;  %v734_v15 = vld [vmem:[%s993_s24 + $0x8] sm:$0xff]  ;;  %v733_v16 = vld [vmem:[%s993_s24] sm:$0xff]  ;;  %v731_v19 = vld [vmem:[%s1000_s12 + $0x10] sm:$0xff] }
  0x3c   : > { %v729_v17 = vld [vmem:[%s1000_s12] sm:$0xff]  ;;  %v730_v18 = vld [vmem:[%s1000_s12 + $0x8] sm:$0xff]  ;;  %v732_v20 = vld [vmem:[%s1000_s12 + $0x18] sm:$0xff] }
  0x3d   : > { %v338_v21 = vld [vmem:[#allocation2 + $0x30] sm:$0xff]  ;;  %v340_v22 = vld [vmem:[#allocation2 + $0x18] sm:$0xff]  ;;  %v342_v27 = vld [vmem:[#allocation2 + $0x8] sm:$0xff] }
  0x3e   : > { %443 = vmatpush.bf16.msra.mxu0 %v739_v10  ;;  %767 = vmatpush.bf16.msra.mxu1 %v739_v10  ;;  %v344_v28 = vld [vmem:[#allocation2 + $0x28] sm:$0xff]  ;;  %v339_v29 = vld [vmem:[#allocation2] sm:$0xff]  ;;  %v341_v30 = vld [vmem:[#allocation2 + $0x10] sm:$0xff] }
  0x3f   : > { %768 = vmatpush.bf16.msra.mxu2 %v739_v10  ;;  %769 = vmatpush.bf16.msra.mxu3 %v739_v10  ;;  %v343_v39 = vld [vmem:[#allocation2 + $0x20] sm:$0xff]  ;;  %v345_v40 = vld [vmem:[#allocation2 + $0x38] sm:$0xff] }
  0x42   : > { %444 = vmatpush.bf16.msra.mxu0 %v738_v11  ;;  %770 = vmatpush.bf16.msra.mxu1 %v738_v11 }
  0x43   : > { %771 = vmatpush.bf16.msra.mxu2 %v738_v11  ;;  %772 = vmatpush.bf16.msra.mxu3 %v738_v11 }
  0x46   : > { %445 = vmatpush.bf16.msra.mxu0 %v737_v12  ;;  %773 = vmatpush.bf16.msra.mxu1 %v737_v12 }
  0x47   : > { %774 = vmatpush.bf16.msra.mxu2 %v737_v12  ;;  %775 = vmatpush.bf16.msra.mxu3 %v737_v12 }
  0x4a   : > { %446 = vmatpush.bf16.msra.mxu0 %v736_v13  ;;  %776 = vmatpush.bf16.msra.mxu1 %v736_v13 }
  0x4b   : > { %777 = vmatpush.bf16.msra.mxu2 %v736_v13  ;;  %778 = vmatpush.bf16.msra.mxu3 %v736_v13 }
  0x4e   : > { %447 = vmatpush.bf16.msra.mxu0 %v735_v14  ;;  %779 = vmatpush.bf16.msra.mxu1 %v735_v14 }
  0x4f   : > { %780 = vmatpush.bf16.msra.mxu2 %v735_v14  ;;  %781 = vmatpush.bf16.msra.mxu3 %v735_v14 }
  0x52   : > { %448 = vmatpush.bf16.msra.mxu0 %v734_v15  ;;  %782 = vmatpush.bf16.msra.mxu1 %v734_v15 }
  0x53   : > { %783 = vmatpush.bf16.msra.mxu2 %v734_v15  ;;  %784 = vmatpush.bf16.msra.mxu3 %v734_v15 }
  0x56   : > { %449 = vmatpush.bf16.msra.mxu0 %v733_v16  ;;  %785 = vmatpush.bf16.msra.mxu1 %v733_v16 }
  0x57   : > { %786 = vmatpush.bf16.msra.mxu2 %v733_v16  ;;  %787 = vmatpush.bf16.msra.mxu3 %v733_v16 }
  0x59   : > { %450 = vmatmul.bf16.vlgmr.msra.gmra.mxu0 %v729_v17  ;;  %455 = vmatmul.bf16.vlgmr.msra.gmra.mxu1 %v730_v18 }
  0x5a   : > { %460 = vmatmul.bf16.vlgmr.msra.gmra.mxu2 %v731_v19  ;;  %465 = vmatmul.bf16.vlgmr.msra.gmra.mxu3 %v732_v20 }
  0xd6   : > { %v451_v23 = vpop.f32.mrf.mxu0  ;;  %v456_v24 = vpop.f32.mrf.mxu1 }
  0xd7   : > { %v471_v25 = vadd.f32 %v451_v23, %v338_v21  ;;  %v473_v26 = vadd.f32 %v456_v24, %v340_v22 }
  0xd9   : > { %479 = vst [vmem:[#allocation2 + $0x30] sm:$0xff] %v471_v25 }
  0xda   : > { %481 = vst [vmem:[#allocation2 + $0x18] sm:$0xff] %v473_v26 }
  0xdd   : > { %v461_v31 = vpop.f32.mrf.mxu2  ;;  %v466_v32 = vpop.f32.mrf.mxu3 }
  0xde   : > { %v475_v33 = vadd.f32 %v461_v31, %v342_v27  ;;  %v477_v34 = vadd.f32 %v466_v32, %v344_v28  ;;  %v453_v35 = vpop.f32.mrf.mxu0  ;;  %v458_v36 = vpop.f32.mrf.mxu1 }
  0xdf   : > { %v472_v37 = vadd.f32 %v453_v35, %v339_v29  ;;  %v474_v38 = vadd.f32 %v458_v36, %v341_v30 }
  0xe0   : > { %483 = vst [vmem:[#allocation2 + $0x8] sm:$0xff] %v475_v33 }
  0xe1   : > { %485 = vst [vmem:[#allocation2 + $0x28] sm:$0xff] %v477_v34 }
  0xe2   : > { %480 = vst [vmem:[#allocation2] sm:$0xff] %v472_v37 }
  0xe3   : > { %482 = vst [vmem:[#allocation2 + $0x10] sm:$0xff] %v474_v38 }
  0xe5   : > { %v463_v41 = vpop.f32.mrf.mxu2  ;;  %v468_v42 = vpop.f32.mrf.mxu3  ;;  %490 = sbr.rel (%p726_p13) target bundleno = 250 (0xfa), region = 81 }
  0xe6   : > { %v476_v43 = vadd.f32 %v463_v41, %v343_v39  ;;  %v478_v44 = vadd.f32 %v468_v42, %v345_v40 }
  0xe8   : > { %484 = vst [vmem:[#allocation2 + $0x20] sm:$0xff] %v476_v43 }
  0xe9   : > { %486 = vst [vmem:[#allocation2 + $0x38] sm:$0xff] %v478_v44 }
  0xea   : > { %v491_v45 = vld [vmem:[#allocation2 + $0x30] sm:$0xff]  ;;  %v492_v46 = vld [vmem:[#allocation2] sm:$0xff]  ;;  %v493_v49 = vld [vmem:[#allocation2 + $0x18] sm:$0xff] }
  0xeb   : > { %v846_v47 = vld [vmem:[%s1049_s2] ss:$0 sm:$0xff]  ;;  %v847_v48 = vld [vmem:[%s1049_s2 + $0x1] ss:$0 sm:$0xff]  ;;  %v494_v50 = vld [vmem:[#allocation2 + $0x10] sm:$0xff] }
  0xec   : > { %v495_v51 = vld [vmem:[#allocation2 + $0x8] sm:$0xff]  ;;  %v501_v52 = vmul.f32 %v846_v47, %v491_v45  ;;  %v502_v53 = vmul.f32 %v846_v47, %v492_v46  ;;  %v503_v54 = vmul.f32 %v846_v47, %v493_v49  ;;  %v504_v55 = vmul.f32 %v846_v47, %v494_v50 }
  0xed   : > { %v497_v57 = vld [vmem:[#allocation2 + $0x28] sm:$0xff]  ;;  %v505_v59 = vmul.f32 %v846_v47, %v495_v51 }
  0xee   : > { %v507_v61 = vmul.f32 %v846_v47, %v497_v57  ;;  %v511_v63 = vadd.f32 %v847_v48, %v501_v52  ;;  %v512_v0 = vadd.f32 %v847_v48, %v502_v53  ;;  %v513_v1 = vadd.f32 %v847_v48, %v503_v54 }
  0xef   : > { %v496_v56 = vld [vmem:[#allocation2 + $0x20] sm:$0xff]  ;;  %v514_v2 = vadd.f32 %v847_v48, %v504_v55  ;;  %v515_v3 = vadd.f32 %v847_v48, %v505_v59 }
  0xf0   : > { %v498_v58 = vld [vmem:[#allocation2 + $0x38] sm:$0xff]  ;;  %v506_v60 = vmul.f32 %v846_v47, %v496_v56  ;;  %v517_v5 = vadd.f32 %v847_v48, %v507_v61  ;;  %v519_v7 = vmax.f32 %v511_v63, 0.0  ;;  %v520_v8 = vmax.f32 %v512_v0, 0.0 }
  0xf1   : > { %v508_v62 = vmul.f32 %v846_v47, %v498_v58  ;;  %v521_v9 = vmax.f32 %v513_v1, 0.0  ;;  %v522_v10 = vmax.f32 %v514_v2, 0.0  ;;  %v523_v11 = vmax.f32 %v515_v3, 0.0 }
  0xf2   : > { %v516_v4 = vadd.f32 %v847_v48, %v506_v60  ;;  %v525_v13 = vmax.f32 %v517_v5, 0.0  ;;  %v744_v15 = vpack.c.bf16 %v520_v8, %v519_v7 }
  0xf3   : > { %v518_v6 = vadd.f32 %v847_v48, %v508_v62  ;;  %v749_v16 = vpack.c.bf16 %v522_v10, %v521_v9 }
  0xf4   : > { %v524_v12 = vmax.f32 %v516_v4, 0.0  ;;  %745 = vst [vmem:[%s998_s29] sm:$0xff] %v744_v15  }
  0xf5   : > { %v526_v14 = vmax.f32 %v518_v6, 0.0  ;;  %761 = vst [vmem:[%s998_s29 + $0x8] sm:$0xff] %v749_v16  }
  0xf6   : > { %v754_v17 = vpack.c.bf16 %v524_v12, %v523_v11 }
  0xf7   : > { %v759_v18 = vpack.c.bf16 %v526_v14, %v525_v13 }
  0xf8   : > { %762 = vst [vmem:[%s998_s29 + $0x10] sm:$0xff] %v754_v17  }
  0xf9   : > { %763 = vst [vmem:[%s998_s29 + $0x18] sm:$0xff] %v759_v18  }
  0xfa PF: > { %s13_s18 = sadd.s32 1, %s902_s18   ;;  %s1051_s12 = smov %s882_s13 }
  0xfb   : > { %p10_p0 = scmp.ge.s32.totalorder %s13_s18, 12   ;;  %s1052_s13 = smov %s976_s25 }
  0xfc   : > { %s1053_s14 = smov %s894_s16  ;;  %s1054_s15 = smov %s898_s17 }
  0xfd   : > { %s1055_s16 = smov %s1058_s19  ;;  %s1056_s17 = smov %s1062_s20 }
  0xfe   :  { %12 = sbr.rel (!%p10_p0) target bundleno = 4 (0x4), region = 122 }

// kernel: my_script_module_forward.22
= control target key start
LH: loop header
LB: loop body
LE: loop exit
PB: predicated region body
PF: predicated region fallthrough
CT: control target
= control target key end

     0   :  { %s1050_s15 = smov 0   ;;  %s1052_s16 = smov 0   ;;  %s1181_s0 = inlined_call_operand.vmem [shape: bf16[128,640], index: 0, kind: input, shape index: {}]   ;;  %s1182_s1 = inlined_call_operand.vmem [shape: bf16[640,128], index: 1, kind: input, shape index: {}]   ;;  %s1183_s2 = inlined_call_operand.vmem [shape: f32[2,128], index: 2, kind: input, shape index: {}]   ;;  %s1184_s3 = inlined_call_operand.vmem [shape: bf16[128,128], index: 3, kind: input, shape index: {}]   ;;  %s1185_s4 = inlined_call_operand.vmem [shape: bf16[128,128], index: 4, kind: output, shape index: {}]  }
   0x1   :  { %s1054_s17 = smov 0   ;;  %s1056_s18 = smov 0  }
   0x2   :  { %s1058_s19 = smov 0   ;;  %s1060_s20 = smov 0  }
   0x3   :  { %s1062_s21 = smov 0  }
   0x4 LB: > { %s26_s22 = sadd.s32 1, %s1014_s19  ;;  %s33_s23 = sadd.s32 1, %s1018_s20  ;;  %s1022_s21 = sphi %s1062_s21, %s14_s21   ;;  %s1018_s20 = sphi %s1060_s20, %s1191_s20   ;;  %s1014_s19 = sphi %s1058_s19, %s1190_s19   ;;  %s1010_s18 = sphi %s1056_s18, %s1189_s18   ;;  %s1006_s17 = sphi %s1054_s17, %s1188_s17   ;;  %s1002_s16 = sphi %s1052_s16, %s1187_s16   ;;  %s998_s15 = sphi %s1050_s15, %s1186_s15  }
   0x5   : > { %p27_p0 = scmp.ge.s32.totalorder %s26_s22, 5  ;;  %p49_p1 = scmp.ne.s32.totalorder %s1002_s16, %s998_s15 }
   0x6   : > { %p50_p2 = scmp.eq.s32.totalorder %s1022_s21, 0  ;;  %s42_s27 = sadd.s32 1, %s1002_s16 }
   0x7   : > { %s1193_s22 = smov (%p27_p0, %s26_s22), 0  ;;  %s1195_s23 = smov (!%p27_p0, %s33_s23), %s1018_s20 }
   0x8   : > { %p51_p3 = por %p50_p2, %p49_p1  ;;  %p35_p4 = scmp.ge.s32.totalorder %s1195_s23, 2 }
   0x9   : > { %s38_s24 = ssub.s32 %s1014_s19, %s1193_s22  ;;  %p765_p6 = scmp.ge.s32.totalorder %s1022_s21, 10 }
   0xa   : > { %s1197_s23 = smov (%p35_p4, %s1195_s23), 0 }
   0xb   : > { %s37_s25 = ssub.s32 %s1018_s20, %s1197_s23  ;;  %192 = sbr.rel (%p765_p6) target bundleno = 31 (0x1f), region = 20 }
   0xc   : > { %s39_s26 = sor.u32 %s38_s24, %s37_s25 }
   0xd   : > { %p40_p5 = scmp.eq.s32.totalorder %s39_s26, 0 }
   0xf   : > { %s1101_s28 = scalar_select %p40_p5, %s1002_s16, %s42_s27  }
  0x10   : > { %195 = sbr.rel (!%p51_p3) target bundleno = 31 (0x1f), region = 24  ;;  %s197_s29 = sand.u32 (%p51_p3), 1, %s1002_s16  }
  0x11   : > { %s908_s30 = smul.u32 (%p51_p3), 40, %s1018_s20  ;;  %s766_s5 = sshll.u32 (%p51_p3), %s197_s29, 5 }
  0x12   : > { %s199_s11 = scalar_lea.vmem (%p51_p3), [#allocation3], %s766_s5 }
  0x13   : > { %s202_s6 = sadd.s32 (%p51_p3), %s1014_s19, %s908_s30 }
  0x14   : > { %s769_s7 = sshll.u32 (%p51_p3), %s202_s6, 2 }
  0x15   : > { %s204_s10 = scalar_lea.vmem %s1181_s0, %s769_s7 }
  0x16   : > { %v221_v0 = vld [vmem:[%s204_s10] sm:$0xf]  ;;  %v223_v1 = vld [vmem:[%s204_s10 + $0x14] sm:$0xf]  ;;  %v225_v2 = vld [vmem:[%s204_s10 + $0x28] sm:$0xf] }
  0x17   : > { %222 = vst [vmem:[%s199_s11] sm:$0xf] %v221_v0  ;;  %v227_v3 = vld [vmem:[%s204_s10 + $0x3c] sm:$0xf]  ;;  %v229_v4 = vld [vmem:[%s204_s10 + $0x50] sm:$0xf] }
  0x18   : > { %224 = vst [vmem:[%s199_s11 + $0x4] sm:$0xf] %v223_v1  ;;  %v231_v5 = vld [vmem:[%s204_s10 + $0x64] sm:$0xf]  ;;  %v233_v6 = vld [vmem:[%s204_s10 + $0x78] sm:$0xf] }
  0x19   : > { %226 = vst [vmem:[%s199_s11 + $0x8] sm:$0xf] %v225_v2  ;;  %v235_v7 = vld [vmem:[%s204_s10 + $0x8c] sm:$0xf] }
  0x1a   : > { %228 = vst [vmem:[%s199_s11 + $0xc] sm:$0xf] %v227_v3 }
  0x1b   : > { %230 = vst [vmem:[%s199_s11 + $0x10] sm:$0xf] %v229_v4 }
  0x1c   : > { %232 = vst [vmem:[%s199_s11 + $0x14] sm:$0xf] %v231_v5 }
  0x1d   : > { %234 = vst [vmem:[%s199_s11 + $0x18] sm:$0xf] %v233_v6 }
  0x1e   : > { %236 = vst [vmem:[%s199_s11 + $0x1c] sm:$0xf] %v235_v7 }
  0x1f PF: > { %p770_p7 = scmp.ge.s32.totalorder %s1022_s21, 1  ;;  %p299_p8 = scmp.lt.s32.totalorder %s1022_s21, 11 }
  0x21   : > { %p300_p9 = pnand %p770_p7, %p299_p8 }
  0x22   : > { %s306_s12 = sand.u32 (!%p300_p9), 1, %s998_s15   ;;  %s772_s13 = sshll.u32 (!%p300_p9), %s1006_s17, 4 }
  0x23   : > { %303 = sbr.rel (%p300_p9) target bundleno = 253 (0xfd), region = 73  ;;  %s771_s14 = sshll.u32 (!%p300_p9), %s306_s12, 5 }
  0x24   : > { %p356_p10 = scmp.lt.s32.totalorder (!%p300_p9), %s772_s13, 79  ;;  %s774_s24 = sshll.u32 (!%p300_p9), %s1010_s18, 3 }
  0x25   : > { %p369_p11 = scmp.lt.s32.totalorder (!%p300_p9), %s774_s24, 15  ;;  %s1130_s18 = scalar_lea.vmem (!%p300_p9), [#allocation3], %s771_s14 }
  0x26   : > { %p778_p12 = scmp.ne.s32.totalorder (!%p300_p9), %s1006_s17, 0 }
  0x28   : > { %s1199_s13 = smov (!%p356_p10, %s772_s13), 79  ;;  %s1201_s24 = smov (!%p369_p11, %s774_s24), 15 }
  0x29   : > { %s773_s25 = sshll.u32 %s1199_s13, 2  ;;  %s775_s30 = sshll.u32 %s1201_s24, 2 }
  0x2a   : > { %s1118_s29 = scalar_lea.vmem %s1182_s1, %s773_s25  ;;  %s1123_s7 = scalar_lea.vmem %s1184_s3, %s775_s30 }
  0x2b   : > { %s1128_s9 = scalar_lea.vmem %s1185_s4, %s775_s30  ;;  %389 = sbr.rel (%p778_p12) target bundleno = 57 (0x39), region = 81 }
  0x30   : > { %v1024_v8 = vmov 0.0  }
  0x31   : > { %390 = vst [vmem:[#allocation2 + $0x30] sm:$0xff] %v1024_v8 }
  0x32   : > { %391 = vst [vmem:[#allocation2] sm:$0xff] %v1024_v8 }
  0x33   : > { %392 = vst [vmem:[#allocation2 + $0x18] sm:$0xff] %v1024_v8 }
  0x34   : > { %393 = vst [vmem:[#allocation2 + $0x10] sm:$0xff] %v1024_v8 }
  0x35   : > { %394 = vst [vmem:[#allocation2 + $0x8] sm:$0xff] %v1024_v8 }
  0x36   : > { %395 = vst [vmem:[#allocation2 + $0x20] sm:$0xff] %v1024_v8 }
  0x37   : > { %396 = vst [vmem:[#allocation2 + $0x28] sm:$0xff] %v1024_v8 }
  0x38   : > { %397 = vst [vmem:[#allocation2 + $0x38] sm:$0xff] %v1024_v8 }
  0x39 PF: > { %v841_v9 = vld [vmem:[%s1118_s29 + $0x38] sm:$0xff]  ;;  %v840_v10 = vld [vmem:[%s1118_s29 + $0x30] sm:$0xff]  ;;  %v839_v11 = vld [vmem:[%s1118_s29 + $0x28] sm:$0xff]  ;;  %p827_p13 = scmp.ne.s32.totalorder %s1006_s17, 4 }
  0x3a   : > { %502 = vmatpush.bf16.msra.mxu0 %v841_v9  ;;  %884 = vmatpush.bf16.msra.mxu1 %v841_v9  ;;  %v838_v12 = vld [vmem:[%s1118_s29 + $0x20] sm:$0xff]  ;;  %v837_v13 = vld [vmem:[%s1118_s29 + $0x18] sm:$0xff]  ;;  %v836_v14 = vld [vmem:[%s1118_s29 + $0x10] sm:$0xff] }
  0x3b   : > { %885 = vmatpush.bf16.msra.mxu2 %v841_v9  ;;  %886 = vmatpush.bf16.msra.mxu3 %v841_v9  ;;  %v835_v15 = vld [vmem:[%s1118_s29 + $0x8] sm:$0xff]  ;;  %v834_v16 = vld [vmem:[%s1118_s29] sm:$0xff]  ;;  %v832_v19 = vld [vmem:[%s1130_s18 + $0x10] sm:$0xff] }
  0x3c   : > { %v830_v17 = vld [vmem:[%s1130_s18] sm:$0xff]  ;;  %v831_v18 = vld [vmem:[%s1130_s18 + $0x8] sm:$0xff]  ;;  %v833_v20 = vld [vmem:[%s1130_s18 + $0x18] sm:$0xff] }
  0x3d   : > { %v398_v21 = vld [vmem:[#allocation2 + $0x30] sm:$0xff]  ;;  %v400_v22 = vld [vmem:[#allocation2 + $0x18] sm:$0xff]  ;;  %v402_v27 = vld [vmem:[#allocation2 + $0x8] sm:$0xff] }
  0x3e   : > { %503 = vmatpush.bf16.msra.mxu0 %v840_v10  ;;  %887 = vmatpush.bf16.msra.mxu1 %v840_v10  ;;  %v404_v28 = vld [vmem:[#allocation2 + $0x28] sm:$0xff]  ;;  %v399_v29 = vld [vmem:[#allocation2] sm:$0xff]  ;;  %v401_v30 = vld [vmem:[#allocation2 + $0x10] sm:$0xff] }
  0x3f   : > { %888 = vmatpush.bf16.msra.mxu2 %v840_v10  ;;  %889 = vmatpush.bf16.msra.mxu3 %v840_v10  ;;  %v403_v39 = vld [vmem:[#allocation2 + $0x20] sm:$0xff]  ;;  %v405_v40 = vld [vmem:[#allocation2 + $0x38] sm:$0xff] }
  0x42   : > { %504 = vmatpush.bf16.msra.mxu0 %v839_v11  ;;  %890 = vmatpush.bf16.msra.mxu1 %v839_v11 }
  0x43   : > { %891 = vmatpush.bf16.msra.mxu2 %v839_v11  ;;  %892 = vmatpush.bf16.msra.mxu3 %v839_v11 }
  0x46   : > { %505 = vmatpush.bf16.msra.mxu0 %v838_v12  ;;  %893 = vmatpush.bf16.msra.mxu1 %v838_v12 }
  0x47   : > { %894 = vmatpush.bf16.msra.mxu2 %v838_v12  ;;  %895 = vmatpush.bf16.msra.mxu3 %v838_v12 }
  0x4a   : > { %506 = vmatpush.bf16.msra.mxu0 %v837_v13  ;;  %896 = vmatpush.bf16.msra.mxu1 %v837_v13 }
  0x4b   : > { %897 = vmatpush.bf16.msra.mxu2 %v837_v13  ;;  %898 = vmatpush.bf16.msra.mxu3 %v837_v13 }
  0x4e   : > { %507 = vmatpush.bf16.msra.mxu0 %v836_v14  ;;  %899 = vmatpush.bf16.msra.mxu1 %v836_v14 }
  0x4f   : > { %900 = vmatpush.bf16.msra.mxu2 %v836_v14  ;;  %901 = vmatpush.bf16.msra.mxu3 %v836_v14 }
  0x52   : > { %508 = vmatpush.bf16.msra.mxu0 %v835_v15  ;;  %902 = vmatpush.bf16.msra.mxu1 %v835_v15 }
  0x53   : > { %903 = vmatpush.bf16.msra.mxu2 %v835_v15  ;;  %904 = vmatpush.bf16.msra.mxu3 %v835_v15 }
  0x56   : > { %509 = vmatpush.bf16.msra.mxu0 %v834_v16  ;;  %905 = vmatpush.bf16.msra.mxu1 %v834_v16 }
  0x57   : > { %906 = vmatpush.bf16.msra.mxu2 %v834_v16  ;;  %907 = vmatpush.bf16.msra.mxu3 %v834_v16 }
  0x59   : > { %510 = vmatmul.bf16.vlgmr.msra.gmra.mxu0 %v830_v17  ;;  %515 = vmatmul.bf16.vlgmr.msra.gmra.mxu1 %v831_v18 }
  0x5a   : > { %520 = vmatmul.bf16.vlgmr.msra.gmra.mxu2 %v832_v19  ;;  %525 = vmatmul.bf16.vlgmr.msra.gmra.mxu3 %v833_v20 }
  0xd6   : > { %v511_v23 = vpop.f32.mrf.mxu0  ;;  %v516_v24 = vpop.f32.mrf.mxu1 }
  0xd7   : > { %v531_v25 = vadd.f32 %v511_v23, %v398_v21  ;;  %v533_v26 = vadd.f32 %v516_v24, %v400_v22 }
  0xd9   : > { %539 = vst [vmem:[#allocation2 + $0x30] sm:$0xff] %v531_v25 }
  0xda   : > { %541 = vst [vmem:[#allocation2 + $0x18] sm:$0xff] %v533_v26 }
  0xdd   : > { %v521_v31 = vpop.f32.mrf.mxu2  ;;  %v526_v32 = vpop.f32.mrf.mxu3 }
  0xde   : > { %v535_v33 = vadd.f32 %v521_v31, %v402_v27  ;;  %v537_v34 = vadd.f32 %v526_v32, %v404_v28  ;;  %v513_v35 = vpop.f32.mrf.mxu0  ;;  %v518_v36 = vpop.f32.mrf.mxu1 }
  0xdf   : > { %v532_v37 = vadd.f32 %v513_v35, %v399_v29  ;;  %v534_v38 = vadd.f32 %v518_v36, %v401_v30 }
  0xe0   : > { %543 = vst [vmem:[#allocation2 + $0x8] sm:$0xff] %v535_v33 }
  0xe1   : > { %545 = vst [vmem:[#allocation2 + $0x28] sm:$0xff] %v537_v34 }
  0xe2   : > { %540 = vst [vmem:[#allocation2] sm:$0xff] %v532_v37 }
  0xe3   : > { %542 = vst [vmem:[#allocation2 + $0x10] sm:$0xff] %v534_v38 }
  0xe5   : > { %v523_v41 = vpop.f32.mrf.mxu2  ;;  %v528_v42 = vpop.f32.mrf.mxu3  ;;  %550 = sbr.rel (%p827_p13) target bundleno = 253 (0xfd), region = 85 }
  0xe6   : > { %v536_v43 = vadd.f32 %v523_v41, %v403_v39  ;;  %v538_v44 = vadd.f32 %v528_v42, %v405_v40 }
  0xe8   : > { %544 = vst [vmem:[#allocation2 + $0x20] sm:$0xff] %v536_v43 }
  0xe9   : > { %546 = vst [vmem:[#allocation2 + $0x38] sm:$0xff] %v538_v44 }
  0xea   : > { %v551_v45 = vld [vmem:[#allocation2 + $0x30] sm:$0xff]  ;;  %v552_v46 = vld [vmem:[#allocation2] sm:$0xff]  ;;  %v553_v50 = vld [vmem:[#allocation2 + $0x18] sm:$0xff] }
  0xeb   : > { %v966_v47 = vld [vmem:[%s1183_s2] ss:$0 sm:$0xff]  ;;  %v967_v48 = vld [vmem:[%s1183_s2 + $0x1] ss:$0 sm:$0xff]  ;;  %v554_v51 = vld [vmem:[#allocation2 + $0x10] sm:$0xff] }
  0xec   : > { %v843_v49 = vld [vmem:[%s1123_s7] sm:$0xff]   ;;  %v561_v52 = vmul.f32 %v966_v47, %v551_v45  ;;  %v562_v53 = vmul.f32 %v966_v47, %v552_v46  ;;  %v878_v56 = vld [vmem:[%s1123_s7 + $0x8] sm:$0xff]   ;;  %v563_v59 = vmul.f32 %v966_v47, %v553_v50  ;;  %v564_v60 = vmul.f32 %v966_v47, %v554_v51  ;;  %v879_v63 = vld [vmem:[%s1123_s7 + $0x10] sm:$0xff]  }
  0xed   : > { %v844_v54 = vunpack.c.l.bf16 %v843_v49  ;;  %v845_v55 = vunpack.c.h.bf16 %v843_v49  ;;  %v555_v57 = vld [vmem:[#allocation2 + $0x8] sm:$0xff]  ;;  %v848_v61 = vunpack.c.l.bf16 %v878_v56  ;;  %v849_v62 = vunpack.c.h.bf16 %v878_v56  ;;  %v880_v18 = vld [vmem:[%s1123_s7 + $0x18] sm:$0xff]  }
  0xee   : > { %v571_v0 = vadd.f32 %v967_v48, %v561_v52  ;;  %v572_v1 = vadd.f32 %v967_v48, %v562_v53  ;;  %v565_v2 = vmul.f32 %v966_v47, %v555_v57  ;;  %v557_v4 = vld [vmem:[#allocation2 + $0x28] sm:$0xff]  ;;  %v573_v6 = vadd.f32 %v967_v48, %v563_v59 }
  0xef   : > { %v556_v58 = vld [vmem:[#allocation2 + $0x20] sm:$0xff]  ;;  %v574_v7 = vadd.f32 %v967_v48, %v564_v60  ;;  %v852_v8 = vunpack.c.l.bf16 %v879_v63  ;;  %v853_v9 = vunpack.c.h.bf16 %v879_v63  ;;  %v567_v16 = vmul.f32 %v966_v47, %v557_v4 }
  0xf0   : > { %v566_v3 = vmul.f32 %v966_v47, %v556_v58  ;;  %v558_v5 = vld [vmem:[#allocation2 + $0x38] sm:$0xff]  ;;  %v595_v10 = vadd.f32 %v844_v54, %v571_v0  ;;  %v596_v11 = vadd.f32 %v845_v55, %v572_v1  ;;  %v575_v12 = vadd.f32 %v967_v48, %v565_v2 }
  0xf1   : > { %v597_v14 = vadd.f32 %v848_v61, %v573_v6  ;;  %v598_v15 = vadd.f32 %v849_v62, %v574_v7  ;;  %v568_v17 = vmul.f32 %v966_v47, %v558_v5  ;;  %v577_v25 = vadd.f32 %v967_v48, %v567_v16 }
  0xf2   : > { %v576_v13 = vadd.f32 %v967_v48, %v566_v3  ;;  %v603_v19 = vmax.f32 %v595_v10, 0.0  ;;  %v604_v20 = vmax.f32 %v596_v11, 0.0  ;;  %v599_v21 = vadd.f32 %v852_v8, %v575_v12 }
  0xf3   : > { %v605_v23 = vmax.f32 %v597_v14, 0.0  ;;  %v606_v24 = vmax.f32 %v598_v15, 0.0  ;;  %v578_v26 = vadd.f32 %v967_v48, %v568_v17  ;;  %v856_v30 = vunpack.c.l.bf16 %v880_v18 }
  0xf4   : > { %v600_v22 = vadd.f32 %v853_v9, %v576_v13  ;;  %v861_v27 = vpack.c.bf16 %v604_v20, %v603_v19  ;;  %v607_v28 = vmax.f32 %v599_v21, 0.0  ;;  %v857_v32 = vunpack.c.h.bf16 %v880_v18 }
  0xf5   : > { %v866_v31 = vpack.c.bf16 %v606_v24, %v605_v23  ;;  %v601_v34 = vadd.f32 %v856_v30, %v577_v25 }
  0xf6   : > { %v608_v29 = vmax.f32 %v600_v22, 0.0  ;;  %862 = vst [vmem:[%s1128_s9] sm:$0xff] %v861_v27   ;;  %v602_v35 = vadd.f32 %v857_v32, %v578_v26 }
  0xf7   : > { %881 = vst [vmem:[%s1128_s9 + $0x8] sm:$0xff] %v866_v31   ;;  %v609_v36 = vmax.f32 %v601_v34, 0.0 }
  0xf8   : > { %v871_v33 = vpack.c.bf16 %v608_v29, %v607_v28  ;;  %v610_v37 = vmax.f32 %v602_v35, 0.0 }
  0xfa   : > { %882 = vst [vmem:[%s1128_s9 + $0x10] sm:$0xff] %v871_v33   ;;  %v876_v38 = vpack.c.bf16 %v610_v37, %v609_v36 }
  0xfc   : > { %883 = vst [vmem:[%s1128_s9 + $0x18] sm:$0xff] %v876_v38  }
  0xfd PF: > { %s14_s21 = sadd.s32 1, %s1022_s21   ;;  %s1186_s15 = smov %s1002_s16 }
  0xfe   : > { %p11_p0 = scmp.ge.s32.totalorder %s14_s21, 12   ;;  %s1187_s16 = smov %s1101_s28 }
  0xff   : > { %s1188_s17 = smov %s1014_s19  ;;  %s1189_s18 = smov %s1018_s20 }
 0x100   : > { %s1190_s19 = smov %s1193_s22  ;;  %s1191_s20 = smov %s1197_s23 }
 0x101   :  { %13 = sbr.rel (!%p11_p0) target bundleno = 4 (0x4), region = 129 }

// kernel: my_script_module_forward.25
= control target key start
LH: loop header
LB: loop body
LE: loop exit
PB: predicated region body
PF: predicated region fallthrough
CT: control target
= control target key end

     0   :  { %s745_s12 = smov 0   ;;  %s747_s13 = smov 0   ;;  %s851_s0 = inlined_call_operand.vmem [shape: bf16[32,640], index: 0, kind: input, shape index: {}]   ;;  %s852_s1 = inlined_call_operand.vmem [shape: bf16[640,128], index: 1, kind: input, shape index: {}]   ;;  %s853_s2 = inlined_call_operand.vmem [shape: f32[2,128], index: 2, kind: input, shape index: {}]   ;;  %s854_s3 = inlined_call_operand.vmem [shape: bf16[32,128], index: 3, kind: output, shape index: {}]  }
   0x1   :  { %s749_s14 = smov 0   ;;  %s751_s15 = smov 0  }
   0x2   :  { %s753_s16 = smov 0   ;;  %s755_s17 = smov 0  }
   0x3   :  { %s757_s18 = smov 0  }
   0x4 LB: > { %s25_s19 = sadd.s32 1, %s714_s16  ;;  %s32_s20 = sadd.s32 1, %s718_s17  ;;  %s722_s18 = sphi %s757_s18, %s13_s18   ;;  %s718_s17 = sphi %s755_s17, %s860_s17   ;;  %s714_s16 = sphi %s753_s16, %s859_s16   ;;  %s710_s15 = sphi %s751_s15, %s858_s15   ;;  %s706_s14 = sphi %s749_s14, %s857_s14   ;;  %s702_s13 = sphi %s747_s13, %s856_s13   ;;  %s698_s12 = sphi %s745_s12, %s855_s12  }
   0x5   : > { %p26_p0 = scmp.ge.s32.totalorder %s25_s19, 5  ;;  %p48_p1 = scmp.ne.s32.totalorder %s702_s13, %s698_s12 }
   0x6   : > { %p49_p2 = scmp.eq.s32.totalorder %s722_s18, 0  ;;  %s41_s24 = sadd.s32 1, %s702_s13 }
   0x7   : > { %s862_s19 = smov (%p26_p0, %s25_s19), 0  ;;  %s864_s20 = smov (!%p26_p0, %s32_s20), %s718_s17 }
   0x8   : > { %p50_p3 = por %p49_p2, %p48_p1  ;;  %p34_p4 = scmp.ge.s32.totalorder %s864_s20, 2 }
   0x9   : > { %s37_s21 = ssub.s32 %s714_s16, %s862_s19  ;;  %p543_p6 = scmp.ge.s32.totalorder %s722_s18, 10 }
   0xa   : > { %s866_s20 = smov (%p34_p4, %s864_s20), 0 }
   0xb   : > { %s36_s22 = ssub.s32 %s718_s17, %s866_s20  ;;  %163 = sbr.rel (%p543_p6) target bundleno = 25 (0x19), region = 20 }
   0xc   : > { %s38_s23 = sor.u32 %s37_s21, %s36_s22 }
   0xd   : > { %p39_p5 = scmp.eq.s32.totalorder %s38_s23, 0 }
   0xf   : > { %s796_s25 = scalar_select %p39_p5, %s702_s13, %s41_s24  }
  0x10   : > { %166 = sbr.rel (!%p50_p3) target bundleno = 25 (0x19), region = 24  ;;  %s168_s26 = sand.u32 (%p50_p3), 1, %s702_s13  }
  0x11   : > { %s608_s27 = smul.u32 (%p50_p3), 10, %s718_s17  ;;  %s544_s28 = sshll.u32 (%p50_p3), %s168_s26, 3 }
  0x12   : > { %s170_s7 = scalar_lea.vmem (%p50_p3), [#allocation3], %s544_s28 }
  0x13   : > { %s173_s29 = sadd.s32 (%p50_p3), %s714_s16, %s608_s27 }
  0x14   : > { %s547_s30 = sshll.u32 (%p50_p3), %s173_s29, 2 }
  0x15   : > { %s175_s6 = scalar_lea.vmem %s851_s0, %s547_s30 }
  0x16   : > { %v192_v0 = vld [vmem:[%s175_s6] sm:$0xf]  ;;  %v194_v1 = vld [vmem:[%s175_s6 + $0x14] sm:$0xf] }
  0x17   : > { %193 = vst [vmem:[%s170_s7] sm:$0xf] %v192_v0 }
  0x18   : > { %195 = vst [vmem:[%s170_s7 + $0x4] sm:$0xf] %v194_v1 }
  0x19 PF: > { %p548_p7 = scmp.ge.s32.totalorder %s722_s18, 1  ;;  %p234_p8 = scmp.lt.s32.totalorder %s722_s18, 11 }
  0x1b   : > { %p235_p9 = pnand %p548_p7, %p234_p8 }
  0x1c   : > { %s241_s8 = sand.u32 (!%p235_p9), 1, %s698_s12   ;;  %s550_s9 = sshll.u32 (!%p235_p9), %s706_s14, 4 }
  0x1d   : > { %238 = sbr.rel (%p235_p9) target bundleno = 230 (0xe6), region = 69  ;;  %s809_s10 = sshll.u32 (!%p235_p9), %s241_s8, 3 }
  0x1e   : > { %p281_p10 = scmp.lt.s32.totalorder (!%p235_p9), %s550_s9, 79  ;;  %s552_s11 = sshll.u32 (!%p235_p9), %s710_s15, 1 }
  0x1f   : > { %p294_p11 = scmp.lt.s32.totalorder (!%p235_p9), %s552_s11, 3  ;;  %s243_s12 = scalar_lea.vmem (!%p235_p9), [#allocation3], %s809_s10 }
  0x20   : > { %p554_p12 = scmp.ne.s32.totalorder (!%p235_p9), %s706_s14, 0 }
  0x22   : > { %s868_s9 = smov (!%p281_p10, %s550_s9), 79  ;;  %s870_s11 = smov (!%p294_p11, %s552_s11), 3 }
  0x23   : > { %s551_s21 = sshll.u32 %s868_s9, 2  ;;  %s553_s26 = sshll.u32 %s870_s11, 2 }
  0x24   : > { %s287_s24 = scalar_lea.vmem %s852_s1, %s551_s21  ;;  %s818_s29 = scalar_lea.vmem %s854_s3, %s553_s26 }
  0x25   : > { %305 = sbr.rel (%p554_p12) target bundleno = 45 (0x2d), region = 77 }
  0x2a   : > { %v724_v2 = vmov 0.0  }
  0x2b   : > { %306 = vst [vmem:[#allocation2] sm:$0xff] %v724_v2 }
  0x2c   : > { %307 = vst [vmem:[#allocation2 + $0x8] sm:$0xff] %v724_v2 }
  0x2d PF: > { %v602_v3 = vld [vmem:[%s287_s24 + $0x38] sm:$0xff]  ;;  %v601_v4 = vld [vmem:[%s287_s24 + $0x30] sm:$0xff]  ;;  %v600_v5 = vld [vmem:[%s287_s24 + $0x28] sm:$0xff]  ;;  %p591_p13 = scmp.ne.s32.totalorder %s706_s14, 4 }
  0x2e   : > { %382 = vmatpush.bf16.msra.mxu0 %v602_v3  ;;  %v599_v6 = vld [vmem:[%s287_s24 + $0x20] sm:$0xff]  ;;  %v598_v7 = vld [vmem:[%s287_s24 + $0x18] sm:$0xff]  ;;  %v597_v8 = vld [vmem:[%s287_s24 + $0x10] sm:$0xff] }
  0x2f   : > { %v596_v9 = vld [vmem:[%s287_s24 + $0x8] sm:$0xff]  ;;  %v595_v10 = vld [vmem:[%s287_s24] sm:$0xff]  ;;  %v594_v11 = vld [vmem:[%s243_s12] sm:$0xff] }
  0x32   : > { %383 = vmatpush.bf16.msra.mxu0 %v601_v4  ;;  %v308_v12 = vld [vmem:[#allocation2] sm:$0xff] }
  0x33   : > { %v309_v15 = vld [vmem:[#allocation2 + $0x8] sm:$0xff] }
  0x36   : > { %384 = vmatpush.bf16.msra.mxu0 %v600_v5 }
  0x3a   : > { %385 = vmatpush.bf16.msra.mxu0 %v599_v6 }
  0x3e   : > { %386 = vmatpush.bf16.msra.mxu0 %v598_v7 }
  0x42   : > { %387 = vmatpush.bf16.msra.mxu0 %v597_v8 }
  0x46   : > { %388 = vmatpush.bf16.msra.mxu0 %v596_v9 }
  0x4a   : > { %389 = vmatpush.bf16.msra.mxu0 %v595_v10 }
  0x4d   : > { %390 = vmatmul.bf16.vlgmr.msra.gmra.mxu0 %v594_v11 }
  0xca   : > { %v391_v13 = vpop.f32.mrf.mxu0 }
  0xcb   : > { %v396_v14 = vadd.f32 %v391_v13, %v308_v12 }
  0xcd   : > { %398 = vst [vmem:[#allocation2] sm:$0xff] %v396_v14 }
  0xd1   : > { %403 = sbr.rel (%p591_p13) target bundleno = 230 (0xe6), region = 81 }
  0xd2   : > { %v393_v16 = vpop.f32.mrf.mxu0 }
  0xd3   : > { %v397_v17 = vadd.f32 %v393_v16, %v309_v15 }
  0xd5   : > { %399 = vst [vmem:[#allocation2 + $0x8] sm:$0xff] %v397_v17 }
  0xd6   : > { %v404_v18 = vld [vmem:[#allocation2] sm:$0xff] }
  0xd7   : > { %v666_v20 = vld [vmem:[%s853_s2] ss:$0 sm:$0xff]  ;;  %v667_v21 = vld [vmem:[%s853_s2 + $0x1] ss:$0 sm:$0xff] }
  0xd8   : > { %v408_v22 = vmul.f32 %v666_v20, %v404_v18 }
  0xda   : > { %v412_v24 = vadd.f32 %v667_v21, %v408_v22 }
  0xdc   : > { %v405_v19 = vld [vmem:[#allocation2 + $0x8] sm:$0xff]  ;;  %v414_v26 = vmax.f32 %v412_v24, 0.0 }
  0xdd   : > { %v409_v23 = vmul.f32 %v666_v20, %v405_v19 }
  0xdf   : > { %v413_v25 = vadd.f32 %v667_v21, %v409_v23 }
  0xe1   : > { %v415_v27 = vmax.f32 %v413_v25, 0.0 }
  0xe3   : > { %v606_v28 = vpack.c.bf16 %v415_v27, %v414_v26 }
  0xe5   : > { %607 = vst [vmem:[%s818_s29] sm:$0xff] %v606_v28  }
  0xe6 PF: > { %s13_s18 = sadd.s32 1, %s722_s18   ;;  %s855_s12 = smov %s702_s13 }
  0xe7   : > { %p10_p0 = scmp.ge.s32.totalorder %s13_s18, 12   ;;  %s856_s13 = smov %s796_s25 }
  0xe8   : > { %s857_s14 = smov %s714_s16  ;;  %s858_s15 = smov %s718_s17 }
  0xe9   : > { %s859_s16 = smov %s862_s19  ;;  %s860_s17 = smov %s866_s20 }
  0xea   :  { %12 = sbr.rel (!%p10_p0) target bundleno = 4 (0x4), region = 122 }

// kernel: my_script_module_forward.27
= control target key start
LH: loop header
LB: loop body
LE: loop exit
PB: predicated region body
PF: predicated region fallthrough
CT: control target
= control target key end

     0   :  { %s837_s15 = smov 0   ;;  %s839_s16 = smov 0   ;;  %s949_s0 = inlined_call_operand.vmem [shape: bf16[32,1152], index: 0, kind: input, shape index: {}]   ;;  %s950_s1 = inlined_call_operand.vmem [shape: bf16[1152,128], index: 1, kind: input, shape index: {}]   ;;  %s951_s2 = inlined_call_operand.vmem [shape: f32[2,128], index: 2, kind: input, shape index: {}]   ;;  %s952_s3 = inlined_call_operand.vmem [shape: bf16[32,128], index: 3, kind: input, shape index: {}]   ;;  %s953_s4 = inlined_call_operand.vmem [shape: bf16[32,128], index: 4, kind: output, shape index: {}]  }
   0x1   :  { %s841_s17 = smov 0   ;;  %s843_s18 = smov 0  }
   0x2   :  { %s845_s19 = smov 0   ;;  %s847_s20 = smov 0  }
   0x3   :  { %s849_s21 = smov 0  }
   0x4 LB: > { %s26_s22 = sadd.s32 1, %s801_s19  ;;  %s33_s23 = sadd.s32 1, %s805_s20  ;;  %s809_s21 = sphi %s849_s21, %s14_s21   ;;  %s805_s20 = sphi %s847_s20, %s959_s20   ;;  %s801_s19 = sphi %s845_s19, %s958_s19   ;;  %s797_s18 = sphi %s843_s18, %s957_s18   ;;  %s793_s17 = sphi %s841_s17, %s956_s17   ;;  %s789_s16 = sphi %s839_s16, %s955_s16   ;;  %s785_s15 = sphi %s837_s15, %s954_s15  }
   0x5   : > { %p27_p0 = scmp.ge.s32.totalorder %s26_s22, 9  ;;  %p49_p1 = scmp.ne.s32.totalorder %s789_s16, %s785_s15 }
   0x6   : > { %p50_p2 = scmp.eq.s32.totalorder %s809_s21, 0  ;;  %s42_s27 = sadd.s32 1, %s789_s16 }
   0x7   : > { %s961_s22 = smov (%p27_p0, %s26_s22), 0  ;;  %s963_s23 = smov (!%p27_p0, %s33_s23), %s805_s20 }
   0x8   : > { %p51_p3 = por %p50_p2, %p49_p1  ;;  %p35_p4 = scmp.ge.s32.totalorder %s963_s23, 2 }
   0x9   : > { %s38_s24 = ssub.s32 %s801_s19, %s961_s22  ;;  %p624_p6 = scmp.ge.s32.totalorder %s809_s21, 18 }
   0xa   : > { %s965_s23 = smov (%p35_p4, %s963_s23), 0 }
   0xb   : > { %s37_s25 = ssub.s32 %s805_s20, %s965_s23  ;;  %192 = sbr.rel (%p624_p6) target bundleno = 25 (0x19), region = 20 }
   0xc   : > { %s39_s26 = sor.u32 %s38_s24, %s37_s25 }
   0xd   : > { %p40_p5 = scmp.eq.s32.totalorder %s39_s26, 0 }
   0xf   : > { %s888_s28 = scalar_select %p40_p5, %s789_s16, %s42_s27  }
  0x10   : > { %195 = sbr.rel (!%p51_p3) target bundleno = 25 (0x19), region = 24  ;;  %s197_s29 = sand.u32 (%p51_p3), 1, %s789_s16  }
  0x11   : > { %s695_s30 = smul.u32 (%p51_p3), 18, %s805_s20  ;;  %s625_s5 = sshll.u32 (%p51_p3), %s197_s29, 3 }
  0x12   : > { %s199_s11 = scalar_lea.vmem (%p51_p3), [#allocation3], %s625_s5 }
  0x13   : > { %s202_s6 = sadd.s32 (%p51_p3), %s801_s19, %s695_s30 }
  0x14   : > { %s628_s7 = sshll.u32 (%p51_p3), %s202_s6, 2 }
  0x15   : > { %s204_s10 = scalar_lea.vmem %s949_s0, %s628_s7 }
  0x16   : > { %v221_v0 = vld [vmem:[%s204_s10] sm:$0xf]  ;;  %v223_v1 = vld [vmem:[%s204_s10 + $0x24] sm:$0xf] }
  0x17   : > { %222 = vst [vmem:[%s199_s11] sm:$0xf] %v221_v0 }
  0x18   : > { %224 = vst [vmem:[%s199_s11 + $0x4] sm:$0xf] %v223_v1 }
  0x19 PF: > { %p629_p7 = scmp.ge.s32.totalorder %s809_s21, 1  ;;  %p275_p8 = scmp.lt.s32.totalorder %s809_s21, 19 }
  0x1b   : > { %p276_p9 = pnand %p629_p7, %p275_p8 }
  0x1c   : > { %s282_s12 = sand.u32 (!%p276_p9), 1, %s785_s15   ;;  %s631_s13 = sshll.u32 (!%p276_p9), %s793_s17, 4 }
  0x1d   : > { %279 = sbr.rel (%p276_p9) target bundleno = 232 (0xe8), region = 73  ;;  %s901_s14 = sshll.u32 (!%p276_p9), %s282_s12, 3 }
  0x1e   : > { %p332_p10 = scmp.lt.s32.totalorder (!%p276_p9), %s631_s13, 143  ;;  %s633_s24 = sshll.u32 (!%p276_p9), %s797_s18, 1 }
  0x1f   : > { %p345_p11 = scmp.lt.s32.totalorder (!%p276_p9), %s633_s24, 3  ;;  %s284_s18 = scalar_lea.vmem (!%p276_p9), [#allocation3], %s901_s14 }
  0x20   : > { %p637_p12 = scmp.ne.s32.totalorder (!%p276_p9), %s793_s17, 0 }
  0x22   : > { %s967_s13 = smov (!%p332_p10, %s631_s13), 143  ;;  %s969_s24 = smov (!%p345_p11, %s633_s24), 3 }
  0x23   : > { %s632_s25 = sshll.u32 %s967_s13, 2  ;;  %s634_s30 = sshll.u32 %s969_s24, 2 }
  0x24   : > { %s338_s29 = scalar_lea.vmem %s950_s1, %s632_s25  ;;  %s910_s7 = scalar_lea.vmem %s952_s3, %s634_s30 }
  0x25   : > { %s915_s9 = scalar_lea.vmem %s953_s4, %s634_s30  ;;  %365 = sbr.rel (%p637_p12) target bundleno = 45 (0x2d), region = 81 }
  0x2a   : > { %v811_v2 = vmov 0.0  }
  0x2b   : > { %366 = vst [vmem:[#allocation2] sm:$0xff] %v811_v2 }
  0x2c   : > { %367 = vst [vmem:[#allocation2 + $0x8] sm:$0xff] %v811_v2 }
  0x2d PF: > { %v685_v3 = vld [vmem:[%s338_s29 + $0x38] sm:$0xff]  ;;  %v684_v4 = vld [vmem:[%s338_s29 + $0x30] sm:$0xff]  ;;  %v683_v5 = vld [vmem:[%s338_s29 + $0x28] sm:$0xff]  ;;  %p674_p13 = scmp.ne.s32.totalorder %s793_s17, 8 }
  0x2e   : > { %442 = vmatpush.bf16.msra.mxu0 %v685_v3  ;;  %v682_v6 = vld [vmem:[%s338_s29 + $0x20] sm:$0xff]  ;;  %v681_v7 = vld [vmem:[%s338_s29 + $0x18] sm:$0xff]  ;;  %v680_v8 = vld [vmem:[%s338_s29 + $0x10] sm:$0xff] }
  0x2f   : > { %v679_v9 = vld [vmem:[%s338_s29 + $0x8] sm:$0xff]  ;;  %v678_v10 = vld [vmem:[%s338_s29] sm:$0xff]  ;;  %v677_v11 = vld [vmem:[%s284_s18] sm:$0xff] }
  0x32   : > { %443 = vmatpush.bf16.msra.mxu0 %v684_v4  ;;  %v368_v12 = vld [vmem:[#allocation2] sm:$0xff] }
  0x33   : > { %v369_v15 = vld [vmem:[#allocation2 + $0x8] sm:$0xff] }
  0x36   : > { %444 = vmatpush.bf16.msra.mxu0 %v683_v5 }
  0x3a   : > { %445 = vmatpush.bf16.msra.mxu0 %v682_v6 }
  0x3e   : > { %446 = vmatpush.bf16.msra.mxu0 %v681_v7 }
  0x42   : > { %447 = vmatpush.bf16.msra.mxu0 %v680_v8 }
  0x46   : > { %448 = vmatpush.bf16.msra.mxu0 %v679_v9 }
  0x4a   : > { %449 = vmatpush.bf16.msra.mxu0 %v678_v10 }
  0x4d   : > { %450 = vmatmul.bf16.vlgmr.msra.gmra.mxu0 %v677_v11 }
  0xca   : > { %v451_v13 = vpop.f32.mrf.mxu0 }
  0xcb   : > { %v456_v14 = vadd.f32 %v451_v13, %v368_v12 }
  0xcd   : > { %458 = vst [vmem:[#allocation2] sm:$0xff] %v456_v14 }
  0xd1   : > { %463 = sbr.rel (%p674_p13) target bundleno = 232 (0xe8), region = 85 }
  0xd2   : > { %v453_v16 = vpop.f32.mrf.mxu0 }
  0xd3   : > { %v457_v17 = vadd.f32 %v453_v16, %v369_v15 }
  0xd5   : > { %459 = vst [vmem:[#allocation2 + $0x8] sm:$0xff] %v457_v17 }
  0xd6   : > { %v464_v18 = vld [vmem:[#allocation2] sm:$0xff] }
  0xd7   : > { %v753_v20 = vld [vmem:[%s951_s2] ss:$0 sm:$0xff]  ;;  %v754_v21 = vld [vmem:[%s951_s2 + $0x1] ss:$0 sm:$0xff] }
  0xd8   : > { %v687_v22 = vld [vmem:[%s910_s7] sm:$0xff]   ;;  %v468_v23 = vmul.f32 %v753_v20, %v464_v18 }
  0xd9   : > { %v688_v25 = vunpack.c.l.bf16 %v687_v22  ;;  %v689_v26 = vunpack.c.h.bf16 %v687_v22 }
  0xda   : > { %v472_v27 = vadd.f32 %v754_v21, %v468_v23 }
  0xdc   : > { %v465_v19 = vld [vmem:[#allocation2 + $0x8] sm:$0xff]  ;;  %v478_v29 = vadd.f32 %v688_v25, %v472_v27 }
  0xdd   : > { %v469_v24 = vmul.f32 %v753_v20, %v465_v19 }
  0xde   : > { %v480_v31 = vmax.f32 %v478_v29, 0.0 }
  0xdf   : > { %v473_v28 = vadd.f32 %v754_v21, %v469_v24 }
  0xe1   : > { %v479_v30 = vadd.f32 %v689_v26, %v473_v28 }
  0xe3   : > { %v481_v32 = vmax.f32 %v479_v30, 0.0 }
  0xe5   : > { %v693_v33 = vpack.c.bf16 %v481_v32, %v480_v31 }
  0xe7   : > { %694 = vst [vmem:[%s915_s9] sm:$0xff] %v693_v33  }
  0xe8 PF: > { %s14_s21 = sadd.s32 1, %s809_s21   ;;  %s954_s15 = smov %s789_s16 }
  0xe9   : > { %p11_p0 = scmp.ge.s32.totalorder %s14_s21, 20   ;;  %s955_s16 = smov %s888_s28 }
  0xea   : > { %s956_s17 = smov %s801_s19  ;;  %s957_s18 = smov %s805_s20 }
  0xeb   : > { %s958_s19 = smov %s961_s22  ;;  %s959_s20 = smov %s965_s23 }
  0xec   :  { %13 = sbr.rel (!%p11_p0) target bundleno = 4 (0x4), region = 129 }

// kernel: my_script_module_forward.26
= control target key start
LH: loop header
LB: loop body
LE: loop exit
PB: predicated region body
PF: predicated region fallthrough
CT: control target
= control target key end

     0   :  { %s624_s12 = smov 0   ;;  %s626_s13 = smov 0   ;;  %s687_s0 = inlined_call_operand.vmem [shape: bf16[32,128], index: 0, kind: input, shape index: {}]   ;;  %s688_s1 = inlined_call_operand.vmem [shape: bf16[128,128], index: 1, kind: input, shape index: {}]   ;;  %s689_s2 = inlined_call_operand.vmem [shape: f32[2,128], index: 2, kind: input, shape index: {}]   ;;  %s690_s3 = inlined_call_operand.vmem [shape: bf16[32,128], index: 3, kind: output, shape index: {}]  }
   0x1   :  { %s628_s14 = smov 0  }
   0x2 LB: > { %s32_s15 = sadd.s32 1, %s598_s13  ;;  %p497_p0 = scmp.ge.s32.totalorder %s602_s14, 1  ;;  %s602_s14 = sphi %s628_s14, %s13_s14   ;;  %s598_s13 = sphi %s626_s13, %s692_s13   ;;  %s594_s12 = sphi %s624_s12, %s691_s12  }
   0x3   : > { %p34_p1 = scmp.ge.s32.totalorder %s32_s15, 2  ;;  %p189_p2 = scmp.lt.s32.totalorder %s602_s14, 3 }
   0x5   : > { %s694_s15 = smov (%p34_p1, %s32_s15), 0  ;;  %p190_p3 = pnand %p497_p0, %p189_p2 }
   0x6   : > { %s498_s24 = sshll.u32 (!%p190_p3), %s594_s12, 1 }
   0x7   : > { %193 = sbr.rel (%p190_p3) target bundleno = 185 (0xb9), region = 32  ;;  %p232_p4 = scmp.lt.s32.totalorder (!%p190_p3), %s498_s24, 3 }
   0xc   : > { %v548_v0 = vld [vmem:[%s688_s1 + $0x38] sm:$0xff]  ;;  %v547_v1 = vld [vmem:[%s688_s1 + $0x30] sm:$0xff]  ;;  %v546_v2 = vld [vmem:[%s688_s1 + $0x28] sm:$0xff]  ;;  %s696_s24 = smov (!%p232_p4, %s498_s24), 3 }
   0xd   : > { %342 = vmatpush.bf16.msra.mxu0 %v548_v0  ;;  %v545_v3 = vld [vmem:[%s688_s1 + $0x20] sm:$0xff]  ;;  %v544_v4 = vld [vmem:[%s688_s1 + $0x18] sm:$0xff]  ;;  %v543_v5 = vld [vmem:[%s688_s1 + $0x10] sm:$0xff]  ;;  %s499_s4 = sshll.u32 %s696_s24, 2 }
   0xe   : > { %v542_v6 = vld [vmem:[%s688_s1 + $0x8] sm:$0xff]  ;;  %v541_v7 = vld [vmem:[%s688_s1] sm:$0xff]  ;;  %s238_s9 = scalar_lea.vmem %s687_s0, %s499_s4  ;;  %s260_s19 = scalar_lea.vmem %s690_s3, %s499_s4 }
   0xf   : > { %v540_v8 = vld [vmem:[%s238_s9] sm:$0xff] }
  0x10   : > { %v578_v10 = vld [vmem:[%s689_s2] ss:$0 sm:$0xff]  ;;  %v579_v12 = vld [vmem:[%s689_s2 + $0x1] ss:$0 sm:$0xff] }
  0x11   : > { %343 = vmatpush.bf16.msra.mxu0 %v547_v1 }
  0x15   : > { %344 = vmatpush.bf16.msra.mxu0 %v546_v2 }
  0x19   : > { %345 = vmatpush.bf16.msra.mxu0 %v545_v3 }
  0x1d   : > { %346 = vmatpush.bf16.msra.mxu0 %v544_v4 }
  0x21   : > { %347 = vmatpush.bf16.msra.mxu0 %v543_v5 }
  0x25   : > { %348 = vmatpush.bf16.msra.mxu0 %v542_v6 }
  0x29   : > { %349 = vmatpush.bf16.msra.mxu0 %v541_v7 }
  0x2c   : > { %350 = vmatmul.bf16.vlgmr.msra.gmra.mxu0 %v540_v8 }
  0xa9   : > { %v351_v9 = vpop.f32.mrf.mxu0 }
  0xaa   : > { %v367_v11 = vmul.f32 %v578_v10, %v351_v9 }
  0xac   : > { %v371_v15 = vadd.f32 %v579_v12, %v367_v11 }
  0xb1   : > { %v353_v13 = vpop.f32.mrf.mxu0 }
  0xb2   : > { %v368_v14 = vmul.f32 %v578_v10, %v353_v13 }
  0xb4   : > { %v372_v16 = vadd.f32 %v579_v12, %v368_v14 }
  0xb6   : > { %v552_v17 = vpack.c.bf16 %v372_v16, %v371_v15 }
  0xb8   : > { %553 = vst [vmem:[%s260_s19] sm:$0xff] %v552_v17  }
  0xb9 PF: > { %s13_s14 = sadd.s32 1, %s602_s14   ;;  %s691_s12 = smov %s598_s13 }
  0xba   : > { %p10_p5 = scmp.ge.s32.totalorder %s13_s14, 4   ;;  %s692_s13 = smov %s694_s15 }
  0xbc   :  { %12 = sbr.rel (!%p10_p5) target bundleno = 2 (0x2), region = 76 }

// kernel: my_script_module_forward.28
= control target key start
LH: loop header
LB: loop body
LE: loop exit
PB: predicated region body
PF: predicated region fallthrough
CT: control target
= control target key end

     0   :  { %s745_s12 = smov 0   ;;  %s747_s13 = smov 0   ;;  %s851_s0 = inlined_call_operand.vmem [shape: bf16[32,1152], index: 0, kind: input, shape index: {}]   ;;  %s852_s1 = inlined_call_operand.vmem [shape: bf16[1152,128], index: 1, kind: input, shape index: {}]   ;;  %s853_s2 = inlined_call_operand.vmem [shape: f32[2,128], index: 2, kind: input, shape index: {}]   ;;  %s854_s3 = inlined_call_operand.vmem [shape: bf16[32,128], index: 3, kind: output, shape index: {}]  }
   0x1   :  { %s749_s14 = smov 0   ;;  %s751_s15 = smov 0  }
   0x2   :  { %s753_s16 = smov 0   ;;  %s755_s17 = smov 0  }
   0x3   :  { %s757_s18 = smov 0  }
   0x4 LB: > { %s25_s19 = sadd.s32 1, %s714_s16  ;;  %s32_s20 = sadd.s32 1, %s718_s17  ;;  %s722_s18 = sphi %s757_s18, %s13_s18   ;;  %s718_s17 = sphi %s755_s17, %s860_s17   ;;  %s714_s16 = sphi %s753_s16, %s859_s16   ;;  %s710_s15 = sphi %s751_s15, %s858_s15   ;;  %s706_s14 = sphi %s749_s14, %s857_s14   ;;  %s702_s13 = sphi %s747_s13, %s856_s13   ;;  %s698_s12 = sphi %s745_s12, %s855_s12  }
   0x5   : > { %p26_p0 = scmp.ge.s32.totalorder %s25_s19, 9  ;;  %p48_p1 = scmp.ne.s32.totalorder %s702_s13, %s698_s12 }
   0x6   : > { %p49_p2 = scmp.eq.s32.totalorder %s722_s18, 0  ;;  %s41_s24 = sadd.s32 1, %s702_s13 }
   0x7   : > { %s862_s19 = smov (%p26_p0, %s25_s19), 0  ;;  %s864_s20 = smov (!%p26_p0, %s32_s20), %s718_s17 }
   0x8   : > { %p50_p3 = por %p49_p2, %p48_p1  ;;  %p34_p4 = scmp.ge.s32.totalorder %s864_s20, 2 }
   0x9   : > { %s37_s21 = ssub.s32 %s714_s16, %s862_s19  ;;  %p543_p6 = scmp.ge.s32.totalorder %s722_s18, 18 }
   0xa   : > { %s866_s20 = smov (%p34_p4, %s864_s20), 0 }
   0xb   : > { %s36_s22 = ssub.s32 %s718_s17, %s866_s20  ;;  %163 = sbr.rel (%p543_p6) target bundleno = 25 (0x19), region = 20 }
   0xc   : > { %s38_s23 = sor.u32 %s37_s21, %s36_s22 }
   0xd   : > { %p39_p5 = scmp.eq.s32.totalorder %s38_s23, 0 }
   0xf   : > { %s796_s25 = scalar_select %p39_p5, %s702_s13, %s41_s24  }
  0x10   : > { %166 = sbr.rel (!%p50_p3) target bundleno = 25 (0x19), region = 24  ;;  %s168_s26 = sand.u32 (%p50_p3), 1, %s702_s13  }
  0x11   : > { %s608_s27 = smul.u32 (%p50_p3), 18, %s718_s17  ;;  %s544_s28 = sshll.u32 (%p50_p3), %s168_s26, 3 }
  0x12   : > { %s170_s7 = scalar_lea.vmem (%p50_p3), [#allocation3], %s544_s28 }
  0x13   : > { %s173_s29 = sadd.s32 (%p50_p3), %s714_s16, %s608_s27 }
  0x14   : > { %s547_s30 = sshll.u32 (%p50_p3), %s173_s29, 2 }
  0x15   : > { %s175_s6 = scalar_lea.vmem %s851_s0, %s547_s30 }
  0x16   : > { %v192_v0 = vld [vmem:[%s175_s6] sm:$0xf]  ;;  %v194_v1 = vld [vmem:[%s175_s6 + $0x24] sm:$0xf] }
  0x17   : > { %193 = vst [vmem:[%s170_s7] sm:$0xf] %v192_v0 }
  0x18   : > { %195 = vst [vmem:[%s170_s7 + $0x4] sm:$0xf] %v194_v1 }
  0x19 PF: > { %p548_p7 = scmp.ge.s32.totalorder %s722_s18, 1  ;;  %p234_p8 = scmp.lt.s32.totalorder %s722_s18, 19 }
  0x1b   : > { %p235_p9 = pnand %p548_p7, %p234_p8 }
  0x1c   : > { %s241_s8 = sand.u32 (!%p235_p9), 1, %s698_s12   ;;  %s550_s9 = sshll.u32 (!%p235_p9), %s706_s14, 4 }
  0x1d   : > { %238 = sbr.rel (%p235_p9) target bundleno = 230 (0xe6), region = 69  ;;  %s809_s10 = sshll.u32 (!%p235_p9), %s241_s8, 3 }
  0x1e   : > { %p281_p10 = scmp.lt.s32.totalorder (!%p235_p9), %s550_s9, 143  ;;  %s552_s11 = sshll.u32 (!%p235_p9), %s710_s15, 1 }
  0x1f   : > { %p294_p11 = scmp.lt.s32.totalorder (!%p235_p9), %s552_s11, 3  ;;  %s243_s12 = scalar_lea.vmem (!%p235_p9), [#allocation3], %s809_s10 }
  0x20   : > { %p554_p12 = scmp.ne.s32.totalorder (!%p235_p9), %s706_s14, 0 }
  0x22   : > { %s868_s9 = smov (!%p281_p10, %s550_s9), 143  ;;  %s870_s11 = smov (!%p294_p11, %s552_s11), 3 }
  0x23   : > { %s551_s21 = sshll.u32 %s868_s9, 2  ;;  %s553_s26 = sshll.u32 %s870_s11, 2 }
  0x24   : > { %s287_s24 = scalar_lea.vmem %s852_s1, %s551_s21  ;;  %s818_s29 = scalar_lea.vmem %s854_s3, %s553_s26 }
  0x25   : > { %305 = sbr.rel (%p554_p12) target bundleno = 45 (0x2d), region = 77 }
  0x2a   : > { %v724_v2 = vmov 0.0  }
  0x2b   : > { %306 = vst [vmem:[#allocation2] sm:$0xff] %v724_v2 }
  0x2c   : > { %307 = vst [vmem:[#allocation2 + $0x8] sm:$0xff] %v724_v2 }
  0x2d PF: > { %v602_v3 = vld [vmem:[%s287_s24 + $0x38] sm:$0xff]  ;;  %v601_v4 = vld [vmem:[%s287_s24 + $0x30] sm:$0xff]  ;;  %v600_v5 = vld [vmem:[%s287_s24 + $0x28] sm:$0xff]  ;;  %p591_p13 = scmp.ne.s32.totalorder %s706_s14, 8 }
  0x2e   : > { %382 = vmatpush.bf16.msra.mxu0 %v602_v3  ;;  %v599_v6 = vld [vmem:[%s287_s24 + $0x20] sm:$0xff]  ;;  %v598_v7 = vld [vmem:[%s287_s24 + $0x18] sm:$0xff]  ;;  %v597_v8 = vld [vmem:[%s287_s24 + $0x10] sm:$0xff] }
  0x2f   : > { %v596_v9 = vld [vmem:[%s287_s24 + $0x8] sm:$0xff]  ;;  %v595_v10 = vld [vmem:[%s287_s24] sm:$0xff]  ;;  %v594_v11 = vld [vmem:[%s243_s12] sm:$0xff] }
  0x32   : > { %383 = vmatpush.bf16.msra.mxu0 %v601_v4  ;;  %v308_v12 = vld [vmem:[#allocation2] sm:$0xff] }
  0x33   : > { %v309_v15 = vld [vmem:[#allocation2 + $0x8] sm:$0xff] }
  0x36   : > { %384 = vmatpush.bf16.msra.mxu0 %v600_v5 }
  0x3a   : > { %385 = vmatpush.bf16.msra.mxu0 %v599_v6 }
  0x3e   : > { %386 = vmatpush.bf16.msra.mxu0 %v598_v7 }
  0x42   : > { %387 = vmatpush.bf16.msra.mxu0 %v597_v8 }
  0x46   : > { %388 = vmatpush.bf16.msra.mxu0 %v596_v9 }
  0x4a   : > { %389 = vmatpush.bf16.msra.mxu0 %v595_v10 }
  0x4d   : > { %390 = vmatmul.bf16.vlgmr.msra.gmra.mxu0 %v594_v11 }
  0xca   : > { %v391_v13 = vpop.f32.mrf.mxu0 }
  0xcb   : > { %v396_v14 = vadd.f32 %v391_v13, %v308_v12 }
  0xcd   : > { %398 = vst [vmem:[#allocation2] sm:$0xff] %v396_v14 }
  0xd1   : > { %403 = sbr.rel (%p591_p13) target bundleno = 230 (0xe6), region = 81 }
  0xd2   : > { %v393_v16 = vpop.f32.mrf.mxu0 }
  0xd3   : > { %v397_v17 = vadd.f32 %v393_v16, %v309_v15 }
  0xd5   : > { %399 = vst [vmem:[#allocation2 + $0x8] sm:$0xff] %v397_v17 }
  0xd6   : > { %v404_v18 = vld [vmem:[#allocation2] sm:$0xff] }
  0xd7   : > { %v666_v20 = vld [vmem:[%s853_s2] ss:$0 sm:$0xff]  ;;  %v667_v21 = vld [vmem:[%s853_s2 + $0x1] ss:$0 sm:$0xff] }
  0xd8   : > { %v408_v22 = vmul.f32 %v666_v20, %v404_v18 }
  0xda   : > { %v412_v24 = vadd.f32 %v667_v21, %v408_v22 }
  0xdc   : > { %v405_v19 = vld [vmem:[#allocation2 + $0x8] sm:$0xff]  ;;  %v414_v26 = vmax.f32 %v412_v24, 0.0 }
  0xdd   : > { %v409_v23 = vmul.f32 %v666_v20, %v405_v19 }
  0xdf   : > { %v413_v25 = vadd.f32 %v667_v21, %v409_v23 }
  0xe1   : > { %v415_v27 = vmax.f32 %v413_v25, 0.0 }
  0xe3   : > { %v606_v28 = vpack.c.bf16 %v415_v27, %v414_v26 }
  0xe5   : > { %607 = vst [vmem:[%s818_s29] sm:$0xff] %v606_v28  }
  0xe6 PF: > { %s13_s18 = sadd.s32 1, %s722_s18   ;;  %s855_s12 = smov %s702_s13 }
  0xe7   : > { %p10_p0 = scmp.ge.s32.totalorder %s13_s18, 20   ;;  %s856_s13 = smov %s796_s25 }
  0xe8   : > { %s857_s14 = smov %s714_s16  ;;  %s858_s15 = smov %s718_s17 }
  0xe9   : > { %s859_s16 = smov %s862_s19  ;;  %s860_s17 = smov %s866_s20 }
  0xea   :  { %12 = sbr.rel (!%p10_p0) target bundleno = 4 (0x4), region = 122 }

// kernel: my_script_module_forward.30
= control target key start
LH: loop header
LB: loop body
LE: loop exit
PB: predicated region body
PF: predicated region fallthrough
CT: control target
= control target key end

     0   :  { %s1135_s0 = inlined_call_operand.vmem [shape: bf16[16,1152], index: 0, kind: input, shape index: {}]   ;;  %s1136_s1 = inlined_call_operand.vmem [shape: bf16[1152,256], index: 1, kind: input, shape index: {}]   ;;  %s1137_s2 = inlined_call_operand.vmem [shape: f32[2,256], index: 2, kind: input, shape index: {}]   ;;  %s1138_s3 = inlined_call_operand.vmem [shape: bf16[16,256], index: 3, kind: output, shape index: {}]  }
   0x1   :  { %1141 = sst [smem:[#allocation9_spill]] %s1135_s0 }
   0x2   :  { %s940_s12 = smov 0   ;;  %s942_s13 = smov 0  }
   0x3   :  { %s944_s14 = smov 0   ;;  %s946_s15 = smov 0  }
   0x4   :  { %s948_s16 = smov 0   ;;  %s950_s17 = smov 0  }
   0x5   :  { %s952_s18 = smov 0   ;;  %s954_s19 = smov 0  }
   0x6   :  { %s956_s20 = smov 0   ;;  %s958_s21 = smov 0  }
   0x7   :  { %s960_s22 = smov 0  }
   0x8 LB: > { %s668_s23 = sadd.s32 4294967295, %s917_s22   ;;  %s25_s24 = sadd.s32 1, %s909_s20  ;;  %s917_s22 = sphi %s960_s22, %s13_s22   ;;  %s913_s21 = sphi %s958_s21, %s1161_s21   ;;  %s909_s20 = sphi %s956_s20, %s1160_s20   ;;  %s905_s19 = sphi %s954_s19, %s1159_s19   ;;  %s901_s18 = sphi %s952_s18, %s1158_s18   ;;  %s897_s17 = sphi %s950_s17, %s1157_s17   ;;  %s893_s16 = sphi %s948_s16, %s1156_s16   ;;  %s889_s15 = sphi %s946_s15, %s1155_s15   ;;  %s885_s14 = sphi %s944_s14, %s1154_s14   ;;  %s881_s13 = sphi %s942_s13, %s1153_s13   ;;  %s877_s12 = sphi %s940_s12, %s1152_s12  }
   0x9   : > { %p26_p0 = scmp.ge.s32.totalorder %s25_s24, 9  ;;  %s28_s25 = sadd.s32 1, %s913_s21 }
   0xa   : > { %s41_s26 = sadd.s32 1, %s897_s17  ;;  %p48_p1 = scmp.ne.s32.totalorder %s897_s17, %s893_s16 }
   0xb   : > { %s1163_s24 = smov (%p26_p0, %s25_s24), 0  ;;  %s1165_s25 = smov (!%p26_p0, %s28_s25), %s913_s21 }
   0xc   : > { %1142 = sst [smem:[#allocation6_spill]] %s1163_s24  ;;  %s37_s27 = ssub.s32 %s909_s20, %s1163_s24 }
   0xd   : > { %p49_p2 = scmp.eq.s32.totalorder %s917_s22, 0  ;;  %p30_p3 = scmp.ge.s32.totalorder %s1165_s25, 2 }
   0xe   : > { %p39_p4 = scmp.eq.s32.totalorder %s37_s27, 0  ;;  %s69_s29 = sadd.s32 1, %s889_s15 }
   0xf   : > { %p1007_p5 = por %p49_p2, %p48_p1  ;;  %s1167_s25 = smov (%p30_p3, %s1165_s25), 0 }
  0x10   : > { %1144 = sst [smem:[#allocation7_spill]] %s1167_s25  ;;  %s65_s4 = ssub.s32 %s913_s21, %s1167_s25 }
  0x11   : > { %s1015_s30 = scalar_select %p39_p4, %s897_s17, %s41_s26  }
  0x12   : > { %p76_p6 = scmp.ne.s32.totalorder %s889_s15, %s885_s14  ;;  %s66_s5 = sor.u32 %s65_s4, %s37_s27 }
  0x13   : > { %1145 = sst [smem:[#allocation8_spill]] %s1015_s30  ;;  %p121_p7 = scmp.eq.s32.totalorder %s65_s4, 0 }
  0x14   : > { %p67_p8 = scmp.eq.s32.totalorder %s66_s5, 0  ;;  %p1021_p9 = por %p76_p6, %p49_p2 }
  0x15   : > { %s123_s7 = sadd.s32 1, %s881_s13  ;;  %p133_p10 = scmp.ne.s32.totalorder %s881_s13, %s877_s12 }
  0x16   : > { %s1029_s8 = scalar_select %p67_p8, %s889_s15, %s69_s29  }
  0x17   : > { %s1032_s9 = scalar_select %p121_p7, %s881_s13, %s123_s7  }
  0x18   : > { %p134_p11 = scmp.eq.s32.totalorder %s668_s23, 17  ;;  %p671_p13 = scmp.ge.s32.totalorder %s917_s22, 18 }
  0x1a   : > { %p1034_p12 = por %p134_p11, %p133_p10  ;;  %156 = sbr.rel (%p671_p13) target bundleno = 65 (0x41), region = 16 }
  0x1f   : > { %159 = sbr.rel (!%p1007_p5) target bundleno = 43 (0x2b), region = 20  ;;  %s161_s11 = sand.u32 (%p1007_p5), 1, %s897_s17  }
  0x20   : > { %s673_s26 = sshll.u32 (%p1007_p5), %s909_s20, 2  ;;  %s672_s27 = sshll.u32 (%p1007_p5), %s161_s11, 3 }
  0x21   : > { %s1148_s0 = sld [smem:[#allocation9_spill]] (%p1007_p5)  ;;  %s163_s23 = scalar_lea.vmem (%p1007_p5), [#allocation3], %s672_s27 }
  0x27   : > { %s168_s5 = scalar_lea.vmem %s1148_s0, %s673_s26 }
  0x28   : > { %v185_v0 = vld [vmem:[%s168_s5] sm:$0xf]  ;;  %v187_v1 = vld [vmem:[%s168_s5 + $0x24] sm:$0xf] }
  0x29   : > { %186 = vst [vmem:[%s163_s23] sm:$0xf] %v185_v0 }
  0x2a   : > { %188 = vst [vmem:[%s163_s23 + $0x4] sm:$0xf] %v187_v1 }
  0x2b PF: > { %216 = sbr.rel (!%p1021_p9) target bundleno = 65 (0x41), region = 61  ;;  %s218_s28 = sand.u32 (%p1021_p9), 1, %s889_s15  }
  0x2c   : > { %s725_s7 = sshll.u32 (%p1021_p9), %s909_s20, 5  ;;  %s674_s25 = sshll.u32 (%p1021_p9), %s218_s28, 6 }
  0x2d   : > { %s223_s11 = sadd.s32 (%p1021_p9), %s913_s21, %s725_s7  ;;  %s220_s6 = scalar_lea.vmem (%p1021_p9), [#allocation4], %s674_s25 }
  0x2e   : > { %s677_s24 = sshll.u32 (%p1021_p9), %s223_s11, 2 }
  0x2f   : > { %s1054_s26 = scalar_lea.vmem (%p1021_p9), %s1136_s1, %s677_s24 }
  0x30   : > { %v242_v2 = vld [vmem:[%s1054_s26] sm:$0xf]  ;;  %v244_v3 = vld [vmem:[%s1054_s26 + $0x8] sm:$0xf]  ;;  %v246_v4 = vld [vmem:[%s1054_s26 + $0x10] sm:$0xf] }
  0x31   : > { %243 = vst [vmem:[%s220_s6] sm:$0xf] %v242_v2  ;;  %v248_v5 = vld [vmem:[%s1054_s26 + $0x18] sm:$0xf]  ;;  %v250_v6 = vld [vmem:[%s1054_s26 + $0x20] sm:$0xf] }
  0x32   : > { %245 = vst [vmem:[%s220_s6 + $0x4] sm:$0xf] %v244_v3  ;;  %v252_v7 = vld [vmem:[%s1054_s26 + $0x28] sm:$0xf]  ;;  %v254_v8 = vld [vmem:[%s1054_s26 + $0x30] sm:$0xf] }
  0x33   : > { %247 = vst [vmem:[%s220_s6 + $0x8] sm:$0xf] %v246_v4  ;;  %v256_v9 = vld [vmem:[%s1054_s26 + $0x38] sm:$0xf]  ;;  %v258_v10 = vld [vmem:[%s1054_s26 + $0x40] sm:$0xf] }
  0x34   : > { %249 = vst [vmem:[%s220_s6 + $0xc] sm:$0xf] %v248_v5  ;;  %v260_v11 = vld [vmem:[%s1054_s26 + $0x48] sm:$0xf]  ;;  %v262_v12 = vld [vmem:[%s1054_s26 + $0x50] sm:$0xf] }
  0x35   : > { %251 = vst [vmem:[%s220_s6 + $0x10] sm:$0xf] %v250_v6  ;;  %v264_v13 = vld [vmem:[%s1054_s26 + $0x58] sm:$0xf]  ;;  %v266_v14 = vld [vmem:[%s1054_s26 + $0x60] sm:$0xf] }
  0x36   : > { %253 = vst [vmem:[%s220_s6 + $0x14] sm:$0xf] %v252_v7  ;;  %v268_v15 = vld [vmem:[%s1054_s26 + $0x68] sm:$0xf]  ;;  %v270_v16 = vld [vmem:[%s1054_s26 + $0x70] sm:$0xf] }
  0x37   : > { %255 = vst [vmem:[%s220_s6 + $0x18] sm:$0xf] %v254_v8  ;;  %v272_v17 = vld [vmem:[%s1054_s26 + $0x78] sm:$0xf] }
  0x38   : > { %257 = vst [vmem:[%s220_s6 + $0x1c] sm:$0xf] %v256_v9 }
  0x39   : > { %259 = vst [vmem:[%s220_s6 + $0x20] sm:$0xf] %v258_v10 }
  0x3a   : > { %261 = vst [vmem:[%s220_s6 + $0x24] sm:$0xf] %v260_v11 }
  0x3b   : > { %263 = vst [vmem:[%s220_s6 + $0x28] sm:$0xf] %v262_v12 }
  0x3c   : > { %265 = vst [vmem:[%s220_s6 + $0x2c] sm:$0xf] %v264_v13 }
  0x3d   : > { %267 = vst [vmem:[%s220_s6 + $0x30] sm:$0xf] %v266_v14 }
  0x3e   : > { %269 = vst [vmem:[%s220_s6 + $0x34] sm:$0xf] %v268_v15 }
  0x3f   : > { %271 = vst [vmem:[%s220_s6 + $0x38] sm:$0xf] %v270_v16 }
  0x40   : > { %273 = vst [vmem:[%s220_s6 + $0x3c] sm:$0xf] %v272_v17 }
  0x41 PF: > { %p678_p0 = scmp.ge.s32.totalorder %s917_s22, 1  ;;  %p335_p1 = scmp.lt.s32.totalorder %s917_s22, 19 }
  0x43   : > { %p336_p2 = pnand %p678_p0, %p335_p1 }
  0x44   : > { %s342_s24 = sand.u32 (!%p336_p2), 1, %s893_s16   ;;  %s349_s25 = sand.u32 (!%p336_p2), 1, %s885_s14  }
  0x45   : > { %339 = sbr.rel (%p336_p2) target bundleno = 277 (0x115), region = 106  ;;  %s1076_s30 = sshll.u32 (!%p336_p2), %s342_s24, 3 }
  0x46   : > { %s680_s27 = sshll.u32 (!%p336_p2), %s349_s25, 6  ;;  %s376_s4 = sand.u32 (!%p336_p2), 1, %s877_s12  }
  0x47   : > { %p381_p3 = scmp.lt.s32.totalorder (!%p336_p2), %s905_s19, 1  ;;  %s681_s5 = sshll.u32 (!%p336_p2), %s376_s4, 3 }
  0x48   : > { %s344_s26 = scalar_lea.vmem (!%p336_p2), [#allocation3], %s1076_s30  ;;  %s351_s6 = scalar_lea.vmem (!%p336_p2), [#allocation4], %s680_s27 }
  0x49   : > { %s1087_s0 = scalar_lea.vmem (!%p336_p2), [#allocation5], %s681_s5  ;;  %p683_p4 = scmp.ne.s32.totalorder (!%p336_p2), %s901_s18, 0 }
  0x4a   : > { %s382_s23 = scalar_select %p381_p3, %s905_s19, 1 }
  0x4b   : > { %389 = sbr.rel (%p683_p4) target bundleno = 83 (0x53), region = 118 }
  0x4c   : > { %s682_s28 = sshll.u32 %s382_s23, 1 }
  0x4d   : > { %s1084_s29 = scalar_lea.vmem %s1137_s2, %s682_s28 }
  0x50   : > { %v919_v18 = vmov 0.0  }
  0x51   : > { %390 = vst [vmem:[#allocation2] sm:$0xff] %v919_v18 }
  0x52   : > { %391 = vst [vmem:[#allocation2 + $0x8] sm:$0xff] %v919_v18 }
  0x53 PF: > { %v734_v19 = vld [vmem:[%s351_s6 + $0x38] sm:$0xff]  ;;  %v733_v20 = vld [vmem:[%s351_s6 + $0x30] sm:$0xff]  ;;  %v732_v21 = vld [vmem:[%s351_s6 + $0x28] sm:$0xff]  ;;  %p720_p5 = scmp.ne.s32.totalorder %s901_s18, 8 }
  0x54   : > { %466 = vmatpush.bf16.msra.mxu0 %v734_v19  ;;  %v731_v22 = vld [vmem:[%s351_s6 + $0x20] sm:$0xff]  ;;  %v730_v23 = vld [vmem:[%s351_s6 + $0x18] sm:$0xff]  ;;  %v729_v24 = vld [vmem:[%s351_s6 + $0x10] sm:$0xff] }
  0x55   : > { %v728_v25 = vld [vmem:[%s351_s6 + $0x8] sm:$0xff]  ;;  %v727_v26 = vld [vmem:[%s351_s6] sm:$0xff]  ;;  %v726_v27 = vld [vmem:[%s344_s26] sm:$0xff] }
  0x58   : > { %467 = vmatpush.bf16.msra.mxu0 %v733_v20  ;;  %v392_v28 = vld [vmem:[#allocation2] sm:$0xff] }
  0x59   : > { %v393_v31 = vld [vmem:[#allocation2 + $0x8] sm:$0xff] }
  0x5c   : > { %468 = vmatpush.bf16.msra.mxu0 %v732_v21 }
  0x60   : > { %469 = vmatpush.bf16.msra.mxu0 %v731_v22 }
  0x64   : > { %470 = vmatpush.bf16.msra.mxu0 %v730_v23 }
  0x68   : > { %471 = vmatpush.bf16.msra.mxu0 %v729_v24 }
  0x6c   : > { %472 = vmatpush.bf16.msra.mxu0 %v728_v25 }
  0x70   : > { %473 = vmatpush.bf16.msra.mxu0 %v727_v26 }
  0x73   : > { %474 = vmatmul.bf16.vlgmr.msra.gmra.mxu0 %v726_v27 }
  0xf0   : > { %v475_v29 = vpop.f32.mrf.mxu0 }
  0xf1   : > { %v480_v30 = vadd.f32 %v475_v29, %v392_v28 }
  0xf3   : > { %482 = vst [vmem:[#allocation2] sm:$0xff] %v480_v30 }
  0xf7   : > { %487 = sbr.rel (%p720_p5) target bundleno = 268 (0x10c), region = 122 }
  0xf8   : > { %v477_v32 = vpop.f32.mrf.mxu0 }
  0xf9   : > { %v481_v33 = vadd.f32 %v477_v32, %v393_v31 }
  0xfb   : > { %483 = vst [vmem:[#allocation2 + $0x8] sm:$0xff] %v481_v33 }
  0xfc   : > { %v488_v34 = vld [vmem:[#allocation2] sm:$0xff] }
  0xfd   : > { %v829_v36 = vld [vmem:[%s1084_s29] ss:$0 sm:$0xff]  ;;  %v830_v37 = vld [vmem:[%s1084_s29 + $0x1] ss:$0 sm:$0xff] }
  0xfe   : > { %v492_v38 = vmul.f32 %v829_v36, %v488_v34 }
 0x100   : > { %v496_v40 = vadd.f32 %v830_v37, %v492_v38 }
 0x102   : > { %v489_v35 = vld [vmem:[#allocation2 + $0x8] sm:$0xff]  ;;  %v498_v42 = vmax.f32 %v496_v40, 0.0 }
 0x103   : > { %v493_v39 = vmul.f32 %v829_v36, %v489_v35 }
 0x105   : > { %v497_v41 = vadd.f32 %v830_v37, %v493_v39 }
 0x107   : > { %v499_v43 = vmax.f32 %v497_v41, 0.0 }
 0x109   : > { %v738_v44 = vpack.c.bf16 %v499_v43, %v498_v42 }
 0x10b   : > { %739 = vst [vmem:[%s1087_s0] sm:$0xff] %v738_v44  }
 0x10c PF: > { %510 = sbr.rel (!%p1034_p12) target bundleno = 277 (0x115), region = 126  ;;  %s722_s12 = sshll.u32 (%p1034_p12), %s905_s19, 2 }
 0x10d   : > { %s515_s18 = scalar_lea.vmem (%p1034_p12), %s1138_s3, %s722_s12 }
 0x112   : > { %v532_v45 = vld [vmem:[%s1087_s0] sm:$0xf]  ;;  %v534_v46 = vld [vmem:[%s1087_s0 + $0x4] sm:$0xf] }
 0x113   : > { %533 = vst [vmem:[%s515_s18] sm:$0xf] %v532_v45 }
 0x114   : > { %535 = vst [vmem:[%s515_s18 + $0x8] sm:$0xf] %v534_v46 }
 0x115 PF: > { %s13_s22 = sadd.s32 1, %s917_s22   ;;  %s1149_s10 = sld [smem:[#allocation8_spill]] }
 0x116   : > { %p10_p6 = scmp.ge.s32.totalorder %s13_s22, 20   ;;  %s1150_s0 = sld [smem:[#allocation6_spill]] }
 0x117   : > { %s1151_s24 = sld [smem:[#allocation7_spill]]  ;;  %s1152_s12 = smov %s881_s13 }
 0x118   : > { %s1153_s13 = smov %s1032_s9  ;;  %s1154_s14 = smov %s889_s15 }
 0x119   : > { %s1155_s15 = smov %s1029_s8  ;;  %s1156_s16 = smov %s897_s17 }
 0x11a   : > { %s1158_s18 = smov %s909_s20  ;;  %s1159_s19 = smov %s913_s21 }
 0x11b   : > { %s1157_s17 = smov %s1149_s10  ;;  %12 = sbr.rel (!%p10_p6) target bundleno = 8 (0x8), region = 209 }
 0x11c   : > { %s1160_s20 = smov %s1150_s0 }
 0x11d   : > { %s1161_s21 = smov %s1151_s24 }

// kernel: my_script_module_forward.31
= control target key start
LH: loop header
LB: loop body
LE: loop exit
PB: predicated region body
PF: predicated region fallthrough
CT: control target
= control target key end

     0   :  { %s787_s12 = smov 0   ;;  %s789_s13 = smov 0   ;;  %s885_s0 = inlined_call_operand.vmem [shape: bf16[16,128], index: 0, kind: input, shape index: {}]   ;;  %s886_s1 = inlined_call_operand.vmem [shape: bf16[128,256], index: 1, kind: input, shape index: {}]   ;;  %s887_s2 = inlined_call_operand.vmem [shape: f32[2,256], index: 2, kind: input, shape index: {}]   ;;  %s888_s3 = inlined_call_operand.vmem [shape: bf16[16,256], index: 3, kind: output, shape index: {}]  }
   0x1   :  { %s791_s14 = smov 0   ;;  %s793_s15 = smov 0  }
   0x2   :  { %s795_s16 = smov 0  }
   0x3 LB: > { %s28_s17 = sadd.s32 1, %s761_s15  ;;  %s620_s18 = sadd.s32 4294967295, %s765_s16   ;;  %s765_s16 = sphi %s795_s16, %s13_s16   ;;  %s761_s15 = sphi %s793_s15, %s893_s15   ;;  %s757_s14 = sphi %s791_s14, %s892_s14   ;;  %s753_s13 = sphi %s789_s13, %s891_s13   ;;  %s749_s12 = sphi %s787_s12, %s890_s12  }
   0x4   : > { %p30_p0 = scmp.ge.s32.totalorder %s28_s17, 2  ;;  %p76_p1 = scmp.ne.s32.totalorder %s753_s13, %s749_s12 }
   0x5   : > { %p77_p2 = scmp.eq.s32.totalorder %s765_s16, 0  ;;  %p134_p4 = scmp.eq.s32.totalorder %s620_s18, 1 }
   0x6   : > { %s895_s17 = smov (%p30_p0, %s28_s17), 0  ;;  %s69_s20 = sadd.s32 1, %s753_s13 }
   0x7   : > { %p78_p3 = por %p77_p2, %p76_p1  ;;  %s65_s19 = ssub.s32 %s761_s15, %s895_s17 }
   0x8   : > { %p67_p5 = scmp.eq.s32.totalorder %s65_s19, 0  ;;  %p822_p6 = por %p134_p4, %p76_p1 }
   0x9   : > { %p624_p7 = scmp.ge.s32.totalorder %s765_s16, 2 }
   0xa   : > { %s827_s22 = scalar_select %p67_p5, %s753_s13, %s69_s20  }
   0xb   : > { %168 = sbr.rel (%p624_p7) target bundleno = 36 (0x24), region = 20 }
  0x10   : > { %171 = sbr.rel (!%p78_p3) target bundleno = 36 (0x24), region = 24  ;;  %s173_s23 = sand.u32 (%p78_p3), 1, %s753_s13  }
  0x11   : > { %s626_s24 = sshll.u32 (%p78_p3), %s761_s15, 2  ;;  %s625_s25 = sshll.u32 (%p78_p3), %s173_s23, 6 }
  0x12   : > { %s835_s28 = scalar_lea.vmem (%p78_p3), %s886_s1, %s626_s24  ;;  %s175_s29 = scalar_lea.vmem (%p78_p3), [#allocation3], %s625_s25 }
  0x13   : > { %v197_v0 = vld [vmem:[%s835_s28] sm:$0xf] (%p78_p3)  ;;  %v199_v1 = vld [vmem:[%s835_s28 + $0x8] sm:$0xf] (%p78_p3)  ;;  %v201_v2 = vld [vmem:[%s835_s28 + $0x10] sm:$0xf] (%p78_p3) }
  0x14   : > { %198 = vst [vmem:[%s175_s29] sm:$0xf] (%p78_p3), %v197_v0  ;;  %v203_v3 = vld [vmem:[%s835_s28 + $0x18] sm:$0xf] (%p78_p3)  ;;  %v205_v4 = vld [vmem:[%s835_s28 + $0x20] sm:$0xf] (%p78_p3) }
  0x15   : > { %200 = vst [vmem:[%s175_s29 + $0x4] sm:$0xf] %v199_v1  ;;  %v207_v5 = vld [vmem:[%s835_s28 + $0x28] sm:$0xf]  ;;  %v209_v6 = vld [vmem:[%s835_s28 + $0x30] sm:$0xf] }
  0x16   : > { %202 = vst [vmem:[%s175_s29 + $0x8] sm:$0xf] %v201_v2  ;;  %v211_v7 = vld [vmem:[%s835_s28 + $0x38] sm:$0xf]  ;;  %v213_v8 = vld [vmem:[%s835_s28 + $0x40] sm:$0xf] }
  0x17   : > { %204 = vst [vmem:[%s175_s29 + $0xc] sm:$0xf] %v203_v3  ;;  %v215_v9 = vld [vmem:[%s835_s28 + $0x48] sm:$0xf]  ;;  %v217_v10 = vld [vmem:[%s835_s28 + $0x50] sm:$0xf] }
  0x18   : > { %206 = vst [vmem:[%s175_s29 + $0x10] sm:$0xf] %v205_v4  ;;  %v219_v11 = vld [vmem:[%s835_s28 + $0x58] sm:$0xf]  ;;  %v221_v12 = vld [vmem:[%s835_s28 + $0x60] sm:$0xf] }
  0x19   : > { %208 = vst [vmem:[%s175_s29 + $0x14] sm:$0xf] %v207_v5  ;;  %v223_v13 = vld [vmem:[%s835_s28 + $0x68] sm:$0xf]  ;;  %v225_v14 = vld [vmem:[%s835_s28 + $0x70] sm:$0xf] }
  0x1a   : > { %210 = vst [vmem:[%s175_s29 + $0x18] sm:$0xf] %v209_v6  ;;  %v227_v15 = vld [vmem:[%s835_s28 + $0x78] sm:$0xf] }
  0x1b   : > { %212 = vst [vmem:[%s175_s29 + $0x1c] sm:$0xf] %v211_v7 }
  0x1c   : > { %214 = vst [vmem:[%s175_s29 + $0x20] sm:$0xf] %v213_v8 }
  0x1d   : > { %216 = vst [vmem:[%s175_s29 + $0x24] sm:$0xf] %v215_v9 }
  0x1e   : > { %218 = vst [vmem:[%s175_s29 + $0x28] sm:$0xf] %v217_v10 }
  0x1f   : > { %220 = vst [vmem:[%s175_s29 + $0x2c] sm:$0xf] %v219_v11 }
  0x20   : > { %222 = vst [vmem:[%s175_s29 + $0x30] sm:$0xf] %v221_v12 }
  0x21   : > { %224 = vst [vmem:[%s175_s29 + $0x34] sm:$0xf] %v223_v13 }
  0x22   : > { %226 = vst [vmem:[%s175_s29 + $0x38] sm:$0xf] %v225_v14 }
  0x23   : > { %228 = vst [vmem:[%s175_s29 + $0x3c] sm:$0xf] %v227_v15 }
  0x24 PF: > { %p627_p8 = scmp.ge.s32.totalorder %s765_s16, 1  ;;  %p290_p9 = scmp.lt.s32.totalorder %s765_s16, 3 }
  0x26   : > { %p291_p10 = pnand %p627_p8, %p290_p9 }
  0x27   : > { %s297_s30 = sand.u32 (!%p291_p10), 1, %s749_s12   ;;  %p341_p11 = scmp.lt.s32.totalorder (!%p291_p10), %s757_s14, 1 }
  0x28   : > { %294 = sbr.rel (%p291_p10) target bundleno = 227 (0xe3), region = 69  ;;  %s628_s4 = sshll.u32 (!%p291_p10), %s297_s30, 6 }
  0x29   : > { %s299_s5 = scalar_lea.vmem (!%p291_p10), [#allocation3], %s628_s4  ;;  %s629_s18 = sshll.u32 (!%p291_p10), %s297_s30, 3 }
  0x2a   : > { %s330_s19 = scalar_lea.vmem (!%p291_p10), [#allocation4], %s629_s18 }
  0x2d   : > { %v679_v16 = vld [vmem:[%s299_s5 + $0x38] sm:$0xff]  ;;  %s342_s6 = scalar_select %p341_p11, %s757_s14, 1  ;;  %v678_v17 = vld [vmem:[%s299_s5 + $0x30] sm:$0xff]  ;;  %v677_v18 = vld [vmem:[%s299_s5 + $0x28] sm:$0xff] }
  0x2e   : > { %426 = vmatpush.bf16.msra.mxu0 %v679_v16  ;;  %v676_v19 = vld [vmem:[%s299_s5 + $0x20] sm:$0xff]  ;;  %v675_v20 = vld [vmem:[%s299_s5 + $0x18] sm:$0xff]  ;;  %v674_v21 = vld [vmem:[%s299_s5 + $0x10] sm:$0xff]  ;;  %s668_s20 = sshll.u32 (%p822_p6), %s757_s14, 2 }
  0x2f   : > { %s630_s7 = sshll.u32 %s342_s6, 1  ;;  %v673_v22 = vld [vmem:[%s299_s5 + $0x8] sm:$0xff]  ;;  %v672_v23 = vld [vmem:[%s299_s5] sm:$0xff]  ;;  %s472_s25 = scalar_lea.vmem (%p822_p6), %s888_s3, %s668_s20 }
  0x30   : > { %s344_s10 = scalar_lea.vmem %s887_s2, %s630_s7  ;;  %v671_v24 = vld [vmem:[%s885_s0] sm:$0xff] }
  0x31   : > { %v725_v26 = vld [vmem:[%s344_s10] ss:$0 sm:$0xff]  ;;  %v726_v28 = vld [vmem:[%s344_s10 + $0x1] ss:$0 sm:$0xff] }
  0x32   : > { %427 = vmatpush.bf16.msra.mxu0 %v678_v17 }
  0x36   : > { %428 = vmatpush.bf16.msra.mxu0 %v677_v18 }
  0x3a   : > { %429 = vmatpush.bf16.msra.mxu0 %v676_v19 }
  0x3e   : > { %430 = vmatpush.bf16.msra.mxu0 %v675_v20 }
  0x42   : > { %431 = vmatpush.bf16.msra.mxu0 %v674_v21 }
  0x46   : > { %432 = vmatpush.bf16.msra.mxu0 %v673_v22 }
  0x4a   : > { %433 = vmatpush.bf16.msra.mxu0 %v672_v23 }
  0x4d   : > { %434 = vmatmul.bf16.vlgmr.msra.gmra.mxu0 %v671_v24 }
  0xca   : > { %v435_v25 = vpop.f32.mrf.mxu0 }
  0xcb   : > { %v451_v27 = vmul.f32 %v725_v26, %v435_v25 }
  0xcd   : > { %v455_v31 = vadd.f32 %v726_v28, %v451_v27 }
  0xd2   : > { %v437_v29 = vpop.f32.mrf.mxu0 }
  0xd3   : > { %v452_v30 = vmul.f32 %v725_v26, %v437_v29 }
  0xd5   : > { %v456_v32 = vadd.f32 %v726_v28, %v452_v30  ;;  %467 = sbr.rel (!%p822_p6) target bundleno = 227 (0xe3), region = 85 }
  0xd7   : > { %v683_v33 = vpack.c.bf16 %v456_v32, %v455_v31 }
  0xd9   : > { %684 = vst [vmem:[%s330_s19] sm:$0xff] %v683_v33  }
  0xe0   : > { %v489_v34 = vld [vmem:[%s330_s19] sm:$0xf]  ;;  %v491_v35 = vld [vmem:[%s330_s19 + $0x4] sm:$0xf] }
  0xe1   : > { %490 = vst [vmem:[%s472_s25] sm:$0xf] %v489_v34 }
  0xe2   : > { %492 = vst [vmem:[%s472_s25 + $0x8] sm:$0xf] %v491_v35 }
  0xe3 PF: > { %s13_s16 = sadd.s32 1, %s765_s16   ;;  %s890_s12 = smov %s753_s13 }
  0xe4   : > { %p10_p12 = scmp.ge.s32.totalorder %s13_s16, 4   ;;  %s891_s13 = smov %s827_s22 }
  0xe5   : > { %s892_s14 = smov %s761_s15  ;;  %s893_s15 = smov %s895_s17 }
  0xe6   :  { %12 = sbr.rel (!%p10_p12) target bundleno = 3 (0x3), region = 163 }

// kernel: my_script_module_forward.32
= control target key start
LH: loop header
LB: loop body
LE: loop exit
PB: predicated region body
PF: predicated region fallthrough
CT: control target
= control target key end

     0   :  { %s1266_s15 = smov 0   ;;  %s1268_s16 = smov 0   ;;  %s1555_s0 = inlined_call_operand.vmem [shape: bf16[16,2304], index: 0, kind: input, shape index: {}]   ;;  %s1556_s1 = inlined_call_operand.vmem [shape: bf16[2304,256], index: 1, kind: input, shape index: {}]   ;;  %s1557_s2 = inlined_call_operand.vmem [shape: f32[2,256], index: 2, kind: input, shape index: {}]   ;;  %s1558_s3 = inlined_call_operand.vmem [shape: bf16[16,256], index: 3, kind: input, shape index: {}]   ;;  %s1559_s4 = inlined_call_operand.vmem [shape: bf16[16,256], index: 4, kind: output, shape index: {}]  }
   0x1   :  { %s1270_s17 = smov 0   ;;  %s1272_s18 = smov 0  }
   0x2   :  { %s1274_s19 = smov 0   ;;  %s1276_s20 = smov 0  }
   0x3   :  { %s1278_s21 = smov 0   ;;  %s1280_s22 = smov 0  }
   0x4   :  { %s1282_s23 = smov 0   ;;  %s1284_s24 = smov 0  }
   0x5   :  { %s1286_s25 = smov 0  }
   0x6 LB: > { %1563 = sst [smem:[#allocation7_spill]] %s1218_s20  ;;  %s935_s26 = sadd.s32 4294967295, %s1238_s25   ;;  %s1238_s25 = sphi %s1286_s25, %s14_s25   ;;  %s1234_s24 = sphi %s1284_s24, %s1584_s24   ;;  %s1230_s23 = sphi %s1282_s23, %s1583_s23   ;;  %s1226_s22 = sphi %s1280_s22, %s1582_s22   ;;  %s1222_s21 = sphi %s1278_s21, %s1581_s21   ;;  %s1218_s20 = sphi %s1276_s20, %s1574_s20   ;;  %s1214_s19 = sphi %s1274_s19, %s1573_s19   ;;  %s1210_s18 = sphi %s1272_s18, %s1580_s18   ;;  %s1206_s17 = sphi %s1270_s17, %s1579_s17   ;;  %s1202_s16 = sphi %s1268_s16, %s1578_s16   ;;  %s1198_s15 = sphi %s1266_s15, %s1577_s15  }
   0x7   : > { %s26_s27 = sadd.s32 1, %s1230_s23  ;;  %s29_s28 = sadd.s32 1, %s1234_s24 }
   0x8   : > { %p27_p0 = scmp.ge.s32.totalorder %s26_s27, 9  ;;  %s42_s29 = sadd.s32 1, %s1218_s20 }
   0x9   : > { %p49_p1 = scmp.ne.s32.totalorder %s1218_s20, %s1214_s19  ;;  %p50_p2 = scmp.eq.s32.totalorder %s1238_s25, 0 }
   0xa   : > { %s1586_s27 = smov (%p27_p0, %s26_s27), 0  ;;  %s1588_s28 = smov (!%p27_p0, %s29_s28), %s1234_s24 }
   0xb   : > { %1564 = sst [smem:[#allocation8_spill]] %s1586_s27  ;;  %s38_s30 = ssub.s32 %s1230_s23, %s1586_s27 }
   0xc   : > { %p31_p3 = scmp.ge.s32.totalorder %s1588_s28, 2  ;;  %p40_p4 = scmp.eq.s32.totalorder %s38_s30, 0 }
   0xd   : > { %p1335_p5 = por %p50_p2, %p49_p1  ;;  %s70_s6 = sadd.s32 1, %s1210_s18 }
   0xe   : > { %s1590_s28 = smov (%p31_p3, %s1588_s28), 0  ;;  %p77_p6 = scmp.ne.s32.totalorder %s1210_s18, %s1206_s17 }
   0xf   : > { %1566 = sst [smem:[#allocation9_spill]] %s1590_s28  ;;  %s66_s8 = ssub.s32 %s1234_s24, %s1590_s28 }
  0x10   : > { %s1343_s7 = scalar_select %p40_p4, %s1218_s20, %s42_s29  }
  0x11   : > { %s67_s9 = sor.u32 %s66_s8, %s38_s30  ;;  %p122_p7 = scmp.eq.s32.totalorder %s66_s8, 0 }
  0x12   : > { %1567 = sst [smem:[#allocation10_spill]] %s1343_s7  ;;  %p68_p8 = scmp.eq.s32.totalorder %s67_s9, 0 }
  0x13   : > { %p1351_p9 = por %p77_p6, %p50_p2  ;;  %s124_s11 = sadd.s32 1, %s1202_s16 }
  0x14   : > { %p131_p10 = scmp.ne.s32.totalorder %s1202_s16, %s1198_s15  ;;  %p163_p12 = scmp.eq.s32.totalorder %s935_s26, 17 }
  0x15   : > { %s1359_s12 = scalar_select %p68_p8, %s1210_s18, %s70_s6  }
  0x16   : > { %s1362_s13 = scalar_select %p122_p7, %s1202_s16, %s124_s11  }
  0x17   : > { %1569 = sst [smem:[#allocation11_spill]] %s1359_s12  ;;  %p1366_p11 = por %p131_p10, %p50_p2 }
  0x18   : > { %p1370_p13 = por %p163_p12, %p131_p10  ;;  %p938_p0 = scmp.ge.s32.totalorder %s1238_s25, 18 }
  0x1a   : > { %185 = sbr.rel (%p938_p0) target bundleno = 81 (0x51), region = 16 }
  0x1f   : > { %188 = sbr.rel (!%p1335_p5) target bundleno = 37 (0x25), region = 20  ;;  %s190_s30 = sand.u32 (%p1335_p5), 1, %s1218_s20  }
  0x20   : > { %s1032_s6 = sshll.u32 (%p1335_p5), %s1230_s23, 3  ;;  %s939_s8 = sshll.u32 (%p1335_p5), %s190_s30, 4 }
  0x21   : > { %s198_s28 = scalar_lea.vmem (%p1335_p5), %s1555_s0, %s1032_s6  ;;  %s192_s26 = scalar_lea.vmem (%p1335_p5), [#allocation3], %s939_s8 }
  0x22   : > { %v229_v0 = vld [vmem:[%s198_s28] sm:$0xff] (%p1335_p5)  ;;  %v231_v1 = vld [vmem:[%s198_s28 + $0x48] sm:$0xff] (%p1335_p5) }
  0x23   : > { %230 = vst [vmem:[%s192_s26] sm:$0xff] (%p1335_p5), %v229_v0 }
  0x24   : > { %232 = vst [vmem:[%s192_s26 + $0x8] sm:$0xff] %v231_v1 }
  0x25 PF: > { %238 = sbr.rel (!%p1351_p9) target bundleno = 75 (0x4b), region = 58  ;;  %s240_s5 = sand.u32 (%p1351_p9), 1, %s1210_s18  }
  0x26   : > { %s1033_s27 = sshll.u32 (%p1351_p9), %s1230_s23, 6  ;;  %s942_s7 = sshll.u32 (%p1351_p9), %s240_s5, 7 }
  0x27   : > { %s245_s30 = sadd.s32 (%p1351_p9), %s1234_s24, %s1033_s27  ;;  %s1395_s27 = scalar_lea.vmem (%p1351_p9), [#allocation4], %s942_s7 }
  0x28   : > { %s945_s20 = sshll.u32 (%p1351_p9), %s245_s30, 2 }
  0x29   : > { %s1390_s6 = scalar_lea.vmem (%p1351_p9), %s1556_s1, %s945_s20 }
  0x2a   : > { %v264_v2 = vld [vmem:[%s1390_s6] sm:$0xf]  ;;  %v266_v3 = vld [vmem:[%s1390_s6 + $0x8] sm:$0xf]  ;;  %v268_v4 = vld [vmem:[%s1390_s6 + $0x10] sm:$0xf] }
  0x2b   : > { %265 = vst [vmem:[%s1395_s27] sm:$0xf] %v264_v2  ;;  %v270_v5 = vld [vmem:[%s1390_s6 + $0x18] sm:$0xf]  ;;  %v272_v6 = vld [vmem:[%s1390_s6 + $0x20] sm:$0xf] }
  0x2c   : > { %267 = vst [vmem:[%s1395_s27 + $0x4] sm:$0xf] %v266_v3  ;;  %v274_v7 = vld [vmem:[%s1390_s6 + $0x28] sm:$0xf]  ;;  %v276_v8 = vld [vmem:[%s1390_s6 + $0x30] sm:$0xf] }
  0x2d   : > { %269 = vst [vmem:[%s1395_s27 + $0x8] sm:$0xf] %v268_v4  ;;  %v278_v9 = vld [vmem:[%s1390_s6 + $0x38] sm:$0xf]  ;;  %v280_v10 = vld [vmem:[%s1390_s6 + $0x40] sm:$0xf] }
  0x2e   : > { %271 = vst [vmem:[%s1395_s27 + $0xc] sm:$0xf] %v270_v5  ;;  %v282_v11 = vld [vmem:[%s1390_s6 + $0x48] sm:$0xf]  ;;  %v284_v12 = vld [vmem:[%s1390_s6 + $0x50] sm:$0xf] }
  0x2f   : > { %273 = vst [vmem:[%s1395_s27 + $0x10] sm:$0xf] %v272_v6  ;;  %v286_v13 = vld [vmem:[%s1390_s6 + $0x58] sm:$0xf]  ;;  %v288_v14 = vld [vmem:[%s1390_s6 + $0x60] sm:$0xf] }
  0x30   : > { %275 = vst [vmem:[%s1395_s27 + $0x14] sm:$0xf] %v274_v7  ;;  %v290_v15 = vld [vmem:[%s1390_s6 + $0x68] sm:$0xf]  ;;  %v292_v16 = vld [vmem:[%s1390_s6 + $0x70] sm:$0xf] }
  0x31   : > { %277 = vst [vmem:[%s1395_s27 + $0x18] sm:$0xf] %v276_v8  ;;  %v294_v17 = vld [vmem:[%s1390_s6 + $0x78] sm:$0xf]  ;;  %v296_v18 = vld [vmem:[%s1390_s6 + $0x80] sm:$0xf] }
  0x32   : > { %279 = vst [vmem:[%s1395_s27 + $0x1c] sm:$0xf] %v278_v9  ;;  %v298_v19 = vld [vmem:[%s1390_s6 + $0x88] sm:$0xf]  ;;  %v300_v20 = vld [vmem:[%s1390_s6 + $0x90] sm:$0xf] }
  0x33   : > { %281 = vst [vmem:[%s1395_s27 + $0x20] sm:$0xf] %v280_v10  ;;  %v302_v21 = vld [vmem:[%s1390_s6 + $0x98] sm:$0xf]  ;;  %v304_v22 = vld [vmem:[%s1390_s6 + $0xa0] sm:$0xf] }
  0x34   : > { %283 = vst [vmem:[%s1395_s27 + $0x24] sm:$0xf] %v282_v11  ;;  %v306_v23 = vld [vmem:[%s1390_s6 + $0xa8] sm:$0xf]  ;;  %v308_v24 = vld [vmem:[%s1390_s6 + $0xb0] sm:$0xf] }
  0x35   : > { %285 = vst [vmem:[%s1395_s27 + $0x28] sm:$0xf] %v284_v12  ;;  %v310_v25 = vld [vmem:[%s1390_s6 + $0xb8] sm:$0xf]  ;;  %v312_v26 = vld [vmem:[%s1390_s6 + $0xc0] sm:$0xf] }
  0x36   : > { %287 = vst [vmem:[%s1395_s27 + $0x2c] sm:$0xf] %v286_v13  ;;  %v314_v27 = vld [vmem:[%s1390_s6 + $0xc8] sm:$0xf]  ;;  %v316_v28 = vld [vmem:[%s1390_s6 + $0xd0] sm:$0xf] }
  0x37   : > { %289 = vst [vmem:[%s1395_s27 + $0x30] sm:$0xf] %v288_v14  ;;  %v318_v29 = vld [vmem:[%s1390_s6 + $0xd8] sm:$0xf]  ;;  %v320_v30 = vld [vmem:[%s1390_s6 + $0xe0] sm:$0xf] }
  0x38   : > { %291 = vst [vmem:[%s1395_s27 + $0x34] sm:$0xf] %v290_v15  ;;  %v322_v31 = vld [vmem:[%s1390_s6 + $0xe8] sm:$0xf]  ;;  %v324_v32 = vld [vmem:[%s1390_s6 + $0xf0] sm:$0xf] }
  0x39   : > { %293 = vst [vmem:[%s1395_s27 + $0x38] sm:$0xf] %v292_v16  ;;  %v326_v33 = vld [vmem:[%s1390_s6 + $0xf8] sm:$0xf] }
  0x3a   : > { %295 = vst [vmem:[%s1395_s27 + $0x3c] sm:$0xf] %v294_v17 }
  0x3b   : > { %297 = vst [vmem:[%s1395_s27 + $0x40] sm:$0xf] %v296_v18 }
  0x3c   : > { %299 = vst [vmem:[%s1395_s27 + $0x44] sm:$0xf] %v298_v19 }
  0x3d   : > { %301 = vst [vmem:[%s1395_s27 + $0x48] sm:$0xf] %v300_v20 }
  0x3e   : > { %303 = vst [vmem:[%s1395_s27 + $0x4c] sm:$0xf] %v302_v21 }
  0x3f   : > { %305 = vst [vmem:[%s1395_s27 + $0x50] sm:$0xf] %v304_v22 }
  0x40   : > { %307 = vst [vmem:[%s1395_s27 + $0x54] sm:$0xf] %v306_v23 }
  0x41   : > { %309 = vst [vmem:[%s1395_s27 + $0x58] sm:$0xf] %v308_v24 }
  0x42   : > { %311 = vst [vmem:[%s1395_s27 + $0x5c] sm:$0xf] %v310_v25 }
  0x43   : > { %313 = vst [vmem:[%s1395_s27 + $0x60] sm:$0xf] %v312_v26 }
  0x44   : > { %315 = vst [vmem:[%s1395_s27 + $0x64] sm:$0xf] %v314_v27 }
  0x45   : > { %317 = vst [vmem:[%s1395_s27 + $0x68] sm:$0xf] %v316_v28 }
  0x46   : > { %319 = vst [vmem:[%s1395_s27 + $0x6c] sm:$0xf] %v318_v29 }
  0x47   : > { %321 = vst [vmem:[%s1395_s27 + $0x70] sm:$0xf] %v320_v30 }
  0x48   : > { %323 = vst [vmem:[%s1395_s27 + $0x74] sm:$0xf] %v322_v31 }
  0x49   : > { %325 = vst [vmem:[%s1395_s27 + $0x78] sm:$0xf] %v324_v32 }
  0x4a   : > { %327 = vst [vmem:[%s1395_s27 + $0x7c] sm:$0xf] %v326_v33 }
  0x4b PF: > { %422 = sbr.rel (!%p1366_p11) target bundleno = 81 (0x51), region = 103  ;;  %s424_s20 = sand.u32 (%p1366_p11), 1, %s1202_s16  }
  0x4c   : > { %s947_s28 = sshll.u32 (%p1366_p11), %s1234_s24, 2  ;;  %s946_s7 = sshll.u32 (%p1366_p11), %s424_s20, 3 }
  0x4d   : > { %s431_s8 = scalar_lea.vmem (%p1366_p11), %s1558_s3, %s947_s28  ;;  %s426_s11 = scalar_lea.vmem (%p1366_p11), [#allocation5], %s946_s7 }
  0x4e   : > { %v448_v34 = vld [vmem:[%s431_s8] sm:$0xf] (%p1366_p11)  ;;  %v450_v35 = vld [vmem:[%s431_s8 + $0x8] sm:$0xf] (%p1366_p11) }
  0x4f   : > { %449 = vst [vmem:[%s426_s11] sm:$0xf] (%p1366_p11), %v448_v34 }
  0x50   : > { %451 = vst [vmem:[%s426_s11 + $0x4] sm:$0xf] %v450_v35 }
  0x51 PF: > { %p948_p1 = scmp.ge.s32.totalorder %s1238_s25, 1  ;;  %p478_p2 = scmp.lt.s32.totalorder %s1238_s25, 19 }
  0x53   : > { %p479_p3 = pnand %p948_p1, %p478_p2 }
  0x54   : > { %s485_s14 = sand.u32 (!%p479_p3), 1, %s1214_s19   ;;  %s492_s26 = sand.u32 (!%p479_p3), 1, %s1206_s17  }
  0x55   : > { %482 = sbr.rel (%p479_p3) target bundleno = 300 (0x12c), region = 144  ;;  %s949_s5 = sshll.u32 (!%p479_p3), %s485_s14, 4 }
  0x56   : > { %s950_s30 = sshll.u32 (!%p479_p3), %s492_s26, 7  ;;  %s499_s9 = sand.u32 (!%p479_p3), 1, %s1198_s15  }
  0x57   : > { %p538_p4 = scmp.lt.s32.totalorder (!%p479_p3), %s1226_s22, 1  ;;  %s1471_s6 = sshll.u32 (!%p479_p3), %s499_s9, 3 }
  0x58   : > { %s1479_s12 = scalar_lea.vmem (!%p479_p3), [#allocation3], %s949_s5  ;;  %s1481_s8 = scalar_lea.vmem (!%p479_p3), [#allocation4], %s950_s30 }
  0x59   : > { %s501_s17 = scalar_lea.vmem (!%p479_p3), [#allocation5], %s1471_s6  ;;  %s1485_s19 = scalar_lea.vmem (!%p479_p3), [#allocation6], %s1471_s6 }
  0x5a   : > { %s539_s27 = scalar_select %p538_p4, %s1226_s22, 1 }
  0x5b   : > { %p954_p5 = scmp.ne.s32.totalorder %s1222_s21, 0 }
  0x5c   : > { %s953_s20 = sshll.u32 %s539_s27, 1 }
  0x5d   : > { %s1477_s10 = scalar_lea.vmem %s1557_s2, %s953_s20  ;;  %547 = sbr.rel (%p954_p5) target bundleno = 101 (0x65), region = 160 }
  0x62   : > { %v1240_v36 = vmov 0.0  }
  0x63   : > { %548 = vst [vmem:[#allocation2] sm:$0xff] %v1240_v36 }
  0x64   : > { %549 = vst [vmem:[#allocation2 + $0x8] sm:$0xff] %v1240_v36 }
  0x65 PF: > { %v1043_v37 = vld [vmem:[%s1481_s8 + $0x38] sm:$0xff]  ;;  %v1042_v39 = vld [vmem:[%s1481_s8 + $0x30] sm:$0xff]  ;;  %v1041_v41 = vld [vmem:[%s1481_s8 + $0x28] sm:$0xff]  ;;  %p1027_p6 = scmp.ne.s32.totalorder %s1222_s21, 8 }
  0x66   : > { %v1051_v38 = vld [vmem:[%s1481_s8 + $0x78] sm:$0xff]  ;;  %692 = vmatpush.bf16.msra.mxu0 %v1043_v37  ;;  %v1050_v40 = vld [vmem:[%s1481_s8 + $0x70] sm:$0xff]  ;;  %v1049_v42 = vld [vmem:[%s1481_s8 + $0x68] sm:$0xff] }
  0x67   : > { %706 = vmatpush.bf16.msra.mxu1 %v1051_v38  ;;  %v1040_v43 = vld [vmem:[%s1481_s8 + $0x20] sm:$0xff]  ;;  %v1039_v45 = vld [vmem:[%s1481_s8 + $0x18] sm:$0xff]  ;;  %v1038_v47 = vld [vmem:[%s1481_s8 + $0x10] sm:$0xff] }
  0x68   : > { %v1048_v44 = vld [vmem:[%s1481_s8 + $0x60] sm:$0xff]  ;;  %v1047_v46 = vld [vmem:[%s1481_s8 + $0x58] sm:$0xff]  ;;  %v1046_v48 = vld [vmem:[%s1481_s8 + $0x50] sm:$0xff] }
  0x69   : > { %v1037_v49 = vld [vmem:[%s1481_s8 + $0x8] sm:$0xff]  ;;  %v1036_v51 = vld [vmem:[%s1481_s8] sm:$0xff] }
  0x6a   : > { %693 = vmatpush.bf16.msra.mxu0 %v1042_v39  ;;  %v1045_v50 = vld [vmem:[%s1481_s8 + $0x48] sm:$0xff]  ;;  %v1044_v52 = vld [vmem:[%s1481_s8 + $0x40] sm:$0xff]  ;;  %v550_v60 = vld [vmem:[#allocation2] sm:$0xff] }
  0x6b   : > { %707 = vmatpush.bf16.msra.mxu1 %v1050_v40  ;;  %v957_v53 = vld [vmem:[%s1479_s12] sm:$0xf]  ;;  %v1035_v54 = vld [vmem:[%s1479_s12 + $0x4] sm:$0xf0]  ;;  %v1034_v55 = vld [vmem:[%s1479_s12 + $0x4] sm:$0xf] }
  0x6c   : > { %v959_v56 = vld [vmem:[%s1479_s12 + $0x8] sm:$0xf0]  ;;  %v958_v57 = vor.u32 %v1035_v54, %v957_v53 }
  0x6d   : > { %v962_v58 = vor.u32 %v1034_v55, %v959_v56  ;;  %v551_v1 = vld [vmem:[#allocation2 + $0x8] sm:$0xff] }
  0x6e   : > { %694 = vmatpush.bf16.msra.mxu0 %v1041_v41 }
  0x6f   : > { %708 = vmatpush.bf16.msra.mxu1 %v1049_v42 }
  0x72   : > { %695 = vmatpush.bf16.msra.mxu0 %v1040_v43 }
  0x73   : > { %709 = vmatpush.bf16.msra.mxu1 %v1048_v44 }
  0x76   : > { %696 = vmatpush.bf16.msra.mxu0 %v1039_v45 }
  0x77   : > { %710 = vmatpush.bf16.msra.mxu1 %v1047_v46 }
  0x7a   : > { %697 = vmatpush.bf16.msra.mxu0 %v1038_v47 }
  0x7b   : > { %711 = vmatpush.bf16.msra.mxu1 %v1046_v48 }
  0x7e   : > { %698 = vmatpush.bf16.msra.mxu0 %v1037_v49 }
  0x7f   : > { %712 = vmatpush.bf16.msra.mxu1 %v1045_v50 }
  0x82   : > { %699 = vmatpush.bf16.msra.mxu0 %v1036_v51 }
  0x83   : > { %713 = vmatpush.bf16.msra.mxu1 %v1044_v52 }
  0x85   : > { %700 = vmatmul.bf16.vlgmr.msra.gmra.mxu0 %v958_v57 }
  0x86   : > { %714 = vmatmul.bf16.vlgmr.msra.gmra.mxu1 %v962_v58 }
 0x102   : > { %v701_v59 = vpop.f32.mrf.mxu0 }
 0x103   : > { %v715_v61 = vpop.f32.mrf.mxu1 }
 0x104   : > { %v716_v62 = vadd.f32 %v715_v61, %v701_v59 }
 0x106   : > { %v720_v63 = vadd.f32 %v716_v62, %v550_v60 }
 0x108   : > { %722 = vst [vmem:[#allocation2] sm:$0xff] %v720_v63 }
 0x10a   : > { %v703_v0 = vpop.f32.mrf.mxu0 }
 0x10b   : > { %v717_v2 = vpop.f32.mrf.mxu1 }
 0x10c   : > { %v718_v3 = vadd.f32 %v717_v2, %v703_v0  ;;  %727 = sbr.rel (%p1027_p6) target bundleno = 291 (0x123), region = 164 }
 0x10e   : > { %v721_v4 = vadd.f32 %v718_v3, %v551_v1 }
 0x110   : > { %723 = vst [vmem:[#allocation2 + $0x8] sm:$0xff] %v721_v4 }
 0x111   : > { %v728_v5 = vld [vmem:[#allocation2] sm:$0xff]  ;;  %v1053_v9 = vld [vmem:[%s501_s17] sm:$0xff]  }
 0x112   : > { %v1150_v7 = vld [vmem:[%s1477_s10] ss:$0 sm:$0xff]  ;;  %v1151_v8 = vld [vmem:[%s1477_s10 + $0x1] ss:$0 sm:$0xff]  ;;  %v1054_v12 = vunpack.c.l.bf16 %v1053_v9  ;;  %v1055_v13 = vunpack.c.h.bf16 %v1053_v9 }
 0x113   : > { %v732_v10 = vmul.f32 %v1150_v7, %v728_v5 }
 0x115   : > { %v736_v14 = vadd.f32 %v1151_v8, %v732_v10 }
 0x117   : > { %v729_v6 = vld [vmem:[#allocation2 + $0x8] sm:$0xff]  ;;  %v742_v16 = vadd.f32 %v1054_v12, %v736_v14 }
 0x118   : > { %v733_v11 = vmul.f32 %v1150_v7, %v729_v6 }
 0x119   : > { %v744_v18 = vmax.f32 %v742_v16, 0.0 }
 0x11a   : > { %v737_v15 = vadd.f32 %v1151_v8, %v733_v11 }
 0x11c   : > { %v743_v17 = vadd.f32 %v1055_v13, %v737_v15 }
 0x11e   : > { %v745_v19 = vmax.f32 %v743_v17, 0.0 }
 0x120   : > { %v1059_v20 = vpack.c.bf16 %v745_v19, %v744_v18 }
 0x122   : > { %1060 = vst [vmem:[%s1485_s19] sm:$0xff] %v1059_v20  }
 0x123 PF: > { %756 = sbr.rel (!%p1370_p13) target bundleno = 300 (0x12c), region = 168  ;;  %s1029_s15 = sshll.u32 (%p1370_p13), %s1226_s22, 2 }
 0x124   : > { %s761_s14 = scalar_lea.vmem (%p1370_p13), %s1559_s4, %s1029_s15 }
 0x129   : > { %v778_v21 = vld [vmem:[%s1485_s19] sm:$0xf]  ;;  %v780_v22 = vld [vmem:[%s1485_s19 + $0x4] sm:$0xf] }
 0x12a   : > { %779 = vst [vmem:[%s761_s14] sm:$0xf] %v778_v21 }
 0x12b   : > { %781 = vst [vmem:[%s761_s14 + $0x8] sm:$0xf] %v780_v22 }
 0x12c PF: > { %s14_s25 = sadd.s32 1, %s1238_s25   ;;  %s1572_s29 = sld [smem:[#allocation11_spill]] }
 0x12d   : > { %p11_p7 = scmp.ge.s32.totalorder %s14_s25, 20   ;;  %s1573_s19 = sld [smem:[#allocation7_spill]] }
 0x12e   : > { %s1574_s20 = sld [smem:[#allocation10_spill]]  ;;  %s1577_s15 = smov %s1202_s16 }
 0x12f   : > { %s1575_s26 = sld [smem:[#allocation8_spill]]  ;;  %s1578_s16 = smov %s1362_s13 }
 0x130   : > { %s1576_s5 = sld [smem:[#allocation9_spill]]  ;;  %s1579_s17 = smov %s1210_s18 }
 0x131   : > { %s1581_s21 = smov %s1230_s23  ;;  %s1582_s22 = smov %s1234_s24 }
 0x132   : > { %s1580_s18 = smov %s1572_s29  ;;  %13 = sbr.rel (!%p11_p7) target bundleno = 6 (0x6), region = 259 }
 0x135   : > { %s1583_s23 = smov %s1575_s26 }
 0x136   : > { %s1584_s24 = smov %s1576_s5 }

// kernel: my_script_module_forward.33
= control target key start
LH: loop header
LB: loop body
LE: loop exit
PB: predicated region body
PF: predicated region fallthrough
CT: control target
= control target key end

     0   :  { %s1394_s0 = inlined_call_operand.vmem [shape: bf16[16,2304], index: 0, kind: input, shape index: {}]   ;;  %s1395_s1 = inlined_call_operand.vmem [shape: bf16[2304,256], index: 1, kind: input, shape index: {}]   ;;  %s1396_s2 = inlined_call_operand.vmem [shape: f32[2,256], index: 2, kind: input, shape index: {}]   ;;  %s1397_s3 = inlined_call_operand.vmem [shape: bf16[16,256], index: 3, kind: output, shape index: {}]  }
   0x1   :  { %1400 = sst [smem:[#allocation9_spill]] %s1394_s0 }
   0x2   :  { %s1128_s12 = smov 0   ;;  %s1130_s13 = smov 0  }
   0x3   :  { %s1132_s14 = smov 0   ;;  %s1134_s15 = smov 0  }
   0x4   :  { %s1136_s16 = smov 0   ;;  %s1138_s17 = smov 0  }
   0x5   :  { %s1140_s18 = smov 0   ;;  %s1142_s19 = smov 0  }
   0x6   :  { %s1144_s20 = smov 0   ;;  %s1146_s21 = smov 0  }
   0x7   :  { %s1148_s22 = smov 0  }
   0x8 LB: > { %s809_s23 = sadd.s32 4294967295, %s1105_s22   ;;  %s25_s24 = sadd.s32 1, %s1097_s20  ;;  %s1105_s22 = sphi %s1148_s22, %s13_s22   ;;  %s1101_s21 = sphi %s1146_s21, %s1420_s21   ;;  %s1097_s20 = sphi %s1144_s20, %s1419_s20   ;;  %s1093_s19 = sphi %s1142_s19, %s1418_s19   ;;  %s1089_s18 = sphi %s1140_s18, %s1417_s18   ;;  %s1085_s17 = sphi %s1138_s17, %s1416_s17   ;;  %s1081_s16 = sphi %s1136_s16, %s1415_s16   ;;  %s1077_s15 = sphi %s1134_s15, %s1414_s15   ;;  %s1073_s14 = sphi %s1132_s14, %s1413_s14   ;;  %s1069_s13 = sphi %s1130_s13, %s1412_s13   ;;  %s1065_s12 = sphi %s1128_s12, %s1411_s12  }
   0x9   : > { %p26_p0 = scmp.ge.s32.totalorder %s25_s24, 9  ;;  %s28_s25 = sadd.s32 1, %s1101_s21 }
   0xa   : > { %s41_s26 = sadd.s32 1, %s1085_s17  ;;  %p48_p1 = scmp.ne.s32.totalorder %s1085_s17, %s1081_s16 }
   0xb   : > { %s1422_s24 = smov (%p26_p0, %s25_s24), 0  ;;  %s1424_s25 = smov (!%p26_p0, %s28_s25), %s1101_s21 }
   0xc   : > { %1401 = sst [smem:[#allocation6_spill]] %s1422_s24  ;;  %s37_s27 = ssub.s32 %s1097_s20, %s1422_s24 }
   0xd   : > { %p49_p2 = scmp.eq.s32.totalorder %s1105_s22, 0  ;;  %p30_p3 = scmp.ge.s32.totalorder %s1424_s25, 2 }
   0xe   : > { %p39_p4 = scmp.eq.s32.totalorder %s37_s27, 0  ;;  %s69_s29 = sadd.s32 1, %s1077_s15 }
   0xf   : > { %p1195_p5 = por %p49_p2, %p48_p1  ;;  %s1426_s25 = smov (%p30_p3, %s1424_s25), 0 }
  0x10   : > { %1403 = sst [smem:[#allocation7_spill]] %s1426_s25  ;;  %s65_s4 = ssub.s32 %s1101_s21, %s1426_s25 }
  0x11   : > { %s1203_s30 = scalar_select %p39_p4, %s1085_s17, %s41_s26  }
  0x12   : > { %p76_p6 = scmp.ne.s32.totalorder %s1077_s15, %s1073_s14  ;;  %s66_s5 = sor.u32 %s65_s4, %s37_s27 }
  0x13   : > { %1404 = sst [smem:[#allocation8_spill]] %s1203_s30  ;;  %p121_p7 = scmp.eq.s32.totalorder %s65_s4, 0 }
  0x14   : > { %p67_p8 = scmp.eq.s32.totalorder %s66_s5, 0  ;;  %p1209_p9 = por %p76_p6, %p49_p2 }
  0x15   : > { %s123_s7 = sadd.s32 1, %s1069_s13  ;;  %p133_p10 = scmp.ne.s32.totalorder %s1069_s13, %s1065_s12 }
  0x16   : > { %s1217_s8 = scalar_select %p67_p8, %s1077_s15, %s69_s29  }
  0x17   : > { %s1220_s9 = scalar_select %p121_p7, %s1069_s13, %s123_s7  }
  0x18   : > { %p134_p11 = scmp.eq.s32.totalorder %s809_s23, 17  ;;  %p812_p13 = scmp.ge.s32.totalorder %s1105_s22, 18 }
  0x1a   : > { %p1222_p12 = por %p134_p11, %p133_p10  ;;  %156 = sbr.rel (%p812_p13) target bundleno = 81 (0x51), region = 16 }
  0x1f   : > { %159 = sbr.rel (!%p1195_p5) target bundleno = 43 (0x2b), region = 20  ;;  %s161_s11 = sand.u32 (%p1195_p5), 1, %s1085_s17  }
  0x20   : > { %s903_s26 = sshll.u32 (%p1195_p5), %s1097_s20, 3  ;;  %s813_s27 = sshll.u32 (%p1195_p5), %s161_s11, 4 }
  0x21   : > { %s1407_s0 = sld [smem:[#allocation9_spill]] (%p1195_p5)  ;;  %s163_s23 = scalar_lea.vmem (%p1195_p5), [#allocation3], %s813_s27 }
  0x27   : > { %s169_s5 = scalar_lea.vmem %s1407_s0, %s903_s26 }
  0x28   : > { %v200_v0 = vld [vmem:[%s169_s5] sm:$0xff]  ;;  %v202_v1 = vld [vmem:[%s169_s5 + $0x48] sm:$0xff] }
  0x29   : > { %201 = vst [vmem:[%s163_s23] sm:$0xff] %v200_v0 }
  0x2a   : > { %203 = vst [vmem:[%s163_s23 + $0x8] sm:$0xff] %v202_v1 }
  0x2b PF: > { %209 = sbr.rel (!%p1209_p9) target bundleno = 81 (0x51), region = 58  ;;  %s211_s28 = sand.u32 (%p1209_p9), 1, %s1077_s15  }
  0x2c   : > { %s904_s7 = sshll.u32 (%p1209_p9), %s1097_s20, 6  ;;  %s816_s25 = sshll.u32 (%p1209_p9), %s211_s28, 7 }
  0x2d   : > { %s216_s11 = sadd.s32 (%p1209_p9), %s1101_s21, %s904_s7  ;;  %s1247_s6 = scalar_lea.vmem (%p1209_p9), [#allocation4], %s816_s25 }
  0x2e   : > { %s819_s24 = sshll.u32 (%p1209_p9), %s216_s11, 2 }
  0x2f   : > { %s1242_s26 = scalar_lea.vmem (%p1209_p9), %s1395_s1, %s819_s24 }
  0x30   : > { %v235_v2 = vld [vmem:[%s1242_s26] sm:$0xf]  ;;  %v237_v3 = vld [vmem:[%s1242_s26 + $0x8] sm:$0xf]  ;;  %v239_v4 = vld [vmem:[%s1242_s26 + $0x10] sm:$0xf] }
  0x31   : > { %236 = vst [vmem:[%s1247_s6] sm:$0xf] %v235_v2  ;;  %v241_v5 = vld [vmem:[%s1242_s26 + $0x18] sm:$0xf]  ;;  %v243_v6 = vld [vmem:[%s1242_s26 + $0x20] sm:$0xf] }
  0x32   : > { %238 = vst [vmem:[%s1247_s6 + $0x4] sm:$0xf] %v237_v3  ;;  %v245_v7 = vld [vmem:[%s1242_s26 + $0x28] sm:$0xf]  ;;  %v247_v8 = vld [vmem:[%s1242_s26 + $0x30] sm:$0xf] }
  0x33   : > { %240 = vst [vmem:[%s1247_s6 + $0x8] sm:$0xf] %v239_v4  ;;  %v249_v9 = vld [vmem:[%s1242_s26 + $0x38] sm:$0xf]  ;;  %v251_v10 = vld [vmem:[%s1242_s26 + $0x40] sm:$0xf] }
  0x34   : > { %242 = vst [vmem:[%s1247_s6 + $0xc] sm:$0xf] %v241_v5  ;;  %v253_v11 = vld [vmem:[%s1242_s26 + $0x48] sm:$0xf]  ;;  %v255_v12 = vld [vmem:[%s1242_s26 + $0x50] sm:$0xf] }
  0x35   : > { %244 = vst [vmem:[%s1247_s6 + $0x10] sm:$0xf] %v243_v6  ;;  %v257_v13 = vld [vmem:[%s1242_s26 + $0x58] sm:$0xf]  ;;  %v259_v14 = vld [vmem:[%s1242_s26 + $0x60] sm:$0xf] }
  0x36   : > { %246 = vst [vmem:[%s1247_s6 + $0x14] sm:$0xf] %v245_v7  ;;  %v261_v15 = vld [vmem:[%s1242_s26 + $0x68] sm:$0xf]  ;;  %v263_v16 = vld [vmem:[%s1242_s26 + $0x70] sm:$0xf] }
  0x37   : > { %248 = vst [vmem:[%s1247_s6 + $0x18] sm:$0xf] %v247_v8  ;;  %v265_v17 = vld [vmem:[%s1242_s26 + $0x78] sm:$0xf]  ;;  %v267_v18 = vld [vmem:[%s1242_s26 + $0x80] sm:$0xf] }
  0x38   : > { %250 = vst [vmem:[%s1247_s6 + $0x1c] sm:$0xf] %v249_v9  ;;  %v269_v19 = vld [vmem:[%s1242_s26 + $0x88] sm:$0xf]  ;;  %v271_v20 = vld [vmem:[%s1242_s26 + $0x90] sm:$0xf] }
  0x39   : > { %252 = vst [vmem:[%s1247_s6 + $0x20] sm:$0xf] %v251_v10  ;;  %v273_v21 = vld [vmem:[%s1242_s26 + $0x98] sm:$0xf]  ;;  %v275_v22 = vld [vmem:[%s1242_s26 + $0xa0] sm:$0xf] }
  0x3a   : > { %254 = vst [vmem:[%s1247_s6 + $0x24] sm:$0xf] %v253_v11  ;;  %v277_v23 = vld [vmem:[%s1242_s26 + $0xa8] sm:$0xf]  ;;  %v279_v24 = vld [vmem:[%s1242_s26 + $0xb0] sm:$0xf] }
  0x3b   : > { %256 = vst [vmem:[%s1247_s6 + $0x28] sm:$0xf] %v255_v12  ;;  %v281_v25 = vld [vmem:[%s1242_s26 + $0xb8] sm:$0xf]  ;;  %v283_v26 = vld [vmem:[%s1242_s26 + $0xc0] sm:$0xf] }
  0x3c   : > { %258 = vst [vmem:[%s1247_s6 + $0x2c] sm:$0xf] %v257_v13  ;;  %v285_v27 = vld [vmem:[%s1242_s26 + $0xc8] sm:$0xf]  ;;  %v287_v28 = vld [vmem:[%s1242_s26 + $0xd0] sm:$0xf] }
  0x3d   : > { %260 = vst [vmem:[%s1247_s6 + $0x30] sm:$0xf] %v259_v14  ;;  %v289_v29 = vld [vmem:[%s1242_s26 + $0xd8] sm:$0xf]  ;;  %v291_v30 = vld [vmem:[%s1242_s26 + $0xe0] sm:$0xf] }
  0x3e   : > { %262 = vst [vmem:[%s1247_s6 + $0x34] sm:$0xf] %v261_v15  ;;  %v293_v31 = vld [vmem:[%s1242_s26 + $0xe8] sm:$0xf]  ;;  %v295_v32 = vld [vmem:[%s1242_s26 + $0xf0] sm:$0xf] }
  0x3f   : > { %264 = vst [vmem:[%s1247_s6 + $0x38] sm:$0xf] %v263_v16  ;;  %v297_v33 = vld [vmem:[%s1242_s26 + $0xf8] sm:$0xf] }
  0x40   : > { %266 = vst [vmem:[%s1247_s6 + $0x3c] sm:$0xf] %v265_v17 }
  0x41   : > { %268 = vst [vmem:[%s1247_s6 + $0x40] sm:$0xf] %v267_v18 }
  0x42   : > { %270 = vst [vmem:[%s1247_s6 + $0x44] sm:$0xf] %v269_v19 }
  0x43   : > { %272 = vst [vmem:[%s1247_s6 + $0x48] sm:$0xf] %v271_v20 }
  0x44   : > { %274 = vst [vmem:[%s1247_s6 + $0x4c] sm:$0xf] %v273_v21 }
  0x45   : > { %276 = vst [vmem:[%s1247_s6 + $0x50] sm:$0xf] %v275_v22 }
  0x46   : > { %278 = vst [vmem:[%s1247_s6 + $0x54] sm:$0xf] %v277_v23 }
  0x47   : > { %280 = vst [vmem:[%s1247_s6 + $0x58] sm:$0xf] %v279_v24 }
  0x48   : > { %282 = vst [vmem:[%s1247_s6 + $0x5c] sm:$0xf] %v281_v25 }
  0x49   : > { %284 = vst [vmem:[%s1247_s6 + $0x60] sm:$0xf] %v283_v26 }
  0x4a   : > { %286 = vst [vmem:[%s1247_s6 + $0x64] sm:$0xf] %v285_v27 }
  0x4b   : > { %288 = vst [vmem:[%s1247_s6 + $0x68] sm:$0xf] %v287_v28 }
  0x4c   : > { %290 = vst [vmem:[%s1247_s6 + $0x6c] sm:$0xf] %v289_v29 }
  0x4d   : > { %292 = vst [vmem:[%s1247_s6 + $0x70] sm:$0xf] %v291_v30 }
  0x4e   : > { %294 = vst [vmem:[%s1247_s6 + $0x74] sm:$0xf] %v293_v31 }
  0x4f   : > { %296 = vst [vmem:[%s1247_s6 + $0x78] sm:$0xf] %v295_v32 }
  0x50   : > { %298 = vst [vmem:[%s1247_s6 + $0x7c] sm:$0xf] %v297_v33 }
  0x51 PF: > { %p820_p0 = scmp.ge.s32.totalorder %s1105_s22, 1  ;;  %p392_p1 = scmp.lt.s32.totalorder %s1105_s22, 19 }
  0x53   : > { %p393_p2 = pnand %p820_p0, %p392_p1 }
  0x54   : > { %s399_s24 = sand.u32 (!%p393_p2), 1, %s1081_s16   ;;  %s406_s25 = sand.u32 (!%p393_p2), 1, %s1073_s14  }
  0x55   : > { %396 = sbr.rel (%p393_p2) target bundleno = 296 (0x128), region = 103  ;;  %s821_s30 = sshll.u32 (!%p393_p2), %s399_s24, 4 }
  0x56   : > { %s822_s27 = sshll.u32 (!%p393_p2), %s406_s25, 7  ;;  %s433_s4 = sand.u32 (!%p393_p2), 1, %s1065_s12  }
  0x57   : > { %p439_p3 = scmp.lt.s32.totalorder (!%p393_p2), %s1093_s19, 1  ;;  %s823_s5 = sshll.u32 (!%p393_p2), %s433_s4, 3 }
  0x58   : > { %s1322_s26 = scalar_lea.vmem (!%p393_p2), [#allocation3], %s821_s30  ;;  %s1324_s6 = scalar_lea.vmem (!%p393_p2), [#allocation4], %s822_s27 }
  0x59   : > { %s1326_s0 = scalar_lea.vmem (!%p393_p2), [#allocation5], %s823_s5  ;;  %p825_p4 = scmp.ne.s32.totalorder (!%p393_p2), %s1089_s18, 0 }
  0x5a   : > { %s440_s23 = scalar_select %p439_p3, %s1093_s19, 1 }
  0x5b   : > { %447 = sbr.rel (%p825_p4) target bundleno = 99 (0x63), region = 115 }
  0x5c   : > { %s824_s28 = sshll.u32 %s440_s23, 1 }
  0x5d   : > { %s1320_s29 = scalar_lea.vmem %s1396_s2, %s824_s28 }
  0x60   : > { %v1107_v34 = vmov 0.0  }
  0x61   : > { %448 = vst [vmem:[#allocation2] sm:$0xff] %v1107_v34 }
  0x62   : > { %449 = vst [vmem:[#allocation2 + $0x8] sm:$0xff] %v1107_v34 }
  0x63 PF: > { %v914_v35 = vld [vmem:[%s1324_s6 + $0x38] sm:$0xff]  ;;  %v913_v37 = vld [vmem:[%s1324_s6 + $0x30] sm:$0xff]  ;;  %v912_v39 = vld [vmem:[%s1324_s6 + $0x28] sm:$0xff]  ;;  %p898_p5 = scmp.ne.s32.totalorder %s1089_s18, 8 }
  0x64   : > { %v922_v36 = vld [vmem:[%s1324_s6 + $0x78] sm:$0xff]  ;;  %592 = vmatpush.bf16.msra.mxu0 %v914_v35  ;;  %v921_v38 = vld [vmem:[%s1324_s6 + $0x70] sm:$0xff]  ;;  %v920_v40 = vld [vmem:[%s1324_s6 + $0x68] sm:$0xff] }
  0x65   : > { %606 = vmatpush.bf16.msra.mxu1 %v922_v36  ;;  %v911_v41 = vld [vmem:[%s1324_s6 + $0x20] sm:$0xff]  ;;  %v910_v43 = vld [vmem:[%s1324_s6 + $0x18] sm:$0xff]  ;;  %v909_v45 = vld [vmem:[%s1324_s6 + $0x10] sm:$0xff] }
  0x66   : > { %v919_v42 = vld [vmem:[%s1324_s6 + $0x60] sm:$0xff]  ;;  %v918_v44 = vld [vmem:[%s1324_s6 + $0x58] sm:$0xff]  ;;  %v917_v46 = vld [vmem:[%s1324_s6 + $0x50] sm:$0xff] }
  0x67   : > { %v908_v47 = vld [vmem:[%s1324_s6 + $0x8] sm:$0xff]  ;;  %v907_v49 = vld [vmem:[%s1324_s6] sm:$0xff] }
  0x68   : > { %593 = vmatpush.bf16.msra.mxu0 %v913_v37  ;;  %v916_v48 = vld [vmem:[%s1324_s6 + $0x48] sm:$0xff]  ;;  %v915_v50 = vld [vmem:[%s1324_s6 + $0x40] sm:$0xff]  ;;  %v450_v58 = vld [vmem:[#allocation2] sm:$0xff] }
  0x69   : > { %607 = vmatpush.bf16.msra.mxu1 %v921_v38  ;;  %v828_v51 = vld [vmem:[%s1322_s26] sm:$0xf]  ;;  %v906_v52 = vld [vmem:[%s1322_s26 + $0x4] sm:$0xf0]  ;;  %v905_v53 = vld [vmem:[%s1322_s26 + $0x4] sm:$0xf] }
  0x6a   : > { %v830_v54 = vld [vmem:[%s1322_s26 + $0x8] sm:$0xf0]  ;;  %v829_v55 = vor.u32 %v906_v52, %v828_v51 }
  0x6b   : > { %v833_v56 = vor.u32 %v905_v53, %v830_v54  ;;  %v451_v63 = vld [vmem:[#allocation2 + $0x8] sm:$0xff] }
  0x6c   : > { %594 = vmatpush.bf16.msra.mxu0 %v912_v39 }
  0x6d   : > { %608 = vmatpush.bf16.msra.mxu1 %v920_v40 }
  0x70   : > { %595 = vmatpush.bf16.msra.mxu0 %v911_v41 }
  0x71   : > { %609 = vmatpush.bf16.msra.mxu1 %v919_v42 }
  0x74   : > { %596 = vmatpush.bf16.msra.mxu0 %v910_v43 }
  0x75   : > { %610 = vmatpush.bf16.msra.mxu1 %v918_v44 }
  0x78   : > { %597 = vmatpush.bf16.msra.mxu0 %v909_v45 }
  0x79   : > { %611 = vmatpush.bf16.msra.mxu1 %v917_v46 }
  0x7c   : > { %598 = vmatpush.bf16.msra.mxu0 %v908_v47 }
  0x7d   : > { %612 = vmatpush.bf16.msra.mxu1 %v916_v48 }
  0x80   : > { %599 = vmatpush.bf16.msra.mxu0 %v907_v49 }
  0x81   : > { %613 = vmatpush.bf16.msra.mxu1 %v915_v50 }
  0x83   : > { %600 = vmatmul.bf16.vlgmr.msra.gmra.mxu0 %v829_v55 }
  0x84   : > { %614 = vmatmul.bf16.vlgmr.msra.gmra.mxu1 %v833_v56 }
 0x100   : > { %v601_v57 = vpop.f32.mrf.mxu0 }
 0x101   : > { %v615_v59 = vpop.f32.mrf.mxu1 }
 0x102   : > { %v616_v60 = vadd.f32 %v615_v59, %v601_v57 }
 0x104   : > { %v620_v61 = vadd.f32 %v616_v60, %v450_v58 }
 0x106   : > { %622 = vst [vmem:[#allocation2] sm:$0xff] %v620_v61 }
 0x108   : > { %v603_v62 = vpop.f32.mrf.mxu0 }
 0x109   : > { %v617_v0 = vpop.f32.mrf.mxu1 }
 0x10a   : > { %v618_v1 = vadd.f32 %v617_v0, %v603_v62  ;;  %627 = sbr.rel (%p898_p5) target bundleno = 287 (0x11f), region = 119 }
 0x10c   : > { %v621_v2 = vadd.f32 %v618_v1, %v451_v63 }
 0x10e   : > { %623 = vst [vmem:[#allocation2 + $0x8] sm:$0xff] %v621_v2 }
 0x10f   : > { %v628_v3 = vld [vmem:[#allocation2] sm:$0xff] }
 0x110   : > { %v1017_v5 = vld [vmem:[%s1320_s29] ss:$0 sm:$0xff]  ;;  %v1018_v6 = vld [vmem:[%s1320_s29 + $0x1] ss:$0 sm:$0xff] }
 0x111   : > { %v632_v7 = vmul.f32 %v1017_v5, %v628_v3 }
 0x113   : > { %v636_v9 = vadd.f32 %v1018_v6, %v632_v7 }
 0x115   : > { %v629_v4 = vld [vmem:[#allocation2 + $0x8] sm:$0xff]  ;;  %v638_v11 = vmax.f32 %v636_v9, 0.0 }
 0x116   : > { %v633_v8 = vmul.f32 %v1017_v5, %v629_v4 }
 0x118   : > { %v637_v10 = vadd.f32 %v1018_v6, %v633_v8 }
 0x11a   : > { %v639_v12 = vmax.f32 %v637_v10, 0.0 }
 0x11c   : > { %v926_v13 = vpack.c.bf16 %v639_v12, %v638_v11 }
 0x11e   : > { %927 = vst [vmem:[%s1326_s0] sm:$0xff] %v926_v13  }
 0x11f PF: > { %650 = sbr.rel (!%p1222_p12) target bundleno = 296 (0x128), region = 123  ;;  %s900_s12 = sshll.u32 (%p1222_p12), %s1093_s19, 2 }
 0x120   : > { %s655_s18 = scalar_lea.vmem (%p1222_p12), %s1397_s3, %s900_s12 }
 0x125   : > { %v672_v14 = vld [vmem:[%s1326_s0] sm:$0xf]  ;;  %v674_v15 = vld [vmem:[%s1326_s0 + $0x4] sm:$0xf] }
 0x126   : > { %673 = vst [vmem:[%s655_s18] sm:$0xf] %v672_v14 }
 0x127   : > { %675 = vst [vmem:[%s655_s18 + $0x8] sm:$0xf] %v674_v15 }
 0x128 PF: > { %s13_s22 = sadd.s32 1, %s1105_s22   ;;  %s1408_s10 = sld [smem:[#allocation8_spill]] }
 0x129   : > { %p10_p6 = scmp.ge.s32.totalorder %s13_s22, 20   ;;  %s1409_s0 = sld [smem:[#allocation6_spill]] }
 0x12a   : > { %s1410_s24 = sld [smem:[#allocation7_spill]]  ;;  %s1411_s12 = smov %s1069_s13 }
 0x12b   : > { %s1412_s13 = smov %s1220_s9  ;;  %s1413_s14 = smov %s1077_s15 }
 0x12c   : > { %s1414_s15 = smov %s1217_s8  ;;  %s1415_s16 = smov %s1085_s17 }
 0x12d   : > { %s1417_s18 = smov %s1097_s20  ;;  %s1418_s19 = smov %s1101_s21 }
 0x12e   : > { %s1416_s17 = smov %s1408_s10  ;;  %12 = sbr.rel (!%p10_p6) target bundleno = 8 (0x8), region = 206 }
 0x12f   : > { %s1419_s20 = smov %s1409_s0 }
 0x130   : > { %s1420_s21 = smov %s1410_s24 }

// kernel: my_script_module_forward.35
= control target key start
LH: loop header
LB: loop body
LE: loop exit
PB: predicated region body
PF: predicated region fallthrough
CT: control target
= control target key end

     0   :  { %s1632_s0 = inlined_call_operand.vmem [shape: bf16[16,2304], index: 0, kind: input, shape index: {}]   ;;  %s1633_s1 = inlined_call_operand.vmem [shape: bf16[2304,512], index: 1, kind: input, shape index: {}]   ;;  %s1634_s2 = inlined_call_operand.vmem [shape: f32[2,512], index: 2, kind: input, shape index: {}]   ;;  %s1635_s3 = inlined_call_operand.vmem [shape: bf16[16,512], index: 3, kind: output, shape index: {}]  }
   0x1   :  { %1638 = sst [smem:[#allocation9_spill]] %s1632_s0 }
   0x2   :  { %s1318_s12 = smov 0   ;;  %s1320_s13 = smov 0  }
   0x3   :  { %s1322_s14 = smov 0   ;;  %s1324_s15 = smov 0  }
   0x4   :  { %s1326_s16 = smov 0   ;;  %s1328_s17 = smov 0  }
   0x5   :  { %s1330_s18 = smov 0   ;;  %s1332_s19 = smov 0  }
   0x6   :  { %s1334_s20 = smov 0   ;;  %s1336_s21 = smov 0  }
   0x7   :  { %s1338_s22 = smov 0  }
   0x8 LB: > { %s921_s23 = sadd.s32 4294967295, %s1295_s22   ;;  %s25_s24 = sadd.s32 1, %s1287_s20  ;;  %s1295_s22 = sphi %s1338_s22, %s13_s22   ;;  %s1291_s21 = sphi %s1336_s21, %s1658_s21   ;;  %s1287_s20 = sphi %s1334_s20, %s1657_s20   ;;  %s1283_s19 = sphi %s1332_s19, %s1656_s19   ;;  %s1279_s18 = sphi %s1330_s18, %s1655_s18   ;;  %s1275_s17 = sphi %s1328_s17, %s1654_s17   ;;  %s1271_s16 = sphi %s1326_s16, %s1653_s16   ;;  %s1267_s15 = sphi %s1324_s15, %s1652_s15   ;;  %s1263_s14 = sphi %s1322_s14, %s1651_s14   ;;  %s1259_s13 = sphi %s1320_s13, %s1650_s13   ;;  %s1255_s12 = sphi %s1318_s12, %s1649_s12  }
   0x9   : > { %p26_p0 = scmp.ge.s32.totalorder %s25_s24, 9  ;;  %s28_s25 = sadd.s32 1, %s1291_s21 }
   0xa   : > { %s41_s26 = sadd.s32 1, %s1275_s17  ;;  %p48_p1 = scmp.ne.s32.totalorder %s1275_s17, %s1271_s16 }
   0xb   : > { %s1660_s24 = smov (%p26_p0, %s25_s24), 0  ;;  %s1662_s25 = smov (!%p26_p0, %s28_s25), %s1291_s21 }
   0xc   : > { %1639 = sst [smem:[#allocation6_spill]] %s1660_s24  ;;  %s37_s27 = ssub.s32 %s1287_s20, %s1660_s24 }
   0xd   : > { %p49_p2 = scmp.eq.s32.totalorder %s1295_s22, 0  ;;  %p30_p3 = scmp.ge.s32.totalorder %s1662_s25, 2 }
   0xe   : > { %p39_p4 = scmp.eq.s32.totalorder %s37_s27, 0  ;;  %s69_s29 = sadd.s32 1, %s1267_s15 }
   0xf   : > { %p1385_p5 = por %p49_p2, %p48_p1  ;;  %s1664_s25 = smov (%p30_p3, %s1662_s25), 0 }
  0x10   : > { %1641 = sst [smem:[#allocation7_spill]] %s1664_s25  ;;  %s65_s4 = ssub.s32 %s1291_s21, %s1664_s25 }
  0x11   : > { %s1393_s30 = scalar_select %p39_p4, %s1275_s17, %s41_s26  }
  0x12   : > { %p76_p6 = scmp.ne.s32.totalorder %s1267_s15, %s1263_s14  ;;  %s66_s5 = sor.u32 %s65_s4, %s37_s27 }
  0x13   : > { %1642 = sst [smem:[#allocation8_spill]] %s1393_s30  ;;  %p121_p7 = scmp.eq.s32.totalorder %s65_s4, 0 }
  0x14   : > { %p67_p8 = scmp.eq.s32.totalorder %s66_s5, 0  ;;  %p1399_p9 = por %p76_p6, %p49_p2 }
  0x15   : > { %s123_s7 = sadd.s32 1, %s1259_s13  ;;  %p133_p10 = scmp.ne.s32.totalorder %s1259_s13, %s1255_s12 }
  0x16   : > { %s1407_s8 = scalar_select %p67_p8, %s1267_s15, %s69_s29  }
  0x17   : > { %s1410_s9 = scalar_select %p121_p7, %s1259_s13, %s123_s7  }
  0x18   : > { %p134_p11 = scmp.eq.s32.totalorder %s921_s23, 17  ;;  %p924_p13 = scmp.ge.s32.totalorder %s1295_s22, 18 }
  0x1a   : > { %p1412_p12 = por %p134_p11, %p133_p10  ;;  %156 = sbr.rel (%p924_p13) target bundleno = 82 (0x52), region = 16 }
  0x1f   : > { %159 = sbr.rel (!%p1385_p5) target bundleno = 43 (0x2b), region = 20  ;;  %s161_s11 = sand.u32 (%p1385_p5), 1, %s1275_s17  }
  0x20   : > { %s1083_s26 = sshll.u32 (%p1385_p5), %s1287_s20, 3  ;;  %s925_s27 = sshll.u32 (%p1385_p5), %s161_s11, 4 }
  0x21   : > { %s1645_s0 = sld [smem:[#allocation9_spill]] (%p1385_p5)  ;;  %s163_s23 = scalar_lea.vmem (%p1385_p5), [#allocation3], %s925_s27 }
  0x27   : > { %s169_s5 = scalar_lea.vmem %s1645_s0, %s1083_s26 }
  0x28   : > { %v200_v0 = vld [vmem:[%s169_s5] sm:$0xff]  ;;  %v202_v1 = vld [vmem:[%s169_s5 + $0x48] sm:$0xff] }
  0x29   : > { %201 = vst [vmem:[%s163_s23] sm:$0xff] %v200_v0 }
  0x2a   : > { %203 = vst [vmem:[%s163_s23 + $0x8] sm:$0xff] %v202_v1 }
  0x2b PF: > { %209 = sbr.rel (!%p1399_p9) target bundleno = 82 (0x52), region = 58  ;;  %s211_s28 = sand.u32 (%p1399_p9), 1, %s1267_s15  }
  0x2c   : > { %s930_s7 = sshll.u32 (%p1399_p9), %s1291_s21, 1  ;;  %s928_s25 = sshll.u32 (%p1399_p9), %s211_s28, 8 }
  0x2d   : > { %s1084_s11 = sshll.u32 (%p1399_p9), %s1287_s20, 7  ;;  %s1437_s6 = scalar_lea.vmem (%p1399_p9), [#allocation4], %s928_s25 }
  0x2e   : > { %s217_s24 = sadd.s32 (%p1399_p9), %s1084_s11, %s930_s7 }
  0x2f   : > { %s932_s30 = sshll.u32 (%p1399_p9), %s217_s24, 2 }
  0x30   : > { %s1432_s4 = scalar_lea.vmem %s1633_s1, %s932_s30 }
  0x31   : > { %v310_v2 = vld [vmem:[%s1432_s4] sm:$0xff]  ;;  %v312_v3 = vld [vmem:[%s1432_s4 + $0x10] sm:$0xff] }
  0x32   : > { %v314_v4 = vld [vmem:[%s1432_s4 + $0x20] sm:$0xff]  ;;  %311 = vst [vmem:[%s1437_s6] sm:$0xff] %v310_v2  ;;  %v316_v5 = vld [vmem:[%s1432_s4 + $0x30] sm:$0xff] }
  0x33   : > { %313 = vst [vmem:[%s1437_s6 + $0x8] sm:$0xff] %v312_v3  ;;  %v318_v6 = vld [vmem:[%s1432_s4 + $0x40] sm:$0xff]  ;;  %v320_v7 = vld [vmem:[%s1432_s4 + $0x50] sm:$0xff] }
  0x34   : > { %315 = vst [vmem:[%s1437_s6 + $0x10] sm:$0xff] %v314_v4  ;;  %v322_v8 = vld [vmem:[%s1432_s4 + $0x60] sm:$0xff]  ;;  %v324_v9 = vld [vmem:[%s1432_s4 + $0x70] sm:$0xff] }
  0x35   : > { %317 = vst [vmem:[%s1437_s6 + $0x18] sm:$0xff] %v316_v5  ;;  %v326_v10 = vld [vmem:[%s1432_s4 + $0x80] sm:$0xff]  ;;  %v328_v11 = vld [vmem:[%s1432_s4 + $0x90] sm:$0xff] }
  0x36   : > { %319 = vst [vmem:[%s1437_s6 + $0x20] sm:$0xff] %v318_v6  ;;  %v330_v12 = vld [vmem:[%s1432_s4 + $0xa0] sm:$0xff]  ;;  %v332_v13 = vld [vmem:[%s1432_s4 + $0xb0] sm:$0xff] }
  0x37   : > { %321 = vst [vmem:[%s1437_s6 + $0x28] sm:$0xff] %v320_v7  ;;  %v334_v14 = vld [vmem:[%s1432_s4 + $0xc0] sm:$0xff]  ;;  %v336_v15 = vld [vmem:[%s1432_s4 + $0xd0] sm:$0xff] }
  0x38   : > { %323 = vst [vmem:[%s1437_s6 + $0x30] sm:$0xff] %v322_v8  ;;  %v338_v16 = vld [vmem:[%s1432_s4 + $0xe0] sm:$0xff]  ;;  %v340_v17 = vld [vmem:[%s1432_s4 + $0xf0] sm:$0xff] }
  0x39   : > { %325 = vst [vmem:[%s1437_s6 + $0x38] sm:$0xff] %v324_v9  ;;  %v342_v18 = vld [vmem:[%s1432_s4 + $0x100] sm:$0xff]  ;;  %v344_v19 = vld [vmem:[%s1432_s4 + $0x110] sm:$0xff] }
  0x3a   : > { %327 = vst [vmem:[%s1437_s6 + $0x40] sm:$0xff] %v326_v10  ;;  %v346_v20 = vld [vmem:[%s1432_s4 + $0x120] sm:$0xff]  ;;  %v348_v21 = vld [vmem:[%s1432_s4 + $0x130] sm:$0xff] }
  0x3b   : > { %329 = vst [vmem:[%s1437_s6 + $0x48] sm:$0xff] %v328_v11  ;;  %v350_v22 = vld [vmem:[%s1432_s4 + $0x140] sm:$0xff]  ;;  %v352_v23 = vld [vmem:[%s1432_s4 + $0x150] sm:$0xff] }
  0x3c   : > { %331 = vst [vmem:[%s1437_s6 + $0x50] sm:$0xff] %v330_v12  ;;  %v354_v24 = vld [vmem:[%s1432_s4 + $0x160] sm:$0xff]  ;;  %v356_v25 = vld [vmem:[%s1432_s4 + $0x170] sm:$0xff] }
  0x3d   : > { %333 = vst [vmem:[%s1437_s6 + $0x58] sm:$0xff] %v332_v13  ;;  %v358_v26 = vld [vmem:[%s1432_s4 + $0x180] sm:$0xff]  ;;  %v360_v27 = vld [vmem:[%s1432_s4 + $0x190] sm:$0xff] }
  0x3e   : > { %335 = vst [vmem:[%s1437_s6 + $0x60] sm:$0xff] %v334_v14  ;;  %v362_v28 = vld [vmem:[%s1432_s4 + $0x1a0] sm:$0xff]  ;;  %v364_v29 = vld [vmem:[%s1432_s4 + $0x1b0] sm:$0xff] }
  0x3f   : > { %337 = vst [vmem:[%s1437_s6 + $0x68] sm:$0xff] %v336_v15  ;;  %v366_v30 = vld [vmem:[%s1432_s4 + $0x1c0] sm:$0xff]  ;;  %v368_v31 = vld [vmem:[%s1432_s4 + $0x1d0] sm:$0xff] }
  0x40   : > { %339 = vst [vmem:[%s1437_s6 + $0x70] sm:$0xff] %v338_v16  ;;  %v370_v32 = vld [vmem:[%s1432_s4 + $0x1e0] sm:$0xff]  ;;  %v372_v33 = vld [vmem:[%s1432_s4 + $0x1f0] sm:$0xff] }
  0x41   : > { %341 = vst [vmem:[%s1437_s6 + $0x78] sm:$0xff] %v340_v17 }
  0x42   : > { %343 = vst [vmem:[%s1437_s6 + $0x80] sm:$0xff] %v342_v18 }
  0x43   : > { %345 = vst [vmem:[%s1437_s6 + $0x88] sm:$0xff] %v344_v19 }
  0x44   : > { %347 = vst [vmem:[%s1437_s6 + $0x90] sm:$0xff] %v346_v20 }
  0x45   : > { %349 = vst [vmem:[%s1437_s6 + $0x98] sm:$0xff] %v348_v21 }
  0x46   : > { %351 = vst [vmem:[%s1437_s6 + $0xa0] sm:$0xff] %v350_v22 }
  0x47   : > { %353 = vst [vmem:[%s1437_s6 + $0xa8] sm:$0xff] %v352_v23 }
  0x48   : > { %355 = vst [vmem:[%s1437_s6 + $0xb0] sm:$0xff] %v354_v24 }
  0x49   : > { %357 = vst [vmem:[%s1437_s6 + $0xb8] sm:$0xff] %v356_v25 }
  0x4a   : > { %359 = vst [vmem:[%s1437_s6 + $0xc0] sm:$0xff] %v358_v26 }
  0x4b   : > { %361 = vst [vmem:[%s1437_s6 + $0xc8] sm:$0xff] %v360_v27 }
  0x4c   : > { %363 = vst [vmem:[%s1437_s6 + $0xd0] sm:$0xff] %v362_v28 }
  0x4d   : > { %365 = vst [vmem:[%s1437_s6 + $0xd8] sm:$0xff] %v364_v29 }
  0x4e   : > { %367 = vst [vmem:[%s1437_s6 + $0xe0] sm:$0xff] %v366_v30 }
  0x4f   : > { %369 = vst [vmem:[%s1437_s6 + $0xe8] sm:$0xff] %v368_v31 }
  0x50   : > { %371 = vst [vmem:[%s1437_s6 + $0xf0] sm:$0xff] %v370_v32 }
  0x51   : > { %373 = vst [vmem:[%s1437_s6 + $0xf8] sm:$0xff] %v372_v33 }
  0x52 PF: > { %p933_p0 = scmp.ge.s32.totalorder %s1295_s22, 1  ;;  %p387_p1 = scmp.lt.s32.totalorder %s1295_s22, 19 }
  0x54   : > { %p388_p2 = pnand %p933_p0, %p387_p1 }
  0x55   : > { %s394_s24 = sand.u32 (!%p388_p2), 1, %s1271_s16   ;;  %s401_s25 = sand.u32 (!%p388_p2), 1, %s1263_s14  }
  0x56   : > { %391 = sbr.rel (%p388_p2) target bundleno = 308 (0x134), region = 100  ;;  %s934_s30 = sshll.u32 (!%p388_p2), %s394_s24, 4 }
  0x57   : > { %s935_s27 = sshll.u32 (!%p388_p2), %s401_s25, 8  ;;  %s429_s5 = sand.u32 (!%p388_p2), 1, %s1255_s12  }
  0x58   : > { %s937_s23 = sshll.u32 (!%p388_p2), %s1283_s19, 1  ;;  %s936_s28 = sshll.u32 (!%p388_p2), %s429_s5, 4 }
  0x59   : > { %p437_p3 = scmp.lt.s32.totalorder (!%p388_p2), %s937_s23, 3  ;;  %s1511_s4 = scalar_lea.vmem (!%p388_p2), [#allocation3], %s934_s30 }
  0x5a   : > { %s1513_s6 = scalar_lea.vmem (!%p388_p2), [#allocation4], %s935_s27  ;;  %s1515_s0 = scalar_lea.vmem (!%p388_p2), [#allocation5], %s936_s28 }
  0x5b   : > { %s1666_s23 = smov (!%p437_p3, %s937_s23), 3  ;;  %p939_p4 = scmp.ne.s32.totalorder %s1279_s18, 0 }
  0x5c   : > { %s938_s7 = sshll.u32 %s1666_s23, 1 }
  0x5d   : > { %s1509_s26 = scalar_lea.vmem %s1634_s2, %s938_s7  ;;  %447 = sbr.rel (%p939_p4) target bundleno = 103 (0x67), region = 112 }
  0x62   : > { %v1297_v34 = vmov 0.0  }
  0x63   : > { %448 = vst [vmem:[#allocation2 + $0x10] sm:$0xff] %v1297_v34 }
  0x64   : > { %449 = vst [vmem:[#allocation2] sm:$0xff] %v1297_v34 }
  0x65   : > { %450 = vst [vmem:[#allocation2 + $0x18] sm:$0xff] %v1297_v34 }
  0x66   : > { %451 = vst [vmem:[#allocation2 + $0x8] sm:$0xff] %v1297_v34 }
  0x67 PF: > { %v1006_v35 = vld [vmem:[%s1513_s6 + $0x70] sm:$0xf]  ;;  %v1102_v36 = vld [vmem:[%s1513_s6 + $0x74] sm:$0xf0]  ;;  %v1101_v40 = vld [vmem:[%s1513_s6 + $0x74] sm:$0xf] }
  0x68   : > { %v1070_v37 = vld [vmem:[%s1513_s6 + $0xf0] sm:$0xf]  ;;  %v1007_v38 = vor.u32 %v1102_v36, %v1006_v35  ;;  %v1118_v39 = vld [vmem:[%s1513_s6 + $0xf4] sm:$0xf0]  ;;  %v1008_v41 = vld [vmem:[%s1513_s6 + $0x78] sm:$0xf0] }
  0x69   : > { %v1071_v42 = vor.u32 %v1118_v39, %v1070_v37  ;;  %v1011_v43 = vor.u32 %v1101_v40, %v1008_v41  ;;  %v1117_v44 = vld [vmem:[%s1513_s6 + $0xf4] sm:$0xf]  ;;  %v1072_v45 = vld [vmem:[%s1513_s6 + $0xf8] sm:$0xf0]  ;;  %v998_v46 = vld [vmem:[%s1513_s6 + $0x60] sm:$0xf] }
  0x6a   : > { %660 = vmatpush.bf16.msra.mxu0 %v1007_v38  ;;  %v1075_v47 = vor.u32 %v1117_v44, %v1072_v45  ;;  %v1100_v48 = vld [vmem:[%s1513_s6 + $0x64] sm:$0xf0]  ;;  %v1062_v49 = vld [vmem:[%s1513_s6 + $0xe0] sm:$0xf]  ;;  %v1099_v53 = vld [vmem:[%s1513_s6 + $0x64] sm:$0xf] }
  0x6b   : > { %v1116_v50 = vld [vmem:[%s1513_s6 + $0xe4] sm:$0xf0]  ;;  %674 = vmatpush.bf16.msra.mxu1 %v1071_v42  ;;  %688 = vmatpush.bf16.msra.mxu2 %v1011_v43  ;;  %v999_v51 = vor.u32 %v1100_v48, %v998_v46  ;;  %v1000_v54 = vld [vmem:[%s1513_s6 + $0x68] sm:$0xf0]  ;;  %v1115_v55 = vld [vmem:[%s1513_s6 + $0xe4] sm:$0xf] }
  0x6c   : > { %v1063_v52 = vor.u32 %v1116_v50, %v1062_v49  ;;  %702 = vmatpush.bf16.msra.mxu3 %v1075_v47  ;;  %v1003_v56 = vor.u32 %v1099_v53, %v1000_v54  ;;  %v1064_v57 = vld [vmem:[%s1513_s6 + $0xe8] sm:$0xf0]  ;;  %v990_v58 = vld [vmem:[%s1513_s6 + $0x50] sm:$0xf]  ;;  %v1098_v59 = vld [vmem:[%s1513_s6 + $0x54] sm:$0xf0] }
  0x6d   : > { %v1067_v60 = vor.u32 %v1115_v55, %v1064_v57  ;;  %v1054_v61 = vld [vmem:[%s1513_s6 + $0xd0] sm:$0xf]  ;;  %v1114_v62 = vld [vmem:[%s1513_s6 + $0xd4] sm:$0xf0]  ;;  %v1097_v63 = vld [vmem:[%s1513_s6 + $0x54] sm:$0xf]  ;;  %v991_v0 = vor.u32 %v1098_v59, %v990_v58 }
  0x6e   : > { %661 = vmatpush.bf16.msra.mxu0 %v999_v51  ;;  %v992_v1 = vld [vmem:[%s1513_s6 + $0x58] sm:$0xf0]  ;;  %v1113_v2 = vld [vmem:[%s1513_s6 + $0xd4] sm:$0xf]  ;;  %v1055_v4 = vor.u32 %v1114_v62, %v1054_v61  ;;  %v982_v6 = vld [vmem:[%s1513_s6 + $0x40] sm:$0xf] }
  0x6f   : > { %v1056_v3 = vld [vmem:[%s1513_s6 + $0xd8] sm:$0xf0]  ;;  %675 = vmatpush.bf16.msra.mxu1 %v1063_v52  ;;  %689 = vmatpush.bf16.msra.mxu2 %v1003_v56  ;;  %v995_v5 = vor.u32 %v1097_v63, %v992_v1  ;;  %v1096_v7 = vld [vmem:[%s1513_s6 + $0x44] sm:$0xf0]  ;;  %v1046_v8 = vld [vmem:[%s1513_s6 + $0xc0] sm:$0xf] }
  0x70   : > { %703 = vmatpush.bf16.msra.mxu3 %v1067_v60  ;;  %v1059_v9 = vor.u32 %v1113_v2, %v1056_v3  ;;  %v1112_v10 = vld [vmem:[%s1513_s6 + $0xc4] sm:$0xf0]  ;;  %v1095_v11 = vld [vmem:[%s1513_s6 + $0x44] sm:$0xf]  ;;  %v984_v12 = vld [vmem:[%s1513_s6 + $0x48] sm:$0xf0]  ;;  %v983_v15 = vor.u32 %v1096_v7, %v982_v6 }
  0x71   : > { %v1111_v13 = vld [vmem:[%s1513_s6 + $0xc4] sm:$0xf]  ;;  %v1048_v14 = vld [vmem:[%s1513_s6 + $0xc8] sm:$0xf0]  ;;  %v1047_v16 = vor.u32 %v1112_v10, %v1046_v8  ;;  %v987_v17 = vor.u32 %v1095_v11, %v984_v12  ;;  %v974_v18 = vld [vmem:[%s1513_s6 + $0x30] sm:$0xf] }
  0x72   : > { %662 = vmatpush.bf16.msra.mxu0 %v991_v0  ;;  %v1094_v19 = vld [vmem:[%s1513_s6 + $0x34] sm:$0xf0]  ;;  %v1038_v20 = vld [vmem:[%s1513_s6 + $0xb0] sm:$0xf]  ;;  %v1051_v21 = vor.u32 %v1111_v13, %v1048_v14  ;;  %v1093_v23 = vld [vmem:[%s1513_s6 + $0x34] sm:$0xf] }
  0x73   : > { %676 = vmatpush.bf16.msra.mxu1 %v1055_v4  ;;  %690 = vmatpush.bf16.msra.mxu2 %v995_v5  ;;  %v1110_v22 = vld [vmem:[%s1513_s6 + $0xb4] sm:$0xf0]  ;;  %v976_v24 = vld [vmem:[%s1513_s6 + $0x38] sm:$0xf0]  ;;  %v1109_v25 = vld [vmem:[%s1513_s6 + $0xb4] sm:$0xf]  ;;  %v975_v27 = vor.u32 %v1094_v19, %v974_v18 }
  0x74   : > { %704 = vmatpush.bf16.msra.mxu3 %v1059_v9  ;;  %v1040_v26 = vld [vmem:[%s1513_s6 + $0xb8] sm:$0xf0]  ;;  %v1039_v28 = vor.u32 %v1110_v22, %v1038_v20  ;;  %v979_v29 = vor.u32 %v1093_v23, %v976_v24  ;;  %v966_v30 = vld [vmem:[%s1513_s6 + $0x20] sm:$0xf]  ;;  %v1092_v31 = vld [vmem:[%s1513_s6 + $0x24] sm:$0xf0] }
  0x75   : > { %v1030_v32 = vld [vmem:[%s1513_s6 + $0xa0] sm:$0xf]  ;;  %v1043_v33 = vor.u32 %v1109_v25, %v1040_v26  ;;  %v1108_v34 = vld [vmem:[%s1513_s6 + $0xa4] sm:$0xf0]  ;;  %v1091_v35 = vld [vmem:[%s1513_s6 + $0x24] sm:$0xf]  ;;  %v967_v39 = vor.u32 %v1092_v31, %v966_v30 }
  0x76   : > { %663 = vmatpush.bf16.msra.mxu0 %v983_v15  ;;  %v968_v36 = vld [vmem:[%s1513_s6 + $0x28] sm:$0xf0]  ;;  %v1107_v37 = vld [vmem:[%s1513_s6 + $0xa4] sm:$0xf]  ;;  %v1031_v40 = vor.u32 %v1108_v34, %v1030_v32  ;;  %v958_v42 = vld [vmem:[%s1513_s6 + $0x10] sm:$0xf] }
  0x77   : > { %677 = vmatpush.bf16.msra.mxu1 %v1047_v16  ;;  %691 = vmatpush.bf16.msra.mxu2 %v987_v17  ;;  %v1032_v38 = vld [vmem:[%s1513_s6 + $0xa8] sm:$0xf0]  ;;  %v971_v41 = vor.u32 %v1091_v35, %v968_v36  ;;  %v1090_v43 = vld [vmem:[%s1513_s6 + $0x14] sm:$0xf0]  ;;  %v1022_v44 = vld [vmem:[%s1513_s6 + $0x90] sm:$0xf] }
  0x78   : > { %705 = vmatpush.bf16.msra.mxu3 %v1051_v21  ;;  %v1035_v45 = vor.u32 %v1107_v37, %v1032_v38  ;;  %v1106_v46 = vld [vmem:[%s1513_s6 + $0x94] sm:$0xf0]  ;;  %v1089_v47 = vld [vmem:[%s1513_s6 + $0x14] sm:$0xf]  ;;  %v960_v48 = vld [vmem:[%s1513_s6 + $0x18] sm:$0xf0]  ;;  %v959_v51 = vor.u32 %v1090_v43, %v958_v42 }
  0x79   : > { %v1105_v49 = vld [vmem:[%s1513_s6 + $0x94] sm:$0xf]  ;;  %v1024_v50 = vld [vmem:[%s1513_s6 + $0x98] sm:$0xf0]  ;;  %v1023_v52 = vor.u32 %v1106_v46, %v1022_v44  ;;  %v963_v53 = vor.u32 %v1089_v47, %v960_v48  ;;  %v950_v54 = vld [vmem:[%s1513_s6] sm:$0xf] }
  0x7a   : > { %664 = vmatpush.bf16.msra.mxu0 %v975_v27  ;;  %v1088_v55 = vld [vmem:[%s1513_s6 + $0x4] sm:$0xf0]  ;;  %v1014_v56 = vld [vmem:[%s1513_s6 + $0x80] sm:$0xf]  ;;  %v1027_v57 = vor.u32 %v1105_v49, %v1024_v50  ;;  %v1087_v59 = vld [vmem:[%s1513_s6 + $0x4] sm:$0xf] }
  0x7b   : > { %678 = vmatpush.bf16.msra.mxu1 %v1039_v28  ;;  %692 = vmatpush.bf16.msra.mxu2 %v979_v29  ;;  %v1104_v58 = vld [vmem:[%s1513_s6 + $0x84] sm:$0xf0]  ;;  %v952_v60 = vld [vmem:[%s1513_s6 + $0x8] sm:$0xf0]  ;;  %v1103_v61 = vld [vmem:[%s1513_s6 + $0x84] sm:$0xf]  ;;  %v951_v63 = vor.u32 %v1088_v55, %v950_v54 }
  0x7c   : > { %706 = vmatpush.bf16.msra.mxu3 %v1043_v33  ;;  %v1016_v62 = vld [vmem:[%s1513_s6 + $0x88] sm:$0xf0]  ;;  %v942_v0 = vld [vmem:[%s1511_s4] sm:$0xf]  ;;  %v1086_v1 = vld [vmem:[%s1511_s4 + $0x4] sm:$0xf0]  ;;  %v1015_v2 = vor.u32 %v1104_v58, %v1014_v56  ;;  %v955_v3 = vor.u32 %v1087_v59, %v952_v60 }
  0x7d   : > { %v1085_v4 = vld [vmem:[%s1511_s4 + $0x4] sm:$0xf]  ;;  %v944_v5 = vld [vmem:[%s1511_s4 + $0x8] sm:$0xf0]  ;;  %v1019_v6 = vor.u32 %v1103_v61, %v1016_v62  ;;  %v943_v7 = vor.u32 %v1086_v1, %v942_v0  ;;  %p1076_p5 = scmp.ne.s32.totalorder %s1279_s18, 8 }
  0x7e   : > { %665 = vmatpush.bf16.msra.mxu0 %v967_v39  ;;  %v947_v8 = vor.u32 %v1085_v4, %v944_v5  ;;  %v452_v10 = vld [vmem:[#allocation2 + $0x10] sm:$0xff]  ;;  %v453_v15 = vld [vmem:[#allocation2] sm:$0xff]  ;;  %v454_v19 = vld [vmem:[#allocation2 + $0x18] sm:$0xff] }
  0x7f   : > { %679 = vmatpush.bf16.msra.mxu1 %v1031_v40  ;;  %693 = vmatpush.bf16.msra.mxu2 %v971_v41  ;;  %v455_v25 = vld [vmem:[#allocation2 + $0x8] sm:$0xff] }
  0x80   : > { %707 = vmatpush.bf16.msra.mxu3 %v1035_v45 }
  0x82   : > { %666 = vmatpush.bf16.msra.mxu0 %v959_v51 }
  0x83   : > { %680 = vmatpush.bf16.msra.mxu1 %v1023_v52  ;;  %694 = vmatpush.bf16.msra.mxu2 %v963_v53 }
  0x84   : > { %708 = vmatpush.bf16.msra.mxu3 %v1027_v57 }
  0x86   : > { %667 = vmatpush.bf16.msra.mxu0 %v951_v63 }
  0x87   : > { %681 = vmatpush.bf16.msra.mxu1 %v1015_v2  ;;  %695 = vmatpush.bf16.msra.mxu2 %v955_v3 }
  0x88   : > { %709 = vmatpush.bf16.msra.mxu3 %v1019_v6 }
  0x89   : > { %668 = vmatmul.bf16.vlgmr.msra.gmra.mxu0 %v943_v7 }
  0x8a   : > { %682 = vmatmul.bf16.vlgmr.msra.gmra.mxu1 %v947_v8  ;;  %696 = vmatmul.bf16.vlgmr.msra.gmra.mxu2 %v943_v7 }
  0x8b   : > { %710 = vmatmul.bf16.vlgmr.msra.gmra.mxu3 %v947_v8 }
 0x106   : > { %v669_v9 = vpop.f32.mrf.mxu0 }
 0x107   : > { %v683_v11 = vpop.f32.mrf.mxu1 }
 0x108   : > { %v684_v12 = vadd.f32 %v683_v11, %v669_v9 }
 0x10a   : > { %v716_v13 = vadd.f32 %v684_v12, %v452_v10 }
 0x10c   : > { %720 = vst [vmem:[#allocation2 + $0x10] sm:$0xff] %v716_v13 }
 0x10d   : > { %v697_v14 = vpop.f32.mrf.mxu2 }
 0x10e   : > { %v711_v16 = vpop.f32.mrf.mxu3  ;;  %v671_v17 = vpop.f32.mrf.mxu0 }
 0x10f   : > { %v712_v18 = vadd.f32 %v711_v16, %v697_v14  ;;  %v685_v20 = vpop.f32.mrf.mxu1 }
 0x110   : > { %v686_v21 = vadd.f32 %v685_v20, %v671_v17 }
 0x111   : > { %v717_v22 = vadd.f32 %v712_v18, %v453_v15 }
 0x112   : > { %v718_v23 = vadd.f32 %v686_v21, %v454_v19 }
 0x113   : > { %721 = vst [vmem:[#allocation2] sm:$0xff] %v717_v22 }
 0x114   : > { %722 = vst [vmem:[#allocation2 + $0x18] sm:$0xff] %v718_v23 }
 0x115   : > { %v699_v24 = vpop.f32.mrf.mxu2 }
 0x116   : > { %v713_v26 = vpop.f32.mrf.mxu3 }
 0x117   : > { %v714_v27 = vadd.f32 %v713_v26, %v699_v24  ;;  %727 = sbr.rel (%p1076_p5) target bundleno = 300 (0x12c), region = 116 }
 0x119   : > { %v719_v28 = vadd.f32 %v714_v27, %v455_v25 }
 0x11b   : > { %723 = vst [vmem:[#allocation2 + $0x8] sm:$0xff] %v719_v28 }
 0x11c   : > { %v728_v29 = vld [vmem:[#allocation2 + $0x10] sm:$0xff]  ;;  %v729_v30 = vld [vmem:[#allocation2] sm:$0xff]  ;;  %v730_v35 = vld [vmem:[#allocation2 + $0x18] sm:$0xff] }
 0x11d   : > { %v732_v31 = vld [vmem:[%s1509_s26] ss:$2 sm:$0x3]  ;;  %v1077_v34 = vld [vmem:[%s1509_s26 + $0x1] ss:$2 sm:$0x3] }
 0x11e   : > { %v734_v32 = vperm.slane %v732_v31, 0  ;;  %v735_v33 = vperm.slane %v732_v31, 1  ;;  %v745_v36 = vperm.slane %v1077_v34, 0  ;;  %v746_v37 = vperm.slane %v1077_v34, 1 }
 0x120   : > { %v738_v39 = vmul.f32 %v734_v32, %v728_v29  ;;  %v739_v40 = vmul.f32 %v735_v33, %v729_v30  ;;  %v740_v41 = vmul.f32 %v734_v32, %v730_v35 }
 0x122   : > { %v731_v38 = vld [vmem:[#allocation2 + $0x8] sm:$0xff]  ;;  %v749_v43 = vadd.f32 %v745_v36, %v738_v39  ;;  %v750_v44 = vadd.f32 %v746_v37, %v739_v40  ;;  %v751_v45 = vadd.f32 %v745_v36, %v740_v41 }
 0x123   : > { %v741_v42 = vmul.f32 %v735_v33, %v731_v38 }
 0x124   : > { %v753_v47 = vmax.f32 %v749_v43, 0.0  ;;  %v754_v48 = vmax.f32 %v750_v44, 0.0  ;;  %v755_v49 = vmax.f32 %v751_v45, 0.0 }
 0x125   : > { %v752_v46 = vadd.f32 %v746_v37, %v741_v42 }
 0x126   : > { %v757_v51 = vpack.c.bf16 %v754_v48, %v753_v47 }
 0x127   : > { %v756_v50 = vmax.f32 %v752_v46, 0.0 }
 0x128   : > { %759 = vst [vmem:[%s1515_s0] sm:$0xff] %v757_v51 }
 0x129   : > { %v758_v52 = vpack.c.bf16 %v756_v50, %v755_v49 }
 0x12b   : > { %760 = vst [vmem:[%s1515_s0 + $0x8] sm:$0xff] %v758_v52 }
 0x12c PF: > { %767 = sbr.rel (!%p1412_p12) target bundleno = 308 (0x134), region = 120  ;;  %s1119_s12 = sshll.u32 (%p1412_p12), %s1283_s19, 3 }
 0x12d   : > { %s773_s18 = scalar_lea.vmem (%p1412_p12), %s1635_s3, %s1119_s12 }
 0x12f   : > { %v804_v53 = vld [vmem:[%s1515_s0] sm:$0xff] (%p1412_p12) }
 0x130   : > { %805 = vst [vmem:[%s773_s18] sm:$0xff] (%p1412_p12), %v804_v53 }
 0x132   : > { %v806_v54 = vld [vmem:[%s1515_s0 + $0x8] sm:$0xff] }
 0x133   : > { %807 = vst [vmem:[%s773_s18 + $0x10] sm:$0xff] %v806_v54 }
 0x134 PF: > { %s13_s22 = sadd.s32 1, %s1295_s22   ;;  %s1646_s10 = sld [smem:[#allocation8_spill]] }
 0x135   : > { %p10_p6 = scmp.ge.s32.totalorder %s13_s22, 20   ;;  %s1647_s0 = sld [smem:[#allocation6_spill]] }
 0x136   : > { %s1648_s24 = sld [smem:[#allocation7_spill]]  ;;  %s1649_s12 = smov %s1259_s13 }
 0x137   : > { %s1650_s13 = smov %s1410_s9  ;;  %s1651_s14 = smov %s1267_s15 }
 0x138   : > { %s1652_s15 = smov %s1407_s8  ;;  %s1653_s16 = smov %s1275_s17 }
 0x139   : > { %s1655_s18 = smov %s1287_s20  ;;  %s1656_s19 = smov %s1291_s21 }
 0x13a   : > { %s1654_s17 = smov %s1646_s10  ;;  %12 = sbr.rel (!%p10_p6) target bundleno = 8 (0x8), region = 201 }
 0x13b   : > { %s1657_s20 = smov %s1647_s0 }
 0x13c   : > { %s1658_s21 = smov %s1648_s24 }

// kernel: my_script_module_forward.36
= control target key start
LH: loop header
LB: loop body
LE: loop exit
PB: predicated region body
PF: predicated region fallthrough
CT: control target
= control target key end

     0   :  { %s1178_s12 = smov 0   ;;  %s1180_s13 = smov 0   ;;  %s1404_s0 = inlined_call_operand.vmem [shape: bf16[16,256], index: 0, kind: input, shape index: {}]   ;;  %s1405_s1 = inlined_call_operand.vmem [shape: bf16[256,512], index: 1, kind: input, shape index: {}]   ;;  %s1406_s2 = inlined_call_operand.vmem [shape: f32[2,512], index: 2, kind: input, shape index: {}]   ;;  %s1407_s3 = inlined_call_operand.vmem [shape: bf16[16,512], index: 3, kind: output, shape index: {}]  }
   0x1   :  { %s1182_s14 = smov 0   ;;  %s1184_s15 = smov 0  }
   0x2   :  { %s1186_s16 = smov 0  }
   0x3 LB: > { %s28_s17 = sadd.s32 1, %s1152_s15  ;;  %s887_s18 = sadd.s32 4294967295, %s1156_s16   ;;  %s1156_s16 = sphi %s1186_s16, %s13_s16   ;;  %s1152_s15 = sphi %s1184_s15, %s1412_s15   ;;  %s1148_s14 = sphi %s1182_s14, %s1411_s14   ;;  %s1144_s13 = sphi %s1180_s13, %s1410_s13   ;;  %s1140_s12 = sphi %s1178_s12, %s1409_s12  }
   0x4   : > { %p30_p0 = scmp.ge.s32.totalorder %s28_s17, 2  ;;  %p76_p1 = scmp.ne.s32.totalorder %s1144_s13, %s1140_s12 }
   0x5   : > { %p77_p2 = scmp.eq.s32.totalorder %s1156_s16, 0  ;;  %p134_p4 = scmp.eq.s32.totalorder %s887_s18, 1 }
   0x6   : > { %s1414_s17 = smov (%p30_p0, %s28_s17), 0  ;;  %s69_s20 = sadd.s32 1, %s1144_s13 }
   0x7   : > { %p78_p3 = por %p77_p2, %p76_p1  ;;  %s65_s19 = ssub.s32 %s1152_s15, %s1414_s17 }
   0x8   : > { %p67_p5 = scmp.eq.s32.totalorder %s65_s19, 0  ;;  %p1213_p6 = por %p134_p4, %p76_p1 }
   0x9   : > { %p891_p7 = scmp.ge.s32.totalorder %s1156_s16, 2 }
   0xa   : > { %s1218_s22 = scalar_select %p67_p5, %s1144_s13, %s69_s20  }
   0xb   : > { %171 = sbr.rel (%p891_p7) target bundleno = 52 (0x34), region = 20 }
  0x10   : > { %174 = sbr.rel (!%p78_p3) target bundleno = 52 (0x34), region = 24  ;;  %s176_s23 = sand.u32 (%p78_p3), 1, %s1144_s13  }
  0x11   : > { %s1042_s24 = sshll.u32 (%p78_p3), %s1152_s15, 3  ;;  %s892_s25 = sshll.u32 (%p78_p3), %s176_s23, 8 }
  0x12   : > { %s1226_s28 = scalar_lea.vmem (%p78_p3), %s1405_s1, %s1042_s24  ;;  %s1231_s29 = scalar_lea.vmem (%p78_p3), [#allocation3], %s892_s25 }
  0x13   : > { %v275_v0 = vld [vmem:[%s1226_s28] sm:$0xff] (%p78_p3)  ;;  %v277_v1 = vld [vmem:[%s1226_s28 + $0x10] sm:$0xff] (%p78_p3) }
  0x14   : > { %v279_v2 = vld [vmem:[%s1226_s28 + $0x20] sm:$0xff] (%p78_p3)  ;;  %276 = vst [vmem:[%s1231_s29] sm:$0xff] (%p78_p3), %v275_v0  ;;  %v281_v3 = vld [vmem:[%s1226_s28 + $0x30] sm:$0xff] (%p78_p3) }
  0x15   : > { %278 = vst [vmem:[%s1231_s29 + $0x8] sm:$0xff] %v277_v1  ;;  %v283_v4 = vld [vmem:[%s1226_s28 + $0x40] sm:$0xff]  ;;  %v285_v5 = vld [vmem:[%s1226_s28 + $0x50] sm:$0xff] }
  0x16   : > { %280 = vst [vmem:[%s1231_s29 + $0x10] sm:$0xff] %v279_v2  ;;  %v287_v6 = vld [vmem:[%s1226_s28 + $0x60] sm:$0xff]  ;;  %v289_v7 = vld [vmem:[%s1226_s28 + $0x70] sm:$0xff] }
  0x17   : > { %282 = vst [vmem:[%s1231_s29 + $0x18] sm:$0xff] %v281_v3  ;;  %v291_v8 = vld [vmem:[%s1226_s28 + $0x80] sm:$0xff]  ;;  %v293_v9 = vld [vmem:[%s1226_s28 + $0x90] sm:$0xff] }
  0x18   : > { %284 = vst [vmem:[%s1231_s29 + $0x20] sm:$0xff] %v283_v4  ;;  %v295_v10 = vld [vmem:[%s1226_s28 + $0xa0] sm:$0xff]  ;;  %v297_v11 = vld [vmem:[%s1226_s28 + $0xb0] sm:$0xff] }
  0x19   : > { %286 = vst [vmem:[%s1231_s29 + $0x28] sm:$0xff] %v285_v5  ;;  %v299_v12 = vld [vmem:[%s1226_s28 + $0xc0] sm:$0xff]  ;;  %v301_v13 = vld [vmem:[%s1226_s28 + $0xd0] sm:$0xff] }
  0x1a   : > { %288 = vst [vmem:[%s1231_s29 + $0x30] sm:$0xff] %v287_v6  ;;  %v303_v14 = vld [vmem:[%s1226_s28 + $0xe0] sm:$0xff]  ;;  %v305_v15 = vld [vmem:[%s1226_s28 + $0xf0] sm:$0xff] }
  0x1b   : > { %290 = vst [vmem:[%s1231_s29 + $0x38] sm:$0xff] %v289_v7  ;;  %v307_v16 = vld [vmem:[%s1226_s28 + $0x100] sm:$0xff]  ;;  %v309_v17 = vld [vmem:[%s1226_s28 + $0x110] sm:$0xff] }
  0x1c   : > { %292 = vst [vmem:[%s1231_s29 + $0x40] sm:$0xff] %v291_v8  ;;  %v311_v18 = vld [vmem:[%s1226_s28 + $0x120] sm:$0xff]  ;;  %v313_v19 = vld [vmem:[%s1226_s28 + $0x130] sm:$0xff] }
  0x1d   : > { %294 = vst [vmem:[%s1231_s29 + $0x48] sm:$0xff] %v293_v9  ;;  %v315_v20 = vld [vmem:[%s1226_s28 + $0x140] sm:$0xff]  ;;  %v317_v21 = vld [vmem:[%s1226_s28 + $0x150] sm:$0xff] }
  0x1e   : > { %296 = vst [vmem:[%s1231_s29 + $0x50] sm:$0xff] %v295_v10  ;;  %v319_v22 = vld [vmem:[%s1226_s28 + $0x160] sm:$0xff]  ;;  %v321_v23 = vld [vmem:[%s1226_s28 + $0x170] sm:$0xff] }
  0x1f   : > { %298 = vst [vmem:[%s1231_s29 + $0x58] sm:$0xff] %v297_v11  ;;  %v323_v24 = vld [vmem:[%s1226_s28 + $0x180] sm:$0xff]  ;;  %v325_v25 = vld [vmem:[%s1226_s28 + $0x190] sm:$0xff] }
  0x20   : > { %300 = vst [vmem:[%s1231_s29 + $0x60] sm:$0xff] %v299_v12  ;;  %v327_v26 = vld [vmem:[%s1226_s28 + $0x1a0] sm:$0xff]  ;;  %v329_v27 = vld [vmem:[%s1226_s28 + $0x1b0] sm:$0xff] }
  0x21   : > { %302 = vst [vmem:[%s1231_s29 + $0x68] sm:$0xff] %v301_v13  ;;  %v331_v28 = vld [vmem:[%s1226_s28 + $0x1c0] sm:$0xff]  ;;  %v333_v29 = vld [vmem:[%s1226_s28 + $0x1d0] sm:$0xff] }
  0x22   : > { %304 = vst [vmem:[%s1231_s29 + $0x70] sm:$0xff] %v303_v14  ;;  %v335_v30 = vld [vmem:[%s1226_s28 + $0x1e0] sm:$0xff]  ;;  %v337_v31 = vld [vmem:[%s1226_s28 + $0x1f0] sm:$0xff] }
  0x23   : > { %306 = vst [vmem:[%s1231_s29 + $0x78] sm:$0xff] %v305_v15 }
  0x24   : > { %308 = vst [vmem:[%s1231_s29 + $0x80] sm:$0xff] %v307_v16 }
  0x25   : > { %310 = vst [vmem:[%s1231_s29 + $0x88] sm:$0xff] %v309_v17 }
  0x26   : > { %312 = vst [vmem:[%s1231_s29 + $0x90] sm:$0xff] %v311_v18 }
  0x27   : > { %314 = vst [vmem:[%s1231_s29 + $0x98] sm:$0xff] %v313_v19 }
  0x28   : > { %316 = vst [vmem:[%s1231_s29 + $0xa0] sm:$0xff] %v315_v20 }
  0x29   : > { %318 = vst [vmem:[%s1231_s29 + $0xa8] sm:$0xff] %v317_v21 }
  0x2a   : > { %320 = vst [vmem:[%s1231_s29 + $0xb0] sm:$0xff] %v319_v22 }
  0x2b   : > { %322 = vst [vmem:[%s1231_s29 + $0xb8] sm:$0xff] %v321_v23 }
  0x2c   : > { %324 = vst [vmem:[%s1231_s29 + $0xc0] sm:$0xff] %v323_v24 }
  0x2d   : > { %326 = vst [vmem:[%s1231_s29 + $0xc8] sm:$0xff] %v325_v25 }
  0x2e   : > { %328 = vst [vmem:[%s1231_s29 + $0xd0] sm:$0xff] %v327_v26 }
  0x2f   : > { %330 = vst [vmem:[%s1231_s29 + $0xd8] sm:$0xff] %v329_v27 }
  0x30   : > { %332 = vst [vmem:[%s1231_s29 + $0xe0] sm:$0xff] %v331_v28 }
  0x31   : > { %334 = vst [vmem:[%s1231_s29 + $0xe8] sm:$0xff] %v333_v29 }
  0x32   : > { %336 = vst [vmem:[%s1231_s29 + $0xf0] sm:$0xff] %v335_v30 }
  0x33   : > { %338 = vst [vmem:[%s1231_s29 + $0xf8] sm:$0xff] %v337_v31 }
  0x34 PF: > { %p895_p8 = scmp.ge.s32.totalorder %s1156_s16, 1  ;;  %p352_p9 = scmp.lt.s32.totalorder %s1156_s16, 3 }
  0x36   : > { %p353_p10 = pnand %p895_p8, %p352_p9 }
  0x37   : > { %s359_s30 = sand.u32 (!%p353_p10), 1, %s1140_s12   ;;  %s898_s20 = sshll.u32 (!%p353_p10), %s1148_s14, 1 }
  0x38   : > { %356 = sbr.rel (%p353_p10) target bundleno = 254 (0xfe), region = 66  ;;  %s896_s4 = sshll.u32 (!%p353_p10), %s359_s30, 8 }
  0x39   : > { %s1299_s5 = scalar_lea.vmem (!%p353_p10), [#allocation3], %s896_s4  ;;  %p411_p11 = scmp.lt.s32.totalorder (!%p353_p10), %s898_s20, 3 }
  0x3a   : > { %s897_s27 = sshll.u32 (!%p353_p10), %s359_s30, 4 }
  0x3b   : > { %s395_s28 = scalar_lea.vmem (!%p353_p10), [#allocation4], %s897_s27 }
  0x3d   : > { %v966_v32 = vld [vmem:[%s1299_s5 + $0x70] sm:$0xf]  ;;  %v1060_v33 = vld [vmem:[%s1299_s5 + $0x74] sm:$0xf0]  ;;  %v1059_v37 = vld [vmem:[%s1299_s5 + $0x74] sm:$0xf] }
  0x3e   : > { %v1030_v34 = vld [vmem:[%s1299_s5 + $0xf0] sm:$0xf]  ;;  %v967_v35 = vor.u32 %v1060_v33, %v966_v32  ;;  %v1076_v36 = vld [vmem:[%s1299_s5 + $0xf4] sm:$0xf0]  ;;  %v968_v38 = vld [vmem:[%s1299_s5 + $0x78] sm:$0xf0] }
  0x3f   : > { %v1031_v39 = vor.u32 %v1076_v36, %v1030_v34  ;;  %v971_v40 = vor.u32 %v1059_v37, %v968_v38  ;;  %v1075_v41 = vld [vmem:[%s1299_s5 + $0xf4] sm:$0xf]  ;;  %v1032_v42 = vld [vmem:[%s1299_s5 + $0xf8] sm:$0xf0]  ;;  %v958_v43 = vld [vmem:[%s1299_s5 + $0x60] sm:$0xf] }
  0x40   : > { %634 = vmatpush.bf16.msra.mxu0 %v967_v35  ;;  %v1035_v44 = vor.u32 %v1075_v41, %v1032_v42  ;;  %v1058_v45 = vld [vmem:[%s1299_s5 + $0x64] sm:$0xf0]  ;;  %v1022_v46 = vld [vmem:[%s1299_s5 + $0xe0] sm:$0xf]  ;;  %v1057_v50 = vld [vmem:[%s1299_s5 + $0x64] sm:$0xf] }
  0x41   : > { %v1074_v47 = vld [vmem:[%s1299_s5 + $0xe4] sm:$0xf0]  ;;  %648 = vmatpush.bf16.msra.mxu1 %v1031_v39  ;;  %662 = vmatpush.bf16.msra.mxu2 %v971_v40  ;;  %v959_v48 = vor.u32 %v1058_v45, %v958_v43  ;;  %v960_v51 = vld [vmem:[%s1299_s5 + $0x68] sm:$0xf0]  ;;  %v1073_v52 = vld [vmem:[%s1299_s5 + $0xe4] sm:$0xf] }
  0x42   : > { %v1023_v49 = vor.u32 %v1074_v47, %v1022_v46  ;;  %676 = vmatpush.bf16.msra.mxu3 %v1035_v44  ;;  %v963_v53 = vor.u32 %v1057_v50, %v960_v51  ;;  %v1024_v54 = vld [vmem:[%s1299_s5 + $0xe8] sm:$0xf0]  ;;  %v950_v55 = vld [vmem:[%s1299_s5 + $0x50] sm:$0xf]  ;;  %v1056_v56 = vld [vmem:[%s1299_s5 + $0x54] sm:$0xf0] }
  0x43   : > { %v1027_v57 = vor.u32 %v1073_v52, %v1024_v54  ;;  %v1014_v58 = vld [vmem:[%s1299_s5 + $0xd0] sm:$0xf]  ;;  %v1072_v59 = vld [vmem:[%s1299_s5 + $0xd4] sm:$0xf0]  ;;  %v1055_v60 = vld [vmem:[%s1299_s5 + $0x54] sm:$0xf]  ;;  %v951_v61 = vor.u32 %v1056_v56, %v950_v55 }
  0x44   : > { %635 = vmatpush.bf16.msra.mxu0 %v959_v48  ;;  %v952_v62 = vld [vmem:[%s1299_s5 + $0x58] sm:$0xf0]  ;;  %v1071_v63 = vld [vmem:[%s1299_s5 + $0xd4] sm:$0xf]  ;;  %v1015_v1 = vor.u32 %v1072_v59, %v1014_v58  ;;  %v942_v3 = vld [vmem:[%s1299_s5 + $0x40] sm:$0xf] }
  0x45   : > { %v1016_v0 = vld [vmem:[%s1299_s5 + $0xd8] sm:$0xf0]  ;;  %649 = vmatpush.bf16.msra.mxu1 %v1023_v49  ;;  %663 = vmatpush.bf16.msra.mxu2 %v963_v53  ;;  %v955_v2 = vor.u32 %v1055_v60, %v952_v62  ;;  %v1054_v4 = vld [vmem:[%s1299_s5 + $0x44] sm:$0xf0]  ;;  %v1006_v5 = vld [vmem:[%s1299_s5 + $0xc0] sm:$0xf] }
  0x46   : > { %677 = vmatpush.bf16.msra.mxu3 %v1027_v57  ;;  %v1019_v6 = vor.u32 %v1071_v63, %v1016_v0  ;;  %v1070_v7 = vld [vmem:[%s1299_s5 + $0xc4] sm:$0xf0]  ;;  %v1053_v8 = vld [vmem:[%s1299_s5 + $0x44] sm:$0xf]  ;;  %v944_v9 = vld [vmem:[%s1299_s5 + $0x48] sm:$0xf0]  ;;  %v943_v12 = vor.u32 %v1054_v4, %v942_v3 }
  0x47   : > { %v1069_v10 = vld [vmem:[%s1299_s5 + $0xc4] sm:$0xf]  ;;  %v1008_v11 = vld [vmem:[%s1299_s5 + $0xc8] sm:$0xf0]  ;;  %v1007_v13 = vor.u32 %v1070_v7, %v1006_v5  ;;  %v947_v14 = vor.u32 %v1053_v8, %v944_v9  ;;  %v934_v15 = vld [vmem:[%s1299_s5 + $0x30] sm:$0xf] }
  0x48   : > { %636 = vmatpush.bf16.msra.mxu0 %v951_v61  ;;  %v1052_v16 = vld [vmem:[%s1299_s5 + $0x34] sm:$0xf0]  ;;  %v998_v17 = vld [vmem:[%s1299_s5 + $0xb0] sm:$0xf]  ;;  %v1011_v18 = vor.u32 %v1069_v10, %v1008_v11  ;;  %v1051_v20 = vld [vmem:[%s1299_s5 + $0x34] sm:$0xf] }
  0x49   : > { %650 = vmatpush.bf16.msra.mxu1 %v1015_v1  ;;  %664 = vmatpush.bf16.msra.mxu2 %v955_v2  ;;  %v1068_v19 = vld [vmem:[%s1299_s5 + $0xb4] sm:$0xf0]  ;;  %v936_v21 = vld [vmem:[%s1299_s5 + $0x38] sm:$0xf0]  ;;  %v1067_v22 = vld [vmem:[%s1299_s5 + $0xb4] sm:$0xf]  ;;  %v935_v24 = vor.u32 %v1052_v16, %v934_v15 }
  0x4a   : > { %678 = vmatpush.bf16.msra.mxu3 %v1019_v6  ;;  %v1000_v23 = vld [vmem:[%s1299_s5 + $0xb8] sm:$0xf0]  ;;  %v999_v25 = vor.u32 %v1068_v19, %v998_v17  ;;  %v939_v26 = vor.u32 %v1051_v20, %v936_v21  ;;  %v926_v27 = vld [vmem:[%s1299_s5 + $0x20] sm:$0xf]  ;;  %v1050_v28 = vld [vmem:[%s1299_s5 + $0x24] sm:$0xf0] }
  0x4b   : > { %v990_v29 = vld [vmem:[%s1299_s5 + $0xa0] sm:$0xf]  ;;  %v1003_v30 = vor.u32 %v1067_v22, %v1000_v23  ;;  %v1066_v31 = vld [vmem:[%s1299_s5 + $0xa4] sm:$0xf0]  ;;  %v1049_v32 = vld [vmem:[%s1299_s5 + $0x24] sm:$0xf]  ;;  %v927_v36 = vor.u32 %v1050_v28, %v926_v27 }
  0x4c   : > { %637 = vmatpush.bf16.msra.mxu0 %v943_v12  ;;  %v928_v33 = vld [vmem:[%s1299_s5 + $0x28] sm:$0xf0]  ;;  %v1065_v34 = vld [vmem:[%s1299_s5 + $0xa4] sm:$0xf]  ;;  %v991_v37 = vor.u32 %v1066_v31, %v990_v29  ;;  %v918_v39 = vld [vmem:[%s1299_s5 + $0x10] sm:$0xf] }
  0x4d   : > { %651 = vmatpush.bf16.msra.mxu1 %v1007_v13  ;;  %665 = vmatpush.bf16.msra.mxu2 %v947_v14  ;;  %v992_v35 = vld [vmem:[%s1299_s5 + $0xa8] sm:$0xf0]  ;;  %v931_v38 = vor.u32 %v1049_v32, %v928_v33  ;;  %v1048_v40 = vld [vmem:[%s1299_s5 + $0x14] sm:$0xf0]  ;;  %v982_v41 = vld [vmem:[%s1299_s5 + $0x90] sm:$0xf] }
  0x4e   : > { %679 = vmatpush.bf16.msra.mxu3 %v1011_v18  ;;  %v995_v42 = vor.u32 %v1065_v34, %v992_v35  ;;  %v1064_v43 = vld [vmem:[%s1299_s5 + $0x94] sm:$0xf0]  ;;  %v1047_v44 = vld [vmem:[%s1299_s5 + $0x14] sm:$0xf]  ;;  %v920_v45 = vld [vmem:[%s1299_s5 + $0x18] sm:$0xf0]  ;;  %v919_v48 = vor.u32 %v1048_v40, %v918_v39 }
  0x4f   : > { %v1063_v46 = vld [vmem:[%s1299_s5 + $0x94] sm:$0xf]  ;;  %v984_v47 = vld [vmem:[%s1299_s5 + $0x98] sm:$0xf0]  ;;  %v983_v49 = vor.u32 %v1064_v43, %v982_v41  ;;  %v923_v50 = vor.u32 %v1047_v44, %v920_v45  ;;  %v910_v51 = vld [vmem:[%s1299_s5] sm:$0xf] }
  0x50   : > { %638 = vmatpush.bf16.msra.mxu0 %v935_v24  ;;  %v1046_v52 = vld [vmem:[%s1299_s5 + $0x4] sm:$0xf0]  ;;  %v974_v53 = vld [vmem:[%s1299_s5 + $0x80] sm:$0xf]  ;;  %v987_v54 = vor.u32 %v1063_v46, %v984_v47  ;;  %v1045_v56 = vld [vmem:[%s1299_s5 + $0x4] sm:$0xf] }
  0x51   : > { %652 = vmatpush.bf16.msra.mxu1 %v999_v25  ;;  %666 = vmatpush.bf16.msra.mxu2 %v939_v26  ;;  %v1062_v55 = vld [vmem:[%s1299_s5 + $0x84] sm:$0xf0]  ;;  %v912_v57 = vld [vmem:[%s1299_s5 + $0x8] sm:$0xf0]  ;;  %v1061_v58 = vld [vmem:[%s1299_s5 + $0x84] sm:$0xf]  ;;  %v911_v60 = vor.u32 %v1046_v52, %v910_v51 }
  0x52   : > { %680 = vmatpush.bf16.msra.mxu3 %v1003_v30  ;;  %v976_v59 = vld [vmem:[%s1299_s5 + $0x88] sm:$0xf0]  ;;  %v902_v61 = vld [vmem:[%s1404_s0] sm:$0xf]  ;;  %v1044_v62 = vld [vmem:[%s1404_s0 + $0x4] sm:$0xf0]  ;;  %v975_v63 = vor.u32 %v1062_v55, %v974_v53  ;;  %v915_v0 = vor.u32 %v1045_v56, %v912_v57 }
  0x53   : > { %v1043_v1 = vld [vmem:[%s1404_s0 + $0x4] sm:$0xf]  ;;  %v904_v2 = vld [vmem:[%s1404_s0 + $0x8] sm:$0xf0]  ;;  %v979_v3 = vor.u32 %v1061_v58, %v976_v59  ;;  %v903_v4 = vor.u32 %v1044_v62, %v902_v61  ;;  %s1416_s20 = smov (!%p411_p11, %s898_s20), 3  ;;  %s1077_s12 = sshll.u32 (%p1213_p6), %s1148_s14, 3 }
  0x54   : > { %639 = vmatpush.bf16.msra.mxu0 %v927_v36  ;;  %v907_v5 = vor.u32 %v1043_v1, %v904_v2  ;;  %s899_s23 = sshll.u32 %s1416_s20, 1  ;;  %s742_s4 = scalar_lea.vmem (%p1213_p6), %s1407_s3, %s1077_s12 }
  0x55   : > { %653 = vmatpush.bf16.msra.mxu1 %v991_v37  ;;  %667 = vmatpush.bf16.msra.mxu2 %v931_v38  ;;  %s414_s26 = scalar_lea.vmem %s1406_s2, %s899_s23 }
  0x56   : > { %681 = vmatpush.bf16.msra.mxu3 %v995_v42  ;;  %v705_v7 = vld [vmem:[%s414_s26] ss:$2 sm:$0x3]  ;;  %v1036_v11 = vld [vmem:[%s414_s26 + $0x1] ss:$2 sm:$0x3] }
  0x57   : > { %v707_v10 = vperm.slane %v705_v7, 0  ;;  %v718_v13 = vperm.slane %v1036_v11, 0  ;;  %v708_v15 = vperm.slane %v705_v7, 1  ;;  %v719_v18 = vperm.slane %v1036_v11, 1 }
  0x58   : > { %640 = vmatpush.bf16.msra.mxu0 %v919_v48 }
  0x59   : > { %654 = vmatpush.bf16.msra.mxu1 %v983_v49  ;;  %668 = vmatpush.bf16.msra.mxu2 %v923_v50 }
  0x5a   : > { %682 = vmatpush.bf16.msra.mxu3 %v987_v54 }
  0x5c   : > { %641 = vmatpush.bf16.msra.mxu0 %v911_v60 }
  0x5d   : > { %655 = vmatpush.bf16.msra.mxu1 %v975_v63  ;;  %669 = vmatpush.bf16.msra.mxu2 %v915_v0 }
  0x5e   : > { %683 = vmatpush.bf16.msra.mxu3 %v979_v3 }
  0x5f   : > { %642 = vmatmul.bf16.vlgmr.msra.gmra.mxu0 %v903_v4 }
  0x60   : > { %656 = vmatmul.bf16.vlgmr.msra.gmra.mxu1 %v907_v5  ;;  %670 = vmatmul.bf16.vlgmr.msra.gmra.mxu2 %v903_v4 }
  0x61   : > { %684 = vmatmul.bf16.vlgmr.msra.gmra.mxu3 %v907_v5 }
  0xdc   : > { %v643_v6 = vpop.f32.mrf.mxu0 }
  0xdd   : > { %v657_v8 = vpop.f32.mrf.mxu1 }
  0xde   : > { %v658_v9 = vadd.f32 %v657_v8, %v643_v6 }
  0xe0   : > { %v711_v12 = vmul.f32 %v707_v10, %v658_v9 }
  0xe2   : > { %v722_v21 = vadd.f32 %v718_v13, %v711_v12 }
  0xe3   : > { %v671_v14 = vpop.f32.mrf.mxu2 }
  0xe4   : > { %v685_v16 = vpop.f32.mrf.mxu3  ;;  %v645_v19 = vpop.f32.mrf.mxu0 }
  0xe5   : > { %v686_v17 = vadd.f32 %v685_v16, %v671_v14  ;;  %v659_v20 = vpop.f32.mrf.mxu1 }
  0xe6   : > { %v660_v24 = vadd.f32 %v659_v20, %v645_v19 }
  0xe7   : > { %v712_v22 = vmul.f32 %v708_v15, %v686_v17 }
  0xe8   : > { %v713_v28 = vmul.f32 %v707_v10, %v660_v24 }
  0xe9   : > { %v723_v23 = vadd.f32 %v719_v18, %v712_v22 }
  0xea   : > { %v724_v31 = vadd.f32 %v718_v13, %v713_v28 }
  0xeb   : > { %v726_v25 = vpack.c.bf16 %v723_v23, %v722_v21  ;;  %v673_v26 = vpop.f32.mrf.mxu2 }
  0xec   : > { %v687_v27 = vpop.f32.mrf.mxu3 }
  0xed   : > { %728 = vst [vmem:[%s395_s28] sm:$0xff] %v726_v25  ;;  %v688_v29 = vadd.f32 %v687_v27, %v673_v26 }
  0xef   : > { %v714_v30 = vmul.f32 %v708_v15, %v688_v29 }
  0xf1   : > { %v725_v32 = vadd.f32 %v719_v18, %v714_v30  ;;  %736 = sbr.rel (!%p1213_p6) target bundleno = 254 (0xfe), region = 82 }
  0xf3   : > { %v727_v33 = vpack.c.bf16 %v725_v32, %v724_v31 }
  0xf4   : > { %v773_v34 = vld [vmem:[%s395_s28] sm:$0xff] (%p1213_p6) }
  0xf5   : > { %729 = vst [vmem:[%s395_s28 + $0x8] sm:$0xff] %v727_v33 }
  0xf6   : > { %774 = vst [vmem:[%s742_s4] sm:$0xff] %v773_v34 }
  0xfc   : > { %v775_v35 = vld [vmem:[%s395_s28 + $0x8] sm:$0xff] }
  0xfd   : > { %776 = vst [vmem:[%s742_s4 + $0x10] sm:$0xff] %v775_v35 }
  0xfe PF: > { %s13_s16 = sadd.s32 1, %s1156_s16   ;;  %s1409_s12 = smov %s1144_s13 }
  0xff   : > { %p10_p12 = scmp.ge.s32.totalorder %s13_s16, 4   ;;  %s1410_s13 = smov %s1218_s22 }
 0x100   : > { %s1411_s14 = smov %s1152_s15  ;;  %s1412_s15 = smov %s1414_s17 }
 0x101   :  { %12 = sbr.rel (!%p10_p12) target bundleno = 3 (0x3), region = 158 }

// kernel: my_script_module_forward.38
= control target key start
LH: loop header
LB: loop body
LE: loop exit
PB: predicated region body
PF: predicated region fallthrough
CT: control target
= control target key end

     0   :  { %s1632_s0 = inlined_call_operand.vmem [shape: bf16[16,4608], index: 0, kind: input, shape index: {}]   ;;  %s1633_s1 = inlined_call_operand.vmem [shape: bf16[4608,512], index: 1, kind: input, shape index: {}]   ;;  %s1634_s2 = inlined_call_operand.vmem [shape: f32[2,512], index: 2, kind: input, shape index: {}]   ;;  %s1635_s3 = inlined_call_operand.vmem [shape: bf16[16,512], index: 3, kind: output, shape index: {}]  }
   0x1   :  { %1638 = sst [smem:[#allocation9_spill]] %s1632_s0 }
   0x2   :  { %s1318_s12 = smov 0   ;;  %s1320_s13 = smov 0  }
   0x3   :  { %s1322_s14 = smov 0   ;;  %s1324_s15 = smov 0  }
   0x4   :  { %s1326_s16 = smov 0   ;;  %s1328_s17 = smov 0  }
   0x5   :  { %s1330_s18 = smov 0   ;;  %s1332_s19 = smov 0  }
   0x6   :  { %s1334_s20 = smov 0   ;;  %s1336_s21 = smov 0  }
   0x7   :  { %s1338_s22 = smov 0  }
   0x8 LB: > { %s921_s23 = sadd.s32 4294967295, %s1295_s22   ;;  %s25_s24 = sadd.s32 1, %s1287_s20  ;;  %s1295_s22 = sphi %s1338_s22, %s13_s22   ;;  %s1291_s21 = sphi %s1336_s21, %s1658_s21   ;;  %s1287_s20 = sphi %s1334_s20, %s1657_s20   ;;  %s1283_s19 = sphi %s1332_s19, %s1656_s19   ;;  %s1279_s18 = sphi %s1330_s18, %s1655_s18   ;;  %s1275_s17 = sphi %s1328_s17, %s1654_s17   ;;  %s1271_s16 = sphi %s1326_s16, %s1653_s16   ;;  %s1267_s15 = sphi %s1324_s15, %s1652_s15   ;;  %s1263_s14 = sphi %s1322_s14, %s1651_s14   ;;  %s1259_s13 = sphi %s1320_s13, %s1650_s13   ;;  %s1255_s12 = sphi %s1318_s12, %s1649_s12  }
   0x9   : > { %p26_p0 = scmp.ge.s32.totalorder %s25_s24, 18  ;;  %s28_s25 = sadd.s32 1, %s1291_s21 }
   0xa   : > { %s41_s26 = sadd.s32 1, %s1275_s17  ;;  %p48_p1 = scmp.ne.s32.totalorder %s1275_s17, %s1271_s16 }
   0xb   : > { %s1660_s24 = smov (%p26_p0, %s25_s24), 0  ;;  %s1662_s25 = smov (!%p26_p0, %s28_s25), %s1291_s21 }
   0xc   : > { %1639 = sst [smem:[#allocation6_spill]] %s1660_s24  ;;  %s37_s27 = ssub.s32 %s1287_s20, %s1660_s24 }
   0xd   : > { %p49_p2 = scmp.eq.s32.totalorder %s1295_s22, 0  ;;  %p30_p3 = scmp.ge.s32.totalorder %s1662_s25, 2 }
   0xe   : > { %p39_p4 = scmp.eq.s32.totalorder %s37_s27, 0  ;;  %s69_s29 = sadd.s32 1, %s1267_s15 }
   0xf   : > { %p1385_p5 = por %p49_p2, %p48_p1  ;;  %s1664_s25 = smov (%p30_p3, %s1662_s25), 0 }
  0x10   : > { %1641 = sst [smem:[#allocation7_spill]] %s1664_s25  ;;  %s65_s4 = ssub.s32 %s1291_s21, %s1664_s25 }
  0x11   : > { %s1393_s30 = scalar_select %p39_p4, %s1275_s17, %s41_s26  }
  0x12   : > { %p76_p6 = scmp.ne.s32.totalorder %s1267_s15, %s1263_s14  ;;  %s66_s5 = sor.u32 %s65_s4, %s37_s27 }
  0x13   : > { %1642 = sst [smem:[#allocation8_spill]] %s1393_s30  ;;  %p121_p7 = scmp.eq.s32.totalorder %s65_s4, 0 }
  0x14   : > { %p67_p8 = scmp.eq.s32.totalorder %s66_s5, 0  ;;  %p1399_p9 = por %p76_p6, %p49_p2 }
  0x15   : > { %s123_s7 = sadd.s32 1, %s1259_s13  ;;  %p133_p10 = scmp.ne.s32.totalorder %s1259_s13, %s1255_s12 }
  0x16   : > { %s1407_s8 = scalar_select %p67_p8, %s1267_s15, %s69_s29  }
  0x17   : > { %s1410_s9 = scalar_select %p121_p7, %s1259_s13, %s123_s7  }
  0x18   : > { %p134_p11 = scmp.eq.s32.totalorder %s921_s23, 35  ;;  %p924_p13 = scmp.ge.s32.totalorder %s1295_s22, 36 }
  0x1a   : > { %p1412_p12 = por %p134_p11, %p133_p10  ;;  %156 = sbr.rel (%p924_p13) target bundleno = 82 (0x52), region = 16 }
  0x1f   : > { %159 = sbr.rel (!%p1385_p5) target bundleno = 43 (0x2b), region = 20  ;;  %s161_s11 = sand.u32 (%p1385_p5), 1, %s1275_s17  }
  0x20   : > { %s1083_s26 = sshll.u32 (%p1385_p5), %s1287_s20, 3  ;;  %s925_s27 = sshll.u32 (%p1385_p5), %s161_s11, 4 }
  0x21   : > { %s1645_s0 = sld [smem:[#allocation9_spill]] (%p1385_p5)  ;;  %s163_s23 = scalar_lea.vmem (%p1385_p5), [#allocation3], %s925_s27 }
  0x27   : > { %s169_s5 = scalar_lea.vmem %s1645_s0, %s1083_s26 }
  0x28   : > { %v200_v0 = vld [vmem:[%s169_s5] sm:$0xff]  ;;  %v202_v1 = vld [vmem:[%s169_s5 + $0x90] sm:$0xff] }
  0x29   : > { %201 = vst [vmem:[%s163_s23] sm:$0xff] %v200_v0 }
  0x2a   : > { %203 = vst [vmem:[%s163_s23 + $0x8] sm:$0xff] %v202_v1 }
  0x2b PF: > { %209 = sbr.rel (!%p1399_p9) target bundleno = 82 (0x52), region = 58  ;;  %s211_s28 = sand.u32 (%p1399_p9), 1, %s1267_s15  }
  0x2c   : > { %s930_s7 = sshll.u32 (%p1399_p9), %s1291_s21, 1  ;;  %s928_s25 = sshll.u32 (%p1399_p9), %s211_s28, 8 }
  0x2d   : > { %s1084_s11 = sshll.u32 (%p1399_p9), %s1287_s20, 7  ;;  %s1437_s6 = scalar_lea.vmem (%p1399_p9), [#allocation4], %s928_s25 }
  0x2e   : > { %s217_s24 = sadd.s32 (%p1399_p9), %s1084_s11, %s930_s7 }
  0x2f   : > { %s932_s30 = sshll.u32 (%p1399_p9), %s217_s24, 2 }
  0x30   : > { %s1432_s4 = scalar_lea.vmem %s1633_s1, %s932_s30 }
  0x31   : > { %v310_v2 = vld [vmem:[%s1432_s4] sm:$0xff]  ;;  %v312_v3 = vld [vmem:[%s1432_s4 + $0x10] sm:$0xff] }
  0x32   : > { %v314_v4 = vld [vmem:[%s1432_s4 + $0x20] sm:$0xff]  ;;  %311 = vst [vmem:[%s1437_s6] sm:$0xff] %v310_v2  ;;  %v316_v5 = vld [vmem:[%s1432_s4 + $0x30] sm:$0xff] }
  0x33   : > { %313 = vst [vmem:[%s1437_s6 + $0x8] sm:$0xff] %v312_v3  ;;  %v318_v6 = vld [vmem:[%s1432_s4 + $0x40] sm:$0xff]  ;;  %v320_v7 = vld [vmem:[%s1432_s4 + $0x50] sm:$0xff] }
  0x34   : > { %315 = vst [vmem:[%s1437_s6 + $0x10] sm:$0xff] %v314_v4  ;;  %v322_v8 = vld [vmem:[%s1432_s4 + $0x60] sm:$0xff]  ;;  %v324_v9 = vld [vmem:[%s1432_s4 + $0x70] sm:$0xff] }
  0x35   : > { %317 = vst [vmem:[%s1437_s6 + $0x18] sm:$0xff] %v316_v5  ;;  %v326_v10 = vld [vmem:[%s1432_s4 + $0x80] sm:$0xff]  ;;  %v328_v11 = vld [vmem:[%s1432_s4 + $0x90] sm:$0xff] }
  0x36   : > { %319 = vst [vmem:[%s1437_s6 + $0x20] sm:$0xff] %v318_v6  ;;  %v330_v12 = vld [vmem:[%s1432_s4 + $0xa0] sm:$0xff]  ;;  %v332_v13 = vld [vmem:[%s1432_s4 + $0xb0] sm:$0xff] }
  0x37   : > { %321 = vst [vmem:[%s1437_s6 + $0x28] sm:$0xff] %v320_v7  ;;  %v334_v14 = vld [vmem:[%s1432_s4 + $0xc0] sm:$0xff]  ;;  %v336_v15 = vld [vmem:[%s1432_s4 + $0xd0] sm:$0xff] }
  0x38   : > { %323 = vst [vmem:[%s1437_s6 + $0x30] sm:$0xff] %v322_v8  ;;  %v338_v16 = vld [vmem:[%s1432_s4 + $0xe0] sm:$0xff]  ;;  %v340_v17 = vld [vmem:[%s1432_s4 + $0xf0] sm:$0xff] }
  0x39   : > { %325 = vst [vmem:[%s1437_s6 + $0x38] sm:$0xff] %v324_v9  ;;  %v342_v18 = vld [vmem:[%s1432_s4 + $0x100] sm:$0xff]  ;;  %v344_v19 = vld [vmem:[%s1432_s4 + $0x110] sm:$0xff] }
  0x3a   : > { %327 = vst [vmem:[%s1437_s6 + $0x40] sm:$0xff] %v326_v10  ;;  %v346_v20 = vld [vmem:[%s1432_s4 + $0x120] sm:$0xff]  ;;  %v348_v21 = vld [vmem:[%s1432_s4 + $0x130] sm:$0xff] }
  0x3b   : > { %329 = vst [vmem:[%s1437_s6 + $0x48] sm:$0xff] %v328_v11  ;;  %v350_v22 = vld [vmem:[%s1432_s4 + $0x140] sm:$0xff]  ;;  %v352_v23 = vld [vmem:[%s1432_s4 + $0x150] sm:$0xff] }
  0x3c   : > { %331 = vst [vmem:[%s1437_s6 + $0x50] sm:$0xff] %v330_v12  ;;  %v354_v24 = vld [vmem:[%s1432_s4 + $0x160] sm:$0xff]  ;;  %v356_v25 = vld [vmem:[%s1432_s4 + $0x170] sm:$0xff] }
  0x3d   : > { %333 = vst [vmem:[%s1437_s6 + $0x58] sm:$0xff] %v332_v13  ;;  %v358_v26 = vld [vmem:[%s1432_s4 + $0x180] sm:$0xff]  ;;  %v360_v27 = vld [vmem:[%s1432_s4 + $0x190] sm:$0xff] }
  0x3e   : > { %335 = vst [vmem:[%s1437_s6 + $0x60] sm:$0xff] %v334_v14  ;;  %v362_v28 = vld [vmem:[%s1432_s4 + $0x1a0] sm:$0xff]  ;;  %v364_v29 = vld [vmem:[%s1432_s4 + $0x1b0] sm:$0xff] }
  0x3f   : > { %337 = vst [vmem:[%s1437_s6 + $0x68] sm:$0xff] %v336_v15  ;;  %v366_v30 = vld [vmem:[%s1432_s4 + $0x1c0] sm:$0xff]  ;;  %v368_v31 = vld [vmem:[%s1432_s4 + $0x1d0] sm:$0xff] }
  0x40   : > { %339 = vst [vmem:[%s1437_s6 + $0x70] sm:$0xff] %v338_v16  ;;  %v370_v32 = vld [vmem:[%s1432_s4 + $0x1e0] sm:$0xff]  ;;  %v372_v33 = vld [vmem:[%s1432_s4 + $0x1f0] sm:$0xff] }
  0x41   : > { %341 = vst [vmem:[%s1437_s6 + $0x78] sm:$0xff] %v340_v17 }
  0x42   : > { %343 = vst [vmem:[%s1437_s6 + $0x80] sm:$0xff] %v342_v18 }
  0x43   : > { %345 = vst [vmem:[%s1437_s6 + $0x88] sm:$0xff] %v344_v19 }
  0x44   : > { %347 = vst [vmem:[%s1437_s6 + $0x90] sm:$0xff] %v346_v20 }
  0x45   : > { %349 = vst [vmem:[%s1437_s6 + $0x98] sm:$0xff] %v348_v21 }
  0x46   : > { %351 = vst [vmem:[%s1437_s6 + $0xa0] sm:$0xff] %v350_v22 }
  0x47   : > { %353 = vst [vmem:[%s1437_s6 + $0xa8] sm:$0xff] %v352_v23 }
  0x48   : > { %355 = vst [vmem:[%s1437_s6 + $0xb0] sm:$0xff] %v354_v24 }
  0x49   : > { %357 = vst [vmem:[%s1437_s6 + $0xb8] sm:$0xff] %v356_v25 }
  0x4a   : > { %359 = vst [vmem:[%s1437_s6 + $0xc0] sm:$0xff] %v358_v26 }
  0x4b   : > { %361 = vst [vmem:[%s1437_s6 + $0xc8] sm:$0xff] %v360_v27 }
  0x4c   : > { %363 = vst [vmem:[%s1437_s6 + $0xd0] sm:$0xff] %v362_v28 }
  0x4d   : > { %365 = vst [vmem:[%s1437_s6 + $0xd8] sm:$0xff] %v364_v29 }
  0x4e   : > { %367 = vst [vmem:[%s1437_s6 + $0xe0] sm:$0xff] %v366_v30 }
  0x4f   : > { %369 = vst [vmem:[%s1437_s6 + $0xe8] sm:$0xff] %v368_v31 }
  0x50   : > { %371 = vst [vmem:[%s1437_s6 + $0xf0] sm:$0xff] %v370_v32 }
  0x51   : > { %373 = vst [vmem:[%s1437_s6 + $0xf8] sm:$0xff] %v372_v33 }
  0x52 PF: > { %p933_p0 = scmp.ge.s32.totalorder %s1295_s22, 1  ;;  %p387_p1 = scmp.lt.s32.totalorder %s1295_s22, 37 }
  0x54   : > { %p388_p2 = pnand %p933_p0, %p387_p1 }
  0x55   : > { %s394_s24 = sand.u32 (!%p388_p2), 1, %s1271_s16   ;;  %s401_s25 = sand.u32 (!%p388_p2), 1, %s1263_s14  }
  0x56   : > { %391 = sbr.rel (%p388_p2) target bundleno = 308 (0x134), region = 100  ;;  %s934_s30 = sshll.u32 (!%p388_p2), %s394_s24, 4 }
  0x57   : > { %s935_s27 = sshll.u32 (!%p388_p2), %s401_s25, 8  ;;  %s429_s5 = sand.u32 (!%p388_p2), 1, %s1255_s12  }
  0x58   : > { %s937_s23 = sshll.u32 (!%p388_p2), %s1283_s19, 1  ;;  %s936_s28 = sshll.u32 (!%p388_p2), %s429_s5, 4 }
  0x59   : > { %p437_p3 = scmp.lt.s32.totalorder (!%p388_p2), %s937_s23, 3  ;;  %s1511_s4 = scalar_lea.vmem (!%p388_p2), [#allocation3], %s934_s30 }
  0x5a   : > { %s1513_s6 = scalar_lea.vmem (!%p388_p2), [#allocation4], %s935_s27  ;;  %s1515_s0 = scalar_lea.vmem (!%p388_p2), [#allocation5], %s936_s28 }
  0x5b   : > { %s1666_s23 = smov (!%p437_p3, %s937_s23), 3  ;;  %p939_p4 = scmp.ne.s32.totalorder %s1279_s18, 0 }
  0x5c   : > { %s938_s7 = sshll.u32 %s1666_s23, 1 }
  0x5d   : > { %s1509_s26 = scalar_lea.vmem %s1634_s2, %s938_s7  ;;  %447 = sbr.rel (%p939_p4) target bundleno = 103 (0x67), region = 112 }
  0x62   : > { %v1297_v34 = vmov 0.0  }
  0x63   : > { %448 = vst [vmem:[#allocation2 + $0x10] sm:$0xff] %v1297_v34 }
  0x64   : > { %449 = vst [vmem:[#allocation2] sm:$0xff] %v1297_v34 }
  0x65   : > { %450 = vst [vmem:[#allocation2 + $0x18] sm:$0xff] %v1297_v34 }
  0x66   : > { %451 = vst [vmem:[#allocation2 + $0x8] sm:$0xff] %v1297_v34 }
  0x67 PF: > { %v1006_v35 = vld [vmem:[%s1513_s6 + $0x70] sm:$0xf]  ;;  %v1102_v36 = vld [vmem:[%s1513_s6 + $0x74] sm:$0xf0]  ;;  %v1101_v40 = vld [vmem:[%s1513_s6 + $0x74] sm:$0xf] }
  0x68   : > { %v1070_v37 = vld [vmem:[%s1513_s6 + $0xf0] sm:$0xf]  ;;  %v1007_v38 = vor.u32 %v1102_v36, %v1006_v35  ;;  %v1118_v39 = vld [vmem:[%s1513_s6 + $0xf4] sm:$0xf0]  ;;  %v1008_v41 = vld [vmem:[%s1513_s6 + $0x78] sm:$0xf0] }
  0x69   : > { %v1071_v42 = vor.u32 %v1118_v39, %v1070_v37  ;;  %v1011_v43 = vor.u32 %v1101_v40, %v1008_v41  ;;  %v1117_v44 = vld [vmem:[%s1513_s6 + $0xf4] sm:$0xf]  ;;  %v1072_v45 = vld [vmem:[%s1513_s6 + $0xf8] sm:$0xf0]  ;;  %v998_v46 = vld [vmem:[%s1513_s6 + $0x60] sm:$0xf] }
  0x6a   : > { %660 = vmatpush.bf16.msra.mxu0 %v1007_v38  ;;  %v1075_v47 = vor.u32 %v1117_v44, %v1072_v45  ;;  %v1100_v48 = vld [vmem:[%s1513_s6 + $0x64] sm:$0xf0]  ;;  %v1062_v49 = vld [vmem:[%s1513_s6 + $0xe0] sm:$0xf]  ;;  %v1099_v53 = vld [vmem:[%s1513_s6 + $0x64] sm:$0xf] }
  0x6b   : > { %v1116_v50 = vld [vmem:[%s1513_s6 + $0xe4] sm:$0xf0]  ;;  %674 = vmatpush.bf16.msra.mxu1 %v1071_v42  ;;  %688 = vmatpush.bf16.msra.mxu2 %v1011_v43  ;;  %v999_v51 = vor.u32 %v1100_v48, %v998_v46  ;;  %v1000_v54 = vld [vmem:[%s1513_s6 + $0x68] sm:$0xf0]  ;;  %v1115_v55 = vld [vmem:[%s1513_s6 + $0xe4] sm:$0xf] }
  0x6c   : > { %v1063_v52 = vor.u32 %v1116_v50, %v1062_v49  ;;  %702 = vmatpush.bf16.msra.mxu3 %v1075_v47  ;;  %v1003_v56 = vor.u32 %v1099_v53, %v1000_v54  ;;  %v1064_v57 = vld [vmem:[%s1513_s6 + $0xe8] sm:$0xf0]  ;;  %v990_v58 = vld [vmem:[%s1513_s6 + $0x50] sm:$0xf]  ;;  %v1098_v59 = vld [vmem:[%s1513_s6 + $0x54] sm:$0xf0] }
  0x6d   : > { %v1067_v60 = vor.u32 %v1115_v55, %v1064_v57  ;;  %v1054_v61 = vld [vmem:[%s1513_s6 + $0xd0] sm:$0xf]  ;;  %v1114_v62 = vld [vmem:[%s1513_s6 + $0xd4] sm:$0xf0]  ;;  %v1097_v63 = vld [vmem:[%s1513_s6 + $0x54] sm:$0xf]  ;;  %v991_v0 = vor.u32 %v1098_v59, %v990_v58 }
  0x6e   : > { %661 = vmatpush.bf16.msra.mxu0 %v999_v51  ;;  %v992_v1 = vld [vmem:[%s1513_s6 + $0x58] sm:$0xf0]  ;;  %v1113_v2 = vld [vmem:[%s1513_s6 + $0xd4] sm:$0xf]  ;;  %v1055_v4 = vor.u32 %v1114_v62, %v1054_v61  ;;  %v982_v6 = vld [vmem:[%s1513_s6 + $0x40] sm:$0xf] }
  0x6f   : > { %v1056_v3 = vld [vmem:[%s1513_s6 + $0xd8] sm:$0xf0]  ;;  %675 = vmatpush.bf16.msra.mxu1 %v1063_v52  ;;  %689 = vmatpush.bf16.msra.mxu2 %v1003_v56  ;;  %v995_v5 = vor.u32 %v1097_v63, %v992_v1  ;;  %v1096_v7 = vld [vmem:[%s1513_s6 + $0x44] sm:$0xf0]  ;;  %v1046_v8 = vld [vmem:[%s1513_s6 + $0xc0] sm:$0xf] }
  0x70   : > { %703 = vmatpush.bf16.msra.mxu3 %v1067_v60  ;;  %v1059_v9 = vor.u32 %v1113_v2, %v1056_v3  ;;  %v1112_v10 = vld [vmem:[%s1513_s6 + $0xc4] sm:$0xf0]  ;;  %v1095_v11 = vld [vmem:[%s1513_s6 + $0x44] sm:$0xf]  ;;  %v984_v12 = vld [vmem:[%s1513_s6 + $0x48] sm:$0xf0]  ;;  %v983_v15 = vor.u32 %v1096_v7, %v982_v6 }
  0x71   : > { %v1111_v13 = vld [vmem:[%s1513_s6 + $0xc4] sm:$0xf]  ;;  %v1048_v14 = vld [vmem:[%s1513_s6 + $0xc8] sm:$0xf0]  ;;  %v1047_v16 = vor.u32 %v1112_v10, %v1046_v8  ;;  %v987_v17 = vor.u32 %v1095_v11, %v984_v12  ;;  %v974_v18 = vld [vmem:[%s1513_s6 + $0x30] sm:$0xf] }
  0x72   : > { %662 = vmatpush.bf16.msra.mxu0 %v991_v0  ;;  %v1094_v19 = vld [vmem:[%s1513_s6 + $0x34] sm:$0xf0]  ;;  %v1038_v20 = vld [vmem:[%s1513_s6 + $0xb0] sm:$0xf]  ;;  %v1051_v21 = vor.u32 %v1111_v13, %v1048_v14  ;;  %v1093_v23 = vld [vmem:[%s1513_s6 + $0x34] sm:$0xf] }
  0x73   : > { %676 = vmatpush.bf16.msra.mxu1 %v1055_v4  ;;  %690 = vmatpush.bf16.msra.mxu2 %v995_v5  ;;  %v1110_v22 = vld [vmem:[%s1513_s6 + $0xb4] sm:$0xf0]  ;;  %v976_v24 = vld [vmem:[%s1513_s6 + $0x38] sm:$0xf0]  ;;  %v1109_v25 = vld [vmem:[%s1513_s6 + $0xb4] sm:$0xf]  ;;  %v975_v27 = vor.u32 %v1094_v19, %v974_v18 }
  0x74   : > { %704 = vmatpush.bf16.msra.mxu3 %v1059_v9  ;;  %v1040_v26 = vld [vmem:[%s1513_s6 + $0xb8] sm:$0xf0]  ;;  %v1039_v28 = vor.u32 %v1110_v22, %v1038_v20  ;;  %v979_v29 = vor.u32 %v1093_v23, %v976_v24  ;;  %v966_v30 = vld [vmem:[%s1513_s6 + $0x20] sm:$0xf]  ;;  %v1092_v31 = vld [vmem:[%s1513_s6 + $0x24] sm:$0xf0] }
  0x75   : > { %v1030_v32 = vld [vmem:[%s1513_s6 + $0xa0] sm:$0xf]  ;;  %v1043_v33 = vor.u32 %v1109_v25, %v1040_v26  ;;  %v1108_v34 = vld [vmem:[%s1513_s6 + $0xa4] sm:$0xf0]  ;;  %v1091_v35 = vld [vmem:[%s1513_s6 + $0x24] sm:$0xf]  ;;  %v967_v39 = vor.u32 %v1092_v31, %v966_v30 }
  0x76   : > { %663 = vmatpush.bf16.msra.mxu0 %v983_v15  ;;  %v968_v36 = vld [vmem:[%s1513_s6 + $0x28] sm:$0xf0]  ;;  %v1107_v37 = vld [vmem:[%s1513_s6 + $0xa4] sm:$0xf]  ;;  %v1031_v40 = vor.u32 %v1108_v34, %v1030_v32  ;;  %v958_v42 = vld [vmem:[%s1513_s6 + $0x10] sm:$0xf] }
  0x77   : > { %677 = vmatpush.bf16.msra.mxu1 %v1047_v16  ;;  %691 = vmatpush.bf16.msra.mxu2 %v987_v17  ;;  %v1032_v38 = vld [vmem:[%s1513_s6 + $0xa8] sm:$0xf0]  ;;  %v971_v41 = vor.u32 %v1091_v35, %v968_v36  ;;  %v1090_v43 = vld [vmem:[%s1513_s6 + $0x14] sm:$0xf0]  ;;  %v1022_v44 = vld [vmem:[%s1513_s6 + $0x90] sm:$0xf] }
  0x78   : > { %705 = vmatpush.bf16.msra.mxu3 %v1051_v21  ;;  %v1035_v45 = vor.u32 %v1107_v37, %v1032_v38  ;;  %v1106_v46 = vld [vmem:[%s1513_s6 + $0x94] sm:$0xf0]  ;;  %v1089_v47 = vld [vmem:[%s1513_s6 + $0x14] sm:$0xf]  ;;  %v960_v48 = vld [vmem:[%s1513_s6 + $0x18] sm:$0xf0]  ;;  %v959_v51 = vor.u32 %v1090_v43, %v958_v42 }
  0x79   : > { %v1105_v49 = vld [vmem:[%s1513_s6 + $0x94] sm:$0xf]  ;;  %v1024_v50 = vld [vmem:[%s1513_s6 + $0x98] sm:$0xf0]  ;;  %v1023_v52 = vor.u32 %v1106_v46, %v1022_v44  ;;  %v963_v53 = vor.u32 %v1089_v47, %v960_v48  ;;  %v950_v54 = vld [vmem:[%s1513_s6] sm:$0xf] }
  0x7a   : > { %664 = vmatpush.bf16.msra.mxu0 %v975_v27  ;;  %v1088_v55 = vld [vmem:[%s1513_s6 + $0x4] sm:$0xf0]  ;;  %v1014_v56 = vld [vmem:[%s1513_s6 + $0x80] sm:$0xf]  ;;  %v1027_v57 = vor.u32 %v1105_v49, %v1024_v50  ;;  %v1087_v59 = vld [vmem:[%s1513_s6 + $0x4] sm:$0xf] }
  0x7b   : > { %678 = vmatpush.bf16.msra.mxu1 %v1039_v28  ;;  %692 = vmatpush.bf16.msra.mxu2 %v979_v29  ;;  %v1104_v58 = vld [vmem:[%s1513_s6 + $0x84] sm:$0xf0]  ;;  %v952_v60 = vld [vmem:[%s1513_s6 + $0x8] sm:$0xf0]  ;;  %v1103_v61 = vld [vmem:[%s1513_s6 + $0x84] sm:$0xf]  ;;  %v951_v63 = vor.u32 %v1088_v55, %v950_v54 }
  0x7c   : > { %706 = vmatpush.bf16.msra.mxu3 %v1043_v33  ;;  %v1016_v62 = vld [vmem:[%s1513_s6 + $0x88] sm:$0xf0]  ;;  %v942_v0 = vld [vmem:[%s1511_s4] sm:$0xf]  ;;  %v1086_v1 = vld [vmem:[%s1511_s4 + $0x4] sm:$0xf0]  ;;  %v1015_v2 = vor.u32 %v1104_v58, %v1014_v56  ;;  %v955_v3 = vor.u32 %v1087_v59, %v952_v60 }
  0x7d   : > { %v1085_v4 = vld [vmem:[%s1511_s4 + $0x4] sm:$0xf]  ;;  %v944_v5 = vld [vmem:[%s1511_s4 + $0x8] sm:$0xf0]  ;;  %v1019_v6 = vor.u32 %v1103_v61, %v1016_v62  ;;  %v943_v7 = vor.u32 %v1086_v1, %v942_v0  ;;  %p1076_p5 = scmp.ne.s32.totalorder %s1279_s18, 17 }
  0x7e   : > { %665 = vmatpush.bf16.msra.mxu0 %v967_v39  ;;  %v947_v8 = vor.u32 %v1085_v4, %v944_v5  ;;  %v452_v10 = vld [vmem:[#allocation2 + $0x10] sm:$0xff]  ;;  %v453_v15 = vld [vmem:[#allocation2] sm:$0xff]  ;;  %v454_v19 = vld [vmem:[#allocation2 + $0x18] sm:$0xff] }
  0x7f   : > { %679 = vmatpush.bf16.msra.mxu1 %v1031_v40  ;;  %693 = vmatpush.bf16.msra.mxu2 %v971_v41  ;;  %v455_v25 = vld [vmem:[#allocation2 + $0x8] sm:$0xff] }
  0x80   : > { %707 = vmatpush.bf16.msra.mxu3 %v1035_v45 }
  0x82   : > { %666 = vmatpush.bf16.msra.mxu0 %v959_v51 }
  0x83   : > { %680 = vmatpush.bf16.msra.mxu1 %v1023_v52  ;;  %694 = vmatpush.bf16.msra.mxu2 %v963_v53 }
  0x84   : > { %708 = vmatpush.bf16.msra.mxu3 %v1027_v57 }
  0x86   : > { %667 = vmatpush.bf16.msra.mxu0 %v951_v63 }
  0x87   : > { %681 = vmatpush.bf16.msra.mxu1 %v1015_v2  ;;  %695 = vmatpush.bf16.msra.mxu2 %v955_v3 }
  0x88   : > { %709 = vmatpush.bf16.msra.mxu3 %v1019_v6 }
  0x89   : > { %668 = vmatmul.bf16.vlgmr.msra.gmra.mxu0 %v943_v7 }
  0x8a   : > { %682 = vmatmul.bf16.vlgmr.msra.gmra.mxu1 %v947_v8  ;;  %696 = vmatmul.bf16.vlgmr.msra.gmra.mxu2 %v943_v7 }
  0x8b   : > { %710 = vmatmul.bf16.vlgmr.msra.gmra.mxu3 %v947_v8 }
 0x106   : > { %v669_v9 = vpop.f32.mrf.mxu0 }
 0x107   : > { %v683_v11 = vpop.f32.mrf.mxu1 }
 0x108   : > { %v684_v12 = vadd.f32 %v683_v11, %v669_v9 }
 0x10a   : > { %v716_v13 = vadd.f32 %v684_v12, %v452_v10 }
 0x10c   : > { %720 = vst [vmem:[#allocation2 + $0x10] sm:$0xff] %v716_v13 }
 0x10d   : > { %v697_v14 = vpop.f32.mrf.mxu2 }
 0x10e   : > { %v711_v16 = vpop.f32.mrf.mxu3  ;;  %v671_v17 = vpop.f32.mrf.mxu0 }
 0x10f   : > { %v712_v18 = vadd.f32 %v711_v16, %v697_v14  ;;  %v685_v20 = vpop.f32.mrf.mxu1 }
 0x110   : > { %v686_v21 = vadd.f32 %v685_v20, %v671_v17 }
 0x111   : > { %v717_v22 = vadd.f32 %v712_v18, %v453_v15 }
 0x112   : > { %v718_v23 = vadd.f32 %v686_v21, %v454_v19 }
 0x113   : > { %721 = vst [vmem:[#allocation2] sm:$0xff] %v717_v22 }
 0x114   : > { %722 = vst [vmem:[#allocation2 + $0x18] sm:$0xff] %v718_v23 }
 0x115   : > { %v699_v24 = vpop.f32.mrf.mxu2 }
 0x116   : > { %v713_v26 = vpop.f32.mrf.mxu3 }
 0x117   : > { %v714_v27 = vadd.f32 %v713_v26, %v699_v24  ;;  %727 = sbr.rel (%p1076_p5) target bundleno = 300 (0x12c), region = 116 }
 0x119   : > { %v719_v28 = vadd.f32 %v714_v27, %v455_v25 }
 0x11b   : > { %723 = vst [vmem:[#allocation2 + $0x8] sm:$0xff] %v719_v28 }
 0x11c   : > { %v728_v29 = vld [vmem:[#allocation2 + $0x10] sm:$0xff]  ;;  %v729_v30 = vld [vmem:[#allocation2] sm:$0xff]  ;;  %v730_v35 = vld [vmem:[#allocation2 + $0x18] sm:$0xff] }
 0x11d   : > { %v732_v31 = vld [vmem:[%s1509_s26] ss:$2 sm:$0x3]  ;;  %v1077_v34 = vld [vmem:[%s1509_s26 + $0x1] ss:$2 sm:$0x3] }
 0x11e   : > { %v734_v32 = vperm.slane %v732_v31, 0  ;;  %v735_v33 = vperm.slane %v732_v31, 1  ;;  %v745_v36 = vperm.slane %v1077_v34, 0  ;;  %v746_v37 = vperm.slane %v1077_v34, 1 }
 0x120   : > { %v738_v39 = vmul.f32 %v734_v32, %v728_v29  ;;  %v739_v40 = vmul.f32 %v735_v33, %v729_v30  ;;  %v740_v41 = vmul.f32 %v734_v32, %v730_v35 }
 0x122   : > { %v731_v38 = vld [vmem:[#allocation2 + $0x8] sm:$0xff]  ;;  %v749_v43 = vadd.f32 %v745_v36, %v738_v39  ;;  %v750_v44 = vadd.f32 %v746_v37, %v739_v40  ;;  %v751_v45 = vadd.f32 %v745_v36, %v740_v41 }
 0x123   : > { %v741_v42 = vmul.f32 %v735_v33, %v731_v38 }
 0x124   : > { %v753_v47 = vmax.f32 %v749_v43, 0.0  ;;  %v754_v48 = vmax.f32 %v750_v44, 0.0  ;;  %v755_v49 = vmax.f32 %v751_v45, 0.0 }
 0x125   : > { %v752_v46 = vadd.f32 %v746_v37, %v741_v42 }
 0x126   : > { %v757_v51 = vpack.c.bf16 %v754_v48, %v753_v47 }
 0x127   : > { %v756_v50 = vmax.f32 %v752_v46, 0.0 }
 0x128   : > { %759 = vst [vmem:[%s1515_s0] sm:$0xff] %v757_v51 }
 0x129   : > { %v758_v52 = vpack.c.bf16 %v756_v50, %v755_v49 }
 0x12b   : > { %760 = vst [vmem:[%s1515_s0 + $0x8] sm:$0xff] %v758_v52 }
 0x12c PF: > { %767 = sbr.rel (!%p1412_p12) target bundleno = 308 (0x134), region = 120  ;;  %s1119_s12 = sshll.u32 (%p1412_p12), %s1283_s19, 3 }
 0x12d   : > { %s773_s18 = scalar_lea.vmem (%p1412_p12), %s1635_s3, %s1119_s12 }
 0x12f   : > { %v804_v53 = vld [vmem:[%s1515_s0] sm:$0xff] (%p1412_p12) }
 0x130   : > { %805 = vst [vmem:[%s773_s18] sm:$0xff] (%p1412_p12), %v804_v53 }
 0x132   : > { %v806_v54 = vld [vmem:[%s1515_s0 + $0x8] sm:$0xff] }
 0x133   : > { %807 = vst [vmem:[%s773_s18 + $0x10] sm:$0xff] %v806_v54 }
 0x134 PF: > { %s13_s22 = sadd.s32 1, %s1295_s22   ;;  %s1646_s10 = sld [smem:[#allocation8_spill]] }
 0x135   : > { %p10_p6 = scmp.ge.s32.totalorder %s13_s22, 38   ;;  %s1647_s0 = sld [smem:[#allocation6_spill]] }
 0x136   : > { %s1648_s24 = sld [smem:[#allocation7_spill]]  ;;  %s1649_s12 = smov %s1259_s13 }
 0x137   : > { %s1650_s13 = smov %s1410_s9  ;;  %s1651_s14 = smov %s1267_s15 }
 0x138   : > { %s1652_s15 = smov %s1407_s8  ;;  %s1653_s16 = smov %s1275_s17 }
 0x139   : > { %s1655_s18 = smov %s1287_s20  ;;  %s1656_s19 = smov %s1291_s21 }
 0x13a   : > { %s1654_s17 = smov %s1646_s10  ;;  %12 = sbr.rel (!%p10_p6) target bundleno = 8 (0x8), region = 201 }
 0x13b   : > { %s1657_s20 = smov %s1647_s0 }
 0x13c   : > { %s1658_s21 = smov %s1648_s24 }

// kernel: my_script_module_forward.37
= control target key start
LH: loop header
LB: loop body
LE: loop exit
PB: predicated region body
PF: predicated region fallthrough
CT: control target
= control target key end

     0   :  { %s1453_s15 = smov 0   ;;  %s1455_s16 = smov 0   ;;  %s1792_s0 = inlined_call_operand.vmem [shape: bf16[16,4608], index: 0, kind: input, shape index: {}]   ;;  %s1793_s1 = inlined_call_operand.vmem [shape: bf16[4608,512], index: 1, kind: input, shape index: {}]   ;;  %s1794_s2 = inlined_call_operand.vmem [shape: f32[2,512], index: 2, kind: input, shape index: {}]   ;;  %s1795_s3 = inlined_call_operand.vmem [shape: bf16[16,512], index: 3, kind: input, shape index: {}]   ;;  %s1796_s4 = inlined_call_operand.vmem [shape: bf16[16,512], index: 4, kind: output, shape index: {}]  }
   0x1   :  { %s1457_s17 = smov 0   ;;  %s1459_s18 = smov 0  }
   0x2   :  { %s1461_s19 = smov 0   ;;  %s1463_s20 = smov 0  }
   0x3   :  { %s1465_s21 = smov 0   ;;  %s1467_s22 = smov 0  }
   0x4   :  { %s1469_s23 = smov 0   ;;  %s1471_s24 = smov 0  }
   0x5   :  { %s1473_s25 = smov 0  }
   0x6 LB: > { %1800 = sst [smem:[#allocation7_spill]] %s1405_s20  ;;  %s1046_s26 = sadd.s32 4294967295, %s1425_s25   ;;  %s1425_s25 = sphi %s1473_s25, %s14_s25   ;;  %s1421_s24 = sphi %s1471_s24, %s1821_s24   ;;  %s1417_s23 = sphi %s1469_s23, %s1820_s23   ;;  %s1413_s22 = sphi %s1467_s22, %s1819_s22   ;;  %s1409_s21 = sphi %s1465_s21, %s1818_s21   ;;  %s1405_s20 = sphi %s1463_s20, %s1811_s20   ;;  %s1401_s19 = sphi %s1461_s19, %s1810_s19   ;;  %s1397_s18 = sphi %s1459_s18, %s1817_s18   ;;  %s1393_s17 = sphi %s1457_s17, %s1816_s17   ;;  %s1389_s16 = sphi %s1455_s16, %s1815_s16   ;;  %s1385_s15 = sphi %s1453_s15, %s1814_s15  }
   0x7   : > { %s26_s27 = sadd.s32 1, %s1417_s23  ;;  %s29_s28 = sadd.s32 1, %s1421_s24 }
   0x8   : > { %p27_p0 = scmp.ge.s32.totalorder %s26_s27, 18  ;;  %s42_s29 = sadd.s32 1, %s1405_s20 }
   0x9   : > { %p49_p1 = scmp.ne.s32.totalorder %s1405_s20, %s1401_s19  ;;  %p50_p2 = scmp.eq.s32.totalorder %s1425_s25, 0 }
   0xa   : > { %s1823_s27 = smov (%p27_p0, %s26_s27), 0  ;;  %s1825_s28 = smov (!%p27_p0, %s29_s28), %s1421_s24 }
   0xb   : > { %1801 = sst [smem:[#allocation8_spill]] %s1823_s27  ;;  %s38_s30 = ssub.s32 %s1417_s23, %s1823_s27 }
   0xc   : > { %p31_p3 = scmp.ge.s32.totalorder %s1825_s28, 2  ;;  %p40_p4 = scmp.eq.s32.totalorder %s38_s30, 0 }
   0xd   : > { %p1522_p5 = por %p50_p2, %p49_p1  ;;  %s70_s6 = sadd.s32 1, %s1397_s18 }
   0xe   : > { %s1827_s28 = smov (%p31_p3, %s1825_s28), 0  ;;  %p77_p6 = scmp.ne.s32.totalorder %s1397_s18, %s1393_s17 }
   0xf   : > { %1803 = sst [smem:[#allocation9_spill]] %s1827_s28  ;;  %s66_s8 = ssub.s32 %s1421_s24, %s1827_s28 }
  0x10   : > { %s1530_s7 = scalar_select %p40_p4, %s1405_s20, %s42_s29  }
  0x11   : > { %s67_s9 = sor.u32 %s66_s8, %s38_s30  ;;  %p122_p7 = scmp.eq.s32.totalorder %s66_s8, 0 }
  0x12   : > { %1804 = sst [smem:[#allocation10_spill]] %s1530_s7  ;;  %p68_p8 = scmp.eq.s32.totalorder %s67_s9, 0 }
  0x13   : > { %p1538_p9 = por %p77_p6, %p50_p2  ;;  %s124_s11 = sadd.s32 1, %s1389_s16 }
  0x14   : > { %p131_p10 = scmp.ne.s32.totalorder %s1389_s16, %s1385_s15  ;;  %p163_p12 = scmp.eq.s32.totalorder %s1046_s26, 35 }
  0x15   : > { %s1546_s12 = scalar_select %p68_p8, %s1397_s18, %s70_s6  }
  0x16   : > { %s1549_s13 = scalar_select %p122_p7, %s1389_s16, %s124_s11  }
  0x17   : > { %1806 = sst [smem:[#allocation11_spill]] %s1546_s12  ;;  %p1553_p11 = por %p131_p10, %p50_p2 }
  0x18   : > { %p1557_p13 = por %p163_p12, %p131_p10  ;;  %p1049_p0 = scmp.ge.s32.totalorder %s1425_s25, 36 }
  0x1a   : > { %185 = sbr.rel (%p1049_p0) target bundleno = 82 (0x52), region = 16 }
  0x1f   : > { %188 = sbr.rel (!%p1522_p5) target bundleno = 37 (0x25), region = 20  ;;  %s190_s30 = sand.u32 (%p1522_p5), 1, %s1405_s20  }
  0x20   : > { %s1212_s6 = sshll.u32 (%p1522_p5), %s1417_s23, 3  ;;  %s1050_s8 = sshll.u32 (%p1522_p5), %s190_s30, 4 }
  0x21   : > { %s198_s28 = scalar_lea.vmem (%p1522_p5), %s1792_s0, %s1212_s6  ;;  %s192_s26 = scalar_lea.vmem (%p1522_p5), [#allocation3], %s1050_s8 }
  0x22   : > { %v229_v0 = vld [vmem:[%s198_s28] sm:$0xff] (%p1522_p5)  ;;  %v231_v1 = vld [vmem:[%s198_s28 + $0x90] sm:$0xff] (%p1522_p5) }
  0x23   : > { %230 = vst [vmem:[%s192_s26] sm:$0xff] (%p1522_p5), %v229_v0 }
  0x24   : > { %232 = vst [vmem:[%s192_s26 + $0x8] sm:$0xff] %v231_v1 }
  0x25 PF: > { %238 = sbr.rel (!%p1538_p9) target bundleno = 76 (0x4c), region = 58  ;;  %s240_s5 = sand.u32 (%p1538_p9), 1, %s1397_s18  }
  0x26   : > { %s1055_s27 = sshll.u32 (%p1538_p9), %s1421_s24, 1  ;;  %s1053_s7 = sshll.u32 (%p1538_p9), %s240_s5, 8 }
  0x27   : > { %s1213_s30 = sshll.u32 (%p1538_p9), %s1417_s23, 7 }
  0x28   : > { %s246_s20 = sadd.s32 (%p1538_p9), %s1213_s30, %s1055_s27  ;;  %s1582_s27 = scalar_lea.vmem (%p1538_p9), [#allocation4], %s1053_s7 }
  0x29   : > { %s1057_s12 = sshll.u32 (%p1538_p9), %s246_s20, 2 }
  0x2a   : > { %s1577_s28 = scalar_lea.vmem %s1793_s1, %s1057_s12 }
  0x2b   : > { %v339_v2 = vld [vmem:[%s1577_s28] sm:$0xff]  ;;  %v341_v3 = vld [vmem:[%s1577_s28 + $0x10] sm:$0xff] }
  0x2c   : > { %v343_v4 = vld [vmem:[%s1577_s28 + $0x20] sm:$0xff]  ;;  %340 = vst [vmem:[%s1582_s27] sm:$0xff] %v339_v2  ;;  %v345_v5 = vld [vmem:[%s1577_s28 + $0x30] sm:$0xff] }
  0x2d   : > { %342 = vst [vmem:[%s1582_s27 + $0x8] sm:$0xff] %v341_v3  ;;  %v347_v6 = vld [vmem:[%s1577_s28 + $0x40] sm:$0xff]  ;;  %v349_v7 = vld [vmem:[%s1577_s28 + $0x50] sm:$0xff] }
  0x2e   : > { %344 = vst [vmem:[%s1582_s27 + $0x10] sm:$0xff] %v343_v4  ;;  %v351_v8 = vld [vmem:[%s1577_s28 + $0x60] sm:$0xff]  ;;  %v353_v9 = vld [vmem:[%s1577_s28 + $0x70] sm:$0xff] }
  0x2f   : > { %346 = vst [vmem:[%s1582_s27 + $0x18] sm:$0xff] %v345_v5  ;;  %v355_v10 = vld [vmem:[%s1577_s28 + $0x80] sm:$0xff]  ;;  %v357_v11 = vld [vmem:[%s1577_s28 + $0x90] sm:$0xff] }
  0x30   : > { %348 = vst [vmem:[%s1582_s27 + $0x20] sm:$0xff] %v347_v6  ;;  %v359_v12 = vld [vmem:[%s1577_s28 + $0xa0] sm:$0xff]  ;;  %v361_v13 = vld [vmem:[%s1577_s28 + $0xb0] sm:$0xff] }
  0x31   : > { %350 = vst [vmem:[%s1582_s27 + $0x28] sm:$0xff] %v349_v7  ;;  %v363_v14 = vld [vmem:[%s1577_s28 + $0xc0] sm:$0xff]  ;;  %v365_v15 = vld [vmem:[%s1577_s28 + $0xd0] sm:$0xff] }
  0x32   : > { %352 = vst [vmem:[%s1582_s27 + $0x30] sm:$0xff] %v351_v8  ;;  %v367_v16 = vld [vmem:[%s1577_s28 + $0xe0] sm:$0xff]  ;;  %v369_v17 = vld [vmem:[%s1577_s28 + $0xf0] sm:$0xff] }
  0x33   : > { %354 = vst [vmem:[%s1582_s27 + $0x38] sm:$0xff] %v353_v9  ;;  %v371_v18 = vld [vmem:[%s1577_s28 + $0x100] sm:$0xff]  ;;  %v373_v19 = vld [vmem:[%s1577_s28 + $0x110] sm:$0xff] }
  0x34   : > { %356 = vst [vmem:[%s1582_s27 + $0x40] sm:$0xff] %v355_v10  ;;  %v375_v20 = vld [vmem:[%s1577_s28 + $0x120] sm:$0xff]  ;;  %v377_v21 = vld [vmem:[%s1577_s28 + $0x130] sm:$0xff] }
  0x35   : > { %358 = vst [vmem:[%s1582_s27 + $0x48] sm:$0xff] %v357_v11  ;;  %v379_v22 = vld [vmem:[%s1577_s28 + $0x140] sm:$0xff]  ;;  %v381_v23 = vld [vmem:[%s1577_s28 + $0x150] sm:$0xff] }
  0x36   : > { %360 = vst [vmem:[%s1582_s27 + $0x50] sm:$0xff] %v359_v12  ;;  %v383_v24 = vld [vmem:[%s1577_s28 + $0x160] sm:$0xff]  ;;  %v385_v25 = vld [vmem:[%s1577_s28 + $0x170] sm:$0xff] }
  0x37   : > { %362 = vst [vmem:[%s1582_s27 + $0x58] sm:$0xff] %v361_v13  ;;  %v387_v26 = vld [vmem:[%s1577_s28 + $0x180] sm:$0xff]  ;;  %v389_v27 = vld [vmem:[%s1577_s28 + $0x190] sm:$0xff] }
  0x38   : > { %364 = vst [vmem:[%s1582_s27 + $0x60] sm:$0xff] %v363_v14  ;;  %v391_v28 = vld [vmem:[%s1577_s28 + $0x1a0] sm:$0xff]  ;;  %v393_v29 = vld [vmem:[%s1577_s28 + $0x1b0] sm:$0xff] }
  0x39   : > { %366 = vst [vmem:[%s1582_s27 + $0x68] sm:$0xff] %v365_v15  ;;  %v395_v30 = vld [vmem:[%s1577_s28 + $0x1c0] sm:$0xff]  ;;  %v397_v31 = vld [vmem:[%s1577_s28 + $0x1d0] sm:$0xff] }
  0x3a   : > { %368 = vst [vmem:[%s1582_s27 + $0x70] sm:$0xff] %v367_v16  ;;  %v399_v32 = vld [vmem:[%s1577_s28 + $0x1e0] sm:$0xff]  ;;  %v401_v33 = vld [vmem:[%s1577_s28 + $0x1f0] sm:$0xff] }
  0x3b   : > { %370 = vst [vmem:[%s1582_s27 + $0x78] sm:$0xff] %v369_v17 }
  0x3c   : > { %372 = vst [vmem:[%s1582_s27 + $0x80] sm:$0xff] %v371_v18 }
  0x3d   : > { %374 = vst [vmem:[%s1582_s27 + $0x88] sm:$0xff] %v373_v19 }
  0x3e   : > { %376 = vst [vmem:[%s1582_s27 + $0x90] sm:$0xff] %v375_v20 }
  0x3f   : > { %378 = vst [vmem:[%s1582_s27 + $0x98] sm:$0xff] %v377_v21 }
  0x40   : > { %380 = vst [vmem:[%s1582_s27 + $0xa0] sm:$0xff] %v379_v22 }
  0x41   : > { %382 = vst [vmem:[%s1582_s27 + $0xa8] sm:$0xff] %v381_v23 }
  0x42   : > { %384 = vst [vmem:[%s1582_s27 + $0xb0] sm:$0xff] %v383_v24 }
  0x43   : > { %386 = vst [vmem:[%s1582_s27 + $0xb8] sm:$0xff] %v385_v25 }
  0x44   : > { %388 = vst [vmem:[%s1582_s27 + $0xc0] sm:$0xff] %v387_v26 }
  0x45   : > { %390 = vst [vmem:[%s1582_s27 + $0xc8] sm:$0xff] %v389_v27 }
  0x46   : > { %392 = vst [vmem:[%s1582_s27 + $0xd0] sm:$0xff] %v391_v28 }
  0x47   : > { %394 = vst [vmem:[%s1582_s27 + $0xd8] sm:$0xff] %v393_v29 }
  0x48   : > { %396 = vst [vmem:[%s1582_s27 + $0xe0] sm:$0xff] %v395_v30 }
  0x49   : > { %398 = vst [vmem:[%s1582_s27 + $0xe8] sm:$0xff] %v397_v31 }
  0x4a   : > { %400 = vst [vmem:[%s1582_s27 + $0xf0] sm:$0xff] %v399_v32 }
  0x4b   : > { %402 = vst [vmem:[%s1582_s27 + $0xf8] sm:$0xff] %v401_v33 }
  0x4c PF: > { %417 = sbr.rel (!%p1553_p11) target bundleno = 82 (0x52), region = 100  ;;  %s419_s20 = sand.u32 (%p1553_p11), 1, %s1389_s16  }
  0x4d   : > { %s1214_s7 = sshll.u32 (%p1553_p11), %s1421_s24, 3  ;;  %s1058_s10 = sshll.u32 (%p1553_p11), %s419_s20, 4 }
  0x4e   : > { %s427_s11 = scalar_lea.vmem (%p1553_p11), %s1795_s3, %s1214_s7  ;;  %s421_s26 = scalar_lea.vmem (%p1553_p11), [#allocation5], %s1058_s10 }
  0x4f   : > { %v458_v34 = vld [vmem:[%s427_s11] sm:$0xff] (%p1553_p11)  ;;  %v460_v35 = vld [vmem:[%s427_s11 + $0x10] sm:$0xff] (%p1553_p11) }
  0x50   : > { %459 = vst [vmem:[%s421_s26] sm:$0xff] (%p1553_p11), %v458_v34 }
  0x51   : > { %461 = vst [vmem:[%s421_s26 + $0x8] sm:$0xff] %v460_v35 }
  0x52 PF: > { %p1061_p1 = scmp.ge.s32.totalorder %s1425_s25, 1  ;;  %p466_p2 = scmp.lt.s32.totalorder %s1425_s25, 37 }
  0x54   : > { %p467_p3 = pnand %p1061_p1, %p466_p2 }
  0x55   : > { %s473_s14 = sand.u32 (!%p467_p3), 1, %s1401_s19   ;;  %s480_s5 = sand.u32 (!%p467_p3), 1, %s1393_s17  }
  0x56   : > { %470 = sbr.rel (%p467_p3) target bundleno = 311 (0x137), region = 138  ;;  %s1062_s30 = sshll.u32 (!%p467_p3), %s473_s14, 4 }
  0x57   : > { %s1063_s9 = sshll.u32 (!%p467_p3), %s480_s5, 8  ;;  %s487_s6 = sand.u32 (!%p467_p3), 1, %s1385_s15  }
  0x58   : > { %s1066_s28 = sshll.u32 (!%p467_p3), %s1413_s22, 1  ;;  %s1658_s27 = sshll.u32 (!%p467_p3), %s487_s6, 4 }
  0x59   : > { %p529_p4 = scmp.lt.s32.totalorder (!%p467_p3), %s1066_s28, 3  ;;  %s1665_s8 = scalar_lea.vmem (!%p467_p3), [#allocation3], %s1062_s30 }
  0x5a   : > { %s1667_s19 = scalar_lea.vmem (!%p467_p3), [#allocation4], %s1063_s9  ;;  %s489_s17 = scalar_lea.vmem (!%p467_p3), [#allocation5], %s1658_s27 }
  0x5b   : > { %s1829_s28 = smov (!%p529_p4, %s1066_s28), 3  ;;  %s1671_s11 = scalar_lea.vmem [#allocation6], %s1658_s27 }
  0x5c   : > { %s1067_s20 = sshll.u32 %s1829_s28, 1  ;;  %p1068_p5 = scmp.ne.s32.totalorder %s1409_s21, 0 }
  0x5d   : > { %s1663_s12 = scalar_lea.vmem %s1794_s2, %s1067_s20 }
  0x5e   : > { %541 = sbr.rel (%p1068_p5) target bundleno = 104 (0x68), region = 154 }
  0x63   : > { %v1427_v36 = vmov 0.0  }
  0x64   : > { %542 = vst [vmem:[#allocation2 + $0x10] sm:$0xff] %v1427_v36 }
  0x65   : > { %543 = vst [vmem:[#allocation2] sm:$0xff] %v1427_v36 }
  0x66   : > { %544 = vst [vmem:[#allocation2 + $0x18] sm:$0xff] %v1427_v36 }
  0x67   : > { %545 = vst [vmem:[#allocation2 + $0x8] sm:$0xff] %v1427_v36 }
  0x68 PF: > { %v1135_v37 = vld [vmem:[%s1667_s19 + $0x70] sm:$0xf]  ;;  %v1232_v38 = vld [vmem:[%s1667_s19 + $0x74] sm:$0xf0]  ;;  %v1231_v42 = vld [vmem:[%s1667_s19 + $0x74] sm:$0xf] }
  0x69   : > { %v1199_v39 = vld [vmem:[%s1667_s19 + $0xf0] sm:$0xf]  ;;  %v1136_v40 = vor.u32 %v1232_v38, %v1135_v37  ;;  %v1248_v41 = vld [vmem:[%s1667_s19 + $0xf4] sm:$0xf0]  ;;  %v1137_v43 = vld [vmem:[%s1667_s19 + $0x78] sm:$0xf0] }
  0x6a   : > { %v1200_v44 = vor.u32 %v1248_v41, %v1199_v39  ;;  %v1140_v45 = vor.u32 %v1231_v42, %v1137_v43  ;;  %v1247_v46 = vld [vmem:[%s1667_s19 + $0xf4] sm:$0xf]  ;;  %v1201_v47 = vld [vmem:[%s1667_s19 + $0xf8] sm:$0xf0]  ;;  %v1127_v48 = vld [vmem:[%s1667_s19 + $0x60] sm:$0xf] }
  0x6b   : > { %754 = vmatpush.bf16.msra.mxu0 %v1136_v40  ;;  %v1204_v49 = vor.u32 %v1247_v46, %v1201_v47  ;;  %v1230_v50 = vld [vmem:[%s1667_s19 + $0x64] sm:$0xf0]  ;;  %v1191_v51 = vld [vmem:[%s1667_s19 + $0xe0] sm:$0xf]  ;;  %v1229_v55 = vld [vmem:[%s1667_s19 + $0x64] sm:$0xf] }
  0x6c   : > { %v1246_v52 = vld [vmem:[%s1667_s19 + $0xe4] sm:$0xf0]  ;;  %768 = vmatpush.bf16.msra.mxu1 %v1200_v44  ;;  %782 = vmatpush.bf16.msra.mxu2 %v1140_v45  ;;  %v1128_v53 = vor.u32 %v1230_v50, %v1127_v48  ;;  %v1129_v56 = vld [vmem:[%s1667_s19 + $0x68] sm:$0xf0]  ;;  %v1245_v57 = vld [vmem:[%s1667_s19 + $0xe4] sm:$0xf] }
  0x6d   : > { %v1192_v54 = vor.u32 %v1246_v52, %v1191_v51  ;;  %796 = vmatpush.bf16.msra.mxu3 %v1204_v49  ;;  %v1132_v58 = vor.u32 %v1229_v55, %v1129_v56  ;;  %v1193_v59 = vld [vmem:[%s1667_s19 + $0xe8] sm:$0xf0]  ;;  %v1119_v60 = vld [vmem:[%s1667_s19 + $0x50] sm:$0xf]  ;;  %v1228_v61 = vld [vmem:[%s1667_s19 + $0x54] sm:$0xf0] }
  0x6e   : > { %v1196_v62 = vor.u32 %v1245_v57, %v1193_v59  ;;  %v1183_v63 = vld [vmem:[%s1667_s19 + $0xd0] sm:$0xf]  ;;  %v1244_v0 = vld [vmem:[%s1667_s19 + $0xd4] sm:$0xf0]  ;;  %v1227_v1 = vld [vmem:[%s1667_s19 + $0x54] sm:$0xf]  ;;  %v1120_v2 = vor.u32 %v1228_v61, %v1119_v60 }
  0x6f   : > { %755 = vmatpush.bf16.msra.mxu0 %v1128_v53  ;;  %v1121_v3 = vld [vmem:[%s1667_s19 + $0x58] sm:$0xf0]  ;;  %v1243_v4 = vld [vmem:[%s1667_s19 + $0xd4] sm:$0xf]  ;;  %v1184_v6 = vor.u32 %v1244_v0, %v1183_v63  ;;  %v1111_v8 = vld [vmem:[%s1667_s19 + $0x40] sm:$0xf] }
  0x70   : > { %v1185_v5 = vld [vmem:[%s1667_s19 + $0xd8] sm:$0xf0]  ;;  %769 = vmatpush.bf16.msra.mxu1 %v1192_v54  ;;  %783 = vmatpush.bf16.msra.mxu2 %v1132_v58  ;;  %v1124_v7 = vor.u32 %v1227_v1, %v1121_v3  ;;  %v1226_v9 = vld [vmem:[%s1667_s19 + $0x44] sm:$0xf0]  ;;  %v1175_v10 = vld [vmem:[%s1667_s19 + $0xc0] sm:$0xf] }
  0x71   : > { %797 = vmatpush.bf16.msra.mxu3 %v1196_v62  ;;  %v1188_v11 = vor.u32 %v1243_v4, %v1185_v5  ;;  %v1242_v12 = vld [vmem:[%s1667_s19 + $0xc4] sm:$0xf0]  ;;  %v1225_v13 = vld [vmem:[%s1667_s19 + $0x44] sm:$0xf]  ;;  %v1113_v14 = vld [vmem:[%s1667_s19 + $0x48] sm:$0xf0]  ;;  %v1112_v17 = vor.u32 %v1226_v9, %v1111_v8 }
  0x72   : > { %v1241_v15 = vld [vmem:[%s1667_s19 + $0xc4] sm:$0xf]  ;;  %v1177_v16 = vld [vmem:[%s1667_s19 + $0xc8] sm:$0xf0]  ;;  %v1176_v18 = vor.u32 %v1242_v12, %v1175_v10  ;;  %v1116_v19 = vor.u32 %v1225_v13, %v1113_v14  ;;  %v1103_v20 = vld [vmem:[%s1667_s19 + $0x30] sm:$0xf] }
  0x73   : > { %756 = vmatpush.bf16.msra.mxu0 %v1120_v2  ;;  %v1224_v21 = vld [vmem:[%s1667_s19 + $0x34] sm:$0xf0]  ;;  %v1167_v22 = vld [vmem:[%s1667_s19 + $0xb0] sm:$0xf]  ;;  %v1180_v23 = vor.u32 %v1241_v15, %v1177_v16  ;;  %v1223_v25 = vld [vmem:[%s1667_s19 + $0x34] sm:$0xf] }
  0x74   : > { %770 = vmatpush.bf16.msra.mxu1 %v1184_v6  ;;  %784 = vmatpush.bf16.msra.mxu2 %v1124_v7  ;;  %v1240_v24 = vld [vmem:[%s1667_s19 + $0xb4] sm:$0xf0]  ;;  %v1105_v26 = vld [vmem:[%s1667_s19 + $0x38] sm:$0xf0]  ;;  %v1239_v27 = vld [vmem:[%s1667_s19 + $0xb4] sm:$0xf]  ;;  %v1104_v29 = vor.u32 %v1224_v21, %v1103_v20 }
  0x75   : > { %798 = vmatpush.bf16.msra.mxu3 %v1188_v11  ;;  %v1169_v28 = vld [vmem:[%s1667_s19 + $0xb8] sm:$0xf0]  ;;  %v1168_v30 = vor.u32 %v1240_v24, %v1167_v22  ;;  %v1108_v31 = vor.u32 %v1223_v25, %v1105_v26  ;;  %v1095_v32 = vld [vmem:[%s1667_s19 + $0x20] sm:$0xf]  ;;  %v1222_v33 = vld [vmem:[%s1667_s19 + $0x24] sm:$0xf0] }
  0x76   : > { %v1159_v34 = vld [vmem:[%s1667_s19 + $0xa0] sm:$0xf]  ;;  %v1172_v35 = vor.u32 %v1239_v27, %v1169_v28  ;;  %v1238_v36 = vld [vmem:[%s1667_s19 + $0xa4] sm:$0xf0]  ;;  %v1221_v37 = vld [vmem:[%s1667_s19 + $0x24] sm:$0xf]  ;;  %v1096_v41 = vor.u32 %v1222_v33, %v1095_v32 }
  0x77   : > { %757 = vmatpush.bf16.msra.mxu0 %v1112_v17  ;;  %v1097_v38 = vld [vmem:[%s1667_s19 + $0x28] sm:$0xf0]  ;;  %v1237_v39 = vld [vmem:[%s1667_s19 + $0xa4] sm:$0xf]  ;;  %v1160_v42 = vor.u32 %v1238_v36, %v1159_v34  ;;  %v1087_v44 = vld [vmem:[%s1667_s19 + $0x10] sm:$0xf] }
  0x78   : > { %771 = vmatpush.bf16.msra.mxu1 %v1176_v18  ;;  %785 = vmatpush.bf16.msra.mxu2 %v1116_v19  ;;  %v1161_v40 = vld [vmem:[%s1667_s19 + $0xa8] sm:$0xf0]  ;;  %v1100_v43 = vor.u32 %v1221_v37, %v1097_v38  ;;  %v1220_v45 = vld [vmem:[%s1667_s19 + $0x14] sm:$0xf0]  ;;  %v1151_v46 = vld [vmem:[%s1667_s19 + $0x90] sm:$0xf] }
  0x79   : > { %799 = vmatpush.bf16.msra.mxu3 %v1180_v23  ;;  %v1164_v47 = vor.u32 %v1237_v39, %v1161_v40  ;;  %v1236_v48 = vld [vmem:[%s1667_s19 + $0x94] sm:$0xf0]  ;;  %v1219_v49 = vld [vmem:[%s1667_s19 + $0x14] sm:$0xf]  ;;  %v1089_v50 = vld [vmem:[%s1667_s19 + $0x18] sm:$0xf0]  ;;  %v1088_v53 = vor.u32 %v1220_v45, %v1087_v44 }
  0x7a   : > { %v1235_v51 = vld [vmem:[%s1667_s19 + $0x94] sm:$0xf]  ;;  %v1153_v52 = vld [vmem:[%s1667_s19 + $0x98] sm:$0xf0]  ;;  %v1152_v54 = vor.u32 %v1236_v48, %v1151_v46  ;;  %v1092_v55 = vor.u32 %v1219_v49, %v1089_v50  ;;  %v1079_v56 = vld [vmem:[%s1667_s19] sm:$0xf] }
  0x7b   : > { %758 = vmatpush.bf16.msra.mxu0 %v1104_v29  ;;  %v1218_v57 = vld [vmem:[%s1667_s19 + $0x4] sm:$0xf0]  ;;  %v1143_v58 = vld [vmem:[%s1667_s19 + $0x80] sm:$0xf]  ;;  %v1156_v59 = vor.u32 %v1235_v51, %v1153_v52  ;;  %v1217_v61 = vld [vmem:[%s1667_s19 + $0x4] sm:$0xf] }
  0x7c   : > { %772 = vmatpush.bf16.msra.mxu1 %v1168_v30  ;;  %786 = vmatpush.bf16.msra.mxu2 %v1108_v31  ;;  %v1234_v60 = vld [vmem:[%s1667_s19 + $0x84] sm:$0xf0]  ;;  %v1081_v62 = vld [vmem:[%s1667_s19 + $0x8] sm:$0xf0]  ;;  %v1233_v63 = vld [vmem:[%s1667_s19 + $0x84] sm:$0xf]  ;;  %v1080_v1 = vor.u32 %v1218_v57, %v1079_v56 }
  0x7d   : > { %800 = vmatpush.bf16.msra.mxu3 %v1172_v35  ;;  %v1145_v0 = vld [vmem:[%s1667_s19 + $0x88] sm:$0xf0]  ;;  %v1071_v2 = vld [vmem:[%s1665_s8] sm:$0xf]  ;;  %v1216_v3 = vld [vmem:[%s1665_s8 + $0x4] sm:$0xf0]  ;;  %v1144_v4 = vor.u32 %v1234_v60, %v1143_v58  ;;  %v1084_v5 = vor.u32 %v1217_v61, %v1081_v62 }
  0x7e   : > { %v1215_v6 = vld [vmem:[%s1665_s8 + $0x4] sm:$0xf]  ;;  %v1073_v7 = vld [vmem:[%s1665_s8 + $0x8] sm:$0xf0]  ;;  %v1148_v8 = vor.u32 %v1233_v63, %v1145_v0  ;;  %v1072_v9 = vor.u32 %v1216_v3, %v1071_v2  ;;  %p1205_p6 = scmp.ne.s32.totalorder %s1409_s21, 17 }
  0x7f   : > { %759 = vmatpush.bf16.msra.mxu0 %v1096_v41  ;;  %v1076_v10 = vor.u32 %v1215_v6, %v1073_v7  ;;  %v546_v12 = vld [vmem:[#allocation2 + $0x10] sm:$0xff]  ;;  %v547_v17 = vld [vmem:[#allocation2] sm:$0xff]  ;;  %v548_v21 = vld [vmem:[#allocation2 + $0x18] sm:$0xff] }
  0x80   : > { %773 = vmatpush.bf16.msra.mxu1 %v1160_v42  ;;  %787 = vmatpush.bf16.msra.mxu2 %v1100_v43  ;;  %v549_v27 = vld [vmem:[#allocation2 + $0x8] sm:$0xff] }
  0x81   : > { %801 = vmatpush.bf16.msra.mxu3 %v1164_v47 }
  0x83   : > { %760 = vmatpush.bf16.msra.mxu0 %v1088_v53 }
  0x84   : > { %774 = vmatpush.bf16.msra.mxu1 %v1152_v54  ;;  %788 = vmatpush.bf16.msra.mxu2 %v1092_v55 }
  0x85   : > { %802 = vmatpush.bf16.msra.mxu3 %v1156_v59 }
  0x87   : > { %761 = vmatpush.bf16.msra.mxu0 %v1080_v1 }
  0x88   : > { %775 = vmatpush.bf16.msra.mxu1 %v1144_v4  ;;  %789 = vmatpush.bf16.msra.mxu2 %v1084_v5 }
  0x89   : > { %803 = vmatpush.bf16.msra.mxu3 %v1148_v8 }
  0x8a   : > { %762 = vmatmul.bf16.vlgmr.msra.gmra.mxu0 %v1072_v9 }
  0x8b   : > { %776 = vmatmul.bf16.vlgmr.msra.gmra.mxu1 %v1076_v10  ;;  %790 = vmatmul.bf16.vlgmr.msra.gmra.mxu2 %v1072_v9 }
  0x8c   : > { %804 = vmatmul.bf16.vlgmr.msra.gmra.mxu3 %v1076_v10 }
 0x107   : > { %v763_v11 = vpop.f32.mrf.mxu0 }
 0x108   : > { %v777_v13 = vpop.f32.mrf.mxu1 }
 0x109   : > { %v778_v14 = vadd.f32 %v777_v13, %v763_v11 }
 0x10b   : > { %v810_v15 = vadd.f32 %v778_v14, %v546_v12 }
 0x10d   : > { %814 = vst [vmem:[#allocation2 + $0x10] sm:$0xff] %v810_v15 }
 0x10e   : > { %v791_v16 = vpop.f32.mrf.mxu2 }
 0x10f   : > { %v805_v18 = vpop.f32.mrf.mxu3  ;;  %v765_v19 = vpop.f32.mrf.mxu0 }
 0x110   : > { %v806_v20 = vadd.f32 %v805_v18, %v791_v16  ;;  %v779_v22 = vpop.f32.mrf.mxu1 }
 0x111   : > { %v780_v23 = vadd.f32 %v779_v22, %v765_v19 }
 0x112   : > { %v811_v24 = vadd.f32 %v806_v20, %v547_v17 }
 0x113   : > { %v812_v25 = vadd.f32 %v780_v23, %v548_v21 }
 0x114   : > { %815 = vst [vmem:[#allocation2] sm:$0xff] %v811_v24 }
 0x115   : > { %816 = vst [vmem:[#allocation2 + $0x18] sm:$0xff] %v812_v25 }
 0x116   : > { %v793_v26 = vpop.f32.mrf.mxu2 }
 0x117   : > { %v807_v28 = vpop.f32.mrf.mxu3 }
 0x118   : > { %v808_v29 = vadd.f32 %v807_v28, %v793_v26  ;;  %821 = sbr.rel (%p1205_p6) target bundleno = 303 (0x12f), region = 158 }
 0x11a   : > { %v813_v30 = vadd.f32 %v808_v29, %v549_v27 }
 0x11c   : > { %817 = vst [vmem:[#allocation2 + $0x8] sm:$0xff] %v813_v30 }
 0x11d   : > { %v822_v31 = vld [vmem:[#allocation2 + $0x10] sm:$0xff]  ;;  %v823_v32 = vld [vmem:[#allocation2] sm:$0xff]  ;;  %v824_v42 = vld [vmem:[#allocation2 + $0x18] sm:$0xff] }
 0x11e   : > { %v826_v33 = vld [vmem:[%s1663_s12] ss:$2 sm:$0x3]  ;;  %v1206_v36 = vld [vmem:[%s1663_s12 + $0x1] ss:$2 sm:$0x3] }
 0x11f   : > { %v828_v34 = vperm.slane %v826_v33, 0  ;;  %v829_v35 = vperm.slane %v826_v33, 1  ;;  %v847_v37 = vld [vmem:[%s489_s17] sm:$0xff]  ;;  %v839_v38 = vperm.slane %v1206_v36, 0  ;;  %v840_v39 = vperm.slane %v1206_v36, 1  ;;  %v848_v44 = vld [vmem:[%s489_s17 + $0x8] sm:$0xff] }
 0x120   : > { %v849_v40 = vunpack.c.l.bf16 %v847_v37  ;;  %v850_v41 = vunpack.c.h.bf16 %v847_v37  ;;  %v851_v49 = vunpack.c.l.bf16 %v848_v44  ;;  %v852_v50 = vunpack.c.h.bf16 %v848_v44 }
 0x121   : > { %v832_v45 = vmul.f32 %v828_v34, %v822_v31  ;;  %v833_v46 = vmul.f32 %v829_v35, %v823_v32  ;;  %v834_v47 = vmul.f32 %v828_v34, %v824_v42 }
 0x123   : > { %v825_v43 = vld [vmem:[#allocation2 + $0x8] sm:$0xff]  ;;  %v843_v51 = vadd.f32 %v839_v38, %v832_v45  ;;  %v844_v52 = vadd.f32 %v840_v39, %v833_v46  ;;  %v845_v53 = vadd.f32 %v839_v38, %v834_v47 }
 0x124   : > { %v835_v48 = vmul.f32 %v829_v35, %v825_v43 }
 0x125   : > { %v853_v55 = vadd.f32 %v849_v40, %v843_v51  ;;  %v854_v56 = vadd.f32 %v850_v41, %v844_v52  ;;  %v855_v57 = vadd.f32 %v851_v49, %v845_v53 }
 0x126   : > { %v846_v54 = vadd.f32 %v840_v39, %v835_v48 }
 0x127   : > { %v857_v59 = vmax.f32 %v853_v55, 0.0  ;;  %v858_v60 = vmax.f32 %v854_v56, 0.0  ;;  %v859_v61 = vmax.f32 %v855_v57, 0.0 }
 0x128   : > { %v856_v58 = vadd.f32 %v852_v50, %v846_v54 }
 0x129   : > { %v861_v63 = vpack.c.bf16 %v858_v60, %v857_v59 }
 0x12a   : > { %v860_v62 = vmax.f32 %v856_v58, 0.0 }
 0x12b   : > { %863 = vst [vmem:[%s1671_s11] sm:$0xff] %v861_v63 }
 0x12c   : > { %v862_v0 = vpack.c.bf16 %v860_v62, %v859_v61 }
 0x12e   : > { %864 = vst [vmem:[%s1671_s11 + $0x8] sm:$0xff] %v862_v0 }
 0x12f PF: > { %871 = sbr.rel (!%p1557_p13) target bundleno = 311 (0x137), region = 162  ;;  %s1249_s15 = sshll.u32 (%p1557_p13), %s1413_s22, 3 }
 0x130   : > { %s877_s14 = scalar_lea.vmem (%p1557_p13), %s1796_s4, %s1249_s15 }
 0x132   : > { %v908_v1 = vld [vmem:[%s1671_s11] sm:$0xff] (%p1557_p13) }
 0x133   : > { %909 = vst [vmem:[%s877_s14] sm:$0xff] (%p1557_p13), %v908_v1 }
 0x135   : > { %v910_v2 = vld [vmem:[%s1671_s11 + $0x8] sm:$0xff] }
 0x136   : > { %911 = vst [vmem:[%s877_s14 + $0x10] sm:$0xff] %v910_v2 }
 0x137 PF: > { %s14_s25 = sadd.s32 1, %s1425_s25   ;;  %s1809_s29 = sld [smem:[#allocation11_spill]] }
 0x138   : > { %p11_p7 = scmp.ge.s32.totalorder %s14_s25, 38   ;;  %s1810_s19 = sld [smem:[#allocation7_spill]] }
 0x139   : > { %s1811_s20 = sld [smem:[#allocation10_spill]]  ;;  %s1814_s15 = smov %s1389_s16 }
 0x13a   : > { %s1812_s5 = sld [smem:[#allocation8_spill]]  ;;  %s1815_s16 = smov %s1549_s13 }
 0x13b   : > { %s1813_s30 = sld [smem:[#allocation9_spill]]  ;;  %s1816_s17 = smov %s1397_s18 }
 0x13c   : > { %s1818_s21 = smov %s1417_s23  ;;  %s1819_s22 = smov %s1421_s24 }
 0x13d   : > { %s1817_s18 = smov %s1809_s29  ;;  %13 = sbr.rel (!%p11_p7) target bundleno = 6 (0x6), region = 251 }
 0x140   : > { %s1820_s23 = smov %s1812_s5 }
 0x141   : > { %s1821_s24 = smov %s1813_s30 }

</bundles_post_ra>
